<compile_context>
chip_gen: v7x
topology: tpu7x:2x2x1
jax: 0.10.0
libtpu: 0.0.40
codegen_flags: <defaults>
</compile_context>

<pallas_src>
import jax
import jax.numpy as jnp
from jax.experimental import pallas as pl
from jax.experimental.pallas import tpu as pltpu

_K = 5  # conv kernel size


def _round_up(x, m):
    return ((x + m - 1) // m) * m


# ----------------------------------------------------------------------------
# Kernel 1: fused conv-as-matmul + bias + ReLU + 2x2 maxpool
#   pooled = relu(max_c(patches_c @ W) + b)   (max over the 4 window corners)
# ----------------------------------------------------------------------------
def _conv_pool_kernel(p0_ref, p1_ref, p2_ref, p3_ref, w_ref, b_ref, o_ref):
    w = w_ref[...]
    y0 = jnp.dot(p0_ref[...], w, preferred_element_type=jnp.float32)
    y1 = jnp.dot(p1_ref[...], w, preferred_element_type=jnp.float32)
    y2 = jnp.dot(p2_ref[...], w, preferred_element_type=jnp.float32)
    y3 = jnp.dot(p3_ref[...], w, preferred_element_type=jnp.float32)
    y = jnp.maximum(jnp.maximum(y0, y1), jnp.maximum(y2, y3))
    y = jnp.maximum(y + b_ref[...], 0.0)          # f32 epilogue (v5e-friendly)
    o_ref[...] = y.astype(o_ref.dtype)


def conv_pool(p0, p1, p2, p3, w, b, *, out_dtype=jnp.bfloat16, tm_cap=256):
    """p*: (M, K) bf16 corner patch matrices, w: (K, N) bf16, b: (1, N) f32."""
    M, K = p0.shape
    K2, N = w.shape
    assert K == K2, (K, K2)
    tm = min(tm_cap, _round_up(M, 8))
    grid = (pl.cdiv(M, tm),)
    p_spec = pl.BlockSpec((tm, K), lambda i: (i, 0))
    w_spec = pl.BlockSpec((K, N), lambda i: (0, 0))   # resident weight tile
    b_spec = pl.BlockSpec((1, N), lambda i: (0, 0))
    return pl.pallas_call(
        _conv_pool_kernel,
        out_shape=jax.ShapeDtypeStruct((M, N), out_dtype),
        grid=grid,
        in_specs=[p_spec, p_spec, p_spec, p_spec, w_spec, b_spec],
        out_specs=pl.BlockSpec((tm, N), lambda i: (i, 0)),
        compiler_params=pltpu.CompilerParams(
            dimension_semantics=("parallel",)),       # v7x: shard M over 2 TCs
    )(p0, p1, p2, p3, w, b)


# ----------------------------------------------------------------------------
# Kernel 2: fused fc1 + ReLU + fc2 + ReLU
# ----------------------------------------------------------------------------
def _mlp_kernel(x_ref, w1_ref, b1_ref, w2_ref, b2_ref, o_ref):
    h = jnp.dot(x_ref[...], w1_ref[...], preferred_element_type=jnp.float32)
    h = jnp.maximum(h + b1_ref[...], 0.0)
    y = jnp.dot(h, w2_ref[...], preferred_element_type=jnp.float32)
    o_ref[...] = jnp.maximum(y + b2_ref[...], 0.0)


def mlp(x, w1, b1, w2, b2, *, tm_cap=256):
    """x: (M, K) bf16, w1: (K, N1) bf16, w2: (N1, N2) f32, biases (1, N) f32."""
    M, K = x.shape
    _, N1 = w1.shape
    _, N2 = w2.shape
    tm = min(tm_cap, _round_up(M, 8))
    grid = (pl.cdiv(M, tm),)
    return pl.pallas_call(
        _mlp_kernel,
        out_shape=jax.ShapeDtypeStruct((M, N2), jnp.float32),
        grid=grid,
        in_specs=[
            pl.BlockSpec((tm, K), lambda i: (i, 0)),
            pl.BlockSpec((K, N1), lambda i: (0, 0)),
            pl.BlockSpec((1, N1), lambda i: (0, 0)),
            pl.BlockSpec((N1, N2), lambda i: (0, 0)),
            pl.BlockSpec((1, N2), lambda i: (0, 0)),
        ],
        out_specs=pl.BlockSpec((tm, N2), lambda i: (i, 0)),
        compiler_params=pltpu.CompilerParams(
            dimension_semantics=("parallel",)),
    )(x, w1, b1, w2, b2)


# ----------------------------------------------------------------------------
# XLA glue: corner-split im2col for a fused conv+pool stage
# ----------------------------------------------------------------------------
def _corner_patches(x, k, dh, dw):
    """x: (B, H, W, C) NHWC.  Patch matrix for the conv outputs landing on
    pool-window corner (dh, dw), i.e. output positions (2*ph+dh, 2*pw+dw).
    Shape (B*POH*POW, k*k*C); feature order (kh, kw, c) matches weight prep."""
    B, H, W, C = x.shape
    OH, OW = H - k + 1, W - k + 1
    POH, POW = OH // 2, OW // 2
    cols = []
    for kh in range(k):
        for kw in range(k):
            h0, w0 = dh + kh, dw + kw
            sl = x[:, h0:h0 + 2 * (POH - 1) + 1:2,
                      w0:w0 + 2 * (POW - 1) + 1:2, :]      # (B, POH, POW, C)
            cols.append(sl)
    p = jnp.stack(cols, axis=3)                            # (B, POH, POW, k*k, C)
    return p.reshape(B * POH * POW, k * k * C)


# ----------------------------------------------------------------------------
# Parameters
# ----------------------------------------------------------------------------
def init_params(key):
    """PyTorch-layout parameters (same layout as nn.Module state_dict)."""
    ks = jax.random.split(key, 8)
    return {
        "conv1_w": jax.random.normal(ks[0], (64, 3, 5, 5), jnp.float32) * 0.05,
        "conv1_b": jax.random.normal(ks[1], (64,), jnp.float32) * 0.05,
        "conv2_w": jax.random.normal(ks[2], (128, 64, 5, 5), jnp.float32) * 0.02,
        "conv2_b": jax.random.normal(ks[3], (128,), jnp.float32) * 0.02,
        "fc1_w": jax.random.normal(ks[4], (120, 128 * 5 * 5), jnp.float32) * 0.01,
        "fc1_b": jax.random.normal(ks[5], (120,), jnp.float32) * 0.01,
        "fc2_w": jax.random.normal(ks[6], (100, 120), jnp.float32) * 0.05,
        "fc2_b": jax.random.normal(ks[7], (100,), jnp.float32) * 0.05,
    }


def preprocess_params(p):
    """One-time conversion of PyTorch-layout params into padded, MXU-friendly
    matmul operands.  Call once OUTSIDE the jitted forward (hoists per-call
    transposes/reshapes out of the hot path).  All padding is zeros."""
    f32, bf16 = jnp.float32, jnp.bfloat16

    # conv1: (64,3,5,5) -> (75,64) matmul layout; pad K 75->128, Cout 64->128.
    w = jnp.transpose(p["conv1_w"], (2, 3, 1, 0)).reshape(5 * 5 * 3, 64)
    conv1_w = jnp.pad(w, ((0, 128 - 75), (0, 128 - 64))).astype(bf16)
    conv1_b = jnp.pad(p["conv1_b"], (0, 128 - 64)).astype(f32).reshape(1, 128)

    # conv2: (128,64,5,5) -> pad Cin 64->128 (conv1's padded channels are
    # exactly zero) -> (3200, 128) bf16.
    w = jnp.transpose(p["conv2_w"], (2, 3, 1, 0))              # (5,5,64,128)
    w = jnp.pad(w, ((0, 0), (0, 0), (0, 128 - 64), (0, 0)))    # (5,5,128,128)
    conv2_w = w.reshape(5 * 5 * 128, 128).astype(bf16)
    conv2_b = p["conv2_b"].astype(f32).reshape(1, 128)

    # fc1: features are flattened (c,h,w) in PyTorch; reorder to the NHWC
    # flatten (h,w,c) used by the kernels, transpose, pad N 120->128.
    w = p["fc1_w"].reshape(120, 128, 5, 5)
    w = jnp.transpose(w, (0, 2, 3, 1)).reshape(120, 5 * 5 * 128)
    fc1_w = jnp.pad(w.T, ((0, 0), (0, 128 - 120))).astype(bf16)      # (3200,128)
    fc1_b = jnp.pad(p["fc1_b"], (0, 128 - 120)).astype(f32).reshape(1, 128)

    # fc2: (100,120) -> (120,100); pad K 120->128, N 100->128.  Kept f32
    # (tiny; its LHS is the f32 fc1 activation inside the fused kernel).
    fc2_w = jnp.pad(p["fc2_w"].T, ((0, 128 - 120), (0, 128 - 100))).astype(f32)
    fc2_b = jnp.pad(p["fc2_b"], (0, 128 - 100)).astype(f32).reshape(1, 128)

    return dict(conv1_w=conv1_w, conv1_b=conv1_b,
                conv2_w=conv2_w, conv2_b=conv2_b,
                fc1_w=fc1_w, fc1_b=fc1_b,
                fc2_w=fc2_w, fc2_b=fc2_b)


# ----------------------------------------------------------------------------
# Net_cifar100_s forward
# ----------------------------------------------------------------------------
def net_cifar100_s_forward(pp, x_nchw):
    """x_nchw: (B, 3, 32, 32) float32 -> (B, 100) float32 (ReLU'd, as in spec)."""
    B, _, H, W = x_nchw.shape
    x = jnp.transpose(x_nchw, (0, 2, 3, 1)).astype(jnp.bfloat16)      # NHWC bf16

    # --- conv1 + ReLU + 2x2 pool (one fused kernel) ---
    POH1, POW1 = (H - _K + 1) // 2, (W - _K + 1) // 2
    p = [_corner_patches(x, _K, dh, dw) for dh in (0, 1) for dw in (0, 1)]
    kpad = pp["conv1_w"].shape[0] - p[0].shape[1]                     # 75 -> 128
    p = [jnp.pad(pi, ((0, 0), (0, kpad))) for pi in p]
    h = conv_pool(*p, pp["conv1_w"], pp["conv1_b"])                   # (B*14*14, 128) bf16
    h = h.reshape(B, POH1, POW1, 128)

    # --- conv2 + ReLU + 2x2 pool (one fused kernel) ---
    POH2, POW2 = (POH1 - _K + 1) // 2, (POW1 - _K + 1) // 2
    q = [_corner_patches(h, _K, dh, dw) for dh in (0, 1) for dw in (0, 1)]
    h = conv_pool(*q, pp["conv2_w"], pp["conv2_b"])                   # (B*5*5, 128) bf16

    # flatten in NHWC order; fc1 weights were pre-permuted to match PyTorch's
    # NCHW view(-1, 128*5*5) semantics.
    h = h.reshape(B, POH2 * POW2 * 128)

    # --- fc1 + ReLU + fc2 + ReLU (one fused kernel); N padded to 128 ---
    y = mlp(h, pp["fc1_w"], pp["fc1_b"], pp["fc2_w"], pp["fc2_b"])    # (B, 128) f32
    return y[:, :100]


if __name__ == "__main__":
    key = jax.random.PRNGKey(0)
    pkey, xkey = jax.random.split(key)
    params = init_params(pkey)
    pp = preprocess_params(params)          # one-time weight prep, outside jit
    # CIFAR input: batch=2, 3 channels, 32x32 (required for the 128*5*5 flatten)
    x = jax.random.normal(xkey, (2, 3, 32, 32), jnp.float32)

    fwd = jax.jit(net_cifar100_s_forward)
    out = jax.block_until_ready(fwd(pp, x))

    assert out.shape == (2, 100), out.shape
    assert out.dtype == jnp.float32, out.dtype
    assert bool(jnp.all(jnp.isfinite(out))), "non-finite output"
    print("KERNEL_OK")
</pallas_src>

<mosaic_0001>
module attributes {stable_mosaic.version = 11 : i64} {
  func.func @_conv_pool_kernel(%arg0: i32, %arg1: memref<256x128xbf16, #tpu.memory_space<vmem>>, %arg2: memref<256x128xbf16, #tpu.memory_space<vmem>>, %arg3: memref<256x128xbf16, #tpu.memory_space<vmem>>, %arg4: memref<256x128xbf16, #tpu.memory_space<vmem>>, %arg5: memref<128x128xbf16, #tpu.memory_space<vmem>>, %arg6: memref<1x128xf32, #tpu.memory_space<vmem>>, %arg7: memref<256x128xbf16, #tpu.memory_space<vmem>>) attributes {dimension_semantics = [#tpu.dimension_semantics<parallel>], iteration_bounds = array<i64: 2>, scalar_prefetch = 0 : i64, scratch_operands = 0 : i64, tpu.core_type = #tpu.core_type<tc>, window_params = [{transform_indices = @transform_0, window_bounds = array<i64: 256, 128>}, {transform_indices = @transform_1, window_bounds = array<i64: 256, 128>}, {transform_indices = @transform_2, window_bounds = array<i64: 256, 128>}, {transform_indices = @transform_3, window_bounds = array<i64: 256, 128>}, {pipeline_mode = #tpu.pipeline_mode<synchronous>, transform_indices = @transform_4, window_bounds = array<i64: 128, 128>}, {pipeline_mode = #tpu.pipeline_mode<synchronous>, transform_indices = @transform_5, window_bounds = array<i64: 1, 128>}, {transform_indices = @transform_6, window_bounds = array<i64: 256, 128>}]} {
    %c0 = arith.constant 0 : index
    %c0_0 = arith.constant 0 : index
    %0 = vector.load %arg5[%c0, %c0_0] : memref<128x128xbf16, #tpu.memory_space<vmem>>, vector<128x128xbf16>
    %c0_1 = arith.constant 0 : index
    %c0_2 = arith.constant 0 : index
    %1 = vector.load %arg1[%c0_1, %c0_2] : memref<256x128xbf16, #tpu.memory_space<vmem>>, vector<256x128xbf16>
    %cst = arith.constant dense<0.000000e+00> : vector<256x128xf32>
    %2 = tpu.matmul %1, %0, %cst {dimension_numbers = #tpu.dot_dimension_numbers<[1], [0], [0], [1], [0, 0, 1, 1], [], []>} : vector<256x128xbf16>, vector<128x128xbf16>, vector<256x128xf32> -> vector<256x128xf32>
    %c0_3 = arith.constant 0 : index
    %c0_4 = arith.constant 0 : index
    %3 = vector.load %arg2[%c0_3, %c0_4] : memref<256x128xbf16, #tpu.memory_space<vmem>>, vector<256x128xbf16>
    %cst_5 = arith.constant dense<0.000000e+00> : vector<256x128xf32>
    %4 = tpu.matmul %3, %0, %cst_5 {dimension_numbers = #tpu.dot_dimension_numbers<[1], [0], [0], [1], [0, 0, 1, 1], [], []>} : vector<256x128xbf16>, vector<128x128xbf16>, vector<256x128xf32> -> vector<256x128xf32>
    %c0_6 = arith.constant 0 : index
    %c0_7 = arith.constant 0 : index
    %5 = vector.load %arg3[%c0_6, %c0_7] : memref<256x128xbf16, #tpu.memory_space<vmem>>, vector<256x128xbf16>
    %cst_8 = arith.constant dense<0.000000e+00> : vector<256x128xf32>
    %6 = tpu.matmul %5, %0, %cst_8 {dimension_numbers = #tpu.dot_dimension_numbers<[1], [0], [0], [1], [0, 0, 1, 1], [], []>} : vector<256x128xbf16>, vector<128x128xbf16>, vector<256x128xf32> -> vector<256x128xf32>
    %c0_9 = arith.constant 0 : index
    %c0_10 = arith.constant 0 : index
    %7 = vector.load %arg4[%c0_9, %c0_10] : memref<256x128xbf16, #tpu.memory_space<vmem>>, vector<256x128xbf16>
    %cst_11 = arith.constant dense<0.000000e+00> : vector<256x128xf32>
    %8 = tpu.matmul %7, %0, %cst_11 {dimension_numbers = #tpu.dot_dimension_numbers<[1], [0], [0], [1], [0, 0, 1, 1], [], []>} : vector<256x128xbf16>, vector<128x128xbf16>, vector<256x128xf32> -> vector<256x128xf32>
    %9 = arith.maximumf %2, %4 : vector<256x128xf32>
    %10 = arith.maximumf %6, %8 : vector<256x128xf32>
    %11 = arith.maximumf %9, %10 : vector<256x128xf32>
    %c0_12 = arith.constant 0 : index
    %c0_13 = arith.constant 0 : index
    %12 = vector.load %arg6[%c0_12, %c0_13] : memref<1x128xf32, #tpu.memory_space<vmem>>, vector<1x128xf32>
    %13 = vector.broadcast %12 : vector<1x128xf32> to vector<256x128xf32>
    %14 = arith.addf %11, %13 : vector<256x128xf32>
    %cst_14 = arith.constant 0.000000e+00 : f32
    %15 = vector.broadcast %cst_14 : f32 to vector<256x128xf32>
    %16 = arith.maximumf %14, %15 : vector<256x128xf32>
    %17 = arith.truncf %16 : vector<256x128xf32> to vector<256x128xbf16>
    %c0_15 = arith.constant 0 : index
    %c0_16 = arith.constant 0 : index
    %18 = vector.load %arg7[%c0_15, %c0_16] : memref<256x128xbf16, #tpu.memory_space<vmem>>, vector<256x128xbf16>
    tpu.vector_store %arg7[%c0_15, %c0_16], %17 {strides = array<i32>} : memref<256x128xbf16, #tpu.memory_space<vmem>>, vector<256x128xbf16>,
    return
  }
  func.func @transform_0(%arg0: i32) -> (i32, i32) {
    %c0_i32 = arith.constant 0 : i32
    %c0_i32_0 = arith.constant 0 : i32
    return %arg0, %c0_i32 : i32, i32
  }
  func.func @transform_1(%arg0: i32) -> (i32, i32) {
    %c0_i32 = arith.constant 0 : i32
    %c0_i32_0 = arith.constant 0 : i32
    return %arg0, %c0_i32 : i32, i32
  }
  func.func @transform_2(%arg0: i32) -> (i32, i32) {
    %c0_i32 = arith.constant 0 : i32
    %c0_i32_0 = arith.constant 0 : i32
    return %arg0, %c0_i32 : i32, i32
  }
  func.func @transform_3(%arg0: i32) -> (i32, i32) {
    %c0_i32 = arith.constant 0 : i32
    %c0_i32_0 = arith.constant 0 : i32
    return %arg0, %c0_i32 : i32, i32
  }
  func.func @transform_4(%arg0: i32) -> (i32, i32) {
    %c0_i32 = arith.constant 0 : i32
    %c0_i32_0 = arith.constant 0 : i32
    %c0_i32_1 = arith.constant 0 : i32
    return %c0_i32, %c0_i32_0 : i32, i32
  }
  func.func @transform_5(%arg0: i32) -> (i32, i32) {
    %c0_i32 = arith.constant 0 : i32
    %c0_i32_0 = arith.constant 0 : i32
    %c0_i32_1 = arith.constant 0 : i32
    return %c0_i32, %c0_i32_0 : i32, i32
  }
  func.func @transform_6(%arg0: i32) -> (i32, i32) {
    %c0_i32 = arith.constant 0 : i32
    %c0_i32_0 = arith.constant 0 : i32
    return %arg0, %c0_i32 : i32, i32
  }
}

module attributes {stable_mosaic.version = 11 : i64} {
  func.func @_conv_pool_kernel(%arg0: i32, %arg1: memref<56x3200xbf16, #tpu.memory_space<vmem>>, %arg2: memref<56x3200xbf16, #tpu.memory_space<vmem>>, %arg3: memref<56x3200xbf16, #tpu.memory_space<vmem>>, %arg4: memref<56x3200xbf16, #tpu.memory_space<vmem>>, %arg5: memref<3200x128xbf16, #tpu.memory_space<vmem>>, %arg6: memref<1x128xf32, #tpu.memory_space<vmem>>, %arg7: memref<56x128xbf16, #tpu.memory_space<vmem>>) attributes {dimension_semantics = [#tpu.dimension_semantics<parallel>], iteration_bounds = array<i64: 1>, scalar_prefetch = 0 : i64, scratch_operands = 0 : i64, tpu.core_type = #tpu.core_type<tc>, window_params = [{transform_indices = @transform_0, window_bounds = array<i64: 56, 3200>}, {transform_indices = @transform_1, window_bounds = array<i64: 56, 3200>}, {transform_indices = @transform_2, window_bounds = array<i64: 56, 3200>}, {transform_indices = @transform_3, window_bounds = array<i64: 56, 3200>}, {pipeline_mode = #tpu.pipeline_mode<synchronous>, transform_indices = @transform_4, window_bounds = array<i64: 3200, 128>}, {pipeline_mode = #tpu.pipeline_mode<synchronous>, transform_indices = @transform_5, window_bounds = array<i64: 1, 128>}, {transform_indices = @transform_6, window_bounds = array<i64: 56, 128>}]} {
    %c0 = arith.constant 0 : index
    %c0_0 = arith.constant 0 : index
    %0 = vector.load %arg5[%c0, %c0_0] : memref<3200x128xbf16, #tpu.memory_space<vmem>>, vector<3200x128xbf16>
    %c0_1 = arith.constant 0 : index
    %c0_2 = arith.constant 0 : index
    %1 = vector.load %arg1[%c0_1, %c0_2] : memref<56x3200xbf16, #tpu.memory_space<vmem>>, vector<56x3200xbf16>
    %cst = arith.constant dense<0.000000e+00> : vector<56x128xf32>
    %2 = tpu.matmul %1, %0, %cst {dimension_numbers = #tpu.dot_dimension_numbers<[1], [0], [0], [1], [0, 0, 1, 1], [], []>} : vector<56x3200xbf16>, vector<3200x128xbf16>, vector<56x128xf32> -> vector<56x128xf32>
    %c0_3 = arith.constant 0 : index
    %c0_4 = arith.constant 0 : index
    %3 = vector.load %arg2[%c0_3, %c0_4] : memref<56x3200xbf16, #tpu.memory_space<vmem>>, vector<56x3200xbf16>
    %cst_5 = arith.constant dense<0.000000e+00> : vector<56x128xf32>
    %4 = tpu.matmul %3, %0, %cst_5 {dimension_numbers = #tpu.dot_dimension_numbers<[1], [0], [0], [1], [0, 0, 1, 1], [], []>} : vector<56x3200xbf16>, vector<3200x128xbf16>, vector<56x128xf32> -> vector<56x128xf32>
    %c0_6 = arith.constant 0 : index
    %c0_7 = arith.constant 0 : index
    %5 = vector.load %arg3[%c0_6, %c0_7] : memref<56x3200xbf16, #tpu.memory_space<vmem>>, vector<56x3200xbf16>
    %cst_8 = arith.constant dense<0.000000e+00> : vector<56x128xf32>
    %6 = tpu.matmul %5, %0, %cst_8 {dimension_numbers = #tpu.dot_dimension_numbers<[1], [0], [0], [1], [0, 0, 1, 1], [], []>} : vector<56x3200xbf16>, vector<3200x128xbf16>, vector<56x128xf32> -> vector<56x128xf32>
    %c0_9 = arith.constant 0 : index
    %c0_10 = arith.constant 0 : index
    %7 = vector.load %arg4[%c0_9, %c0_10] : memref<56x3200xbf16, #tpu.memory_space<vmem>>, vector<56x3200xbf16>
    %cst_11 = arith.constant dense<0.000000e+00> : vector<56x128xf32>
    %8 = tpu.matmul %7, %0, %cst_11 {dimension_numbers = #tpu.dot_dimension_numbers<[1], [0], [0], [1], [0, 0, 1, 1], [], []>} : vector<56x3200xbf16>, vector<3200x128xbf16>, vector<56x128xf32> -> vector<56x128xf32>
    %9 = arith.maximumf %2, %4 : vector<56x128xf32>
    %10 = arith.maximumf %6, %8 : vector<56x128xf32>
    %11 = arith.maximumf %9, %10 : vector<56x128xf32>
    %c0_12 = arith.constant 0 : index
    %c0_13 = arith.constant 0 : index
    %12 = vector.load %arg6[%c0_12, %c0_13] : memref<1x128xf32, #tpu.memory_space<vmem>>, vector<1x128xf32>
    %13 = vector.broadcast %12 : vector<1x128xf32> to vector<56x128xf32>
    %14 = arith.addf %11, %13 : vector<56x128xf32>
    %cst_14 = arith.constant 0.000000e+00 : f32
    %15 = vector.broadcast %cst_14 : f32 to vector<56x128xf32>
    %16 = arith.maximumf %14, %15 : vector<56x128xf32>
    %17 = arith.truncf %16 : vector<56x128xf32> to vector<56x128xbf16>
    %c0_15 = arith.constant 0 : index
    %c0_16 = arith.constant 0 : index
    %18 = vector.load %arg7[%c0_15, %c0_16] : memref<56x128xbf16, #tpu.memory_space<vmem>>, vector<56x128xbf16>
    tpu.vector_store %arg7[%c0_15, %c0_16], %17 {strides = array<i32>} : memref<56x128xbf16, #tpu.memory_space<vmem>>, vector<56x128xbf16>,
    return
  }
  func.func @transform_0(%arg0: i32) -> (i32, i32) {
    %c0_i32 = arith.constant 0 : i32
    %c0_i32_0 = arith.constant 0 : i32
    return %arg0, %c0_i32 : i32, i32
  }
  func.func @transform_1(%arg0: i32) -> (i32, i32) {
    %c0_i32 = arith.constant 0 : i32
    %c0_i32_0 = arith.constant 0 : i32
    return %arg0, %c0_i32 : i32, i32
  }
  func.func @transform_2(%arg0: i32) -> (i32, i32) {
    %c0_i32 = arith.constant 0 : i32
    %c0_i32_0 = arith.constant 0 : i32
    return %arg0, %c0_i32 : i32, i32
  }
  func.func @transform_3(%arg0: i32) -> (i32, i32) {
    %c0_i32 = arith.constant 0 : i32
    %c0_i32_0 = arith.constant 0 : i32
    return %arg0, %c0_i32 : i32, i32
  }
  func.func @transform_4(%arg0: i32) -> (i32, i32) {
    %c0_i32 = arith.constant 0 : i32
    %c0_i32_0 = arith.constant 0 : i32
    %c0_i32_1 = arith.constant 0 : i32
    return %c0_i32, %c0_i32_0 : i32, i32
  }
  func.func @transform_5(%arg0: i32) -> (i32, i32) {
    %c0_i32 = arith.constant 0 : i32
    %c0_i32_0 = arith.constant 0 : i32
    %c0_i32_1 = arith.constant 0 : i32
    return %c0_i32, %c0_i32_0 : i32, i32
  }
  func.func @transform_6(%arg0: i32) -> (i32, i32) {
    %c0_i32 = arith.constant 0 : i32
    %c0_i32_0 = arith.constant 0 : i32
    return %arg0, %c0_i32 : i32, i32
  }
}

module attributes {stable_mosaic.version = 11 : i64} {
  func.func @_mlp_kernel(%arg0: i32, %arg1: memref<8x3200xbf16, #tpu.memory_space<vmem>>, %arg2: memref<3200x128xbf16, #tpu.memory_space<vmem>>, %arg3: memref<1x128xf32, #tpu.memory_space<vmem>>, %arg4: memref<128x128xf32, #tpu.memory_space<vmem>>, %arg5: memref<1x128xf32, #tpu.memory_space<vmem>>, %arg6: memref<8x128xf32, #tpu.memory_space<vmem>>) attributes {dimension_semantics = [#tpu.dimension_semantics<parallel>], iteration_bounds = array<i64: 1>, scalar_prefetch = 0 : i64, scratch_operands = 0 : i64, tpu.core_type = #tpu.core_type<tc>, window_params = [{transform_indices = @transform_0, window_bounds = array<i64: 8, 3200>}, {pipeline_mode = #tpu.pipeline_mode<synchronous>, transform_indices = @transform_1, window_bounds = array<i64: 3200, 128>}, {pipeline_mode = #tpu.pipeline_mode<synchronous>, transform_indices = @transform_2, window_bounds = array<i64: 1, 128>}, {pipeline_mode = #tpu.pipeline_mode<synchronous>, transform_indices = @transform_3, window_bounds = array<i64: 128, 128>}, {pipeline_mode = #tpu.pipeline_mode<synchronous>, transform_indices = @transform_4, window_bounds = array<i64: 1, 128>}, {transform_indices = @transform_5, window_bounds = array<i64: 8, 128>}]} {
    %c0 = arith.constant 0 : index
    %c0_0 = arith.constant 0 : index
    %0 = vector.load %arg1[%c0, %c0_0] : memref<8x3200xbf16, #tpu.memory_space<vmem>>, vector<8x3200xbf16>
    %c0_1 = arith.constant 0 : index
    %c0_2 = arith.constant 0 : index
    %1 = vector.load %arg2[%c0_1, %c0_2] : memref<3200x128xbf16, #tpu.memory_space<vmem>>, vector<3200x128xbf16>
    %cst = arith.constant dense<0.000000e+00> : vector<8x128xf32>
    %2 = tpu.matmul %0, %1, %cst {dimension_numbers = #tpu.dot_dimension_numbers<[1], [0], [0], [1], [0, 0, 1, 1], [], []>} : vector<8x3200xbf16>, vector<3200x128xbf16>, vector<8x128xf32> -> vector<8x128xf32>
    %c0_3 = arith.constant 0 : index
    %c0_4 = arith.constant 0 : index
    %3 = vector.load %arg3[%c0_3, %c0_4] : memref<1x128xf32, #tpu.memory_space<vmem>>, vector<1x128xf32>
    %4 = vector.broadcast %3 : vector<1x128xf32> to vector<8x128xf32>
    %5 = arith.addf %2, %4 : vector<8x128xf32>
    %cst_5 = arith.constant 0.000000e+00 : f32
    %6 = vector.broadcast %cst_5 : f32 to vector<8x128xf32>
    %7 = arith.maximumf %5, %6 : vector<8x128xf32>
    %c0_6 = arith.constant 0 : index
    %c0_7 = arith.constant 0 : index
    %8 = vector.load %arg4[%c0_6, %c0_7] : memref<128x128xf32, #tpu.memory_space<vmem>>, vector<128x128xf32>
    %cst_8 = arith.constant dense<0.000000e+00> : vector<8x128xf32>
    %9 = tpu.matmul %7, %8, %cst_8 {dimension_numbers = #tpu.dot_dimension_numbers<[1], [0], [0], [1], [0, 0, 1, 1], [], []>} : vector<8x128xf32>, vector<128x128xf32>, vector<8x128xf32> -> vector<8x128xf32>
    %c0_9 = arith.constant 0 : index
    %c0_10 = arith.constant 0 : index
    %10 = vector.load %arg5[%c0_9, %c0_10] : memref<1x128xf32, #tpu.memory_space<vmem>>, vector<1x128xf32>
    %11 = vector.broadcast %10 : vector<1x128xf32> to vector<8x128xf32>
    %12 = arith.addf %9, %11 : vector<8x128xf32>
    %cst_11 = arith.constant 0.000000e+00 : f32
    %13 = vector.broadcast %cst_11 : f32 to vector<8x128xf32>
    %14 = arith.maximumf %12, %13 : vector<8x128xf32>
    %c0_12 = arith.constant 0 : index
    %c0_13 = arith.constant 0 : index
    %15 = vector.load %arg6[%c0_12, %c0_13] : memref<8x128xf32, #tpu.memory_space<vmem>>, vector<8x128xf32>
    tpu.vector_store %arg6[%c0_12, %c0_13], %14 {strides = array<i32>} : memref<8x128xf32, #tpu.memory_space<vmem>>, vector<8x128xf32>,
    return
  }
  func.func @transform_0(%arg0: i32) -> (i32, i32) {
    %c0_i32 = arith.constant 0 : i32
    %c0_i32_0 = arith.constant 0 : i32
    return %arg0, %c0_i32 : i32, i32
  }
  func.func @transform_1(%arg0: i32) -> (i32, i32) {
    %c0_i32 = arith.constant 0 : i32
    %c0_i32_0 = arith.constant 0 : i32
    %c0_i32_1 = arith.constant 0 : i32
    return %c0_i32, %c0_i32_0 : i32, i32
  }
  func.func @transform_2(%arg0: i32) -> (i32, i32) {
    %c0_i32 = arith.constant 0 : i32
    %c0_i32_0 = arith.constant 0 : i32
    %c0_i32_1 = arith.constant 0 : i32
    return %c0_i32, %c0_i32_0 : i32, i32
  }
  func.func @transform_3(%arg0: i32) -> (i32, i32) {
    %c0_i32 = arith.constant 0 : i32
    %c0_i32_0 = arith.constant 0 : i32
    %c0_i32_1 = arith.constant 0 : i32
    return %c0_i32, %c0_i32_0 : i32, i32
  }
  func.func @transform_4(%arg0: i32) -> (i32, i32) {
    %c0_i32 = arith.constant 0 : i32
    %c0_i32_0 = arith.constant 0 : i32
    %c0_i32_1 = arith.constant 0 : i32
    return %c0_i32, %c0_i32_0 : i32, i32
  }
  func.func @transform_5(%arg0: i32) -> (i32, i32) {
    %c0_i32 = arith.constant 0 : i32
    %c0_i32_0 = arith.constant 0 : i32
    return %arg0, %c0_i32 : i32, i32
  }
}

</mosaic_0001>

<bundles_post_ra>
// kernel: net_cifar100_s_forward.3
= control target key start
LH: loop header
LB: loop body
LE: loop exit
PB: predicated region body
PF: predicated region fallthrough
CT: control target
= control target key end

     0   :  { %s3157_s21 = smov 0   ;;  %s3159_s22 = smov 0   ;;  %s3854_s0 = inlined_call_operand.vmem [shape: bf16[392,128], index: 0, kind: input, shape index: {}]   ;;  %s3855_s1 = inlined_call_operand.vmem [shape: bf16[392,128], index: 1, kind: input, shape index: {}]   ;;  %s3856_s2 = inlined_call_operand.vmem [shape: bf16[392,128], index: 2, kind: input, shape index: {}]   ;;  %s3857_s3 = inlined_call_operand.vmem [shape: bf16[392,128], index: 3, kind: input, shape index: {}]   ;;  %s3858_s4 = inlined_call_operand.vmem [shape: bf16[128,128], index: 4, kind: input, shape index: {}]   ;;  %s3859_s5 = inlined_call_operand.vmem [shape: f32[1,128], index: 5, kind: input, shape index: {}]   ;;  %s3860_s6 = inlined_call_operand.vmem [shape: bf16[392,128], index: 6, kind: output, shape index: {}]  }
   0x1   :  { %s3161_s23 = smov 0  }
   0x2 LB: > { %s3170_s24 = sadd.s32 4294967295, %s3088_s23   ;;  %s3172_s25 = sadd.s32 1, %s3088_s23   ;;  %s3088_s23 = sphi %s3161_s23, %s3950_s23   ;;  %s3084_s22 = sphi %s3159_s22, %s3949_s22   ;;  %s3080_s21 = sphi %s3157_s21, %s3948_s21  }
   0x3   : > { %s166_s26 = ssub.s32 %s3088_s23, %s3172_s25  ;;  %s169_s27 = sadd.s32 1, %s3084_s22 }
   0x4   : > { %p167_p0 = scmp.eq.s32.totalorder %s166_s26, 0  ;;  %p179_p1 = scmp.ne.s32.totalorder %s3084_s22, %s3080_s21 }
   0x5   : > { %p180_p2 = scmp.eq.s32.totalorder %s3170_s24, 1  ;;  %p2324_p3 = scmp.ge.s32.totalorder %s3088_s23, 1 }
   0x6   : > { %s3180_s28 = scalar_select %p167_p0, %s3084_s22, %s169_s27  }
   0x7   : > { %p3182_p4 = por %p180_p2, %p179_p1  ;;  %p278_p5 = scmp.lt.s32.totalorder %s3088_s23, 3 }
   0x9   : > { %p279_p6 = pnand %p2324_p3, %p278_p5 }
   0xb   : > { %282 = sbr.rel (%p279_p6) target bundleno = 467 (0x1d3), region = 44 }
  0x12   : > { %v2962_v0 = vld [vmem:[%s3858_s4] sm:$0xff]   ;;  %s3190_s8 = sshll.u32 %s3170_s24, 5  ;;  %v3195_v1 = vld [vmem:[%s3858_s4 + $0x8] sm:$0xff]   ;;  %v3204_v2 = vld [vmem:[%s3858_s4 + $0x10] sm:$0xff]   ;;  %s2488_s7 = sshll.u32 (%p3182_p4), %s3170_s24, 7 }
  0x13   : > { %p343_p7 = scmp.lt.s32.totalorder %s3190_s8, 48  ;;  %2682 = vmatprep.subr.bf16.mxu0 %v2962_v0  ;;  %2730 = vmatprep.subr.bf16.mxu1 %v2962_v0  ;;  %v3225_v3 = vld [vmem:[%s3858_s4 + $0x18] sm:$0xff]   ;;  %v3238_v6 = vld [vmem:[%s3858_s4 + $0x20] sm:$0xff]   ;;  %v3247_v7 = vld [vmem:[%s3858_s4 + $0x28] sm:$0xff]   ;;  %s1955_s30 = ssub.s32 (%p3182_p4), 49, %s3190_s8 }
  0x14   : > { %2683 = vmatpush3.bf16.msra.mxu0 %v2962_v0  ;;  %2731 = vmatpush3.bf16.msra.mxu1 %v2962_v0  ;;  %v3256_v8 = vld [vmem:[%s3858_s4 + $0x30] sm:$0xff]   ;;  %v3265_v9 = vld [vmem:[%s3858_s4 + $0x38] sm:$0xff]   ;;  %p1956_p8 = scmp.lt.s32.totalorder (%p3182_p4), %s1955_s30, 32 }
  0x15   : > { %s344_s11 = scalar_select %p343_p7, %s3190_s8, 48  ;;  %2684 = vmatprep.subr.bf16.mxu0 %v3195_v1  ;;  %2732 = vmatprep.subr.bf16.mxu1 %v3195_v1 }
  0x17   : > { %s3206_s14 = sshll.u32 %s344_s11, 2  ;;  %s3726_s11 = scalar_lea.vmem (%p3182_p4), %s3860_s6, %s2488_s7  }
  0x18   : > { %s3212_s17 = scalar_lea.vmem %s3854_s0, %s3206_s14  ;;  %s3218_s20 = scalar_lea.vmem %s3855_s1, %s3206_s14  ;;  %2685 = vmatpush3.bf16.msra.mxu0 %v3195_v1  ;;  %2733 = vmatpush3.bf16.msra.mxu1 %v3195_v1 }
  0x19   : > { %2686 = vmatprep.subr.bf16.mxu0 %v3204_v2  ;;  %2734 = vmatprep.subr.bf16.mxu1 %v3204_v2  ;;  %v2970_v4 = vld [vmem:[%s3212_s17] sm:$0xff]   ;;  %v2972_v10 = vld [vmem:[%s3212_s17 + $0x8] sm:$0xff]   ;;  %v2974_v12 = vld [vmem:[%s3212_s17 + $0x10] sm:$0xff]   ;;  %s3289_s18 = scalar_lea.vmem %s3856_s2, %s3206_s14  ;;  %s3297_s26 = scalar_lea.vmem %s3857_s3, %s3206_s14 }
  0x1a   : > { %v2971_v5 = vld [vmem:[%s3218_s20] sm:$0xff]   ;;  %2698 = vmatprep.mubr.bf16.mxu0 %v2970_v4  ;;  %v2973_v11 = vld [vmem:[%s3218_s20 + $0x8] sm:$0xff]   ;;  %v2975_v13 = vld [vmem:[%s3218_s20 + $0x10] sm:$0xff]  }
  0x1b   : > { %2746 = vmatprep.mubr.bf16.mxu1 %v2971_v5  ;;  %v2976_v14 = vld [vmem:[%s3212_s17 + $0x18] sm:$0xff]   ;;  %v2978_v16 = vld [vmem:[%s3212_s17 + $0x20] sm:$0xff]   ;;  %v2980_v18 = vld [vmem:[%s3212_s17 + $0x28] sm:$0xff]  }
  0x1c   : > { %2687 = vmatpush3.bf16.msra.mxu0 %v3204_v2  ;;  %2735 = vmatpush3.bf16.msra.mxu1 %v3204_v2  ;;  %v2977_v15 = vld [vmem:[%s3218_s20 + $0x18] sm:$0xff]   ;;  %v2979_v17 = vld [vmem:[%s3218_s20 + $0x20] sm:$0xff]   ;;  %v2981_v19 = vld [vmem:[%s3218_s20 + $0x28] sm:$0xff]  }
  0x1d   : > { %2688 = vmatprep.subr.bf16.mxu0 %v3225_v3  ;;  %2736 = vmatprep.subr.bf16.mxu1 %v3225_v3  ;;  %v2982_v20 = vld [vmem:[%s3212_s17 + $0x30] sm:$0xff]   ;;  %v2984_v22 = vld [vmem:[%s3212_s17 + $0x38] sm:$0xff]   ;;  %v2986_v24 = vld [vmem:[%s3212_s17 + $0x40] sm:$0xff]  }
  0x1e   : > { %v2983_v21 = vld [vmem:[%s3218_s20 + $0x30] sm:$0xff]   ;;  %v2985_v23 = vld [vmem:[%s3218_s20 + $0x38] sm:$0xff]   ;;  %v2987_v25 = vld [vmem:[%s3218_s20 + $0x40] sm:$0xff]  }
  0x1f   : > { %v2988_v26 = vld [vmem:[%s3212_s17 + $0x48] sm:$0xff]   ;;  %v2990_v28 = vld [vmem:[%s3212_s17 + $0x50] sm:$0xff]   ;;  %v2992_v30 = vld [vmem:[%s3212_s17 + $0x58] sm:$0xff]  }
  0x20   : > { %2689 = vmatpush3.bf16.msra.mxu0 %v3225_v3  ;;  %2737 = vmatpush3.bf16.msra.mxu1 %v3225_v3  ;;  %v2989_v27 = vld [vmem:[%s3218_s20 + $0x48] sm:$0xff]   ;;  %v2991_v29 = vld [vmem:[%s3218_s20 + $0x50] sm:$0xff]   ;;  %v2993_v31 = vld [vmem:[%s3218_s20 + $0x58] sm:$0xff]  }
  0x21   : > { %2690 = vmatprep.subr.bf16.mxu0 %v3238_v6  ;;  %2738 = vmatprep.subr.bf16.mxu1 %v3238_v6  ;;  %v2994_v32 = vld [vmem:[%s3212_s17 + $0x60] sm:$0xff]   ;;  %v2996_v34 = vld [vmem:[%s3212_s17 + $0x68] sm:$0xff]   ;;  %v2998_v36 = vld [vmem:[%s3212_s17 + $0x70] sm:$0xff]  }
  0x22   : > { %v2995_v33 = vld [vmem:[%s3218_s20 + $0x60] sm:$0xff]   ;;  %v2997_v35 = vld [vmem:[%s3218_s20 + $0x68] sm:$0xff]   ;;  %v2999_v37 = vld [vmem:[%s3218_s20 + $0x70] sm:$0xff]  }
  0x23   : > { %v3000_v38 = vld [vmem:[%s3212_s17 + $0x78] sm:$0xff]   ;;  %v3002_v40 = vld [vmem:[%s3289_s18] sm:$0xff]   ;;  %v3004_v42 = vld [vmem:[%s3289_s18 + $0x8] sm:$0xff]  }
  0x24   : > { %2691 = vmatpush3.bf16.msra.mxu0 %v3238_v6  ;;  %2739 = vmatpush3.bf16.msra.mxu1 %v3238_v6  ;;  %v3001_v39 = vld [vmem:[%s3218_s20 + $0x78] sm:$0xff]   ;;  %v3003_v41 = vld [vmem:[%s3297_s26] sm:$0xff]   ;;  %v3005_v43 = vld [vmem:[%s3297_s26 + $0x8] sm:$0xff]   ;;  %s335_s20 = sand.u32 1, %s3080_s21  }
  0x25   : > { %2692 = vmatprep.subr.bf16.mxu0 %v3247_v7  ;;  %2740 = vmatprep.subr.bf16.mxu1 %v3247_v7  ;;  %v3006_v44 = vld [vmem:[%s3289_s18 + $0x10] sm:$0xff]   ;;  %v3008_v46 = vld [vmem:[%s3289_s18 + $0x18] sm:$0xff]   ;;  %v3010_v48 = vld [vmem:[%s3289_s18 + $0x20] sm:$0xff]   ;;  %s2325_s27 = sshll.u32 %s335_s20, 7 }
  0x26   : > { %v3007_v45 = vld [vmem:[%s3297_s26 + $0x10] sm:$0xff]   ;;  %v3009_v47 = vld [vmem:[%s3297_s26 + $0x18] sm:$0xff]   ;;  %v3011_v49 = vld [vmem:[%s3297_s26 + $0x20] sm:$0xff]   ;;  %s3595_s21 = scalar_lea.vmem [#allocation2], %s2325_s27  }
  0x27   : > { %v3012_v50 = vld [vmem:[%s3289_s18 + $0x28] sm:$0xff]   ;;  %v3014_v52 = vld [vmem:[%s3289_s18 + $0x30] sm:$0xff]   ;;  %v3016_v54 = vld [vmem:[%s3289_s18 + $0x38] sm:$0xff]  }
  0x28   : > { %2693 = vmatpush3.bf16.msra.mxu0 %v3247_v7  ;;  %2741 = vmatpush3.bf16.msra.mxu1 %v3247_v7  ;;  %v3013_v51 = vld [vmem:[%s3297_s26 + $0x28] sm:$0xff]   ;;  %v3015_v53 = vld [vmem:[%s3297_s26 + $0x30] sm:$0xff]   ;;  %v3017_v55 = vld [vmem:[%s3297_s26 + $0x38] sm:$0xff]  }
  0x29   : > { %2694 = vmatprep.subr.bf16.mxu0 %v3256_v8  ;;  %2742 = vmatprep.subr.bf16.mxu1 %v3256_v8  ;;  %v3018_v56 = vld [vmem:[%s3289_s18 + $0x40] sm:$0xff]   ;;  %v3020_v58 = vld [vmem:[%s3289_s18 + $0x48] sm:$0xff]   ;;  %v3022_v60 = vld [vmem:[%s3289_s18 + $0x50] sm:$0xff]  }
  0x2a   : > { %v3019_v57 = vld [vmem:[%s3297_s26 + $0x40] sm:$0xff]   ;;  %v3021_v59 = vld [vmem:[%s3297_s26 + $0x48] sm:$0xff]   ;;  %v3023_v61 = vld [vmem:[%s3297_s26 + $0x50] sm:$0xff]  }
  0x2b   : > { %v3024_v62 = vld [vmem:[%s3289_s18 + $0x58] sm:$0xff]   ;;  %v3030_v4 = vld [vmem:[%s3289_s18 + $0x70] sm:$0xff]  }
  0x2c   : > { %2695 = vmatpush3.bf16.msra.mxu0 %v3256_v8  ;;  %2743 = vmatpush3.bf16.msra.mxu1 %v3256_v8  ;;  %v3025_v63 = vld [vmem:[%s3297_s26 + $0x58] sm:$0xff]   ;;  %v3031_v5 = vld [vmem:[%s3297_s26 + $0x70] sm:$0xff]  }
  0x2d   : > { %2696 = vmatprep.subr.bf16.mxu0 %v3265_v9  ;;  %2744 = vmatprep.subr.bf16.mxu1 %v3265_v9 }
  0x30   : > { %2697 = vmatpush3.bf16.msra.mxu0 %v3265_v9  ;;  %2745 = vmatpush3.bf16.msra.mxu1 %v3265_v9 }
  0x31   : > { %2778 = vmatprep.subr.bf16.mxu0 %v2962_v0  ;;  %2826 = vmatprep.subr.bf16.mxu1 %v2962_v0 }
  0x33   : > { %2699 = vmatmul.mubr.bf16.vlgmr.msra.gmra.mrb[0].mxu0 %v2972_v10  ;;  %2747 = vmatmul.mubr.bf16.vlgmr.msra.gmra.mrb[0].mxu1 %v2973_v11 }
  0x34   : > { %2779 = vmatpush3.bf16.msra.mxu0 %v2962_v0  ;;  %2827 = vmatpush3.bf16.msra.mxu1 %v2962_v0  ;;  %v3026_v0 = vld [vmem:[%s3289_s18 + $0x60] sm:$0xff]  }
  0x35   : > { %2702 = vmatprep.mubr.bf16.mxu0 %v2974_v12  ;;  %2750 = vmatprep.mubr.bf16.mxu1 %v2975_v13 }
  0x36   : > { %2780 = vmatprep.subr.bf16.mxu0 %v3195_v1  ;;  %2828 = vmatprep.subr.bf16.mxu1 %v3195_v1 }
  0x38   : > { %2781 = vmatpush3.bf16.msra.mxu0 %v3195_v1  ;;  %2829 = vmatpush3.bf16.msra.mxu1 %v3195_v1  ;;  %v3027_v1 = vld [vmem:[%s3297_s26 + $0x60] sm:$0xff]  }
  0x39   : > { %2782 = vmatprep.subr.bf16.mxu0 %v3204_v2  ;;  %2830 = vmatprep.subr.bf16.mxu1 %v3204_v2 }
  0x3b   : > { %2703 = vmatmul.mubr.bf16.gmra.mrb[4].mxu0 %v2976_v14  ;;  %2751 = vmatmul.mubr.bf16.gmra.mrb[4].mxu1 %v2977_v15 }
  0x3c   : > { %2706 = vmatprep.mubr.bf16.mxu0 %v2978_v16  ;;  %2754 = vmatprep.mubr.bf16.mxu1 %v2979_v17 }
  0x3d   : > { %2783 = vmatpush3.bf16.msra.mxu0 %v3204_v2  ;;  %2831 = vmatpush3.bf16.msra.mxu1 %v3204_v2  ;;  %v3028_v2 = vld [vmem:[%s3289_s18 + $0x68] sm:$0xff]  }
  0x3e   : > { %2784 = vmatprep.subr.bf16.mxu0 %v3225_v3  ;;  %2832 = vmatprep.subr.bf16.mxu1 %v3225_v3 }
  0x41   : > { %2785 = vmatpush3.bf16.msra.mxu0 %v3225_v3  ;;  %2833 = vmatpush3.bf16.msra.mxu1 %v3225_v3  ;;  %v3029_v3 = vld [vmem:[%s3297_s26 + $0x68] sm:$0xff]  }
  0x42   : > { %2786 = vmatprep.subr.bf16.mxu0 %v3238_v6  ;;  %2834 = vmatprep.subr.bf16.mxu1 %v3238_v6 }
  0x43   : > { %2707 = vmatmul.mubr.bf16.gmra.mrb[8].mxu0 %v2980_v18  ;;  %2755 = vmatmul.mubr.bf16.gmra.mrb[8].mxu1 %v2981_v19 }
  0x44   : > { %2710 = vmatprep.mubr.bf16.mxu0 %v2982_v20  ;;  %2758 = vmatprep.mubr.bf16.mxu1 %v2983_v21 }
  0x45   : > { %2787 = vmatpush3.bf16.msra.mxu0 %v3238_v6  ;;  %2835 = vmatpush3.bf16.msra.mxu1 %v3238_v6  ;;  %v3032_v6 = vld [vmem:[%s3289_s18 + $0x78] sm:$0xff]  }
  0x46   : > { %2788 = vmatprep.subr.bf16.mxu0 %v3247_v7  ;;  %2836 = vmatprep.subr.bf16.mxu1 %v3247_v7 }
  0x49   : > { %2789 = vmatpush3.bf16.msra.mxu0 %v3247_v7  ;;  %2837 = vmatpush3.bf16.msra.mxu1 %v3247_v7  ;;  %v3033_v7 = vld [vmem:[%s3297_s26 + $0x78] sm:$0xff]  }
  0x4a   : > { %2790 = vmatprep.subr.bf16.mxu0 %v3256_v8  ;;  %2838 = vmatprep.subr.bf16.mxu1 %v3256_v8 }
  0x4b   : > { %2711 = vmatmul.mubr.bf16.gmra.mrb[12].mxu0 %v2984_v22  ;;  %2759 = vmatmul.mubr.bf16.gmra.mrb[12].mxu1 %v2985_v23 }
  0x4c   : > { %2714 = vmatprep.mubr.bf16.mxu0 %v2986_v24  ;;  %2762 = vmatprep.mubr.bf16.mxu1 %v2987_v25 }
  0x4d   : > { %2791 = vmatpush3.bf16.msra.mxu0 %v3256_v8  ;;  %2839 = vmatpush3.bf16.msra.mxu1 %v3256_v8 }
  0x4e   : > { %2792 = vmatprep.subr.bf16.mxu0 %v3265_v9  ;;  %2840 = vmatprep.subr.bf16.mxu1 %v3265_v9 }
  0x51   : > { %2793 = vmatpush3.bf16.msra.mxu0 %v3265_v9  ;;  %2841 = vmatpush3.bf16.msra.mxu1 %v3265_v9 }
  0x53   : > { %2715 = vmatmul.mubr.bf16.gmra.mrb[16].mxu0 %v2988_v26  ;;  %2763 = vmatmul.mubr.bf16.gmra.mrb[16].mxu1 %v2989_v27 }
  0x54   : > { %2718 = vmatprep.mubr.bf16.mxu0 %v2990_v28  ;;  %2766 = vmatprep.mubr.bf16.mxu1 %v2991_v29 }
  0x5b   : > { %2719 = vmatmul.mubr.bf16.gmra.mrb[20].mxu0 %v2992_v30  ;;  %2767 = vmatmul.mubr.bf16.gmra.mrb[20].mxu1 %v2993_v31 }
  0x5c   : > { %2722 = vmatprep.mubr.bf16.mxu0 %v2994_v32  ;;  %2770 = vmatprep.mubr.bf16.mxu1 %v2995_v33 }
  0x63   : > { %2723 = vmatmul.mubr.bf16.gmra.mrb[24].mxu0 %v2996_v34  ;;  %2771 = vmatmul.mubr.bf16.gmra.mrb[24].mxu1 %v2997_v35 }
  0x64   : > { %2726 = vmatprep.mubr.bf16.mxu0 %v2998_v36  ;;  %2774 = vmatprep.mubr.bf16.mxu1 %v2999_v37 }
  0x6b   : > { %2727 = vmatmul.mubr.bf16.gmra.mrb[28].mxu0 %v3000_v38  ;;  %2775 = vmatmul.mubr.bf16.gmra.mrb[28].mxu1 %v3001_v39 }
  0x6c   : > { %2794 = vmatprep.mubr.bf16.mxu0 %v3002_v40  ;;  %2842 = vmatprep.mubr.bf16.mxu1 %v3003_v41 }
  0x73   : > { %2795 = vmatmul.mubr.bf16.vlgmr.msra.gmra.mrb[32].mxu0 %v3004_v42  ;;  %2843 = vmatmul.mubr.bf16.vlgmr.msra.gmra.mrb[32].mxu1 %v3005_v43 }
  0x74   : > { %2798 = vmatprep.mubr.bf16.mxu0 %v3006_v44  ;;  %2846 = vmatprep.mubr.bf16.mxu1 %v3007_v45 }
  0x7b   : > { %2799 = vmatmul.mubr.bf16.gmra.mrb[36].mxu0 %v3008_v46  ;;  %2847 = vmatmul.mubr.bf16.gmra.mrb[36].mxu1 %v3009_v47 }
  0x7c   : > { %2802 = vmatprep.mubr.bf16.mxu0 %v3010_v48  ;;  %2850 = vmatprep.mubr.bf16.mxu1 %v3011_v49 }
  0x83   : > { %2803 = vmatmul.mubr.bf16.gmra.mrb[40].mxu0 %v3012_v50  ;;  %2851 = vmatmul.mubr.bf16.gmra.mrb[40].mxu1 %v3013_v51 }
  0x84   : > { %2806 = vmatprep.mubr.bf16.mxu0 %v3014_v52  ;;  %2854 = vmatprep.mubr.bf16.mxu1 %v3015_v53 }
  0x8b   : > { %2807 = vmatmul.mubr.bf16.gmra.mrb[44].mxu0 %v3016_v54  ;;  %2855 = vmatmul.mubr.bf16.gmra.mrb[44].mxu1 %v3017_v55 }
  0x8c   : > { %2810 = vmatprep.mubr.bf16.mxu0 %v3018_v56  ;;  %2858 = vmatprep.mubr.bf16.mxu1 %v3019_v57 }
  0x93   : > { %2811 = vmatmul.mubr.bf16.gmra.mrb[48].mxu0 %v3020_v58  ;;  %2859 = vmatmul.mubr.bf16.gmra.mrb[48].mxu1 %v3021_v59 }
  0x94   : > { %2814 = vmatprep.mubr.bf16.mxu0 %v3022_v60  ;;  %2862 = vmatprep.mubr.bf16.mxu1 %v3023_v61 }
  0x9b   : > { %2815 = vmatmul.mubr.bf16.gmra.mrb[52].mxu0 %v3024_v62  ;;  %2863 = vmatmul.mubr.bf16.gmra.mrb[52].mxu1 %v3025_v63 }
  0x9c   : > { %2818 = vmatprep.mubr.bf16.mxu0 %v3026_v0  ;;  %2866 = vmatprep.mubr.bf16.mxu1 %v3027_v1 }
  0xa3   : > { %2819 = vmatmul.mubr.bf16.gmra.mrb[56].mxu0 %v3028_v2  ;;  %2867 = vmatmul.mubr.bf16.gmra.mrb[56].mxu1 %v3029_v3 }
  0xa4   : > { %2822 = vmatprep.mubr.bf16.mxu0 %v3030_v4  ;;  %2870 = vmatprep.mubr.bf16.mxu1 %v3031_v5 }
  0xab   : > { %2823 = vmatmul.mubr.bf16.gmra.mrb[60].mxu0 %v3032_v6  ;;  %2871 = vmatmul.mubr.bf16.gmra.mrb[60].mxu1 %v3033_v7 }
 0x106   : > { %v3375_v8 = vpop.f32.mrb[0].mxu0  ;;  %v3377_v9 = vpop.f32.mrb[0].mxu1 }
 0x107   : > { %v3381_v11 = vpop.f32.mrb[1].mxu0  ;;  %v3383_v12 = vpop.f32.mrb[1].mxu1 }
 0x108   : > { %v3387_v14 = vpop.f32.mrb[2].mxu0  ;;  %v3389_v15 = vpop.f32.mrb[2].mxu1 }
 0x109   : > { %v3393_v17 = vpop.f32.mrb[3].mxu0  ;;  %v3395_v18 = vpop.f32.mrb[3].mxu1 }
 0x10e   : > { %v3399_v20 = vpop.f32.mrb[4].mxu0  ;;  %v3401_v21 = vpop.f32.mrb[4].mxu1 }
 0x10f   : > { %v3405_v23 = vpop.f32.mrb[5].mxu0  ;;  %v3407_v24 = vpop.f32.mrb[5].mxu1 }
 0x110   : > { %v3411_v26 = vpop.f32.mrb[6].mxu0  ;;  %v3413_v27 = vpop.f32.mrb[6].mxu1 }
 0x111   : > { %v3417_v29 = vpop.f32.mrb[7].mxu0  ;;  %v3419_v30 = vpop.f32.mrb[7].mxu1 }
 0x116   : > { %v3423_v32 = vpop.f32.mrb[8].mxu0  ;;  %v3425_v33 = vpop.f32.mrb[8].mxu1 }
 0x117   : > { %v3429_v35 = vpop.f32.mrb[9].mxu0  ;;  %v3431_v36 = vpop.f32.mrb[9].mxu1 }
 0x118   : > { %v3435_v38 = vpop.f32.mrb[10].mxu0  ;;  %v3437_v39 = vpop.f32.mrb[10].mxu1 }
 0x119   : > { %v3441_v41 = vpop.f32.mrb[11].mxu0  ;;  %v3443_v42 = vpop.f32.mrb[11].mxu1 }
 0x11e   : > { %v3447_v44 = vpop.f32.mrb[12].mxu0  ;;  %v3449_v45 = vpop.f32.mrb[12].mxu1 }
 0x11f   : > { %v3453_v47 = vpop.f32.mrb[13].mxu0  ;;  %v3455_v48 = vpop.f32.mrb[13].mxu1 }
 0x120   : > { %v3459_v50 = vpop.f32.mrb[14].mxu0  ;;  %v3461_v51 = vpop.f32.mrb[14].mxu1 }
 0x121   : > { %v3465_v53 = vpop.f32.mrb[15].mxu0  ;;  %v3467_v54 = vpop.f32.mrb[15].mxu1 }
 0x126   : > { %v3471_v56 = vpop.f32.mrb[16].mxu0  ;;  %v3473_v57 = vpop.f32.mrb[16].mxu1 }
 0x127   : > { %v3477_v59 = vpop.f32.mrb[17].mxu0  ;;  %v3479_v60 = vpop.f32.mrb[17].mxu1 }
 0x128   : > { %v3483_v62 = vpop.f32.mrb[18].mxu0  ;;  %v3485_v63 = vpop.f32.mrb[18].mxu1 }
 0x129   : > { %v3489_v1 = vpop.f32.mrb[19].mxu0  ;;  %v3491_v2 = vpop.f32.mrb[19].mxu1 }
 0x12e   : > { %v3495_v4 = vpop.f32.mrb[20].mxu0  ;;  %v3497_v5 = vpop.f32.mrb[20].mxu1 }
 0x12f   : > { %v3501_v7 = vpop.f32.mrb[21].mxu0  ;;  %v3503_v61 = vpop.f32.mrb[21].mxu1 }
 0x130   : > { %v3507_v58 = vpop.f32.mrb[22].mxu0  ;;  %v3509_v55 = vpop.f32.mrb[22].mxu1 }
 0x131   : > { %v3513_v52 = vpop.f32.mrb[23].mxu0  ;;  %v3515_v49 = vpop.f32.mrb[23].mxu1 }
 0x132   : > { %3879 = vst [vmem:[#allocation3_spill] sm:$0xff] %v3515_v49 }
 0x136   : > { %v3519_v46 = vpop.f32.mrb[24].mxu0  ;;  %v3521_v43 = vpop.f32.mrb[24].mxu1 }
 0x137   : > { %3880 = vst [vmem:[#allocation4_spill] sm:$0xff] %v3519_v46  ;;  %3881 = vst [vmem:[#allocation5_spill] sm:$0xff] %v3521_v43  ;;  %v3525_v40 = vpop.f32.mrb[25].mxu0  ;;  %v3527_v37 = vpop.f32.mrb[25].mxu1 }
 0x138   : > { %3882 = vst [vmem:[#allocation6_spill] sm:$0xff] %v3525_v40  ;;  %3883 = vst [vmem:[#allocation7_spill] sm:$0xff] %v3527_v37  ;;  %v3531_v34 = vpop.f32.mrb[26].mxu0  ;;  %v3533_v31 = vpop.f32.mrb[26].mxu1 }
 0x139   : > { %3884 = vst [vmem:[#allocation8_spill] sm:$0xff] %v3531_v34  ;;  %3885 = vst [vmem:[#allocation9_spill] sm:$0xff] %v3533_v31  ;;  %v3537_v28 = vpop.f32.mrb[27].mxu0  ;;  %v3539_v25 = vpop.f32.mrb[27].mxu1 }
 0x13a   : > { %3886 = vst [vmem:[#allocation10_spill] sm:$0xff] %v3537_v28  ;;  %3887 = vst [vmem:[#allocation11_spill] sm:$0xff] %v3539_v25 }
 0x13e   : > { %v3543_v22 = vpop.f32.mrb[28].mxu0  ;;  %v3545_v19 = vpop.f32.mrb[28].mxu1 }
 0x13f   : > { %3888 = vst [vmem:[#allocation12_spill] sm:$0xff] %v3543_v22  ;;  %3889 = vst [vmem:[#allocation13_spill] sm:$0xff] %v3545_v19  ;;  %v3549_v16 = vpop.f32.mrb[29].mxu0  ;;  %v3551_v13 = vpop.f32.mrb[29].mxu1 }
 0x140   : > { %3890 = vst [vmem:[#allocation14_spill] sm:$0xff] %v3549_v16  ;;  %3891 = vst [vmem:[#allocation15_spill] sm:$0xff] %v3551_v13  ;;  %v3555_v10 = vpop.f32.mrb[30].mxu0  ;;  %v3557_v31 = vpop.f32.mrb[30].mxu1  ;;  %v3570_v13 = vld [vmem:[%s3859_s5] ss:$0 sm:$0xff] }
 0x141   : > { %3892 = vst [vmem:[#allocation16_spill] sm:$0xff] %v3555_v10  ;;  %3893 = vst [vmem:[#allocation17_spill] sm:$0xff] %v3557_v31  ;;  %v3561_v25 = vpop.f32.mrb[31].mxu0  ;;  %v3563_v28 = vpop.f32.mrb[31].mxu1  ;;  %v3896_v10 = vmax.f32 %v3375_v8, %v3377_v9  ;;  %v3899_v8 = vmax.f32 %v3393_v17, %v3395_v18  ;;  %v3900_v17 = vmax.f32 %v3399_v20, %v3401_v21 }
 0x142   : > { %3894 = vst [vmem:[#allocation18_spill] sm:$0xff] %v3561_v25  ;;  %3895 = vst [vmem:[#allocation19_spill] sm:$0xff] %v3563_v28  ;;  %v3902_v20 = vmax.f32 %v3411_v26, %v3413_v27 }
 0x146   : > { %v2796_v19 = vpop.f32.mrb[32].mxu0  ;;  %v2844_v22 = vpop.f32.mrb[32].mxu1 }
 0x147   : > { %v1654_v34 = vmax.f32 %v2796_v19, %v2844_v22  ;;  %v1204_v37 = vpop.f32.mrb[33].mxu0  ;;  %v1493_v6 = vpop.f32.mrb[33].mxu1  ;;  %v3897_v19 = vmax.f32 %v3381_v11, %v3383_v12 }
 0x148   : > { %v1652_v16 = vmax.f32 %v1204_v37, %v1493_v6  ;;  %v2797_v0 = vpop.f32.mrb[34].mxu0  ;;  %v2845_v31 = vpop.f32.mrb[34].mxu1  ;;  %v3898_v37 = vmax.f32 %v3387_v14, %v3389_v15 }
 0x149   : > { %v1686_v40 = vmax.f32 %v3896_v10, %v1654_v34  ;;  %v1655_v43 = vmax.f32 %v2797_v0, %v2845_v31  ;;  %v1207_v46 = vpop.f32.mrb[35].mxu0  ;;  %v1496_v3 = vpop.f32.mrb[35].mxu1 }
 0x14a   : > { %v1684_v22 = vmax.f32 %v3897_v19, %v1652_v16  ;;  %v1653_v28 = vmax.f32 %v1207_v46, %v1496_v3 }
 0x14b   : > { %v1725_v25 = vadd.f32 %v3570_v13, %v1686_v40  ;;  %v1687_v6 = vmax.f32 %v3898_v37, %v1655_v43 }
 0x14c   : > { %v1723_v49 = vadd.f32 %v3570_v13, %v1684_v22  ;;  %v1685_v9 = vmax.f32 %v3899_v8, %v1653_v28 }
 0x14d   : > { %v1726_v10 = vadd.f32 %v3570_v13, %v1687_v6  ;;  %v1757_v31 = vmax.f32 %v1725_v25, 0.0  ;;  %v3901_v25 = vmax.f32 %v3405_v23, %v3407_v24 }
 0x14e   : > { %v1724_v11 = vadd.f32 %v3570_v13, %v1685_v9  ;;  %v2800_v12 = vpop.f32.mrb[36].mxu0  ;;  %v2848_v16 = vpop.f32.mrb[36].mxu1  ;;  %v1755_v14 = vmax.f32 %v1723_v49, 0.0 }
 0x14f   : > { %v1758_v34 = vmax.f32 %v1726_v10, 0.0  ;;  %v1658_v40 = vmax.f32 %v2800_v12, %v2848_v16  ;;  %v1220_v46 = vpop.f32.mrb[37].mxu0  ;;  %v1509_v0 = vpop.f32.mrb[37].mxu1  ;;  %v3903_v12 = vmax.f32 %v3417_v29, %v3419_v30  ;;  %v3904_v30 = vmax.f32 %v3423_v32, %v3425_v33 }
 0x150   : > { %v1756_v15 = vmax.f32 %v1724_v11, 0.0  ;;  %v1656_v43 = vmax.f32 %v1220_v46, %v1509_v0  ;;  %v2801_v3 = vpop.f32.mrb[38].mxu0  ;;  %v2849_v19 = vpop.f32.mrb[38].mxu1  ;;  %v3907_v33 = vmax.f32 %v3441_v41, %v3443_v42  ;;  %v3908_v42 = vmax.f32 %v3447_v44, %v3449_v45 }
 0x151   : > { %v2499_v22 = vpack.c.bf16 %v1758_v34, %v1757_v31  ;;  %v1690_v18 = vmax.f32 %v3900_v17, %v1658_v40  ;;  %v1659_v28 = vmax.f32 %v2801_v3, %v2849_v19  ;;  %v1223_v37 = vpop.f32.mrb[39].mxu0  ;;  %v1512_v6 = vpop.f32.mrb[39].mxu1  ;;  %v3911_v45 = vmax.f32 %v3465_v53, %v3467_v54 }
 0x152   : > { %v2494_v8 = vpack.c.bf16 %v1756_v15, %v1755_v14  ;;  %v1688_v9 = vmax.f32 %v3901_v25, %v1656_v43  ;;  %v1657_v10 = vmax.f32 %v1223_v37, %v1512_v6  ;;  %v3905_v6 = vmax.f32 %v3429_v35, %v3431_v36 }
 0x153   : > { %2571 = vst [vmem:[%s3595_s21 + $0x8] sm:$0xff] %v2499_v22   ;;  %v1729_v49 = vadd.f32 %v3570_v13, %v1690_v18  ;;  %v1691_v21 = vmax.f32 %v3902_v20, %v1659_v28  ;;  %v3912_v54 = vmax.f32 %v3471_v56, %v3473_v57  ;;  %v3915_v57 = vmax.f32 %v3489_v1, %v3491_v2 }
 0x154   : > { %2495 = vst [vmem:[%s3595_s21] sm:$0xff] %v2494_v8   ;;  %v1727_v11 = vadd.f32 %v3570_v13, %v1688_v9  ;;  %v1689_v23 = vmax.f32 %v3903_v12, %v1657_v10  ;;  %v3906_v10 = vmax.f32 %v3435_v38, %v3437_v39  ;;  %v3916_v2 = vmax.f32 %v3495_v4, %v3497_v5  ;;  %v3919_v5 = vld [vmem:[#allocation3_spill] sm:$0xff] }
 0x155   : > { %v1730_v24 = vadd.f32 %v3570_v13, %v1691_v21  ;;  %v1761_v40 = vmax.f32 %v1729_v49, 0.0 }
 0x156   : > { %v1728_v16 = vadd.f32 %v3570_v13, %v1689_v23  ;;  %v2804_v31 = vpop.f32.mrb[40].mxu0  ;;  %v2852_v34 = vpop.f32.mrb[40].mxu1  ;;  %v1759_v27 = vmax.f32 %v1727_v11, 0.0 }
 0x157   : > { %v1762_v46 = vmax.f32 %v1730_v24, 0.0  ;;  %v1662_v0 = vmax.f32 %v2804_v31, %v2852_v34  ;;  %v1236_v14 = vpop.f32.mrb[41].mxu0  ;;  %v1525_v26 = vpop.f32.mrb[41].mxu1 }
 0x158   : > { %v1760_v15 = vmax.f32 %v1728_v16, 0.0  ;;  %v1660_v43 = vmax.f32 %v1236_v14, %v1525_v26  ;;  %v2805_v3 = vpop.f32.mrb[42].mxu0  ;;  %v2853_v19 = vpop.f32.mrb[42].mxu1 }
 0x159   : > { %v2509_v29 = vpack.c.bf16 %v1762_v46, %v1761_v40  ;;  %v1694_v22 = vmax.f32 %v3904_v30, %v1662_v0  ;;  %v1663_v17 = vmax.f32 %v2805_v3, %v2853_v19  ;;  %v1239_v18 = vpop.f32.mrb[43].mxu0  ;;  %v1528_v28 = vpop.f32.mrb[43].mxu1  ;;  %v3910_v30 = vmax.f32 %v3459_v50, %v3461_v51 }
 0x15a   : > { %v2504_v37 = vpack.c.bf16 %v1760_v15, %v1759_v27  ;;  %v1692_v8 = vmax.f32 %v3905_v6, %v1660_v43  ;;  %v1661_v25 = vmax.f32 %v1239_v18, %v1528_v28  ;;  %v3909_v43 = vmax.f32 %v3453_v47, %v3455_v48 }
 0x15b   : > { %2573 = vst [vmem:[%s3595_s21 + $0x18] sm:$0xff] %v2509_v29   ;;  %v1733_v9 = vadd.f32 %v3570_v13, %v1694_v22  ;;  %v1695_v49 = vmax.f32 %v3906_v10, %v1663_v17 }
 0x15c   : > { %2572 = vst [vmem:[%s3595_s21 + $0x10] sm:$0xff] %v2504_v37   ;;  %v1731_v32 = vadd.f32 %v3570_v13, %v1692_v8  ;;  %v1693_v20 = vmax.f32 %v3907_v33, %v1661_v25 }
 0x15d   : > { %v1734_v21 = vadd.f32 %v3570_v13, %v1695_v49  ;;  %v1765_v12 = vmax.f32 %v1733_v9, 0.0 }
 0x15e   : > { %v1732_v35 = vadd.f32 %v3570_v13, %v1693_v20  ;;  %v2808_v36 = vpop.f32.mrb[44].mxu0  ;;  %v2856_v11 = vpop.f32.mrb[44].mxu1  ;;  %v1763_v39 = vmax.f32 %v1731_v32, 0.0 }
 0x15f   : > { %v1766_v23 = vmax.f32 %v1734_v21, 0.0  ;;  %v1666_v24 = vmax.f32 %v2808_v36, %v2856_v11  ;;  %v1252_v16 = vpop.f32.mrb[45].mxu0  ;;  %v1541_v38 = vpop.f32.mrb[45].mxu1  ;;  %v3913_v11 = vmax.f32 %v3477_v59, %v3479_v60 }
 0x160   : > { %v1764_v31 = vmax.f32 %v1732_v35, 0.0  ;;  %v1664_v34 = vmax.f32 %v1252_v16, %v1541_v38  ;;  %v2809_v40 = vpop.f32.mrb[46].mxu0  ;;  %v2857_v46 = vpop.f32.mrb[46].mxu1  ;;  %v3914_v16 = vmax.f32 %v3483_v62, %v3485_v63 }
 0x161   : > { %v2519_v41 = vpack.c.bf16 %v1766_v23, %v1765_v12  ;;  %v1698_v0 = vmax.f32 %v3908_v42, %v1666_v24  ;;  %v1667_v14 = vmax.f32 %v2809_v40, %v2857_v46  ;;  %v1255_v26 = vpop.f32.mrb[47].mxu0  ;;  %v1544_v27 = vpop.f32.mrb[47].mxu1 }
 0x162   : > { %v2514_v15 = vpack.c.bf16 %v1764_v31, %v1763_v39  ;;  %v1696_v3 = vmax.f32 %v3909_v43, %v1664_v34  ;;  %v1665_v19 = vmax.f32 %v1255_v26, %v1544_v27 }
 0x163   : > { %2575 = vst [vmem:[%s3595_s21 + $0x28] sm:$0xff] %v2519_v41   ;;  %v1737_v29 = vadd.f32 %v3570_v13, %v1698_v0  ;;  %v1699_v22 = vmax.f32 %v3910_v30, %v1667_v14  ;;  %v3917_v30 = vmax.f32 %v3501_v7, %v3503_v61 }
 0x164   : > { %2574 = vst [vmem:[%s3595_s21 + $0x20] sm:$0xff] %v2514_v15   ;;  %v1735_v44 = vadd.f32 %v3570_v13, %v1696_v3  ;;  %v1697_v17 = vmax.f32 %v3911_v45, %v1665_v19 }
 0x165   : > { %v1738_v18 = vadd.f32 %v3570_v13, %v1699_v22  ;;  %v1769_v37 = vmax.f32 %v1737_v29, 0.0 }
 0x166   : > { %v1736_v47 = vadd.f32 %v3570_v13, %v1697_v17  ;;  %v2812_v48 = vpop.f32.mrb[48].mxu0  ;;  %v2860_v28 = vpop.f32.mrb[48].mxu1  ;;  %v1767_v51 = vmax.f32 %v1735_v44, 0.0  ;;  %v3918_v17 = vmax.f32 %v3507_v58, %v3509_v55 }
 0x167   : > { %v1770_v6 = vmax.f32 %v1738_v18, 0.0  ;;  %v1670_v8 = vmax.f32 %v2812_v48, %v2860_v28  ;;  %v1268_v25 = vpop.f32.mrb[49].mxu0  ;;  %v1557_v50 = vpop.f32.mrb[49].mxu1 }
 0x168   : > { %v1768_v9 = vmax.f32 %v1736_v47, 0.0  ;;  %v1668_v10 = vmax.f32 %v1268_v25, %v1557_v50  ;;  %v2813_v49 = vpop.f32.mrb[50].mxu0  ;;  %v2861_v32 = vpop.f32.mrb[50].mxu1  ;;  %v3920_v47 = vmax.f32 %v3513_v52, %v3919_v5 }
 0x169   : > { %v2529_v53 = vpack.c.bf16 %v1770_v6, %v1769_v37  ;;  %v1702_v33 = vmax.f32 %v3912_v54, %v1670_v8  ;;  %v1671_v20 = vmax.f32 %v2813_v49, %v2861_v32  ;;  %v1271_v21 = vpop.f32.mrb[51].mxu0  ;;  %v1560_v35 = vpop.f32.mrb[51].mxu1  ;;  %v3921_v32 = vld [vmem:[#allocation4_spill] sm:$0xff] }
 0x16a   : > { %v2524_v36 = vpack.c.bf16 %v1768_v9, %v1767_v51  ;;  %v1700_v12 = vmax.f32 %v3913_v11, %v1668_v10  ;;  %v1669_v23 = vmax.f32 %v1271_v21, %v1560_v35  ;;  %v3924_v11 = vld [vmem:[#allocation6_spill] sm:$0xff] }
 0x16b   : > { %2577 = vst [vmem:[%s3595_s21 + $0x38] sm:$0xff] %v2529_v53   ;;  %v1741_v24 = vadd.f32 %v3570_v13, %v1702_v33  ;;  %v1703_v38 = vmax.f32 %v3914_v16, %v1671_v20  ;;  %v3922_v53 = vld [vmem:[#allocation5_spill] sm:$0xff] }
 0x16c   : > { %2576 = vst [vmem:[%s3595_s21 + $0x30] sm:$0xff] %v2524_v36   ;;  %v1739_v56 = vadd.f32 %v3570_v13, %v1700_v12  ;;  %v1701_v39 = vmax.f32 %v3915_v57, %v1669_v23  ;;  %v3923_v54 = vmax.f32 %v3921_v32, %v3922_v53  ;;  %v3925_v12 = vld [vmem:[#allocation7_spill] sm:$0xff]  ;;  %v3928_v57 = vld [vmem:[#allocation9_spill] sm:$0xff] }
 0x16d   : > { %v1742_v31 = vadd.f32 %v3570_v13, %v1703_v38  ;;  %v1773_v40 = vmax.f32 %v1741_v24, 0.0  ;;  %v3926_v23 = vmax.f32 %v3924_v11, %v3925_v12 }
 0x16e   : > { %v1740_v59 = vadd.f32 %v3570_v13, %v1701_v39  ;;  %v2816_v60 = vpop.f32.mrb[52].mxu0  ;;  %v2864_v34 = vpop.f32.mrb[52].mxu1  ;;  %v1771_v63 = vmax.f32 %v1739_v56, 0.0  ;;  %v3927_v56 = vld [vmem:[#allocation8_spill] sm:$0xff] }
 0x16f   : > { %v1774_v46 = vmax.f32 %v1742_v31, 0.0  ;;  %v1674_v41 = vmax.f32 %v2816_v60, %v2864_v34  ;;  %v1284_v42 = vpop.f32.mrb[53].mxu0  ;;  %v1573_v62 = vpop.f32.mrb[53].mxu1  ;;  %v3929_v39 = vmax.f32 %v3927_v56, %v3928_v57  ;;  %v3930_v60 = vld [vmem:[#allocation10_spill] sm:$0xff]  ;;  %v3931_v34 = vld [vmem:[#allocation11_spill] sm:$0xff] }
 0x170   : > { %v1772_v0 = vmax.f32 %v1740_v59, 0.0  ;;  %v1672_v14 = vmax.f32 %v1284_v42, %v1573_v62  ;;  %v2817_v26 = vpop.f32.mrb[54].mxu0  ;;  %v2865_v27 = vpop.f32.mrb[54].mxu1 }
 0x171   : > { %v2539_v1 = vpack.c.bf16 %v1774_v46, %v1773_v40  ;;  %v1706_v15 = vmax.f32 %v3916_v2, %v1674_v41  ;;  %v1675_v43 = vmax.f32 %v2817_v26, %v2865_v27  ;;  %v1287_v3 = vpop.f32.mrb[55].mxu0  ;;  %v1576_v19 = vpop.f32.mrb[55].mxu1  ;;  %v3932_v40 = vmax.f32 %v3930_v60, %v3931_v34 }
 0x172   : > { %v2534_v29 = vpack.c.bf16 %v1772_v0, %v1771_v63  ;;  %v1704_v22 = vmax.f32 %v3917_v30, %v1672_v14  ;;  %v1673_v44 = vmax.f32 %v1287_v3, %v1576_v19  ;;  %v3933_v30 = vld [vmem:[#allocation12_spill] sm:$0xff] }
 0x173   : > { %2579 = vst [vmem:[%s3595_s21 + $0x48] sm:$0xff] %v2539_v1   ;;  %v1745_v45 = vadd.f32 %v3570_v13, %v1706_v15  ;;  %v1707_v18 = vmax.f32 %v3918_v17, %v1675_v43 }
 0x174   : > { %2578 = vst [vmem:[%s3595_s21 + $0x40] sm:$0xff] %v2534_v29   ;;  %v1743_v4 = vadd.f32 %v3570_v13, %v1704_v22  ;;  %v1705_v48 = vmax.f32 %v3920_v47, %v1673_v44  ;;  %v3934_v22 = vld [vmem:[#allocation13_spill] sm:$0xff]  ;;  %v3936_v47 = vld [vmem:[#allocation14_spill] sm:$0xff] }
 0x175   : > { %v1746_v28 = vadd.f32 %v3570_v13, %v1707_v18  ;;  %v1777_v6 = vmax.f32 %v1745_v45, 0.0  ;;  %v3935_v44 = vmax.f32 %v3933_v30, %v3934_v22 }
 0x176   : > { %v1744_v61 = vadd.f32 %v3570_v13, %v1705_v48  ;;  %v2820_v7 = vpop.f32.mrb[56].mxu0  ;;  %v2868_v37 = vpop.f32.mrb[56].mxu1  ;;  %v1775_v58 = vmax.f32 %v1743_v4, 0.0  ;;  %v3937_v48 = vld [vmem:[#allocation15_spill] sm:$0xff] }
 0x177   : > { %v1778_v8 = vmax.f32 %v1746_v28, 0.0  ;;  %v1678_v25 = vmax.f32 %v2820_v7, %v2868_v37  ;;  %v1300_v50 = vpop.f32.mrb[57].mxu0  ;;  %v1589_v55 = vpop.f32.mrb[57].mxu1  ;;  %v3938_v28 = vmax.f32 %v3936_v47, %v3937_v48 }
 0x178   : > { %v1776_v51 = vmax.f32 %v1744_v61, 0.0  ;;  %v1676_v9 = vmax.f32 %v1300_v50, %v1589_v55  ;;  %v2821_v10 = vpop.f32.mrb[58].mxu0  ;;  %v2869_v49 = vpop.f32.mrb[58].mxu1 }
 0x179   : > { %v2549_v52 = vpack.c.bf16 %v1778_v8, %v1777_v6  ;;  %v1710_v33 = vmax.f32 %v3923_v54, %v1678_v25  ;;  %v1679_v20 = vmax.f32 %v2821_v10, %v2869_v49  ;;  %v1303_v21 = vpop.f32.mrb[59].mxu0  ;;  %v1592_v35 = vpop.f32.mrb[59].mxu1  ;;  %v3939_v6 = vld [vmem:[#allocation16_spill] sm:$0xff]  ;;  %v3940_v8 = vld [vmem:[#allocation17_spill] sm:$0xff] }
 0x17a   : > { %v2544_v36 = vpack.c.bf16 %v1776_v51, %v1775_v58  ;;  %v1708_v24 = vmax.f32 %v3926_v23, %v1676_v9  ;;  %v1677_v16 = vmax.f32 %v1303_v21, %v1592_v35  ;;  %v3941_v25 = vmax.f32 %v3939_v6, %v3940_v8  ;;  %v3942_v58 = vld [vmem:[#allocation18_spill] sm:$0xff]  ;;  %v3943_v51 = vld [vmem:[#allocation19_spill] sm:$0xff] }
 0x17b   : > { %2581 = vst [vmem:[%s3595_s21 + $0x58] sm:$0xff] %v2549_v52   ;;  %v1749_v38 = vadd.f32 %v3570_v13, %v1710_v33  ;;  %v1711_v31 = vmax.f32 %v3929_v39, %v1679_v20  ;;  %v3944_v9 = vmax.f32 %v3942_v58, %v3943_v51 }
 0x17c   : > { %2580 = vst [vmem:[%s3595_s21 + $0x50] sm:$0xff] %v2544_v36   ;;  %v1747_v59 = vadd.f32 %v3570_v13, %v1708_v24  ;;  %v1709_v46 = vmax.f32 %v3932_v40, %v1677_v16 }
 0x17d   : > { %v1750_v41 = vadd.f32 %v3570_v13, %v1711_v31  ;;  %v1781_v0 = vmax.f32 %v1749_v38, 0.0 }
 0x17e   : > { %v1748_v42 = vadd.f32 %v3570_v13, %v1709_v46  ;;  %v2824_v62 = vpop.f32.mrb[60].mxu0  ;;  %v2872_v63 = vpop.f32.mrb[60].mxu1  ;;  %v1779_v2 = vmax.f32 %v1747_v59, 0.0 }
 0x17f   : > { %v1782_v14 = vmax.f32 %v1750_v41, 0.0  ;;  %v1682_v26 = vmax.f32 %v2824_v62, %v2872_v63  ;;  %v1316_v27 = vpop.f32.mrb[61].mxu0  ;;  %v1605_v1 = vpop.f32.mrb[61].mxu1 }
 0x180   : > { %v1780_v15 = vmax.f32 %v1748_v42, 0.0  ;;  %v1680_v43 = vmax.f32 %v1316_v27, %v1605_v1  ;;  %v2825_v3 = vpop.f32.mrb[62].mxu0  ;;  %v2873_v19 = vpop.f32.mrb[62].mxu1 }
 0x181   : > { %v2559_v29 = vpack.c.bf16 %v1782_v14, %v1781_v0  ;;  %v1714_v45 = vmax.f32 %v3935_v44, %v1682_v26  ;;  %v1683_v17 = vmax.f32 %v2825_v3, %v2873_v19  ;;  %v1319_v18 = vpop.f32.mrb[63].mxu0  ;;  %v1608_v4 = vpop.f32.mrb[63].mxu1 }
 0x182   : > { %v2554_v5 = vpack.c.bf16 %v1780_v15, %v1779_v2  ;;  %v1712_v61 = vmax.f32 %v3938_v28, %v1680_v43  ;;  %v1681_v7 = vmax.f32 %v1319_v18, %v1608_v4 }
 0x183   : > { %2583 = vst [vmem:[%s3595_s21 + $0x68] sm:$0xff] %v2559_v29   ;;  %v1753_v37 = vadd.f32 %v3570_v13, %v1714_v45  ;;  %v1715_v50 = vmax.f32 %v3941_v25, %v1683_v17 }
 0x184   : > { %2582 = vst [vmem:[%s3595_s21 + $0x60] sm:$0xff] %v2554_v5   ;;  %v1751_v55 = vadd.f32 %v3570_v13, %v1712_v61  ;;  %v1713_v10 = vmax.f32 %v3944_v9, %v1681_v7 }
 0x185   : > { %v1754_v49 = vadd.f32 %v3570_v13, %v1715_v50  ;;  %v1785_v32 = vmax.f32 %v1753_v37, 0.0 }
 0x186   : > { %v1752_v52 = vadd.f32 %v3570_v13, %v1713_v10  ;;  %v1783_v54 = vmax.f32 %v1751_v55, 0.0  ;;  %1953 = sbr.rel (!%p3182_p4) target bundleno = 467 (0x1d3), region = 48 }
 0x187   : > { %v1786_v53 = vmax.f32 %v1754_v49, 0.0 }
 0x188   : > { %v1784_v33 = vmax.f32 %v1752_v52, 0.0 }
 0x189   : > { %v2569_v20 = vpack.c.bf16 %v1786_v53, %v1785_v32 }
 0x18a   : > { %v2564_v21 = vpack.c.bf16 %v1784_v33, %v1783_v54 }
 0x18b   : > { %2585 = vst [vmem:[%s3595_s21 + $0x78] sm:$0xff] %v2569_v20  }
 0x18c   : > { %2584 = vst [vmem:[%s3595_s21 + $0x70] sm:$0xff] %v2564_v21  }
 0x18d   : > { %s3952_s30 = smov (!%p1956_p8, %s1955_s30), 32 }
 0x18e   : > { %s2441_s12 = sshll.u32 %s3952_s30, 6 }
 0x18f   : > { %p2444_p9 = scmp.eq.s32.totalorder %s2441_s12, 0 }
 0x190   : > { %s3732_s13 = sshrl.u32 (!%p2444_p9), %s3952_s30, 5 }
 0x191   : > { %1964 = sbr.rel (%p2444_p9) target bundleno = 467 (0x1d3), region = 52  ;;  %p2445_p10 = scmp.le.s32.totalorder (!%p2444_p9), %s3732_s13, 0 }
 0x198   : > { %2259 = sbr.rel (%p2445_p10) target bundleno = 446 (0x1be), region = 133  ;;  %s3945_s24 = smov (!%p2445_p10), %s3726_s11 }
 0x199   : > { %s3946_s29 = smov (!%p2445_p10), %s3595_s21  ;;  %s3741_s8 = smov (!%p2445_p10), 0  }
 0x19a   : > { %s3743_s15 = smov (!%p2445_p10), 0  }
 0x19f LB: >> { %v1980_v13 = vld [vmem:[%s3096_s29] sm:$0xf]  ;;  %v1982_v35 = vld [vmem:[%s3096_s29 + $0x4] sm:$0xf]  ;;  %v1984_v36 = vld [vmem:[%s3096_s29 + $0x8] sm:$0xf]  ;;  %s3104_s15 = sphi %s3743_s15, %s1974_s15   ;;  %s3100_s8 = sphi %s3741_s8, %s3947_s8   ;;  %s3096_s29 = sphi %s3946_s29, %s2049_s29   ;;  %s3092_s24 = sphi %s3945_s24, %s2050_s24  }
 0x1a0   : >> { %1981 = vst [vmem:[%s3092_s24] sm:$0xf] %v1980_v13  ;;  %1983 = vst [vmem:[%s3092_s24 + $0x4] sm:$0xf] %v1982_v35  ;;  %v1986_v11 = vld [vmem:[%s3096_s29 + $0xc] sm:$0xf]  ;;  %s2044_s16 = sadd.s32 1, %s3100_s8 }
 0x1a1   : >> { %1985 = vst [vmem:[%s3092_s24 + $0x8] sm:$0xf] %v1984_v36  ;;  %v1988_v12 = vld [vmem:[%s3096_s29 + $0x10] sm:$0xf]  ;;  %v1990_v23 = vld [vmem:[%s3096_s29 + $0x14] sm:$0xf]  ;;  %p2045_p11 = scmp.ge.s32.totalorder %s2044_s16, %s3732_s13 }
 0x1a2   : >> { %1987 = vst [vmem:[%s3092_s24 + $0xc] sm:$0xf] %v1986_v11  ;;  %1989 = vst [vmem:[%s3092_s24 + $0x10] sm:$0xf] %v1988_v12  ;;  %v1992_v24 = vld [vmem:[%s3096_s29 + $0x18] sm:$0xf] }
 0x1a3   : >> { %1991 = vst [vmem:[%s3092_s24 + $0x14] sm:$0xf] %v1990_v23  ;;  %v1994_v16 = vld [vmem:[%s3096_s29 + $0x1c] sm:$0xf]  ;;  %v1996_v38 = vld [vmem:[%s3096_s29 + $0x20] sm:$0xf] }
 0x1a4   : >> { %1993 = vst [vmem:[%s3092_s24 + $0x18] sm:$0xf] %v1992_v24  ;;  %1995 = vst [vmem:[%s3092_s24 + $0x1c] sm:$0xf] %v1994_v16  ;;  %v1998_v56 = vld [vmem:[%s3096_s29 + $0x24] sm:$0xf] }
 0x1a5   : >> { %1997 = vst [vmem:[%s3092_s24 + $0x20] sm:$0xf] %v1996_v38  ;;  %v2000_v57 = vld [vmem:[%s3096_s29 + $0x28] sm:$0xf]  ;;  %v2002_v39 = vld [vmem:[%s3096_s29 + $0x2c] sm:$0xf] }
 0x1a6   : >> { %1999 = vst [vmem:[%s3092_s24 + $0x24] sm:$0xf] %v1998_v56  ;;  %2001 = vst [vmem:[%s3092_s24 + $0x28] sm:$0xf] %v2000_v57  ;;  %v2004_v31 = vld [vmem:[%s3096_s29 + $0x30] sm:$0xf] }
 0x1a7   : >> { %2003 = vst [vmem:[%s3092_s24 + $0x2c] sm:$0xf] %v2002_v39  ;;  %v2006_v59 = vld [vmem:[%s3096_s29 + $0x34] sm:$0xf]  ;;  %v2008_v60 = vld [vmem:[%s3096_s29 + $0x38] sm:$0xf] }
 0x1a8   : >> { %2005 = vst [vmem:[%s3092_s24 + $0x30] sm:$0xf] %v2004_v31  ;;  %2007 = vst [vmem:[%s3092_s24 + $0x34] sm:$0xf] %v2006_v59  ;;  %v2010_v34 = vld [vmem:[%s3096_s29 + $0x3c] sm:$0xf] }
 0x1a9   : >> { %2009 = vst [vmem:[%s3092_s24 + $0x38] sm:$0xf] %v2008_v60  ;;  %v2012_v40 = vld [vmem:[%s3096_s29 + $0x40] sm:$0xf]  ;;  %v2014_v46 = vld [vmem:[%s3096_s29 + $0x44] sm:$0xf] }
 0x1aa   : >> { %2011 = vst [vmem:[%s3092_s24 + $0x3c] sm:$0xf] %v2010_v34  ;;  %2013 = vst [vmem:[%s3092_s24 + $0x40] sm:$0xf] %v2012_v40  ;;  %v2016_v41 = vld [vmem:[%s3096_s29 + $0x48] sm:$0xf] }
 0x1ab   : >> { %2015 = vst [vmem:[%s3092_s24 + $0x44] sm:$0xf] %v2014_v46  ;;  %v2018_v42 = vld [vmem:[%s3096_s29 + $0x4c] sm:$0xf]  ;;  %v2020_v62 = vld [vmem:[%s3096_s29 + $0x50] sm:$0xf] }
 0x1ac   : >> { %2017 = vst [vmem:[%s3092_s24 + $0x48] sm:$0xf] %v2016_v41  ;;  %2019 = vst [vmem:[%s3092_s24 + $0x4c] sm:$0xf] %v2018_v42  ;;  %v2022_v63 = vld [vmem:[%s3096_s29 + $0x54] sm:$0xf] }
 0x1ad   : >> { %2021 = vst [vmem:[%s3092_s24 + $0x50] sm:$0xf] %v2020_v62  ;;  %v2024_v0 = vld [vmem:[%s3096_s29 + $0x58] sm:$0xf]  ;;  %v2026_v14 = vld [vmem:[%s3096_s29 + $0x5c] sm:$0xf] }
 0x1ae   : >> { %2023 = vst [vmem:[%s3092_s24 + $0x54] sm:$0xf] %v2022_v63  ;;  %2025 = vst [vmem:[%s3092_s24 + $0x58] sm:$0xf] %v2024_v0  ;;  %v2028_v26 = vld [vmem:[%s3096_s29 + $0x60] sm:$0xf] }
 0x1af   : >> { %2027 = vst [vmem:[%s3092_s24 + $0x5c] sm:$0xf] %v2026_v14  ;;  %v2030_v27 = vld [vmem:[%s3096_s29 + $0x64] sm:$0xf]  ;;  %v2032_v1 = vld [vmem:[%s3096_s29 + $0x68] sm:$0xf] }
 0x1b0   : >> { %2029 = vst [vmem:[%s3092_s24 + $0x60] sm:$0xf] %v2028_v26  ;;  %2031 = vst [vmem:[%s3092_s24 + $0x64] sm:$0xf] %v2030_v27  ;;  %v2034_v2 = vld [vmem:[%s3096_s29 + $0x6c] sm:$0xf] }
 0x1b1   : >> { %2033 = vst [vmem:[%s3092_s24 + $0x68] sm:$0xf] %v2032_v1  ;;  %v2036_v15 = vld [vmem:[%s3096_s29 + $0x70] sm:$0xf]  ;;  %v2038_v43 = vld [vmem:[%s3096_s29 + $0x74] sm:$0xf] }
 0x1b2   : >> { %2035 = vst [vmem:[%s3092_s24 + $0x6c] sm:$0xf] %v2034_v2  ;;  %2037 = vst [vmem:[%s3092_s24 + $0x70] sm:$0xf] %v2036_v15  ;;  %v2040_v3 = vld [vmem:[%s3096_s29 + $0x78] sm:$0xf] }
 0x1b3   : >> { %2039 = vst [vmem:[%s3092_s24 + $0x74] sm:$0xf] %v2038_v43  ;;  %v2042_v19 = vld [vmem:[%s3096_s29 + $0x7c] sm:$0xf]  ;;  %2041 = vst [vmem:[%s3092_s24 + $0x78] sm:$0xf] %v2040_v3 }
 0x1b4   : >> { %2043 = vst [vmem:[%s3092_s24 + $0x7c] sm:$0xf] %v2042_v19  ;;  %s3954_s16 = smov (%p2045_p11, %s2044_s16), 0  ;;  %s1974_s15 = sadd.s32 1, %s3104_s15  }
 0x1b5   : >> { %s2446_s18 = sshll.u32 %s3954_s16, 7  ;;  %p1973_p12 = scmp.ge.s32.totalorder %s1974_s15, %s3732_s13 }
 0x1b6   : >> { %s2049_s29 = scalar_lea.vmem %s3595_s21, %s2446_s18 [#allocation2]   ;;  %s2050_s24 = scalar_lea.vmem %s3726_s11, %s2446_s18  }
 0x1b7   : >> { %s3947_s8 = smov %s3954_s16  ;;  %1976 = sbr.rel (!%p1973_p12) target bundleno = 415 (0x19f), region = 139 }
 0x1be PF: > { %s3836_s19 = sand.u32 31, %s3952_s30   ;;  %s2489_s23 = sshll.u32 %s3732_s13, 7 }
 0x1bf   : > { %s2055_s26 = scalar_lea.vmem %s3595_s21, %s2489_s23 [#allocation2]   ;;  %s2057_s14 = scalar_lea.vmem %s3726_s11, %s2489_s23  }
 0x1c0   : > { %p2451_p13 = scmp.le.s32.totalorder %s3836_s19, 0 }
 0x1c1   : > { %s3106_s17 = smov (!%p2451_p13), %s2057_s14   ;;  %s3110_s20 = smov (!%p2451_p13), %s2055_s26  }
 0x1c2   : > { %2273 = sbr.rel (%p2451_p13) target bundleno = 467 (0x1d3), region = 144  ;;  %s3114_s27 = smov (!%p2451_p13), 0  }
 0x1c3   : > { %s3118_s7 = smov (!%p2451_p13), 0  }
 0x1c9 LB: >> { %v2067_v29 = vld [vmem:[%s3112_s20] sm:$0xf]  ;;  %s2069_s30 = sadd.s32 1, %s3116_s27  ;;  %s2061_s7 = sadd.s32 1, %s3120_s7   ;;  %s3120_s7 = sphi %s3118_s7, %s2061_s7   ;;  %s3116_s27 = sphi %s3114_s27, %s3115_s27   ;;  %s3112_s20 = sphi %s3110_s20, %s2074_s20   ;;  %s3108_s17 = sphi %s3106_s17, %s2075_s17  }
 0x1ca   : >> { %2068 = vst [vmem:[%s3108_s17] sm:$0xf] %v2067_v29  ;;  %p2070_p0 = scmp.ge.s32.totalorder %s2069_s30, %s3836_s19  ;;  %p2060_p1 = scmp.ge.s32.totalorder %s2061_s7, %s3836_s19 }
 0x1cc   : >> { %s3956_s30 = smov (%p2070_p0, %s2069_s30), 0  ;;  %2063 = sbr.rel (!%p2060_p1) target bundleno = 457 (0x1c9), region = 150 }
 0x1cd   : >> { %s2452_s21 = sshll.u32 %s3956_s30, 2  ;;  %s3115_s27 = smov %s3956_s30  }
 0x1ce   : >> { %s2074_s20 = scalar_lea.vmem %s2055_s26, %s2452_s21 [#allocation2]   ;;  %s2075_s17 = scalar_lea.vmem %s2057_s14, %s2452_s21  }
 0x1d3 PF: > { %p13_p2 = scmp.ge.s32.totalorder %s3172_s25, 4   ;;  %s3948_s21 = smov %s3084_s22 }
 0x1d4   : > { %s3949_s22 = smov %s3180_s28  ;;  %s3950_s23 = smov %s3172_s25 }
 0x1d5   :  { %15 = sbr.rel (!%p13_p2) target bundleno = 2 (0x2), region = 161 }

// kernel: net_cifar100_s_forward.5
= control target key start
LH: loop header
LB: loop body
LE: loop exit
PB: predicated region body
PF: predicated region fallthrough
CT: control target
= control target key end

     0   :  { %10 = vsyncpa [#allocation3], 0  ;;  %v468_v28 = vlaneseq  ;;  %v3368_v33 = vmov 1966171168   ;;  %vm3370_vm0 = vmmov 0   ;;  %s4150_s0 = inlined_call_operand.vmem [shape: bf16[2,3200], index: 0, kind: input, shape index: {}]   ;;  %s4151_s1 = inlined_call_operand.vmem [shape: bf16[3200,128], index: 1, kind: input, shape index: {}]   ;;  %s4152_s2 = inlined_call_operand.vmem [shape: f32[1,128], index: 2, kind: input, shape index: {}]   ;;  %s4153_s3 = inlined_call_operand.vmem [shape: f32[128,128], index: 3, kind: input, shape index: {}]   ;;  %s4154_s4 = inlined_call_operand.vmem [shape: f32[1,128], index: 4, kind: input, shape index: {}]   ;;  %s4155_s5 = inlined_call_operand.hbm [shape: f32[2,128], index: 5, kind: output, shape index: {}]  }
   0x1   :  { %v3124_v0 = vld [vmem:[%s4151_s1 + $0x40] sm:$0xff]   ;;  %v3128_v4 = vld [vmem:[%s4151_s1 + $0x48] sm:$0xff]   ;;  %v3132_v8 = vld [vmem:[%s4151_s1 + $0x50] sm:$0xff]   ;;  %v466_v34 = vunpack.c.l.s4 %v3368_v33 }
   0x2   :  { %v3125_v1 = vld [vmem:[%s4151_s1] sm:$0xff]   ;;  %2748 = vmatprep.subr.bf16.mxu0 %v3124_v0  ;;  %v3129_v5 = vld [vmem:[%s4151_s1 + $0x8] sm:$0xff]   ;;  %v3133_v9 = vld [vmem:[%s4151_s1 + $0x10] sm:$0xff]   ;;  %v469_v35 = vshrl.u32 %v468_v28, 7 }
   0x3   :  { %v3126_v2 = vld [vmem:[%s4151_s1 + $0xc0] sm:$0xff]   ;;  %2749 = vmatpush3.bf16.msra.mxu0 %v3125_v1  ;;  %v3130_v6 = vld [vmem:[%s4151_s1 + $0xc8] sm:$0xff]   ;;  %v3134_v10 = vld [vmem:[%s4151_s1 + $0xd0] sm:$0xff]   ;;  %v467_v39 = vunpack.c.0.s8 %v466_v34 }
   0x4   :  { %v3127_v3 = vld [vmem:[%s4151_s1 + $0x80] sm:$0xff]   ;;  %2770 = vmatprep.subr.bf16.mxu1 %v3126_v2  ;;  %2750 = vmatprep.subr.bf16.mxu0 %v3128_v4  ;;  %v3131_v7 = vld [vmem:[%s4151_s1 + $0x88] sm:$0xff]   ;;  %v3135_v11 = vld [vmem:[%s4151_s1 + $0x90] sm:$0xff]  }
   0x5   :  { %2771 = vmatpush3.bf16.msra.mxu1 %v3127_v3  ;;  %v3136_v12 = vld [vmem:[%s4151_s1 + $0x58] sm:$0xff]   ;;  %v3140_v16 = vld [vmem:[%s4151_s1 + $0x60] sm:$0xff]   ;;  %v3144_v20 = vld [vmem:[%s4151_s1 + $0x68] sm:$0xff]   ;;  %v3516_v42 = vsub.s32 %v467_v39, %v469_v35 }
   0x6   :  { %2772 = vmatprep.subr.bf16.mxu1 %v3130_v6  ;;  %v3137_v13 = vld [vmem:[%s4151_s1 + $0x18] sm:$0xff]   ;;  %v3141_v17 = vld [vmem:[%s4151_s1 + $0x20] sm:$0xff]   ;;  %v3145_v21 = vld [vmem:[%s4151_s1 + $0x28] sm:$0xff]  }
   0x7   :  { %2751 = vmatpush3.bf16.msra.mxu0 %v3129_v5  ;;  %v3138_v14 = vld [vmem:[%s4151_s1 + $0xd8] sm:$0xff]   ;;  %v3142_v18 = vld [vmem:[%s4151_s1 + $0xe0] sm:$0xff]   ;;  %v3146_v22 = vld [vmem:[%s4151_s1 + $0xe8] sm:$0xff]  }
   0x8   :  { %2752 = vmatprep.subr.bf16.mxu0 %v3132_v8  ;;  %v3139_v15 = vld [vmem:[%s4151_s1 + $0x98] sm:$0xff]   ;;  %v3143_v19 = vld [vmem:[%s4151_s1 + $0xa0] sm:$0xff]   ;;  %v3147_v23 = vld [vmem:[%s4151_s1 + $0xa8] sm:$0xff]  }
   0x9   :  { %2773 = vmatpush3.bf16.msra.mxu1 %v3131_v7  ;;  %v3148_v24 = vld [vmem:[%s4151_s1 + $0x70] sm:$0xff]   ;;  %v3152_v29 = vld [vmem:[%s4151_s1 + $0x78] sm:$0xff]   ;;  %v3162_v41 = vld [vmem:[%s4151_s1 + $0x140] sm:$0xff]  }
   0xa   :  { %2774 = vmatprep.subr.bf16.mxu1 %v3134_v10  ;;  %v3149_v25 = vld [vmem:[%s4151_s1 + $0x30] sm:$0xff]   ;;  %v3153_v30 = vld [vmem:[%s4151_s1 + $0x38] sm:$0xff]   ;;  %v3164_v43 = vld [vmem:[%s4151_s1 + $0x1c0] sm:$0xff]  }
   0xb   :  { %2753 = vmatpush3.bf16.msra.mxu0 %v3133_v9  ;;  %v3150_v26 = vld [vmem:[%s4151_s1 + $0xf0] sm:$0xff]   ;;  %v3154_v31 = vld [vmem:[%s4151_s1 + $0xf8] sm:$0xff]   ;;  %v3163_v51 = vld [vmem:[%s4151_s1 + $0x100] sm:$0xff]  }
   0xc   :  { %2754 = vmatprep.subr.bf16.mxu0 %v3136_v12  ;;  %v3151_v27 = vld [vmem:[%s4151_s1 + $0xb0] sm:$0xff]   ;;  %v3155_v32 = vld [vmem:[%s4150_s0] ss:$25 sps:$4 sm:$0xff]   ;;  %v3166_v56 = vld [vmem:[%s4151_s1 + $0x148] sm:$0xff]  }
   0xd   :  { %2775 = vmatpush3.bf16.msra.mxu1 %v3135_v11  ;;  %v3157_v36 = vld [vmem:[%s4150_s0 + $0x4] ss:$25 sps:$4 sm:$0xff]   ;;  %v3158_v37 = vld [vmem:[%s4150_s0 + $0x32] ss:$25 sps:$4 sm:$0xff]   ;;  %v471_v44 = vrot.slane %v3155_v32, %v3516_v42 }
   0xe   :  { %2776 = vmatprep.subr.bf16.mxu1 %v3138_v14  ;;  %v3160_v38 = vld [vmem:[%s4150_s0 + $0x36] ss:$25 sps:$4 sm:$0xff]   ;;  %v485_v45 = vrot.slane %v3158_v37, %v3516_v42  ;;  %v3524_v46 = vrot.slane %v3157_v36, %v3516_v42  ;;  %v3165_v54 = vld [vmem:[%s4151_s1 + $0x180] sm:$0xff]  }
   0xf   :  { %2755 = vmatpush3.bf16.msra.mxu0 %v3137_v13  ;;  %v3161_v40 = vld [vmem:[%s4151_s1 + $0xb8] sm:$0xff]   ;;  %v3527_v47 = vrot.slane %v3160_v38, %v3516_v42  ;;  %v3167_v59 = vld [vmem:[%s4151_s1 + $0x108] sm:$0xff]   ;;  %v3170_v63 = vld [vmem:[%s4151_s1 + $0x150] sm:$0xff]  }
  0x10   :  { %2756 = vmatprep.subr.bf16.mxu0 %v3140_v16  ;;  %v494_v48 = vcombine.high %v471_v44, %v485_v45  ;;  %v493_v49 = vcombine.low %v471_v44, %v485_v45  ;;  %v3168_v60 = vld [vmem:[%s4151_s1 + $0x1c8] sm:$0xff]   ;;  %v3171_v0 = vld [vmem:[%s4151_s1 + $0x110] sm:$0xff]   ;;  %v3174_v3 = vld [vmem:[%s4151_s1 + $0x158] sm:$0xff]  }
  0x11   :  { %2777 = vmatpush3.bf16.msra.mxu1 %v3139_v15  ;;  %v496_v50 = vcombine.high %v3524_v46, %v3527_v47  ;;  %v3169_v62 = vld [vmem:[%s4151_s1 + $0x188] sm:$0xff]   ;;  %v3172_v1 = vld [vmem:[%s4151_s1 + $0x1d0] sm:$0xff]   ;;  %v3175_v4 = vld [vmem:[%s4151_s1 + $0x118] sm:$0xff]  }
  0x12   :  { %2778 = vmatprep.subr.bf16.mxu1 %v3142_v18  ;;  %v517_v52 = vrot.slane %v494_v48, %v3516_v42  ;;  %v503_v53 = vrot.slane %v493_v49, %v3516_v42  ;;  %v3173_v2 = vld [vmem:[%s4151_s1 + $0x190] sm:$0xff]   ;;  %v3176_v5 = vld [vmem:[%s4151_s1 + $0x1d8] sm:$0xff]   ;;  %v3178_v7 = vld [vmem:[%s4151_s1 + $0x160] sm:$0xff]  }
  0x13   :  { %2757 = vmatpush3.bf16.msra.mxu0 %v3141_v17  ;;  %v524_v55 = vrot.slane %v496_v50, %v3516_v42  ;;  %v3177_v6 = vld [vmem:[%s4151_s1 + $0x198] sm:$0xff]   ;;  %v3179_v8 = vld [vmem:[%s4151_s1 + $0x120] sm:$0xff]   ;;  %v3182_v11 = vld [vmem:[%s4151_s1 + $0x168] sm:$0xff]  }
  0x14   :  { %2758 = vmatprep.subr.bf16.mxu0 %v3144_v20  ;;  %1946 = vmatprep.mubr.bf16.mxu0 %v517_v52  ;;  %v527_v57 = vcombine.high %v517_v52, %v517_v52  ;;  %v525_v58 = vcombine.high %v503_v53, %v503_v53  ;;  %v3180_v9 = vld [vmem:[%s4151_s1 + $0x1e0] sm:$0xff]   ;;  %v3183_v12 = vld [vmem:[%s4151_s1 + $0x128] sm:$0xff]   ;;  %v3186_v15 = vld [vmem:[%s4151_s1 + $0x170] sm:$0xff]   ;;  %v495_v20 = vcombine.low %v3524_v46, %v3527_v47 }
  0x15   :  { %2779 = vmatpush3.bf16.msra.mxu1 %v3143_v19  ;;  %v528_v61 = vcombine.high %v524_v55, %v524_v55  ;;  %v3181_v10 = vld [vmem:[%s4151_s1 + $0x1a0] sm:$0xff]   ;;  %v3184_v13 = vld [vmem:[%s4151_s1 + $0x1e8] sm:$0xff]   ;;  %v3187_v16 = vld [vmem:[%s4151_s1 + $0x130] sm:$0xff]  }
  0x16   :  { %2780 = vmatprep.subr.bf16.mxu1 %v3146_v22  ;;  %1986 = vmatprep.mubr.bf16.mxu1 %v527_v57  ;;  %v3185_v14 = vld [vmem:[%s4151_s1 + $0x1a8] sm:$0xff]   ;;  %v3188_v17 = vld [vmem:[%s4151_s1 + $0x1f0] sm:$0xff]   ;;  %v3190_v19 = vld [vmem:[%s4151_s1 + $0x178] sm:$0xff]  }
  0x17   :  { %2759 = vmatpush3.bf16.msra.mxu0 %v3145_v21  ;;  %v3189_v18 = vld [vmem:[%s4151_s1 + $0x1b0] sm:$0xff]   ;;  %v3191_v21 = vld [vmem:[%s4151_s1 + $0x138] sm:$0xff]   ;;  %v3197_v28 = vld [vmem:[%s4151_s1 + $0x280] sm:$0xff]  }
  0x18   :  { %2760 = vmatprep.subr.bf16.mxu0 %v3148_v24  ;;  %v3192_v22 = vld [vmem:[%s4151_s1 + $0x1f8] sm:$0xff]   ;;  %v510_v24 = vrot.slane %v495_v20, %v3516_v42  ;;  %v3200_v32 = vld [vmem:[%s4151_s1 + $0x2c8] sm:$0xff]   ;;  %v3202_v34 = vld [vmem:[%s4151_s1 + $0x250] sm:$0xff]  }
  0x19   :  { %2781 = vmatpush3.bf16.msra.mxu1 %v3147_v23  ;;  %v3193_v23 = vld [vmem:[%s4151_s1 + $0x1b8] sm:$0xff]   ;;  %v3201_v33 = vld [vmem:[%s4151_s1 + $0x288] sm:$0xff]   ;;  %v3203_v35 = vld [vmem:[%s4151_s1 + $0x210] sm:$0xff]  }
  0x1a   :  { %2782 = vmatprep.subr.bf16.mxu1 %v3150_v26  ;;  %v3195_v26 = vld [vmem:[%s4151_s1 + $0x200] sm:$0xff]   ;;  %v3204_v36 = vld [vmem:[%s4151_s1 + $0x2d0] sm:$0xff]   ;;  %v3206_v38 = vld [vmem:[%s4151_s1 + $0x258] sm:$0xff]  }
  0x1b   :  { %2761 = vmatpush3.bf16.msra.mxu0 %v3149_v25  ;;  %v3194_v25 = vld [vmem:[%s4151_s1 + $0x240] sm:$0xff]   ;;  %v3205_v37 = vld [vmem:[%s4151_s1 + $0x290] sm:$0xff]   ;;  %v3207_v39 = vld [vmem:[%s4151_s1 + $0x218] sm:$0xff]  }
  0x1c   :  { %2762 = vmatprep.subr.bf16.mxu0 %v3152_v29  ;;  %v526_v29 = vcombine.high %v510_v24, %v510_v24  ;;  %v3211_v44 = vld [vmem:[%s4151_s1 + $0x220] sm:$0xff]   ;;  %v3214_v47 = vld [vmem:[%s4151_s1 + $0x268] sm:$0xff]   ;;  %v3219_v52 = vld [vmem:[%s4151_s1 + $0x230] sm:$0xff]  }
  0x1d   :  { %2783 = vmatpush3.bf16.msra.mxu1 %v3151_v27  ;;  %v3196_v27 = vld [vmem:[%s4151_s1 + $0x2c0] sm:$0xff]   ;;  %v3215_v48 = vld [vmem:[%s4151_s1 + $0x228] sm:$0xff]   ;;  %v3227_v57 = vld [vmem:[%s4150_s0 + $0x3a] ss:$25 sps:$4 sm:$0xff]  }
  0x1e   :  { %2784 = vmatprep.subr.bf16.mxu1 %v3154_v31  ;;  %v3199_v31 = vld [vmem:[%s4151_s1 + $0x208] sm:$0xff]   ;;  %v3212_v45 = vld [vmem:[%s4151_s1 + $0x2e0] sm:$0xff]   ;;  %v3245_v20 = vld [vmem:[%s4151_s1 + $0x398] sm:$0xff]  }
  0x1f   :  { %2763 = vmatpush3.bf16.msra.mxu0 %v3153_v30  ;;  %v3198_v30 = vld [vmem:[%s4151_s1 + $0x248] sm:$0xff]   ;;  %v3213_v46 = vld [vmem:[%s4151_s1 + $0x2a0] sm:$0xff]  }
  0x20   :  { %2792 = vmatprep.subr.bf16.mxu0 %v3162_v41  ;;  %v3209_v41 = vld [vmem:[%s4151_s1 + $0x298] sm:$0xff]   ;;  %v3216_v49 = vld [vmem:[%s4151_s1 + $0x2e8] sm:$0xff]  }
  0x21   :  { %2785 = vmatpush3.bf16.msra.mxu1 %v3161_v40  ;;  %v3208_v40 = vld [vmem:[%s4151_s1 + $0x2d8] sm:$0xff]   ;;  %v3217_v50 = vld [vmem:[%s4151_s1 + $0x2a8] sm:$0xff]  }
  0x22   :  { %2814 = vmatprep.subr.bf16.mxu1 %v3164_v43  ;;  %1947 = vmatmul.mubr.bf16.vlgmr.msra.gmra.mrb[0].mxu0 %v503_v53  ;;  %v3210_v43 = vld [vmem:[%s4151_s1 + $0x260] sm:$0xff]   ;;  %v3220_v53 = vld [vmem:[%s4151_s1 + $0x2f0] sm:$0xff]  }
  0x23   :  { %2793 = vmatpush3.bf16.msra.mxu0 %v3163_v51  ;;  %2026 = vmatprep.mubr.bf16.mxu0 %v524_v55  ;;  %v3218_v51 = vld [vmem:[%s4151_s1 + $0x270] sm:$0xff]  }
  0x24   :  { %1987 = vmatmul.mubr.bf16.vlgmr.msra.gmra.mrb[0].mxu1 %v525_v58  ;;  %2794 = vmatprep.subr.bf16.mxu0 %v3166_v56  ;;  %v3221_v55 = vld [vmem:[%s4151_s1 + $0x2b0] sm:$0xff]   ;;  %v3225_v56 = vld [vmem:[%s4150_s0 + $0x8] ss:$25 sps:$4 sm:$0xff]   ;;  %v3223_v58 = vld [vmem:[%s4151_s1 + $0x238] sm:$0xff]  }
  0x25   :  { %2815 = vmatpush3.bf16.msra.mxu1 %v3165_v54  ;;  %2066 = vmatprep.mubr.bf16.mxu1 %v528_v61  ;;  %v3222_v54 = vld [vmem:[%s4151_s1 + $0x278] sm:$0xff]   ;;  %v553_v61 = vrot.slane %v3227_v57, %v3516_v42  ;;  %v3273_v57 = vld [vmem:[%s4151_s1 + $0x410] sm:$0xff]  }
  0x26   :  { %2816 = vmatprep.subr.bf16.mxu1 %v3168_v60  ;;  %v539_v60 = vrot.slane %v3225_v56, %v3516_v42  ;;  %v3272_v56 = vld [vmem:[%s4151_s1 + $0x450] sm:$0xff]  }
  0x27   :  { %2795 = vmatpush3.bf16.msra.mxu0 %v3167_v59  ;;  %v3224_v59 = vld [vmem:[%s4151_s1 + $0x2f8] sm:$0xff]  }
  0x28   :  { %2796 = vmatprep.subr.bf16.mxu0 %v3170_v63  ;;  %v562_v63 = vcombine.high %v539_v60, %v553_v61 }
  0x29   :  { %2817 = vmatpush3.bf16.msra.mxu1 %v3169_v62  ;;  %v3229_v62 = vld [vmem:[%s4151_s1 + $0x2b8] sm:$0xff]  }
  0x2a   :  { %2818 = vmatprep.subr.bf16.mxu1 %v3172_v1  ;;  %v3230_v1 = vld [vmem:[%s4151_s1 + $0x340] sm:$0xff]  }
  0x2b   :  { %2797 = vmatpush3.bf16.msra.mxu0 %v3171_v0  ;;  %v561_v0 = vcombine.low %v539_v60, %v553_v61  ;;  %v3276_v60 = vld [vmem:[%s4151_s1 + $0x458] sm:$0xff]  }
  0x2c   :  { %2798 = vmatprep.subr.bf16.mxu0 %v3174_v3  ;;  %v585_v3 = vrot.slane %v562_v63, %v3516_v42  ;;  %v3277_v61 = vld [vmem:[%s4151_s1 + $0x418] sm:$0xff]  }
  0x2d   :  { %2819 = vmatpush3.bf16.msra.mxu1 %v3173_v2  ;;  %v3231_v2 = vld [vmem:[%s4151_s1 + $0x300] sm:$0xff]   ;;  %v3279_v63 = vld [vmem:[%s4151_s1 + $0x498] sm:$0xff]  }
  0x2e   :  { %2820 = vmatprep.subr.bf16.mxu1 %v3176_v5  ;;  %v3232_v5 = vld [vmem:[%s4151_s1 + $0x3c0] sm:$0xff]  }
  0x2f   :  { %2799 = vmatpush3.bf16.msra.mxu0 %v3175_v4  ;;  %v571_v4 = vrot.slane %v561_v0, %v3516_v42  ;;  %v3280_v0 = vld [vmem:[%s4151_s1 + $0x460] sm:$0xff]  }
  0x30   :  { %2800 = vmatprep.subr.bf16.mxu0 %v3178_v7  ;;  %v595_v7 = vcombine.high %v585_v3, %v585_v3 }
  0x31   :  { %2821 = vmatpush3.bf16.msra.mxu1 %v3177_v6  ;;  %v3233_v6 = vld [vmem:[%s4151_s1 + $0x380] sm:$0xff]  }
  0x32   :  { %2822 = vmatprep.subr.bf16.mxu1 %v3180_v9  ;;  %v3234_v9 = vld [vmem:[%s4151_s1 + $0x348] sm:$0xff]  }
  0x33   :  { %2801 = vmatpush3.bf16.msra.mxu0 %v3179_v8  ;;  %v593_v8 = vcombine.high %v571_v4, %v571_v4 }
  0x34   :  { %2802 = vmatprep.subr.bf16.mxu0 %v3182_v11  ;;  %v3236_v11 = vld [vmem:[%s4151_s1 + $0x3c8] sm:$0xff]  }
  0x35   :  { %2823 = vmatpush3.bf16.msra.mxu1 %v3181_v10  ;;  %v3235_v10 = vld [vmem:[%s4151_s1 + $0x308] sm:$0xff]  }
  0x36   :  { %2824 = vmatprep.subr.bf16.mxu1 %v3184_v13  ;;  %v3238_v13 = vld [vmem:[%s4151_s1 + $0x350] sm:$0xff]  }
  0x37   :  { %2803 = vmatpush3.bf16.msra.mxu0 %v3183_v12  ;;  %v3237_v12 = vld [vmem:[%s4151_s1 + $0x388] sm:$0xff]  }
  0x38   :  { %2804 = vmatprep.subr.bf16.mxu0 %v3186_v15  ;;  %v3240_v15 = vld [vmem:[%s4151_s1 + $0x3d0] sm:$0xff]  }
  0x39   :  { %2825 = vmatpush3.bf16.msra.mxu1 %v3185_v14  ;;  %v3239_v14 = vld [vmem:[%s4151_s1 + $0x310] sm:$0xff]  }
  0x3a   :  { %2826 = vmatprep.subr.bf16.mxu1 %v3188_v17  ;;  %v3242_v17 = vld [vmem:[%s4151_s1 + $0x358] sm:$0xff]  }
  0x3b   :  { %2805 = vmatpush3.bf16.msra.mxu0 %v3187_v16  ;;  %v3241_v16 = vld [vmem:[%s4151_s1 + $0x390] sm:$0xff]  }
  0x3c   :  { %2806 = vmatprep.subr.bf16.mxu0 %v3190_v19  ;;  %v3244_v19 = vld [vmem:[%s4151_s1 + $0x3d8] sm:$0xff]  }
  0x3d   :  { %2827 = vmatpush3.bf16.msra.mxu1 %v3189_v18  ;;  %v3243_v18 = vld [vmem:[%s4151_s1 + $0x318] sm:$0xff]  }
  0x3e   :  { %2828 = vmatprep.subr.bf16.mxu1 %v3192_v22  ;;  %v3247_v22 = vld [vmem:[%s4151_s1 + $0x320] sm:$0xff]  }
  0x3f   :  { %2807 = vmatpush3.bf16.msra.mxu0 %v3191_v21  ;;  %v3246_v21 = vld [vmem:[%s4151_s1 + $0x360] sm:$0xff]  }
  0x40   :  { %2836 = vmatprep.subr.bf16.mxu0 %v3194_v25  ;;  %v3250_v25 = vld [vmem:[%s4151_s1 + $0x368] sm:$0xff]  }
  0x41   :  { %2829 = vmatpush3.bf16.msra.mxu1 %v3193_v23  ;;  %v3248_v23 = vld [vmem:[%s4151_s1 + $0x3e0] sm:$0xff]  }
  0x42   :  { %2027 = vmatmul.mubr.bf16.vlgmr.msra.gmra.mrb[4].mxu0 %v510_v24  ;;  %2858 = vmatprep.subr.bf16.mxu1 %v3196_v27  ;;  %v3249_v24 = vld [vmem:[%s4151_s1 + $0x3a0] sm:$0xff]   ;;  %v3252_v27 = vld [vmem:[%s4151_s1 + $0x3e8] sm:$0xff]  }
  0x43   :  { %2837 = vmatpush3.bf16.msra.mxu0 %v3195_v26  ;;  %2106 = vmatprep.mubr.bf16.mxu0 %v585_v3  ;;  %v3251_v26 = vld [vmem:[%s4151_s1 + $0x328] sm:$0xff]   ;;  %v3283_v3 = vld [vmem:[%s4151_s1 + $0x4a0] sm:$0xff]  }
  0x44   :  { %2067 = vmatmul.mubr.bf16.vlgmr.msra.gmra.mrb[4].mxu1 %v526_v29  ;;  %2838 = vmatprep.subr.bf16.mxu0 %v3198_v30  ;;  %v3254_v29 = vld [vmem:[%s4151_s1 + $0x370] sm:$0xff]  }
  0x45   :  { %2859 = vmatpush3.bf16.msra.mxu1 %v3197_v28  ;;  %2146 = vmatprep.mubr.bf16.mxu1 %v595_v7  ;;  %v3253_v28 = vld [vmem:[%s4151_s1 + $0x3a8] sm:$0xff]   ;;  %v3255_v30 = vld [vmem:[%s4151_s1 + $0x330] sm:$0xff]  }
  0x46   :  { %2860 = vmatprep.subr.bf16.mxu1 %v3200_v32  ;;  %v3257_v32 = vld [vmem:[%s4151_s1 + $0x3b0] sm:$0xff]   ;;  %v3287_v7 = vld [vmem:[%s4151_s1 + $0x4a8] sm:$0xff]  }
  0x47   :  { %2839 = vmatpush3.bf16.msra.mxu0 %v3199_v31  ;;  %v3256_v31 = vld [vmem:[%s4151_s1 + $0x3f0] sm:$0xff]  }
  0x48   :  { %2840 = vmatprep.subr.bf16.mxu0 %v3202_v34  ;;  %v3259_v34 = vld [vmem:[%s4151_s1 + $0x338] sm:$0xff]  }
  0x49   :  { %2861 = vmatpush3.bf16.msra.mxu1 %v3201_v33  ;;  %v3258_v33 = vld [vmem:[%s4151_s1 + $0x378] sm:$0xff]  }
  0x4a   :  { %2862 = vmatprep.subr.bf16.mxu1 %v3204_v36  ;;  %v3262_v36 = vld [vmem:[%s4150_s0 + $0x3e] ss:$25 sps:$4 sm:$0xff]  }
  0x4b   :  { %2841 = vmatpush3.bf16.msra.mxu0 %v3203_v35  ;;  %v3261_v35 = vld [vmem:[%s4150_s0 + $0xc] ss:$25 sps:$4 sm:$0xff]  }
  0x4c   :  { %2842 = vmatprep.subr.bf16.mxu0 %v3206_v38  ;;  %v546_v38 = vrot.slane %v3261_v35, %v3516_v42  ;;  %v3309_v35 = vld [vmem:[%s4151_s1 + $0x510] sm:$0xff]  }
  0x4d   :  { %2863 = vmatpush3.bf16.msra.mxu1 %v3205_v37  ;;  %v3260_v37 = vld [vmem:[%s4151_s1 + $0x3f8] sm:$0xff]  }
  0x4e   :  { %2864 = vmatprep.subr.bf16.mxu1 %v3208_v40  ;;  %v3263_v40 = vld [vmem:[%s4151_s1 + $0x3b8] sm:$0xff]  }
  0x4f   :  { %2843 = vmatpush3.bf16.msra.mxu0 %v3207_v39  ;;  %v560_v39 = vrot.slane %v3262_v36, %v3516_v42  ;;  %v3310_v36 = vld [vmem:[%s4151_s1 + $0x5d0] sm:$0xff]  }
  0x50   :  { %2844 = vmatprep.subr.bf16.mxu0 %v3210_v43 }
  0x51   :  { %2865 = vmatpush3.bf16.msra.mxu1 %v3209_v41  ;;  %v3264_v41 = vld [vmem:[%s4151_s1 + $0x440] sm:$0xff]   ;;  %v564_v43 = vcombine.high %v546_v38, %v560_v39 }
  0x52   :  { %2866 = vmatprep.subr.bf16.mxu1 %v3212_v45  ;;  %v3265_v45 = vld [vmem:[%s4151_s1 + $0x400] sm:$0xff]  }
  0x53   :  { %2845 = vmatpush3.bf16.msra.mxu0 %v3211_v44  ;;  %v563_v44 = vcombine.low %v546_v38, %v560_v39  ;;  %v3312_v38 = vld [vmem:[%s4151_s1 + $0x558] sm:$0xff]  }
  0x54   :  { %2846 = vmatprep.subr.bf16.mxu0 %v3214_v47  ;;  %v592_v47 = vrot.slane %v564_v43, %v3516_v42  ;;  %v3313_v39 = vld [vmem:[%s4151_s1 + $0x518] sm:$0xff]   ;;  %v3316_v43 = vld [vmem:[%s4151_s1 + $0x560] sm:$0xff]  }
  0x55   :  { %2867 = vmatpush3.bf16.msra.mxu1 %v3213_v46  ;;  %v3266_v46 = vld [vmem:[%s4151_s1 + $0x4c0] sm:$0xff]  }
  0x56   :  { %2868 = vmatprep.subr.bf16.mxu1 %v3216_v49  ;;  %v3267_v49 = vld [vmem:[%s4151_s1 + $0x480] sm:$0xff]  }
  0x57   :  { %2847 = vmatpush3.bf16.msra.mxu0 %v3215_v48  ;;  %v578_v48 = vrot.slane %v563_v44, %v3516_v42  ;;  %v3317_v44 = vld [vmem:[%s4151_s1 + $0x520] sm:$0xff]  }
  0x58   :  { %2848 = vmatprep.subr.bf16.mxu0 %v3218_v51  ;;  %v596_v51 = vcombine.high %v592_v47, %v592_v47 }
  0x59   :  { %2869 = vmatpush3.bf16.msra.mxu1 %v3217_v50  ;;  %v3268_v50 = vld [vmem:[%s4151_s1 + $0x448] sm:$0xff]  }
  0x5a   :  { %2870 = vmatprep.subr.bf16.mxu1 %v3220_v53  ;;  %v3269_v53 = vld [vmem:[%s4151_s1 + $0x408] sm:$0xff]  }
  0x5b   :  { %2849 = vmatpush3.bf16.msra.mxu0 %v3219_v52  ;;  %v594_v52 = vcombine.high %v578_v48, %v578_v48 }
  0x5c   :  { %2850 = vmatprep.subr.bf16.mxu0 %v3222_v54  ;;  %v3270_v54 = vld [vmem:[%s4151_s1 + $0x4c8] sm:$0xff]  }
  0x5d   :  { %2871 = vmatpush3.bf16.msra.mxu1 %v3221_v55  ;;  %v3271_v55 = vld [vmem:[%s4151_s1 + $0x488] sm:$0xff]  }
  0x5e   :  { %2872 = vmatprep.subr.bf16.mxu1 %v3224_v59  ;;  %v3275_v59 = vld [vmem:[%s4151_s1 + $0x490] sm:$0xff]  }
  0x5f   :  { %2851 = vmatpush3.bf16.msra.mxu0 %v3223_v58  ;;  %v3274_v58 = vld [vmem:[%s4151_s1 + $0x4d0] sm:$0xff]  }
  0x60   :  { %2880 = vmatprep.subr.bf16.mxu0 %v3230_v1  ;;  %v3281_v1 = vld [vmem:[%s4151_s1 + $0x420] sm:$0xff]  }
  0x61   :  { %2873 = vmatpush3.bf16.msra.mxu1 %v3229_v62  ;;  %v3278_v62 = vld [vmem:[%s4151_s1 + $0x4d8] sm:$0xff]  }
  0x62   :  { %2107 = vmatmul.mubr.bf16.vlgmr.msra.gmra.mrb[8].mxu0 %v571_v4  ;;  %2902 = vmatprep.subr.bf16.mxu1 %v3232_v5  ;;  %v3284_v4 = vld [vmem:[%s4151_s1 + $0x468] sm:$0xff]  }
  0x63   :  { %2881 = vmatpush3.bf16.msra.mxu0 %v3231_v2  ;;  %2186 = vmatprep.mubr.bf16.mxu0 %v592_v47  ;;  %v3282_v2 = vld [vmem:[%s4151_s1 + $0x4e0] sm:$0xff]   ;;  %v3285_v5 = vld [vmem:[%s4151_s1 + $0x428] sm:$0xff]  }
  0x64   :  { %2147 = vmatmul.mubr.bf16.vlgmr.msra.gmra.mrb[8].mxu1 %v593_v8  ;;  %2882 = vmatprep.subr.bf16.mxu0 %v3234_v9  ;;  %v3288_v8 = vld [vmem:[%s4151_s1 + $0x470] sm:$0xff]   ;;  %v3320_v47 = vld [vmem:[%s4151_s1 + $0x568] sm:$0xff]  }
  0x65   :  { %2903 = vmatpush3.bf16.msra.mxu1 %v3233_v6  ;;  %2226 = vmatprep.mubr.bf16.mxu1 %v596_v51  ;;  %v3286_v6 = vld [vmem:[%s4151_s1 + $0x4e8] sm:$0xff]   ;;  %v3289_v9 = vld [vmem:[%s4151_s1 + $0x430] sm:$0xff]  }
  0x66   :  { %2904 = vmatprep.subr.bf16.mxu1 %v3236_v11  ;;  %v3291_v11 = vld [vmem:[%s4151_s1 + $0x4b0] sm:$0xff]  }
  0x67   :  { %2883 = vmatpush3.bf16.msra.mxu0 %v3235_v10  ;;  %v3290_v10 = vld [vmem:[%s4151_s1 + $0x4f0] sm:$0xff]  }
  0x68   :  { %2884 = vmatprep.subr.bf16.mxu0 %v3238_v13  ;;  %v3293_v13 = vld [vmem:[%s4151_s1 + $0x438] sm:$0xff]   ;;  %v3324_v51 = vld [vmem:[%s4151_s1 + $0x570] sm:$0xff]  }
  0x69   :  { %2905 = vmatpush3.bf16.msra.mxu1 %v3237_v12  ;;  %v3292_v12 = vld [vmem:[%s4151_s1 + $0x478] sm:$0xff]  }
  0x6a   :  { %2906 = vmatprep.subr.bf16.mxu1 %v3240_v15  ;;  %v3295_v15 = vld [vmem:[%s4150_s0 + $0x10] ss:$25 sps:$4 sm:$0xff]  }
  0x6b   :  { %2885 = vmatpush3.bf16.msra.mxu0 %v3239_v14  ;;  %v3294_v14 = vld [vmem:[%s4151_s1 + $0x4f8] sm:$0xff]  }
  0x6c   :  { %2886 = vmatprep.subr.bf16.mxu0 %v3242_v17  ;;  %v3299_v17 = vld [vmem:[%s4151_s1 + $0x4b8] sm:$0xff]  }
  0x6d   :  { %2907 = vmatpush3.bf16.msra.mxu1 %v3241_v16  ;;  %v3297_v16 = vld [vmem:[%s4150_s0 + $0x42] ss:$25 sps:$4 sm:$0xff]  }
  0x6e   :  { %2908 = vmatprep.subr.bf16.mxu1 %v3244_v19  ;;  %v621_v19 = vrot.slane %v3297_v16, %v3516_v42  ;;  %v3340_v16 = vld [vmem:[%s4151_s1 + $0x630] sm:$0xff]  }
  0x6f   :  { %2887 = vmatpush3.bf16.msra.mxu0 %v3243_v18  ;;  %v607_v18 = vrot.slane %v3295_v15, %v3516_v42 }
  0x70   :  { %2888 = vmatprep.subr.bf16.mxu0 %v3246_v21 }
  0x71   :  { %2909 = vmatpush3.bf16.msra.mxu1 %v3245_v20  ;;  %v3300_v20 = vld [vmem:[%s4151_s1 + $0x540] sm:$0xff]   ;;  %v630_v21 = vcombine.high %v607_v18, %v621_v19 }
  0x72   :  { %2910 = vmatprep.subr.bf16.mxu1 %v3248_v23  ;;  %v3302_v23 = vld [vmem:[%s4151_s1 + $0x5c0] sm:$0xff]  }
  0x73   :  { %2889 = vmatpush3.bf16.msra.mxu0 %v3247_v22  ;;  %v629_v22 = vcombine.low %v607_v18, %v621_v19  ;;  %v3341_v18 = vld [vmem:[%s4151_s1 + $0x638] sm:$0xff]  }
  0x74   :  { %2890 = vmatprep.subr.bf16.mxu0 %v3250_v25  ;;  %v653_v25 = vrot.slane %v630_v21, %v3516_v42  ;;  %v2546_v21 = vld [vmem:[%s4152_s2] ss:$0 sm:$0xff] }
  0x75   :  { %2911 = vmatpush3.bf16.msra.mxu1 %v3249_v24  ;;  %v3301_v24 = vld [vmem:[%s4151_s1 + $0x500] sm:$0xff]  }
  0x76   :  { %2912 = vmatprep.subr.bf16.mxu1 %v3252_v27  ;;  %v3303_v27 = vld [vmem:[%s4151_s1 + $0x580] sm:$0xff]  }
  0x77   :  { %2891 = vmatpush3.bf16.msra.mxu0 %v3251_v26  ;;  %v639_v26 = vrot.slane %v629_v22, %v3516_v42 }
  0x78   :  { %2892 = vmatprep.subr.bf16.mxu0 %v3254_v29  ;;  %v663_v29 = vcombine.high %v653_v25, %v653_v25 }
  0x79   :  { %2913 = vmatpush3.bf16.msra.mxu1 %v3253_v28  ;;  %v3304_v28 = vld [vmem:[%s4151_s1 + $0x548] sm:$0xff]  }
  0x7a   :  { %2914 = vmatprep.subr.bf16.mxu1 %v3256_v31  ;;  %v3305_v31 = vld [vmem:[%s4151_s1 + $0x508] sm:$0xff]  }
  0x7b   :  { %2893 = vmatpush3.bf16.msra.mxu0 %v3255_v30  ;;  %v661_v30 = vcombine.high %v639_v26, %v639_v26 }
  0x7c   :  { %2894 = vmatprep.subr.bf16.mxu0 %v3258_v33  ;;  %v3307_v33 = vld [vmem:[%s4151_s1 + $0x588] sm:$0xff]  }
  0x7d   :  { %2915 = vmatpush3.bf16.msra.mxu1 %v3257_v32  ;;  %v3306_v32 = vld [vmem:[%s4151_s1 + $0x5c8] sm:$0xff]  }
  0x7e   :  { %2916 = vmatprep.subr.bf16.mxu1 %v3260_v37  ;;  %v3311_v37 = vld [vmem:[%s4151_s1 + $0x590] sm:$0xff]  }
  0x7f   :  { %2895 = vmatpush3.bf16.msra.mxu0 %v3259_v34  ;;  %v3308_v34 = vld [vmem:[%s4151_s1 + $0x550] sm:$0xff]  }
  0x80   :  { %2924 = vmatprep.subr.bf16.mxu0 %v3264_v41  ;;  %v3315_v41 = vld [vmem:[%s4151_s1 + $0x598] sm:$0xff]  }
  0x81   :  { %2917 = vmatpush3.bf16.msra.mxu1 %v3263_v40  ;;  %v3314_v40 = vld [vmem:[%s4151_s1 + $0x5d8] sm:$0xff]  }
  0x82   :  { %2187 = vmatmul.mubr.bf16.vlgmr.msra.gmra.mrb[12].mxu0 %v578_v48  ;;  %2946 = vmatprep.subr.bf16.mxu1 %v3266_v46  ;;  %v3319_v46 = vld [vmem:[%s4151_s1 + $0x5a0] sm:$0xff]   ;;  %v3321_v48 = vld [vmem:[%s4151_s1 + $0x528] sm:$0xff]  }
  0x83   :  { %2925 = vmatpush3.bf16.msra.mxu0 %v3265_v45  ;;  %2266 = vmatprep.mubr.bf16.mxu0 %v653_v25  ;;  %v3318_v45 = vld [vmem:[%s4151_s1 + $0x5e0] sm:$0xff]  }
  0x84   :  { %2227 = vmatmul.mubr.bf16.vlgmr.msra.gmra.mrb[12].mxu1 %v594_v52  ;;  %2926 = vmatprep.subr.bf16.mxu0 %v3268_v50  ;;  %v3323_v50 = vld [vmem:[%s4151_s1 + $0x5a8] sm:$0xff]   ;;  %v3325_v52 = vld [vmem:[%s4151_s1 + $0x530] sm:$0xff]  }
  0x85   :  { %2947 = vmatpush3.bf16.msra.mxu1 %v3267_v49  ;;  %2306 = vmatprep.mubr.bf16.mxu1 %v663_v29  ;;  %v3322_v49 = vld [vmem:[%s4151_s1 + $0x5e8] sm:$0xff]  }
  0x86   :  { %2948 = vmatprep.subr.bf16.mxu1 %v3270_v54  ;;  %v3327_v54 = vld [vmem:[%s4151_s1 + $0x5b0] sm:$0xff]  }
  0x87   :  { %2927 = vmatpush3.bf16.msra.mxu0 %v3269_v53  ;;  %v3326_v53 = vld [vmem:[%s4151_s1 + $0x5f0] sm:$0xff]  }
  0x88   :  { %2928 = vmatprep.subr.bf16.mxu0 %v3272_v56  ;;  %v3330_v56 = vld [vmem:[%s4151_s1 + $0x5f8] sm:$0xff]  }
  0x89   :  { %2949 = vmatpush3.bf16.msra.mxu1 %v3271_v55  ;;  %v3328_v55 = vld [vmem:[%s4151_s1 + $0x578] sm:$0xff]  }
  0x8a   :  { %2950 = vmatprep.subr.bf16.mxu1 %v3274_v58  ;;  %v3332_v58 = vld [vmem:[%s4150_s0 + $0x46] ss:$25 sps:$4 sm:$0xff]  }
  0x8b   :  { %2929 = vmatpush3.bf16.msra.mxu0 %v3273_v57  ;;  %v3331_v57 = vld [vmem:[%s4150_s0 + $0x14] ss:$25 sps:$4 sm:$0xff]  }
  0x8c   :  { %2930 = vmatprep.subr.bf16.mxu0 %v3276_v60  ;;  %v614_v60 = vrot.slane %v3331_v57, %v3516_v42 }
  0x8d   :  { %2951 = vmatpush3.bf16.msra.mxu1 %v3275_v59  ;;  %v3329_v59 = vld [vmem:[%s4151_s1 + $0x538] sm:$0xff]  }
  0x8e   :  { %2952 = vmatprep.subr.bf16.mxu1 %v3278_v62  ;;  %v3333_v62 = vld [vmem:[%s4151_s1 + $0x5b8] sm:$0xff]  }
  0x8f   :  { %2931 = vmatpush3.bf16.msra.mxu0 %v3277_v61  ;;  %v628_v61 = vrot.slane %v3332_v58, %v3516_v42  ;;  %v2443_v58 = vld [vmem:[%s4153_s3 + $0x40] sm:$0xff] }
  0x90   :  { %2932 = vmatprep.subr.bf16.mxu0 %v3280_v0 }
  0x91   :  { %2953 = vmatpush3.bf16.msra.mxu1 %v3279_v63  ;;  %v632_v63 = vcombine.high %v614_v60, %v628_v61  ;;  %v631_v0 = vcombine.low %v614_v60, %v628_v61  ;;  %v2445_v61 = vld [vmem:[%s4153_s3 + $0x50] sm:$0xff] }
  0x92   :  { %2954 = vmatprep.subr.bf16.mxu1 %v3282_v2 }
  0x93   :  { %2933 = vmatpush3.bf16.msra.mxu0 %v3281_v1  ;;  %v660_v1 = vrot.slane %v632_v63, %v3516_v42  ;;  %v646_v2 = vrot.slane %v631_v0, %v3516_v42  ;;  %v2447_v0 = vld [vmem:[%s4153_s3 + $0x60] sm:$0xff] }
  0x94   :  { %2934 = vmatprep.subr.bf16.mxu0 %v3284_v4  ;;  %v3334_v4 = vld [vmem:[%s4151_s1 + $0x600] sm:$0xff]  }
  0x95   :  { %2955 = vmatpush3.bf16.msra.mxu1 %v3283_v3  ;;  %v3369_v3 = vmov 0.0  }
  0x96   :  { %2956 = vmatprep.subr.bf16.mxu1 %v3286_v6  ;;  %v662_v6 = vcombine.high %v646_v2, %v646_v2 }
  0x97   :  { %2935 = vmatpush3.bf16.msra.mxu0 %v3285_v5  ;;  %v664_v5 = vcombine.high %v660_v1, %v660_v1 }
  0x98   :  { %2936 = vmatprep.subr.bf16.mxu0 %v3288_v8  ;;  %v3336_v8 = vld [vmem:[%s4151_s1 + $0x610] sm:$0xff]  }
  0x99   :  { %2957 = vmatpush3.bf16.msra.mxu1 %v3287_v7  ;;  %v3335_v7 = vld [vmem:[%s4151_s1 + $0x608] sm:$0xff]  }
  0x9a   :  { %2958 = vmatprep.subr.bf16.mxu1 %v3290_v10  ;;  %v3338_v10 = vld [vmem:[%s4151_s1 + $0x620] sm:$0xff]  }
  0x9b   :  { %2937 = vmatpush3.bf16.msra.mxu0 %v3289_v9  ;;  %v3337_v9 = vld [vmem:[%s4151_s1 + $0x618] sm:$0xff]  }
  0x9c   :  { %2938 = vmatprep.subr.bf16.mxu0 %v3292_v12  ;;  %v3343_v12 = vld [vmem:[%s4150_s0 + $0x4a] ss:$25 sps:$4 sm:$0x11]  }
  0x9d   :  { %2959 = vmatpush3.bf16.msra.mxu1 %v3291_v11  ;;  %v3342_v11 = vld [vmem:[%s4150_s0 + $0x18] ss:$25 sps:$4 sm:$0x11]   ;;  %v680_v15 = vrot.slane %v3343_v12, %v3516_v42 }
  0x9e   :  { %2960 = vmatprep.subr.bf16.mxu1 %v3294_v14  ;;  %v673_v14 = vrot.slane %v3342_v11, %v3516_v42 }
  0x9f   :  { %2939 = vmatpush3.bf16.msra.mxu0 %v3293_v13  ;;  %v3339_v13 = vld [vmem:[%s4151_s1 + $0x628] sm:$0xff]  }
  0xa0   :  { %2968 = vmatprep.subr.bf16.mxu0 %v3300_v20 }
  0xa1   :  { %2961 = vmatpush3.bf16.msra.mxu1 %v3299_v17  ;;  %v681_v17 = vcombine.low %v673_v14, %v680_v15 }
  0xa2   :  { %2990 = vmatprep.subr.bf16.mxu1 %v3302_v23  ;;  %2267 = vmatmul.mubr.bf16.vlgmr.msra.gmra.mrb[16].mxu0 %v639_v26 }
  0xa3   :  { %2969 = vmatpush3.bf16.msra.mxu0 %v3301_v24  ;;  %2346 = vmatprep.mubr.bf16.mxu0 %v660_v1  ;;  %v688_v19 = vrot.slane %v681_v17, %v3516_v42  ;;  %v2448_v1 = vld [vmem:[%s4153_s3 + $0x68] sm:$0xff] }
  0xa4   :  { %2307 = vmatmul.mubr.bf16.vlgmr.msra.gmra.mrb[16].mxu1 %v661_v30  ;;  %2970 = vmatprep.subr.bf16.mxu0 %v3304_v28 }
  0xa5   :  { %2991 = vmatpush3.bf16.msra.mxu1 %v3303_v27  ;;  %2386 = vmatprep.mubr.bf16.mxu1 %v664_v5 }
  0xa6   :  { %2992 = vmatprep.subr.bf16.mxu1 %v3306_v32 }
  0xa7   :  { %2971 = vmatpush3.bf16.msra.mxu0 %v3305_v31 }
  0xa8   :  { %2972 = vmatprep.subr.bf16.mxu0 %v3308_v34 }
  0xa9   :  { %2993 = vmatpush3.bf16.msra.mxu1 %v3307_v33 }
  0xaa   :  { %2994 = vmatprep.subr.bf16.mxu1 %v3310_v36 }
  0xab   :  { %2973 = vmatpush3.bf16.msra.mxu0 %v3309_v35 }
  0xac   :  { %2974 = vmatprep.subr.bf16.mxu0 %v3312_v38 }
  0xad   :  { %2995 = vmatpush3.bf16.msra.mxu1 %v3311_v37 }
  0xae   :  { %2996 = vmatprep.subr.bf16.mxu1 %v3314_v40 }
  0xaf   :  { %2975 = vmatpush3.bf16.msra.mxu0 %v3313_v39 }
  0xb0   :  { %2976 = vmatprep.subr.bf16.mxu0 %v3316_v43 }
  0xb1   :  { %2997 = vmatpush3.bf16.msra.mxu1 %v3315_v41 }
  0xb2   :  { %2998 = vmatprep.subr.bf16.mxu1 %v3318_v45  ;;  %v2435_v45 = vld [vmem:[%s4153_s3] sm:$0xff] }
  0xb3   :  { %2977 = vmatpush3.bf16.msra.mxu0 %v3317_v44 }
  0xb4   :  { %2978 = vmatprep.subr.bf16.mxu0 %v3320_v47 }
  0xb5   :  { %2999 = vmatpush3.bf16.msra.mxu1 %v3319_v46  ;;  %v2436_v46 = vld [vmem:[%s4153_s3 + $0x8] sm:$0xff] }
  0xb6   :  { %3000 = vmatprep.subr.bf16.mxu1 %v3322_v49  ;;  %v3094_v47 = vpack.c.bf16 %v2436_v46, %v2435_v45  ;;  %v2438_v49 = vld [vmem:[%s4153_s3 + $0x18] sm:$0xff] }
  0xb7   :  { %2979 = vmatpush3.bf16.msra.mxu0 %v3321_v48  ;;  %v2437_v48 = vld [vmem:[%s4153_s3 + $0x10] sm:$0xff] }
  0xb8   :  { %2980 = vmatprep.subr.bf16.mxu0 %v3324_v51  ;;  %v3097_v51 = vpack.c.bf16 %v2438_v49, %v2437_v48 }
  0xb9   :  { %3001 = vmatpush3.bf16.msra.mxu1 %v3323_v50  ;;  %v3371_v50 = vmov 0.0|0.0  }
  0xba   :  { %3002 = vmatprep.subr.bf16.mxu1 %v3326_v53  ;;  %v2440_v53 = vld [vmem:[%s4153_s3 + $0x28] sm:$0xff] }
  0xbb   :  { %2981 = vmatpush3.bf16.msra.mxu0 %v3325_v52  ;;  %v2439_v52 = vld [vmem:[%s4153_s3 + $0x20] sm:$0xff] }
  0xbc   :  { %2982 = vmatprep.subr.bf16.mxu0 %v3328_v55  ;;  %v2441_v55 = vld [vmem:[%s4153_s3 + $0x30] sm:$0xff] }
  0xbd   :  { %3003 = vmatpush3.bf16.msra.mxu1 %v3327_v54  ;;  %v3100_v54 = vpack.c.bf16 %v2440_v53, %v2439_v52 }
  0xbe   :  { %3004 = vmatprep.subr.bf16.mxu1 %v3330_v56  ;;  %v2442_v56 = vld [vmem:[%s4153_s3 + $0x38] sm:$0xff] }
  0xbf   :  { %2983 = vmatpush3.bf16.msra.mxu0 %v3329_v59  ;;  %v3103_v57 = vpack.c.bf16 %v2442_v56, %v2441_v55  ;;  %v2444_v59 = vld [vmem:[%s4153_s3 + $0x48] sm:$0xff] }
  0xc0   :  { %3038 = vmatprep.subr.bf16.mxu0 %v3369_v3  ;;  %v3106_v60 = vpack.c.bf16 %v2444_v59, %v2443_v58 }
  0xc1   :  { %3005 = vmatpush3.bf16.msra.mxu1 %v3333_v62  ;;  %v2446_v62 = vld [vmem:[%s4153_s3 + $0x58] sm:$0xff] }
  0xc2   :  { %2347 = vmatmul.mubr.bf16.vlgmr.msra.gmra.mrb[20].mxu0 %v646_v2  ;;  %3093 = vmatprep.subr.bf16.mxu1 %v3371_v50  ;;  %v3109_v63 = vpack.c.bf16 %v2446_v62, %v2445_v61  ;;  %v3112_v2 = vpack.c.bf16 %v2448_v1, %v2447_v0 }
  0xc3   :  { %3039 = vmatpush3.bf16.msra.mxu0 %v3334_v4  ;;  %3054 = vmatprep.mubr.msk.bf16.mxu0 %vm3370_vm0, %v3369_v3 }
  0xc4   :  { %2387 = vmatmul.mubr.bf16.vlgmr.msra.gmra.mrb[20].mxu1 %v662_v6  ;;  %3040 = vmatprep.subr.bf16.mxu0 %v3369_v3 }
  0xc5   :  { %3090 = vmatprep.mubr.msk.f32.mxu1 %vm3370_vm0, %v3369_v3  ;;  %3095 = vmatpush3.bf16.msra.mxu1 %v3094_v47 }
  0xc6   :  { %3096 = vmatprep.subr.bf16.mxu1 %v3371_v50 }
  0xc7   :  { %3041 = vmatpush3.bf16.msra.mxu0 %v3335_v7 }
  0xc8   :  { %3042 = vmatprep.subr.bf16.mxu0 %v3369_v3 }
  0xc9   :  { %3098 = vmatpush3.bf16.msra.mxu1 %v3097_v51 }
  0xca   :  { %3099 = vmatprep.subr.bf16.mxu1 %v3371_v50 }
  0xcb   :  { %3043 = vmatpush3.bf16.msra.mxu0 %v3336_v8  ;;  %v2449_v8 = vld [vmem:[%s4153_s3 + $0x70] sm:$0xff] }
  0xcc   :  { %3044 = vmatprep.subr.bf16.mxu0 %v3369_v3 }
  0xcd   :  { %3101 = vmatpush3.bf16.msra.mxu1 %v3100_v54 }
  0xce   :  { %3102 = vmatprep.subr.bf16.mxu1 %v3371_v50 }
  0xcf   :  { %3045 = vmatpush3.bf16.msra.mxu0 %v3337_v9  ;;  %v2450_v9 = vld [vmem:[%s4153_s3 + $0x78] sm:$0xff] }
  0xd0   :  { %3046 = vmatprep.subr.bf16.mxu0 %v3369_v3  ;;  %v3115_v12 = vpack.c.bf16 %v2450_v9, %v2449_v8 }
  0xd1   :  { %3104 = vmatpush3.bf16.msra.mxu1 %v3103_v57 }
  0xd2   :  { %3105 = vmatprep.subr.bf16.mxu1 %v3371_v50 }
  0xd3   :  { %3047 = vmatpush3.bf16.msra.mxu0 %v3338_v10 }
  0xd4   :  { %3048 = vmatprep.subr.bf16.mxu0 %v3369_v3 }
  0xd5   :  { %3107 = vmatpush3.bf16.msra.mxu1 %v3106_v60  ;;  %v2747_v60 = vld [vmem:[%s4154_s4] ss:$0 sm:$0xff] }
  0xd6   :  { %3108 = vmatprep.subr.bf16.mxu1 %v3371_v50 }
  0xd7   :  { %3049 = vmatpush3.bf16.msra.mxu0 %v3339_v13 }
  0xd8   :  { %3050 = vmatprep.subr.bf16.mxu0 %v3369_v3 }
  0xd9   :  { %3110 = vmatpush3.bf16.msra.mxu1 %v3109_v63 }
  0xda   :  { %3111 = vmatprep.subr.bf16.mxu1 %v3371_v50 }
  0xdb   :  { %3051 = vmatpush3.bf16.msra.mxu0 %v3340_v16 }
  0xdc   :  { %3052 = vmatprep.subr.bf16.mxu0 %v3369_v3 }
  0xdd   :  { %3113 = vmatpush3.bf16.msra.mxu1 %v3112_v2 }
  0xde   :  { %3114 = vmatprep.subr.bf16.mxu1 %v3371_v50 }
  0xdf   :  { %3053 = vmatpush3.bf16.msra.mxu0 %v3341_v18 }
  0xe1   :  { %3116 = vmatpush3.bf16.msra.mxu1 %v3115_v12 }
  0xe2   :  { %3055 = vmatmul.mubr.bf16.vlgmr.msra.gmra.mrb[24].mxu0 %v688_v19 }
  0xf5   :  { %v2764_v20 = vpop.f32.mrb[0].mxu0 }
  0xf6   :  { %v2765_v22 = vpop.f32.mrb[1].mxu0 }
  0xf7   :  { %v2766_v23 = vadd.f32 %v2765_v22, %v2764_v20  ;;  %v2767_v24 = vpop.f32.mrb[2].mxu0  ;;  %v2786_v25 = vpop.f32.mrb[0].mxu1 }
  0xf8   :  { %v2768_v26 = vpop.f32.mrb[3].mxu0  ;;  %v2787_v27 = vpop.f32.mrb[1].mxu1 }
  0xf9   :  { %v1949_v28 = vadd.f32 %v2766_v23, %v2546_v21  ;;  %v2788_v29 = vadd.f32 %v2787_v27, %v2786_v25  ;;  %v2789_v30 = vpop.f32.mrb[2].mxu1 }
  0xfa   :  { %v2790_v31 = vpop.f32.mrb[3].mxu1 }
  0xfb   :  { %v1989_v32 = vadd.f32 %v2788_v29, %v1949_v28 }
 0x115   :  { %v2808_v33 = vpop.f32.mrb[4].mxu0 }
 0x116   :  { %v2809_v42 = vpop.f32.mrb[5].mxu0 }
 0x117   :  { %v2810_v34 = vadd.f32 %v2809_v42, %v2808_v33  ;;  %v2811_v35 = vpop.f32.mrb[6].mxu0  ;;  %v2830_v36 = vpop.f32.mrb[4].mxu1 }
 0x118   :  { %v2812_v37 = vpop.f32.mrb[7].mxu0  ;;  %v2831_v38 = vpop.f32.mrb[5].mxu1 }
 0x119   :  { %v2029_v39 = vadd.f32 %v2810_v34, %v1989_v32  ;;  %v2832_v40 = vadd.f32 %v2831_v38, %v2830_v36  ;;  %v2833_v41 = vpop.f32.mrb[6].mxu1 }
 0x11a   :  { %v2834_v43 = vpop.f32.mrb[7].mxu1 }
 0x11b   :  { %v2069_v44 = vadd.f32 %v2832_v40, %v2029_v39 }
 0x135   :  { %v2852_v3 = vpop.f32.mrb[8].mxu0 }
 0x136   :  { %v2853_v4 = vpop.f32.mrb[9].mxu0 }
 0x137   :  { %v2854_v5 = vadd.f32 %v2853_v4, %v2852_v3  ;;  %v2855_v6 = vpop.f32.mrb[10].mxu0  ;;  %v2874_v7 = vpop.f32.mrb[8].mxu1 }
 0x138   :  { %v2856_v10 = vpop.f32.mrb[11].mxu0  ;;  %v2875_v11 = vpop.f32.mrb[9].mxu1 }
 0x139   :  { %v2109_v13 = vadd.f32 %v2854_v5, %v2069_v44  ;;  %v2876_v14 = vadd.f32 %v2875_v11, %v2874_v7  ;;  %v2877_v15 = vpop.f32.mrb[10].mxu1 }
 0x13a   :  { %v2878_v16 = vpop.f32.mrb[11].mxu1 }
 0x13b   :  { %v2149_v17 = vadd.f32 %v2876_v14, %v2109_v13 }
 0x155   :  { %v2896_v18 = vpop.f32.mrb[12].mxu0 }
 0x156   :  { %v2897_v19 = vpop.f32.mrb[13].mxu0 }
 0x157   :  { %v2898_v20 = vadd.f32 %v2897_v19, %v2896_v18  ;;  %v2899_v21 = vpop.f32.mrb[14].mxu0  ;;  %v2918_v22 = vpop.f32.mrb[12].mxu1 }
 0x158   :  { %v2900_v23 = vpop.f32.mrb[15].mxu0  ;;  %v2919_v24 = vpop.f32.mrb[13].mxu1 }
 0x159   :  { %v2189_v25 = vadd.f32 %v2898_v20, %v2149_v17  ;;  %v2920_v26 = vadd.f32 %v2919_v24, %v2918_v22  ;;  %v2921_v27 = vpop.f32.mrb[14].mxu1 }
 0x15a   :  { %v2922_v28 = vpop.f32.mrb[15].mxu1 }
 0x15b   :  { %v2229_v29 = vadd.f32 %v2920_v26, %v2189_v25 }
 0x175   :  { %v2940_v30 = vpop.f32.mrb[16].mxu0 }
 0x176   :  { %v2941_v31 = vpop.f32.mrb[17].mxu0 }
 0x177   :  { %v2942_v32 = vadd.f32 %v2941_v31, %v2940_v30  ;;  %v2943_v33 = vpop.f32.mrb[18].mxu0  ;;  %v2962_v42 = vpop.f32.mrb[16].mxu1 }
 0x178   :  { %v2944_v34 = vpop.f32.mrb[19].mxu0  ;;  %v2963_v35 = vpop.f32.mrb[17].mxu1 }
 0x179   :  { %v2269_v36 = vadd.f32 %v2942_v32, %v2229_v29  ;;  %v2964_v37 = vadd.f32 %v2963_v35, %v2962_v42  ;;  %v2965_v38 = vpop.f32.mrb[18].mxu1 }
 0x17a   :  { %v2966_v39 = vpop.f32.mrb[19].mxu1 }
 0x17b   :  { %v2309_v40 = vadd.f32 %v2964_v37, %v2269_v36 }
 0x195   :  { %v2984_v41 = vpop.f32.mrb[20].mxu0 }
 0x196   :  { %v2985_v43 = vpop.f32.mrb[21].mxu0 }
 0x197   :  { %v2986_v44 = vadd.f32 %v2985_v43, %v2984_v41  ;;  %v2987_v45 = vpop.f32.mrb[22].mxu0  ;;  %v3006_v46 = vpop.f32.mrb[20].mxu1 }
 0x198   :  { %v2988_v47 = vpop.f32.mrb[23].mxu0  ;;  %v3007_v48 = vpop.f32.mrb[21].mxu1 }
 0x199   :  { %v2349_v49 = vadd.f32 %v2986_v44, %v2309_v40  ;;  %v3008_v50 = vadd.f32 %v3007_v48, %v3006_v46  ;;  %v3009_v51 = vpop.f32.mrb[22].mxu1 }
 0x19a   :  { %v3010_v52 = vpop.f32.mrb[23].mxu1 }
 0x19b   :  { %v2389_v53 = vadd.f32 %v3008_v50, %v2349_v49 }
 0x1b5   :  { %v2428_v54 = vpop.f32.mrb[24].mxu0 }
 0x1b6   :  { %v2429_v55 = vadd.f32 %v2428_v54, %v2389_v53  ;;  %v3056_v56 = vpop.f32.mrb[25].mxu0 }
 0x1b7   :  { %v2431_v57 = vpop.f32.mrb[26].mxu0 }
 0x1b8   :  { %v2434_v58 = vmax.f32 %v2429_v55, 0.0  ;;  %v3057_v59 = vpop.f32.mrb[27].mxu0 }
 0x1ba   :  { %3091 = vmatmul.mubr.f32.vlgmr.msra.gmra.mrb[24].mxu1 %v2434_v58 }
 0x28d   :  { %v2524_v61 = vpop.f32.mrb[24].mxu1 }
 0x28e   :  { %v2525_v62 = vadd.f32 %v2747_v60, %v2524_v61  ;;  %v3092_v63 = vpop.f32.mrb[25].mxu1 }
 0x290   :  { %v2528_v0 = vmax.f32 %v2525_v62, 0.0 }
 0x292   :  { %2529 = vst [vmem:[#allocation2] sm:$0xff] %v2528_v0 }
 0x293   :  { %2534 = vsyncadd [#allocation3], 96  ;;  %s3372_s25 = smov [#allocation2]  }
 0x294   :  { %s2535_s26 = sshll.u32 %s3372_s25, 4  ;;  %s2536_s26 = int_to_ptr.vmem [resolvable:$true] %s2535_s26 }
 0x295   :  { %s3344_s27 = scalar_lea.vmem %s2536_s26, 32  ;;  %s3348_s28 = scalar_lea.vmem %s2536_s26, 128 }
 0x296   :  { %p3345_p0 = scmp.ne.s32.totalorder %s2536_s26, %s3344_s27  ;;  %p3349_p1 = scmp.lt.s32.totalorder %s2536_s26, %s2536_s26 }
 0x297   :  { %p3350_p2 = scmp.lt.s32.totalorder %s3348_s28, %s3344_s27 }
 0x299   :  { %p3351_p3 = por %p3350_p2, %p3349_p1 }
 0x29b   :  { %p3352_p4 = pnand %p3351_p3, %p3345_p0 }
 0x29d   :  { %3355 = shalt.err (!%p3352_p4)
}
 0x29e   :  { %s3356_s4 = scalar_lea.hbm %s4155_s5, 32 }
 0x29f   :  { %p3357_p5 = scmp.ne.s32.totalorder %s4155_s5, %s3356_s4  ;;  %p3360_p6 = scmp.lt.u32.totalorder %s3356_s4, %s4155_s5 }
 0x2a1   :  { %p3362_p7 = pnand %p3360_p6, %p3357_p5 }
 0x2a3   :  { %3365 = shalt.err (!%p3362_p7)
}
 0x2a4   :  { %s3373_s10 = smov 32   ;;  %s3374_s11 = smov 2  }
 0x2a5   :  { %2541 = dma.vmem_to_hbm [thread:$0]  %s2536_s26, 32, %s4155_s5, [#allocation3], %s3373_s10, %s3373_s10, %s3374_s11  }
 0x2a6   :  { %3366 = dma.done.wait [#allocation3], 128  }
 0x2a7   :  { %3367 = vsyncadd [#allocation3], 4294967168 }
 0x2a8   :  { %2545 = vsyncpa [#allocation3], 1 }

// kernel: net_cifar100_s_forward.4
= control target key start
LH: loop header
LB: loop body
LE: loop exit
PB: predicated region body
PF: predicated region fallthrough
CT: control target
= control target key end

     0   :  { %s15288_s4 = inlined_call_operand.vmem [shape: bf16[3200,128], index: 4, kind: input, shape index: {}]   ;;  %s15289_s0 = inlined_call_operand.vmem [shape: bf16[50,3200], index: 0, kind: input, shape index: {}]   ;;  %s15290_s1 = inlined_call_operand.vmem [shape: bf16[50,3200], index: 1, kind: input, shape index: {}]   ;;  %s15291_s2 = inlined_call_operand.vmem [shape: bf16[50,3200], index: 2, kind: input, shape index: {}]   ;;  %s15292_s3 = inlined_call_operand.vmem [shape: bf16[50,3200], index: 3, kind: input, shape index: {}]   ;;  %s15293_s5 = inlined_call_operand.vmem [shape: f32[1,128], index: 5, kind: input, shape index: {}]   ;;  %s15294_s6 = inlined_call_operand.vmem [shape: bf16[50,128], index: 6, kind: output, shape index: {}]  }
   0x1   :  { %v9958_v0 = vld [vmem:[%s15288_s4 + $0x40] sm:$0xff]   ;;  %v9962_v4 = vld [vmem:[%s15288_s4 + $0x48] sm:$0xff]   ;;  %v9966_v8 = vld [vmem:[%s15288_s4 + $0x50] sm:$0xff]  }
   0x2   :  { %v9959_v1 = vld [vmem:[%s15288_s4 + $0xc0] sm:$0xff]   ;;  %7894 = vmatprep.subr.bf16.mxu0 %v9958_v0  ;;  %v9963_v5 = vld [vmem:[%s15288_s4 + $0xc8] sm:$0xff]   ;;  %v9967_v9 = vld [vmem:[%s15288_s4 + $0xd0] sm:$0xff]  }
   0x3   :  { %v9960_v2 = vld [vmem:[%s15288_s4] sm:$0xff]   ;;  %7934 = vmatprep.subr.bf16.mxu1 %v9959_v1  ;;  %v9964_v6 = vld [vmem:[%s15288_s4 + $0x8] sm:$0xff]   ;;  %v9968_v10 = vld [vmem:[%s15288_s4 + $0x10] sm:$0xff]  }
   0x4   :  { %v9961_v3 = vld [vmem:[%s15288_s4 + $0x80] sm:$0xff]   ;;  %7895 = vmatpush3.bf16.msra.mxu0 %v9960_v2  ;;  %v9965_v7 = vld [vmem:[%s15288_s4 + $0x88] sm:$0xff]   ;;  %v9969_v11 = vld [vmem:[%s15288_s4 + $0x90] sm:$0xff]  }
   0x5   :  { %7935 = vmatpush3.bf16.msra.mxu1 %v9961_v3  ;;  %7896 = vmatprep.subr.bf16.mxu0 %v9962_v4  ;;  %v9970_v12 = vld [vmem:[%s15288_s4 + $0x58] sm:$0xff]   ;;  %v9974_v16 = vld [vmem:[%s15288_s4 + $0x60] sm:$0xff]   ;;  %v9978_v20 = vld [vmem:[%s15288_s4 + $0x68] sm:$0xff]  }
   0x6   :  { %7936 = vmatprep.subr.bf16.mxu1 %v9963_v5  ;;  %v9971_v13 = vld [vmem:[%s15288_s4 + $0xd8] sm:$0xff]   ;;  %v9975_v17 = vld [vmem:[%s15288_s4 + $0xe0] sm:$0xff]   ;;  %v9979_v21 = vld [vmem:[%s15288_s4 + $0xe8] sm:$0xff]  }
   0x7   :  { %v9972_v14 = vld [vmem:[%s15288_s4 + $0x18] sm:$0xff]   ;;  %v9976_v18 = vld [vmem:[%s15288_s4 + $0x20] sm:$0xff]   ;;  %v9980_v22 = vld [vmem:[%s15288_s4 + $0x28] sm:$0xff]  }
   0x8   :  { %7897 = vmatpush3.bf16.msra.mxu0 %v9964_v6  ;;  %v9973_v15 = vld [vmem:[%s15288_s4 + $0x98] sm:$0xff]   ;;  %v9977_v19 = vld [vmem:[%s15288_s4 + $0xa0] sm:$0xff]   ;;  %v9981_v23 = vld [vmem:[%s15288_s4 + $0xa8] sm:$0xff]  }
   0x9   :  { %7937 = vmatpush3.bf16.msra.mxu1 %v9965_v7  ;;  %7898 = vmatprep.subr.bf16.mxu0 %v9966_v8  ;;  %v9982_v24 = vld [vmem:[%s15288_s4 + $0x70] sm:$0xff]   ;;  %v9986_v28 = vld [vmem:[%s15288_s4 + $0x78] sm:$0xff]   ;;  %v9990_v32 = vld [vmem:[%s15289_s0] ss:$100 sps:$4 sm:$0xff]  }
   0xa   :  { %7938 = vmatprep.subr.bf16.mxu1 %v9967_v9  ;;  %v9983_v25 = vld [vmem:[%s15288_s4 + $0xf0] sm:$0xff]   ;;  %v9987_v29 = vld [vmem:[%s15288_s4 + $0xf8] sm:$0xff]   ;;  %v9992_v33 = vld [vmem:[%s15289_s0 + $0x4] ss:$100 sps:$4 sm:$0xff]  }
   0xb   :  { %v9984_v26 = vld [vmem:[%s15288_s4 + $0x30] sm:$0xff]   ;;  %v9988_v30 = vld [vmem:[%s15288_s4 + $0x38] sm:$0xff]   ;;  %v9993_v34 = vld [vmem:[%s15289_s0 + $0x8] ss:$100 sps:$4 sm:$0xff]   ;;  %2213 = vmatprep.mubr.bf16.mxu0 %v9992_v33 }
   0xc   :  { %7899 = vmatpush3.bf16.msra.mxu0 %v9968_v10  ;;  %v9985_v27 = vld [vmem:[%s15288_s4 + $0xb0] sm:$0xff]   ;;  %v9989_v31 = vld [vmem:[%s15288_s4 + $0xb8] sm:$0xff]   ;;  %v9996_v36 = vld [vmem:[%s15288_s4 + $0x140] sm:$0xff]  }
   0xd   :  { %7939 = vmatpush3.bf16.msra.mxu1 %v9969_v11  ;;  %7900 = vmatprep.subr.bf16.mxu0 %v9970_v12  ;;  %v9995_v35 = vld [vmem:[%s15289_s0 + $0xc] ss:$100 sps:$4 sm:$0xff]   ;;  %v9997_v37 = vld [vmem:[%s15288_s4 + $0x1c0] sm:$0xff]   ;;  %v10006_v45 = vld [vmem:[%s15289_s0 + $0xd4] ss:$100 sps:$4 sm:$0xff]  }
   0xe   :  { %7940 = vmatprep.subr.bf16.mxu1 %v9971_v13  ;;  %2277 = vmatprep.mubr.bf16.mxu1 %v9995_v35  ;;  %v9998_v38 = vld [vmem:[%s15288_s4 + $0x100] sm:$0xff]   ;;  %v10000_v40 = vld [vmem:[%s15288_s4 + $0x148] sm:$0xff]   ;;  %v10009_v47 = vld [vmem:[%s15289_s0 + $0xd0] ss:$100 sps:$4 sm:$0xff]  }
   0xf   :  { %v9999_v39 = vld [vmem:[%s15288_s4 + $0x180] sm:$0xff]   ;;  %v10001_v41 = vld [vmem:[%s15288_s4 + $0x1c8] sm:$0xff]   ;;  %v10010_v48 = vld [vmem:[%s15288_s4 + $0x150] sm:$0xff]  }
  0x10   :  { %7901 = vmatpush3.bf16.msra.mxu0 %v9972_v14  ;;  %v10002_v42 = vld [vmem:[%s15288_s4 + $0x108] sm:$0xff]   ;;  %v10011_v49 = vld [vmem:[%s15288_s4 + $0x1d0] sm:$0xff]   ;;  %v10014_v52 = vld [vmem:[%s15288_s4 + $0x158] sm:$0xff]  }
  0x11   :  { %7941 = vmatpush3.bf16.msra.mxu1 %v9973_v15  ;;  %7902 = vmatprep.subr.bf16.mxu0 %v9974_v16  ;;  %v10003_v43 = vld [vmem:[%s15288_s4 + $0x188] sm:$0xff]   ;;  %v10012_v50 = vld [vmem:[%s15288_s4 + $0x110] sm:$0xff]   ;;  %v10015_v53 = vld [vmem:[%s15288_s4 + $0x1d8] sm:$0xff]  }
  0x12   :  { %7942 = vmatprep.subr.bf16.mxu1 %v9975_v17  ;;  %v10004_v44 = vld [vmem:[%s15289_s0 + $0xcc] ss:$100 sps:$4 sm:$0xff]   ;;  %v10016_v54 = vld [vmem:[%s15288_s4 + $0x118] sm:$0xff]   ;;  %v10024_v60 = vld [vmem:[%s15288_s4 + $0x160] sm:$0xff]  }
  0x13   :  { %v10008_v46 = vld [vmem:[%s15289_s0 + $0xc8] ss:$100 sps:$4 sm:$0xff]   ;;  %v10013_v51 = vld [vmem:[%s15288_s4 + $0x190] sm:$0xff]   ;;  %v10017_v55 = vld [vmem:[%s15288_s4 + $0x198] sm:$0xff]  }
  0x14   :  { %7903 = vmatpush3.bf16.msra.mxu0 %v9976_v18  ;;  %v10018_v56 = vld [vmem:[%s15289_s0 + $0x194] ss:$100 sps:$4 sm:$0xff]   ;;  %v10020_v57 = vld [vmem:[%s15289_s0 + $0x19c] ss:$100 sps:$4 sm:$0xff]   ;;  %v10028_v0 = vld [vmem:[%s15288_s4 + $0x168] sm:$0xff]  }
  0x15   :  { %7943 = vmatpush3.bf16.msra.mxu1 %v9977_v19  ;;  %7904 = vmatprep.subr.bf16.mxu0 %v9978_v20  ;;  %v10022_v58 = vld [vmem:[%s15289_s0 + $0x190] ss:$100 sps:$4 sm:$0xff]   ;;  %v10023_v59 = vld [vmem:[%s15289_s0 + $0x198] ss:$100 sps:$4 sm:$0xff]   ;;  %v10025_v61 = vld [vmem:[%s15288_s4 + $0x1e0] sm:$0xff]  }
  0x16   :  { %7944 = vmatprep.subr.bf16.mxu1 %v9979_v21  ;;  %v10026_v62 = vld [vmem:[%s15288_s4 + $0x120] sm:$0xff]   ;;  %v10029_v1 = vld [vmem:[%s15288_s4 + $0x1e8] sm:$0xff]   ;;  %v502_v4 = vld [vmem:[%s15289_s0 + $0x258] sm:$0xff] }
  0x17   :  { %v10027_v63 = vld [vmem:[%s15288_s4 + $0x1a0] sm:$0xff]   ;;  %v10030_v2 = vld [vmem:[%s15288_s4 + $0x128] sm:$0xff]   ;;  %v7338_v6 = vcombine.high %v502_v4, %v502_v4  ;;  %v7337_v8 = vcombine.low %v502_v4, %v502_v4  ;;  %v10036_v10 = vld [vmem:[%s15288_s4 + $0x170] sm:$0xff]  }
  0x18   :  { %7905 = vmatpush3.bf16.msra.mxu0 %v9980_v22  ;;  %v10031_v3 = vld [vmem:[%s15288_s4 + $0x1a8] sm:$0xff]   ;;  %v503_v5 = vld [vmem:[%s15289_s0 + $0x260] sm:$0xff]  ;;  %v10037_v11 = vld [vmem:[%s15288_s4 + $0x1f0] sm:$0xff]  }
  0x19   :  { %7945 = vmatpush3.bf16.msra.mxu1 %v9981_v23  ;;  %7906 = vmatprep.subr.bf16.mxu0 %v9982_v24  ;;  %v7340_v7 = vcombine.high %v503_v5, %v503_v5  ;;  %v7339_v9 = vcombine.low %v503_v5, %v503_v5  ;;  %v10038_v12 = vld [vmem:[%s15288_s4 + $0x130] sm:$0xff]   ;;  %v10040_v14 = vld [vmem:[%s15288_s4 + $0x178] sm:$0xff]   ;;  %v10050_v22 = vld [vmem:[%s15288_s4 + $0x240] sm:$0xff]  }
  0x1a   :  { %7946 = vmatprep.subr.bf16.mxu1 %v9983_v25  ;;  %v10039_v13 = vld [vmem:[%s15288_s4 + $0x1b0] sm:$0xff]   ;;  %v10041_v15 = vld [vmem:[%s15288_s4 + $0x1f8] sm:$0xff]   ;;  %v10051_v23 = vld [vmem:[%s15288_s4 + $0x2c0] sm:$0xff]  }
  0x1b   :  { %v10042_v16 = vld [vmem:[%s15288_s4 + $0x138] sm:$0xff]   ;;  %v10044_v18 = vld [vmem:[%s15289_s0 + $0x10] ss:$100 sps:$4 sm:$0xff]   ;;  %v10052_v24 = vld [vmem:[%s15288_s4 + $0x200] sm:$0xff]  }
  0x1c   :  { %7907 = vmatpush3.bf16.msra.mxu0 %v9984_v26  ;;  %v10043_v17 = vld [vmem:[%s15288_s4 + $0x1b8] sm:$0xff]   ;;  %v10053_v25 = vld [vmem:[%s15288_s4 + $0x280] sm:$0xff]   ;;  %v10054_v26 = vld [vmem:[%s15288_s4 + $0x248] sm:$0xff]  }
  0x1d   :  { %7947 = vmatpush3.bf16.msra.mxu1 %v9985_v27  ;;  %7908 = vmatprep.subr.bf16.mxu0 %v9986_v28  ;;  %v10046_v19 = vld [vmem:[%s15289_s0 + $0x14] ss:$100 sps:$4 sm:$0xff]   ;;  %v10049_v21 = vld [vmem:[%s15289_s0 + $0x1c] ss:$100 sps:$4 sm:$0xff]   ;;  %v10055_v27 = vld [vmem:[%s15288_s4 + $0x2c8] sm:$0xff]  }
  0x1e   :  { %7948 = vmatprep.subr.bf16.mxu1 %v9987_v29  ;;  %v10047_v20 = vld [vmem:[%s15289_s0 + $0x18] ss:$100 sps:$4 sm:$0xff]   ;;  %v10056_v28 = vld [vmem:[%s15288_s4 + $0x208] sm:$0xff]   ;;  %v10063_v33 = vld [vmem:[%s15288_s4 + $0x250] sm:$0xff]  }
  0x1f   :  { %v10057_v29 = vld [vmem:[%s15288_s4 + $0x288] sm:$0xff]   ;;  %v10065_v35 = vld [vmem:[%s15289_s0 + $0xe0] ss:$100 sps:$4 sm:$0xff]  }
  0x20   :  { %7909 = vmatpush3.bf16.msra.mxu0 %v9988_v30  ;;  %v10058_v30 = vld [vmem:[%s15289_s0 + $0xdc] ss:$100 sps:$4 sm:$0xff]   ;;  %v10100_v5 = vld [vmem:[%s15289_s0 + $0x24] ss:$100 sps:$4 sm:$0xff]  }
  0x21   :  { %7949 = vmatpush3.bf16.msra.mxu1 %v9989_v31  ;;  %7974 = vmatprep.subr.bf16.mxu0 %v9996_v36  ;;  %v10060_v31 = vld [vmem:[%s15289_s0 + $0xd8] ss:$100 sps:$4 sm:$0xff]   ;;  %v10066_v36 = vld [vmem:[%s15288_s4 + $0x210] sm:$0xff]   ;;  %v10098_v4 = vld [vmem:[%s15289_s0 + $0x20] ss:$100 sps:$4 sm:$0xff]  }
  0x22   :  { %8014 = vmatprep.subr.bf16.mxu1 %v9997_v37  ;;  %v10067_v37 = vld [vmem:[%s15288_s4 + $0x290] sm:$0xff]  }
  0x23   :  { %2214 = vmatmul.mubr.bf16.vlgmr.msra.gmra.mrb[0].mxu0 %v9990_v32  ;;  %v10061_v32 = vld [vmem:[%s15289_s0 + $0xe4] ss:$100 sps:$4 sm:$0xff]  }
  0x24   :  { %2278 = vmatmul.mubr.bf16.vlgmr.msra.gmra.mrb[0].mxu1 %v9993_v34  ;;  %7975 = vmatpush3.bf16.msra.mxu0 %v9998_v38  ;;  %v10064_v34 = vld [vmem:[%s15288_s4 + $0x2d0] sm:$0xff]   ;;  %v10068_v38 = vld [vmem:[%s15288_s4 + $0x258] sm:$0xff]  }
  0x25   :  { %8015 = vmatpush3.bf16.msra.mxu1 %v9999_v39  ;;  %7976 = vmatprep.subr.bf16.mxu0 %v10000_v40  ;;  %v10069_v39 = vld [vmem:[%s15288_s4 + $0x2d8] sm:$0xff]  }
  0x26   :  { %8016 = vmatprep.subr.bf16.mxu1 %v10001_v41  ;;  %2221 = vmatprep.mubr.bf16.mxu0 %v10004_v44  ;;  %v10070_v40 = vld [vmem:[%s15288_s4 + $0x218] sm:$0xff]   ;;  %v10075_v44 = vld [vmem:[%s15289_s0 + $0x1ac] ss:$100 sps:$4 sm:$0xff]  }
  0x27   :  { %2285 = vmatprep.mubr.bf16.mxu1 %v10006_v45  ;;  %v10071_v41 = vld [vmem:[%s15288_s4 + $0x298] sm:$0xff]   ;;  %v10077_v45 = vld [vmem:[%s15288_s4 + $0x260] sm:$0xff]  }
  0x28   :  { %7977 = vmatpush3.bf16.msra.mxu0 %v10002_v42  ;;  %v10072_v42 = vld [vmem:[%s15289_s0 + $0x1a4] ss:$100 sps:$4 sm:$0xff]  }
  0x29   :  { %8017 = vmatpush3.bf16.msra.mxu1 %v10003_v43  ;;  %7978 = vmatprep.subr.bf16.mxu0 %v10010_v48  ;;  %v10074_v43 = vld [vmem:[%s15289_s0 + $0x1a0] ss:$100 sps:$4 sm:$0xff]  }
  0x2a   :  { %8018 = vmatprep.subr.bf16.mxu1 %v10011_v49  ;;  %v10080_v48 = vld [vmem:[%s15288_s4 + $0x220] sm:$0xff]  }
  0x2b   :  { %2222 = vmatmul.mubr.bf16.gmra.mrb[4].mxu0 %v10008_v46  ;;  %v10078_v46 = vld [vmem:[%s15288_s4 + $0x2e0] sm:$0xff]  }
  0x2c   :  { %2286 = vmatmul.mubr.bf16.gmra.mrb[4].mxu1 %v10009_v47  ;;  %7979 = vmatpush3.bf16.msra.mxu0 %v10012_v50  ;;  %v10079_v47 = vld [vmem:[%s15289_s0 + $0x1a8] ss:$100 sps:$4 sm:$0xff]   ;;  %v10081_v49 = vld [vmem:[%s15288_s4 + $0x2a0] sm:$0xff]  }
  0x2d   :  { %8019 = vmatpush3.bf16.msra.mxu1 %v10013_v51  ;;  %7980 = vmatprep.subr.bf16.mxu0 %v10014_v52  ;;  %v10082_v50 = vld [vmem:[%s15288_s4 + $0x268] sm:$0xff]  }
  0x2e   :  { %8020 = vmatprep.subr.bf16.mxu1 %v10015_v53  ;;  %2229 = vmatprep.mubr.bf16.mxu0 %v10018_v56  ;;  %v10083_v51 = vld [vmem:[%s15288_s4 + $0x2e8] sm:$0xff]  }
  0x2f   :  { %2293 = vmatprep.mubr.bf16.mxu1 %v10020_v57  ;;  %v10084_v52 = vld [vmem:[%s15288_s4 + $0x228] sm:$0xff]   ;;  %v505_v57 = vld [vmem:[%s15289_s0 + $0x270] sm:$0xff] }
  0x30   :  { %7981 = vmatpush3.bf16.msra.mxu0 %v10016_v54  ;;  %v10085_v53 = vld [vmem:[%s15288_s4 + $0x2a8] sm:$0xff]  }
  0x31   :  { %8021 = vmatpush3.bf16.msra.mxu1 %v10017_v55  ;;  %7982 = vmatprep.subr.bf16.mxu0 %v10024_v60  ;;  %v504_v54 = vld [vmem:[%s15289_s0 + $0x268] sm:$0xff]  ;;  %v7343_v60 = vcombine.low %v505_v57, %v505_v57 }
  0x32   :  { %8022 = vmatprep.subr.bf16.mxu1 %v10025_v61  ;;  %v7342_v55 = vcombine.high %v504_v54, %v504_v54  ;;  %v7341_v56 = vcombine.low %v504_v54, %v504_v54  ;;  %v10090_v61 = vld [vmem:[%s15288_s4 + $0x2f0] sm:$0xff]  }
  0x33   :  { %2230 = vmatmul.mubr.bf16.gmra.mrb[8].mxu0 %v10022_v58  ;;  %v7344_v58 = vcombine.high %v505_v57, %v505_v57  ;;  %v10152_v54 = vld [vmem:[%s15289_s0 + $0x30] ss:$100 sps:$4 sm:$0xff]   ;;  %v10157_v57 = vld [vmem:[%s15289_s0 + $0x3c] ss:$100 sps:$4 sm:$0xff]  }
  0x34   :  { %2294 = vmatmul.mubr.bf16.gmra.mrb[8].mxu1 %v10023_v59  ;;  %7983 = vmatpush3.bf16.msra.mxu0 %v10026_v62  ;;  %v10089_v59 = vld [vmem:[%s15288_s4 + $0x270] sm:$0xff]  }
  0x35   :  { %8023 = vmatpush3.bf16.msra.mxu1 %v10027_v63  ;;  %7984 = vmatprep.subr.bf16.mxu0 %v10028_v0  ;;  %v10092_v62 = vld [vmem:[%s15288_s4 + $0x230] sm:$0xff]   ;;  %v10094_v0 = vld [vmem:[%s15288_s4 + $0x278] sm:$0xff]  }
  0x36   :  { %8024 = vmatprep.subr.bf16.mxu1 %v10029_v1  ;;  %2237 = vmatprep.mubr.bf16.mxu0 %v7338_v6  ;;  %v10093_v63 = vld [vmem:[%s15288_s4 + $0x2b0] sm:$0xff]   ;;  %v10095_v1 = vld [vmem:[%s15288_s4 + $0x2f8] sm:$0xff]   ;;  %v10101_v6 = vld [vmem:[%s15289_s0 + $0x28] ss:$100 sps:$4 sm:$0xff]  }
  0x37   :  { %2301 = vmatprep.mubr.bf16.mxu1 %v7340_v7  ;;  %v10103_v7 = vld [vmem:[%s15289_s0 + $0x2c] ss:$100 sps:$4 sm:$0xff]  }
  0x38   :  { %7985 = vmatpush3.bf16.msra.mxu0 %v10030_v2  ;;  %v10096_v2 = vld [vmem:[%s15288_s4 + $0x238] sm:$0xff]  }
  0x39   :  { %8025 = vmatpush3.bf16.msra.mxu1 %v10031_v3  ;;  %7986 = vmatprep.subr.bf16.mxu0 %v10036_v10  ;;  %v10097_v3 = vld [vmem:[%s15288_s4 + $0x2b8] sm:$0xff]   ;;  %v10106_v10 = vld [vmem:[%s15288_s4 + $0x300] sm:$0xff]  }
  0x3a   :  { %8026 = vmatprep.subr.bf16.mxu1 %v10037_v11  ;;  %v10107_v11 = vld [vmem:[%s15288_s4 + $0x380] sm:$0xff]  }
  0x3b   :  { %2238 = vmatmul.mubr.bf16.gmra.mrb[12].mxu0 %v7337_v8  ;;  %v10104_v8 = vld [vmem:[%s15288_s4 + $0x340] sm:$0xff]  }
  0x3c   :  { %2302 = vmatmul.mubr.bf16.gmra.mrb[12].mxu1 %v7339_v9  ;;  %7987 = vmatpush3.bf16.msra.mxu0 %v10038_v12  ;;  %v10105_v9 = vld [vmem:[%s15288_s4 + $0x3c0] sm:$0xff]   ;;  %v10108_v12 = vld [vmem:[%s15288_s4 + $0x348] sm:$0xff]  }
  0x3d   :  { %8027 = vmatpush3.bf16.msra.mxu1 %v10039_v13  ;;  %7988 = vmatprep.subr.bf16.mxu0 %v10040_v14  ;;  %v10109_v13 = vld [vmem:[%s15288_s4 + $0x3c8] sm:$0xff]  }
  0x3e   :  { %8028 = vmatprep.subr.bf16.mxu1 %v10041_v15  ;;  %2341 = vmatprep.mubr.bf16.mxu0 %v10046_v19  ;;  %v10110_v14 = vld [vmem:[%s15288_s4 + $0x308] sm:$0xff]   ;;  %v10117_v19 = vld [vmem:[%s15288_s4 + $0x350] sm:$0xff]  }
  0x3f   :  { %2405 = vmatprep.mubr.bf16.mxu1 %v10049_v21  ;;  %v10111_v15 = vld [vmem:[%s15288_s4 + $0x388] sm:$0xff]   ;;  %v10119_v21 = vld [vmem:[%s15289_s0 + $0xf0] ss:$100 sps:$4 sm:$0xff]  }
  0x40   :  { %7989 = vmatpush3.bf16.msra.mxu0 %v10042_v16  ;;  %v10112_v16 = vld [vmem:[%s15289_s0 + $0xec] ss:$100 sps:$4 sm:$0xff]  }
  0x41   :  { %8029 = vmatpush3.bf16.msra.mxu1 %v10043_v17  ;;  %8054 = vmatprep.subr.bf16.mxu0 %v10050_v22  ;;  %v10114_v17 = vld [vmem:[%s15289_s0 + $0xe8] ss:$100 sps:$4 sm:$0xff]   ;;  %v10120_v22 = vld [vmem:[%s15288_s4 + $0x310] sm:$0xff]  }
  0x42   :  { %8094 = vmatprep.subr.bf16.mxu1 %v10051_v23  ;;  %v10121_v23 = vld [vmem:[%s15288_s4 + $0x390] sm:$0xff]  }
  0x43   :  { %2342 = vmatmul.mubr.bf16.vlgmr.msra.gmra.mrb[16].mxu0 %v10044_v18  ;;  %v10115_v18 = vld [vmem:[%s15289_s0 + $0xf4] ss:$100 sps:$4 sm:$0xff]  }
  0x44   :  { %2406 = vmatmul.mubr.bf16.vlgmr.msra.gmra.mrb[16].mxu1 %v10047_v20  ;;  %8055 = vmatpush3.bf16.msra.mxu0 %v10052_v24  ;;  %v10118_v20 = vld [vmem:[%s15288_s4 + $0x3d0] sm:$0xff]   ;;  %v10122_v24 = vld [vmem:[%s15288_s4 + $0x358] sm:$0xff]  }
  0x45   :  { %8095 = vmatpush3.bf16.msra.mxu1 %v10053_v25  ;;  %8056 = vmatprep.subr.bf16.mxu0 %v10054_v26  ;;  %v10123_v25 = vld [vmem:[%s15288_s4 + $0x3d8] sm:$0xff]  }
  0x46   :  { %8096 = vmatprep.subr.bf16.mxu1 %v10055_v27  ;;  %2349 = vmatprep.mubr.bf16.mxu0 %v10058_v30  ;;  %v10124_v26 = vld [vmem:[%s15288_s4 + $0x318] sm:$0xff]  }
  0x47   :  { %2413 = vmatprep.mubr.bf16.mxu1 %v10061_v32  ;;  %v10125_v27 = vld [vmem:[%s15288_s4 + $0x398] sm:$0xff]   ;;  %v10132_v32 = vld [vmem:[%s15288_s4 + $0x3e0] sm:$0xff]  }
  0x48   :  { %8057 = vmatpush3.bf16.msra.mxu0 %v10056_v28  ;;  %v10126_v28 = vld [vmem:[%s15289_s0 + $0x1b4] ss:$100 sps:$4 sm:$0xff]   ;;  %v10129_v30 = vld [vmem:[%s15289_s0 + $0x1bc] ss:$100 sps:$4 sm:$0xff]  }
  0x49   :  { %8097 = vmatpush3.bf16.msra.mxu1 %v10057_v29  ;;  %8058 = vmatprep.subr.bf16.mxu0 %v10063_v33  ;;  %v10128_v29 = vld [vmem:[%s15289_s0 + $0x1b0] ss:$100 sps:$4 sm:$0xff]   ;;  %v10133_v33 = vld [vmem:[%s15289_s0 + $0x1b8] ss:$100 sps:$4 sm:$0xff]  }
  0x4a   :  { %8098 = vmatprep.subr.bf16.mxu1 %v10064_v34  ;;  %v10134_v34 = vld [vmem:[%s15288_s4 + $0x320] sm:$0xff]  }
  0x4b   :  { %2350 = vmatmul.mubr.bf16.gmra.mrb[20].mxu0 %v10060_v31  ;;  %v10131_v31 = vld [vmem:[%s15288_s4 + $0x360] sm:$0xff]  }
  0x4c   :  { %2414 = vmatmul.mubr.bf16.gmra.mrb[20].mxu1 %v10065_v35  ;;  %8059 = vmatpush3.bf16.msra.mxu0 %v10066_v36  ;;  %v10135_v35 = vld [vmem:[%s15288_s4 + $0x3a0] sm:$0xff]   ;;  %v10136_v36 = vld [vmem:[%s15288_s4 + $0x368] sm:$0xff]  }
  0x4d   :  { %8099 = vmatpush3.bf16.msra.mxu1 %v10067_v37  ;;  %8060 = vmatprep.subr.bf16.mxu0 %v10068_v38  ;;  %v10137_v37 = vld [vmem:[%s15288_s4 + $0x3e8] sm:$0xff]  }
  0x4e   :  { %8100 = vmatprep.subr.bf16.mxu1 %v10069_v39  ;;  %2357 = vmatprep.mubr.bf16.mxu0 %v10072_v42  ;;  %v10138_v38 = vld [vmem:[%s15288_s4 + $0x328] sm:$0xff]  }
  0x4f   :  { %2421 = vmatprep.mubr.bf16.mxu1 %v10075_v44  ;;  %v10139_v39 = vld [vmem:[%s15288_s4 + $0x3a8] sm:$0xff]  }
  0x50   :  { %8061 = vmatpush3.bf16.msra.mxu0 %v10070_v40  ;;  %v506_v40 = vld [vmem:[%s15289_s0 + $0x278] sm:$0xff] }
  0x51   :  { %8101 = vmatpush3.bf16.msra.mxu1 %v10071_v41  ;;  %8062 = vmatprep.subr.bf16.mxu0 %v10077_v45  ;;  %v507_v41 = vld [vmem:[%s15289_s0 + $0x280] sm:$0xff]  ;;  %v7346_v42 = vcombine.high %v506_v40, %v506_v40  ;;  %v10143_v45 = vld [vmem:[%s15288_s4 + $0x370] sm:$0xff]  }
  0x52   :  { %8102 = vmatprep.subr.bf16.mxu1 %v10078_v46  ;;  %v7348_v44 = vcombine.high %v507_v41, %v507_v41  ;;  %v7347_v46 = vcombine.low %v507_v41, %v507_v41  ;;  %v10208_v41 = vld [vmem:[%s15289_s0 + $0x44] ss:$100 sps:$4 sm:$0xff]  }
  0x53   :  { %2358 = vmatmul.mubr.bf16.gmra.mrb[24].mxu0 %v10074_v43  ;;  %v7345_v43 = vcombine.low %v506_v40, %v506_v40  ;;  %v10206_v40 = vld [vmem:[%s15289_s0 + $0x40] ss:$100 sps:$4 sm:$0xff]  }
  0x54   :  { %2422 = vmatmul.mubr.bf16.gmra.mrb[24].mxu1 %v10079_v47  ;;  %8063 = vmatpush3.bf16.msra.mxu0 %v10080_v48  ;;  %v10144_v47 = vld [vmem:[%s15288_s4 + $0x3f0] sm:$0xff]  }
  0x55   :  { %8103 = vmatpush3.bf16.msra.mxu1 %v10081_v49  ;;  %8064 = vmatprep.subr.bf16.mxu0 %v10082_v50  ;;  %v10146_v48 = vld [vmem:[%s15288_s4 + $0x330] sm:$0xff]   ;;  %v10148_v50 = vld [vmem:[%s15288_s4 + $0x378] sm:$0xff]  }
  0x56   :  { %8104 = vmatprep.subr.bf16.mxu1 %v10083_v51  ;;  %2365 = vmatprep.mubr.bf16.mxu0 %v7342_v55  ;;  %v10147_v49 = vld [vmem:[%s15288_s4 + $0x3b0] sm:$0xff]   ;;  %v10149_v51 = vld [vmem:[%s15288_s4 + $0x3f8] sm:$0xff]  }
  0x57   :  { %2429 = vmatprep.mubr.bf16.mxu1 %v7344_v58  ;;  %v10154_v55 = vld [vmem:[%s15289_s0 + $0x34] ss:$100 sps:$4 sm:$0xff]   ;;  %v10158_v58 = vld [vmem:[%s15288_s4 + $0x440] sm:$0xff]  }
  0x58   :  { %8065 = vmatpush3.bf16.msra.mxu0 %v10084_v52  ;;  %v10150_v52 = vld [vmem:[%s15288_s4 + $0x338] sm:$0xff]  }
  0x59   :  { %8105 = vmatpush3.bf16.msra.mxu1 %v10085_v53  ;;  %8066 = vmatprep.subr.bf16.mxu0 %v10089_v59  ;;  %v10151_v53 = vld [vmem:[%s15288_s4 + $0x3b8] sm:$0xff]   ;;  %v10159_v59 = vld [vmem:[%s15288_s4 + $0x4c0] sm:$0xff]  }
  0x5a   :  { %8106 = vmatprep.subr.bf16.mxu1 %v10090_v61  ;;  %v10161_v61 = vld [vmem:[%s15288_s4 + $0x480] sm:$0xff]  }
  0x5b   :  { %2366 = vmatmul.mubr.bf16.gmra.mrb[28].mxu0 %v7341_v56  ;;  %v10155_v56 = vld [vmem:[%s15289_s0 + $0x38] ss:$100 sps:$4 sm:$0xff]  }
  0x5c   :  { %2430 = vmatmul.mubr.bf16.gmra.mrb[28].mxu1 %v7343_v60  ;;  %8067 = vmatpush3.bf16.msra.mxu0 %v10092_v62  ;;  %v10160_v60 = vld [vmem:[%s15288_s4 + $0x400] sm:$0xff]   ;;  %v10162_v62 = vld [vmem:[%s15288_s4 + $0x448] sm:$0xff]  }
  0x5d   :  { %8107 = vmatpush3.bf16.msra.mxu1 %v10093_v63  ;;  %8068 = vmatprep.subr.bf16.mxu0 %v10094_v0  ;;  %v10163_v63 = vld [vmem:[%s15288_s4 + $0x4c8] sm:$0xff]  }
  0x5e   :  { %8108 = vmatprep.subr.bf16.mxu1 %v10095_v1  ;;  %2469 = vmatprep.mubr.bf16.mxu0 %v10100_v5  ;;  %v10164_v0 = vld [vmem:[%s15288_s4 + $0x408] sm:$0xff]   ;;  %v10171_v5 = vld [vmem:[%s15288_s4 + $0x450] sm:$0xff]  }
  0x5f   :  { %2533 = vmatprep.mubr.bf16.mxu1 %v10103_v7  ;;  %v10165_v1 = vld [vmem:[%s15288_s4 + $0x488] sm:$0xff]   ;;  %v10173_v7 = vld [vmem:[%s15289_s0 + $0x100] ss:$100 sps:$4 sm:$0xff]  }
  0x60   :  { %8069 = vmatpush3.bf16.msra.mxu0 %v10096_v2  ;;  %v10166_v2 = vld [vmem:[%s15289_s0 + $0xfc] ss:$100 sps:$4 sm:$0xff]  }
  0x61   :  { %8109 = vmatpush3.bf16.msra.mxu1 %v10097_v3  ;;  %8134 = vmatprep.subr.bf16.mxu0 %v10104_v8  ;;  %v10168_v3 = vld [vmem:[%s15289_s0 + $0xf8] ss:$100 sps:$4 sm:$0xff]   ;;  %v10174_v8 = vld [vmem:[%s15288_s4 + $0x410] sm:$0xff]  }
  0x62   :  { %8174 = vmatprep.subr.bf16.mxu1 %v10105_v9  ;;  %v10175_v9 = vld [vmem:[%s15288_s4 + $0x490] sm:$0xff]  }
  0x63   :  { %2470 = vmatmul.mubr.bf16.vlgmr.msra.gmra.mrb[32].mxu0 %v10098_v4  ;;  %v10169_v4 = vld [vmem:[%s15289_s0 + $0x104] ss:$100 sps:$4 sm:$0xff]  }
  0x64   :  { %2534 = vmatmul.mubr.bf16.vlgmr.msra.gmra.mrb[32].mxu1 %v10101_v6  ;;  %8135 = vmatpush3.bf16.msra.mxu0 %v10106_v10  ;;  %v10172_v6 = vld [vmem:[%s15288_s4 + $0x4d0] sm:$0xff]   ;;  %v10176_v10 = vld [vmem:[%s15288_s4 + $0x458] sm:$0xff]  }
  0x65   :  { %8175 = vmatpush3.bf16.msra.mxu1 %v10107_v11  ;;  %8136 = vmatprep.subr.bf16.mxu0 %v10108_v12  ;;  %v10177_v11 = vld [vmem:[%s15288_s4 + $0x4d8] sm:$0xff]  }
  0x66   :  { %8176 = vmatprep.subr.bf16.mxu1 %v10109_v13  ;;  %2477 = vmatprep.mubr.bf16.mxu0 %v10112_v16  ;;  %v10178_v12 = vld [vmem:[%s15288_s4 + $0x418] sm:$0xff]   ;;  %v10183_v16 = vld [vmem:[%s15289_s0 + $0x1cc] ss:$100 sps:$4 sm:$0xff]  }
  0x67   :  { %2541 = vmatprep.mubr.bf16.mxu1 %v10115_v18  ;;  %v10179_v13 = vld [vmem:[%s15288_s4 + $0x498] sm:$0xff]   ;;  %v10186_v18 = vld [vmem:[%s15288_s4 + $0x4e0] sm:$0xff]  }
  0x68   :  { %8137 = vmatpush3.bf16.msra.mxu0 %v10110_v14  ;;  %v10180_v14 = vld [vmem:[%s15289_s0 + $0x1c4] ss:$100 sps:$4 sm:$0xff]  }
  0x69   :  { %8177 = vmatpush3.bf16.msra.mxu1 %v10111_v15  ;;  %8138 = vmatprep.subr.bf16.mxu0 %v10117_v19  ;;  %v10182_v15 = vld [vmem:[%s15289_s0 + $0x1c0] ss:$100 sps:$4 sm:$0xff]   ;;  %v10187_v19 = vld [vmem:[%s15289_s0 + $0x1c8] ss:$100 sps:$4 sm:$0xff]  }
  0x6a   :  { %8178 = vmatprep.subr.bf16.mxu1 %v10118_v20  ;;  %v10188_v20 = vld [vmem:[%s15288_s4 + $0x420] sm:$0xff]  }
  0x6b   :  { %2478 = vmatmul.mubr.bf16.gmra.mrb[36].mxu0 %v10114_v17  ;;  %v10185_v17 = vld [vmem:[%s15288_s4 + $0x460] sm:$0xff]  }
  0x6c   :  { %2542 = vmatmul.mubr.bf16.gmra.mrb[36].mxu1 %v10119_v21  ;;  %8139 = vmatpush3.bf16.msra.mxu0 %v10120_v22  ;;  %v10189_v21 = vld [vmem:[%s15288_s4 + $0x4a0] sm:$0xff]   ;;  %v10190_v22 = vld [vmem:[%s15288_s4 + $0x468] sm:$0xff]  }
  0x6d   :  { %8179 = vmatpush3.bf16.msra.mxu1 %v10121_v23  ;;  %8140 = vmatprep.subr.bf16.mxu0 %v10122_v24  ;;  %v10191_v23 = vld [vmem:[%s15288_s4 + $0x4e8] sm:$0xff]  }
  0x6e   :  { %8180 = vmatprep.subr.bf16.mxu1 %v10123_v25  ;;  %2485 = vmatprep.mubr.bf16.mxu0 %v10126_v28  ;;  %v10192_v24 = vld [vmem:[%s15288_s4 + $0x428] sm:$0xff]  }
  0x6f   :  { %2549 = vmatprep.mubr.bf16.mxu1 %v10129_v30  ;;  %v10193_v25 = vld [vmem:[%s15288_s4 + $0x4a8] sm:$0xff]  }
  0x70   :  { %8141 = vmatpush3.bf16.msra.mxu0 %v10124_v26  ;;  %v508_v26 = vld [vmem:[%s15289_s0 + $0x288] sm:$0xff] }
  0x71   :  { %8181 = vmatpush3.bf16.msra.mxu1 %v10125_v27  ;;  %8142 = vmatprep.subr.bf16.mxu0 %v10131_v31  ;;  %v509_v27 = vld [vmem:[%s15289_s0 + $0x290] sm:$0xff]  ;;  %v7350_v28 = vcombine.high %v508_v26, %v508_v26 }
  0x72   :  { %8182 = vmatprep.subr.bf16.mxu1 %v10132_v32  ;;  %v7352_v30 = vcombine.high %v509_v27, %v509_v27  ;;  %v10197_v31 = vld [vmem:[%s15288_s4 + $0x470] sm:$0xff]   ;;  %v7351_v32 = vcombine.low %v509_v27, %v509_v27 }
  0x73   :  { %2486 = vmatmul.mubr.bf16.gmra.mrb[40].mxu0 %v10128_v29  ;;  %v7349_v29 = vcombine.low %v508_v26, %v508_v26  ;;  %v10260_v26 = vld [vmem:[%s15289_s0 + $0x50] ss:$100 sps:$4 sm:$0xff]  }
  0x74   :  { %2550 = vmatmul.mubr.bf16.gmra.mrb[40].mxu1 %v10133_v33  ;;  %8143 = vmatpush3.bf16.msra.mxu0 %v10134_v34  ;;  %v10198_v33 = vld [vmem:[%s15288_s4 + $0x4f0] sm:$0xff]  }
  0x75   :  { %8183 = vmatpush3.bf16.msra.mxu1 %v10135_v35  ;;  %8144 = vmatprep.subr.bf16.mxu0 %v10136_v36  ;;  %v10200_v34 = vld [vmem:[%s15288_s4 + $0x430] sm:$0xff]   ;;  %v10202_v36 = vld [vmem:[%s15288_s4 + $0x478] sm:$0xff]  }
  0x76   :  { %8184 = vmatprep.subr.bf16.mxu1 %v10137_v37  ;;  %2493 = vmatprep.mubr.bf16.mxu0 %v7346_v42  ;;  %v10201_v35 = vld [vmem:[%s15288_s4 + $0x4b0] sm:$0xff]   ;;  %v10203_v37 = vld [vmem:[%s15288_s4 + $0x4f8] sm:$0xff]   ;;  %v10209_v42 = vld [vmem:[%s15289_s0 + $0x48] ss:$100 sps:$4 sm:$0xff]  }
  0x77   :  { %2557 = vmatprep.mubr.bf16.mxu1 %v7348_v44  ;;  %v10212_v44 = vld [vmem:[%s15288_s4 + $0x540] sm:$0xff]   ;;  %v10262_v27 = vld [vmem:[%s15289_s0 + $0x54] ss:$100 sps:$4 sm:$0xff]  }
  0x78   :  { %8145 = vmatpush3.bf16.msra.mxu0 %v10138_v38  ;;  %v10204_v38 = vld [vmem:[%s15288_s4 + $0x438] sm:$0xff]  }
  0x79   :  { %8185 = vmatpush3.bf16.msra.mxu1 %v10139_v39  ;;  %8146 = vmatprep.subr.bf16.mxu0 %v10143_v45  ;;  %v10205_v39 = vld [vmem:[%s15288_s4 + $0x4b8] sm:$0xff]   ;;  %v10213_v45 = vld [vmem:[%s15288_s4 + $0x5c0] sm:$0xff]  }
  0x7a   :  { %8186 = vmatprep.subr.bf16.mxu1 %v10144_v47  ;;  %v10215_v47 = vld [vmem:[%s15288_s4 + $0x580] sm:$0xff]  }
  0x7b   :  { %2494 = vmatmul.mubr.bf16.gmra.mrb[44].mxu0 %v7345_v43  ;;  %v10211_v43 = vld [vmem:[%s15289_s0 + $0x4c] ss:$100 sps:$4 sm:$0xff]  }
  0x7c   :  { %2558 = vmatmul.mubr.bf16.gmra.mrb[44].mxu1 %v7347_v46  ;;  %8147 = vmatpush3.bf16.msra.mxu0 %v10146_v48  ;;  %v10214_v46 = vld [vmem:[%s15288_s4 + $0x500] sm:$0xff]   ;;  %v10216_v48 = vld [vmem:[%s15288_s4 + $0x548] sm:$0xff]  }
  0x7d   :  { %8187 = vmatpush3.bf16.msra.mxu1 %v10147_v49  ;;  %8148 = vmatprep.subr.bf16.mxu0 %v10148_v50  ;;  %v10217_v49 = vld [vmem:[%s15288_s4 + $0x5c8] sm:$0xff]  }
  0x7e   :  { %8188 = vmatprep.subr.bf16.mxu1 %v10149_v51  ;;  %2597 = vmatprep.mubr.bf16.mxu0 %v10154_v55  ;;  %v10218_v50 = vld [vmem:[%s15288_s4 + $0x508] sm:$0xff]   ;;  %v10225_v55 = vld [vmem:[%s15288_s4 + $0x550] sm:$0xff]  }
  0x7f   :  { %2661 = vmatprep.mubr.bf16.mxu1 %v10157_v57  ;;  %v10219_v51 = vld [vmem:[%s15288_s4 + $0x588] sm:$0xff]   ;;  %v10227_v57 = vld [vmem:[%s15289_s0 + $0x110] ss:$100 sps:$4 sm:$0xff]  }
  0x80   :  { %8149 = vmatpush3.bf16.msra.mxu0 %v10150_v52  ;;  %v10220_v52 = vld [vmem:[%s15289_s0 + $0x10c] ss:$100 sps:$4 sm:$0xff]  }
  0x81   :  { %8189 = vmatpush3.bf16.msra.mxu1 %v10151_v53  ;;  %8214 = vmatprep.subr.bf16.mxu0 %v10158_v58  ;;  %v10222_v53 = vld [vmem:[%s15289_s0 + $0x108] ss:$100 sps:$4 sm:$0xff]   ;;  %v10228_v58 = vld [vmem:[%s15288_s4 + $0x510] sm:$0xff]  }
  0x82   :  { %8254 = vmatprep.subr.bf16.mxu1 %v10159_v59  ;;  %v10229_v59 = vld [vmem:[%s15288_s4 + $0x590] sm:$0xff]  }
  0x83   :  { %2598 = vmatmul.mubr.bf16.vlgmr.msra.gmra.mrb[48].mxu0 %v10152_v54  ;;  %v10223_v54 = vld [vmem:[%s15289_s0 + $0x114] ss:$100 sps:$4 sm:$0xff]  }
  0x84   :  { %2662 = vmatmul.mubr.bf16.vlgmr.msra.gmra.mrb[48].mxu1 %v10155_v56  ;;  %8215 = vmatpush3.bf16.msra.mxu0 %v10160_v60  ;;  %v10226_v56 = vld [vmem:[%s15288_s4 + $0x5d0] sm:$0xff]   ;;  %v10230_v60 = vld [vmem:[%s15288_s4 + $0x558] sm:$0xff]  }
  0x85   :  { %8255 = vmatpush3.bf16.msra.mxu1 %v10161_v61  ;;  %8216 = vmatprep.subr.bf16.mxu0 %v10162_v62  ;;  %v10231_v61 = vld [vmem:[%s15288_s4 + $0x5d8] sm:$0xff]  }
  0x86   :  { %8256 = vmatprep.subr.bf16.mxu1 %v10163_v63  ;;  %2605 = vmatprep.mubr.bf16.mxu0 %v10166_v2  ;;  %v10232_v62 = vld [vmem:[%s15288_s4 + $0x518] sm:$0xff]  }
  0x87   :  { %2669 = vmatprep.mubr.bf16.mxu1 %v10169_v4  ;;  %v10233_v63 = vld [vmem:[%s15288_s4 + $0x598] sm:$0xff]   ;;  %v10240_v4 = vld [vmem:[%s15288_s4 + $0x5e0] sm:$0xff]  }
  0x88   :  { %8217 = vmatpush3.bf16.msra.mxu0 %v10164_v0  ;;  %v10234_v0 = vld [vmem:[%s15289_s0 + $0x1d4] ss:$100 sps:$4 sm:$0xff]   ;;  %v10237_v2 = vld [vmem:[%s15289_s0 + $0x1dc] ss:$100 sps:$4 sm:$0xff]  }
  0x89   :  { %8257 = vmatpush3.bf16.msra.mxu1 %v10165_v1  ;;  %8218 = vmatprep.subr.bf16.mxu0 %v10171_v5  ;;  %v10236_v1 = vld [vmem:[%s15289_s0 + $0x1d0] ss:$100 sps:$4 sm:$0xff]   ;;  %v10241_v5 = vld [vmem:[%s15289_s0 + $0x1d8] ss:$100 sps:$4 sm:$0xff]  }
  0x8a   :  { %8258 = vmatprep.subr.bf16.mxu1 %v10172_v6  ;;  %v10242_v6 = vld [vmem:[%s15288_s4 + $0x520] sm:$0xff]  }
  0x8b   :  { %2606 = vmatmul.mubr.bf16.gmra.mrb[52].mxu0 %v10168_v3  ;;  %v10239_v3 = vld [vmem:[%s15288_s4 + $0x560] sm:$0xff]  }
  0x8c   :  { %2670 = vmatmul.mubr.bf16.gmra.mrb[52].mxu1 %v10173_v7  ;;  %8219 = vmatpush3.bf16.msra.mxu0 %v10174_v8  ;;  %v10243_v7 = vld [vmem:[%s15288_s4 + $0x5a0] sm:$0xff]   ;;  %v10244_v8 = vld [vmem:[%s15288_s4 + $0x568] sm:$0xff]  }
  0x8d   :  { %8259 = vmatpush3.bf16.msra.mxu1 %v10175_v9  ;;  %8220 = vmatprep.subr.bf16.mxu0 %v10176_v10  ;;  %v10245_v9 = vld [vmem:[%s15288_s4 + $0x5e8] sm:$0xff]  }
  0x8e   :  { %8260 = vmatprep.subr.bf16.mxu1 %v10177_v11  ;;  %2613 = vmatprep.mubr.bf16.mxu0 %v10180_v14  ;;  %v10246_v10 = vld [vmem:[%s15288_s4 + $0x528] sm:$0xff]  }
  0x8f   :  { %2677 = vmatprep.mubr.bf16.mxu1 %v10183_v16  ;;  %v10247_v11 = vld [vmem:[%s15288_s4 + $0x5a8] sm:$0xff]  }
  0x90   :  { %8221 = vmatpush3.bf16.msra.mxu0 %v10178_v12  ;;  %v510_v12 = vld [vmem:[%s15289_s0 + $0x298] sm:$0xff] }
  0x91   :  { %8261 = vmatpush3.bf16.msra.mxu1 %v10179_v13  ;;  %8222 = vmatprep.subr.bf16.mxu0 %v10185_v17  ;;  %v7354_v13 = vcombine.high %v510_v12, %v510_v12  ;;  %v7353_v14 = vcombine.low %v510_v12, %v510_v12  ;;  %v10251_v17 = vld [vmem:[%s15288_s4 + $0x570] sm:$0xff]  }
  0x92   :  { %8262 = vmatprep.subr.bf16.mxu1 %v10186_v18 }
  0x93   :  { %2614 = vmatmul.mubr.bf16.gmra.mrb[56].mxu0 %v10182_v15  ;;  %v511_v15 = vld [vmem:[%s15289_s0 + $0x2a0] sm:$0xff] }
  0x94   :  { %2678 = vmatmul.mubr.bf16.gmra.mrb[56].mxu1 %v10187_v19  ;;  %8223 = vmatpush3.bf16.msra.mxu0 %v10188_v20  ;;  %v7356_v16 = vcombine.high %v511_v15, %v511_v15  ;;  %v7355_v18 = vcombine.low %v511_v15, %v511_v15  ;;  %v10252_v19 = vld [vmem:[%s15288_s4 + $0x5f0] sm:$0xff]  }
  0x95   :  { %8263 = vmatpush3.bf16.msra.mxu1 %v10189_v21  ;;  %8224 = vmatprep.subr.bf16.mxu0 %v10190_v22  ;;  %v10254_v20 = vld [vmem:[%s15288_s4 + $0x530] sm:$0xff]   ;;  %v10256_v22 = vld [vmem:[%s15288_s4 + $0x578] sm:$0xff]  }
  0x96   :  { %8264 = vmatprep.subr.bf16.mxu1 %v10191_v23  ;;  %2621 = vmatprep.mubr.bf16.mxu0 %v7350_v28  ;;  %v10255_v21 = vld [vmem:[%s15288_s4 + $0x5b0] sm:$0xff]   ;;  %v10257_v23 = vld [vmem:[%s15288_s4 + $0x5f8] sm:$0xff]  }
  0x97   :  { %2685 = vmatprep.mubr.bf16.mxu1 %v7352_v30  ;;  %v10263_v28 = vld [vmem:[%s15289_s0 + $0x58] ss:$100 sps:$4 sm:$0xff]   ;;  %v10266_v30 = vld [vmem:[%s15288_s4 + $0x600] sm:$0xff]  }
  0x98   :  { %8225 = vmatpush3.bf16.msra.mxu0 %v10192_v24  ;;  %v10258_v24 = vld [vmem:[%s15288_s4 + $0x538] sm:$0xff]  }
  0x99   :  { %8265 = vmatpush3.bf16.msra.mxu1 %v10193_v25  ;;  %8226 = vmatprep.subr.bf16.mxu0 %v10197_v31  ;;  %v10259_v25 = vld [vmem:[%s15288_s4 + $0x5b8] sm:$0xff]   ;;  %v10702_v31 = vld [vmem:[%s15288_s4 + $0x40] sm:$0xff]  }
  0x9a   :  { %8266 = vmatprep.subr.bf16.mxu1 %v10198_v33  ;;  %v10268_v33 = vld [vmem:[%s15289_s0 + $0x11c] ss:$100 sps:$4 sm:$0xff]  }
  0x9b   :  { %2622 = vmatmul.mubr.bf16.gmra.mrb[60].mxu0 %v7349_v29  ;;  %v10265_v29 = vld [vmem:[%s15289_s0 + $0x5c] ss:$100 sps:$4 sm:$0xff]  }
  0x9c   :  { %2686 = vmatmul.mubr.bf16.gmra.mrb[60].mxu1 %v7351_v32  ;;  %8227 = vmatpush3.bf16.msra.mxu0 %v10200_v34  ;;  %v10267_v32 = vld [vmem:[%s15288_s4 + $0x608] sm:$0xff]   ;;  %v10703_v34 = vld [vmem:[%s15288_s4] sm:$0xff]  }
  0x9d   :  { %8267 = vmatpush3.bf16.msra.mxu1 %v10201_v35  ;;  %8228 = vmatprep.subr.bf16.mxu0 %v10202_v36  ;;  %v10704_v35 = vld [vmem:[%s15288_s4 + $0x48] sm:$0xff]  }
  0x9e   :  { %8268 = vmatprep.subr.bf16.mxu1 %v10203_v37  ;;  %2725 = vmatprep.mubr.bf16.mxu0 %v10208_v41  ;;  %v10271_v36 = vld [vmem:[%s15289_s0 + $0x124] ss:$100 sps:$4 sm:$0xff]   ;;  %v10270_v37 = vld [vmem:[%s15289_s0 + $0x118] ss:$100 sps:$4 sm:$0xff]  }
  0x9f   :  { %2789 = vmatprep.mubr.bf16.mxu1 %v10211_v43  ;;  %v10275_v41 = vld [vmem:[%s15288_s4 + $0x618] sm:$0xff]   ;;  %v10706_v43 = vld [vmem:[%s15288_s4 + $0x50] sm:$0xff]  }
  0xa0   :  { %8229 = vmatpush3.bf16.msra.mxu0 %v10204_v38  ;;  %v10273_v38 = vld [vmem:[%s15288_s4 + $0x610] sm:$0xff]  }
  0xa1   :  { %8269 = vmatpush3.bf16.msra.mxu1 %v10205_v39  ;;  %8294 = vmatprep.subr.bf16.mxu0 %v10212_v44  ;;  %v10274_v39 = vld [vmem:[%s15289_s0 + $0x120] ss:$100 sps:$4 sm:$0xff]   ;;  %v10279_v44 = vld [vmem:[%s15289_s0 + $0x1ec] ss:$100 sps:$4 sm:$0xff]  }
  0xa2   :  { %8334 = vmatprep.subr.bf16.mxu1 %v10213_v45 }
  0xa3   :  { %2726 = vmatmul.mubr.bf16.vlgmr.msra.gmra.mrb[64].mxu0 %v10206_v40  ;;  %v10705_v40 = vld [vmem:[%s15288_s4 + $0x8] sm:$0xff]  }
  0xa4   :  { %2790 = vmatmul.mubr.bf16.vlgmr.msra.gmra.mrb[64].mxu1 %v10209_v42  ;;  %8295 = vmatpush3.bf16.msra.mxu0 %v10214_v46  ;;  %v10276_v42 = vld [vmem:[%s15289_s0 + $0x1e4] ss:$100 sps:$4 sm:$0xff]   ;;  %v10707_v46 = vld [vmem:[%s15288_s4 + $0x10] sm:$0xff]  }
  0xa5   :  { %8335 = vmatpush3.bf16.msra.mxu1 %v10215_v47  ;;  %8296 = vmatprep.subr.bf16.mxu0 %v10216_v48  ;;  %v10278_v47 = vld [vmem:[%s15289_s0 + $0x1e0] ss:$100 sps:$4 sm:$0xff]   ;;  %v12189_v48 = vld [vmem:[%s15289_s0 + $0x2a8] sm:$0xff] }
  0xa6   :  { %8336 = vmatprep.subr.bf16.mxu1 %v10217_v49  ;;  %2733 = vmatprep.mubr.bf16.mxu0 %v10220_v52  ;;  %v10281_v52 = vld [vmem:[%s15288_s4 + $0x620] sm:$0xff]   ;;  %v7357_v12 = vcombine.low %v12189_v48, %v12189_v48 }
  0xa7   :  { %2797 = vmatprep.mubr.bf16.mxu1 %v10223_v54 }
  0xa8   :  { %8297 = vmatpush3.bf16.msra.mxu0 %v10218_v50 }
  0xa9   :  { %8337 = vmatpush3.bf16.msra.mxu1 %v10219_v51  ;;  %8298 = vmatprep.subr.bf16.mxu0 %v10225_v55  ;;  %v10708_v51 = vld [vmem:[%s15288_s4 + $0x58] sm:$0xff]  }
  0xaa   :  { %8338 = vmatprep.subr.bf16.mxu1 %v10226_v56 }
  0xab   :  { %2734 = vmatmul.mubr.bf16.gmra.mrb[68].mxu0 %v10222_v53  ;;  %v10282_v53 = vld [vmem:[%s15289_s0 + $0x1e8] ss:$100 sps:$4 sm:$0xff]  }
  0xac   :  { %2798 = vmatmul.mubr.bf16.gmra.mrb[68].mxu1 %v10227_v57  ;;  %8299 = vmatpush3.bf16.msra.mxu0 %v10228_v58  ;;  %v7358_v58 = vcombine.high %v12189_v48, %v12189_v48 }
  0xad   :  { %8339 = vmatpush3.bf16.msra.mxu1 %v10229_v59  ;;  %8300 = vmatprep.subr.bf16.mxu0 %v10230_v60  ;;  %v513_v59 = vld [vmem:[%s15289_s0 + $0x2b0] sm:$0xff]  ;;  %v10709_v60 = vld [vmem:[%s15288_s4 + $0x18] sm:$0xff]  }
  0xae   :  { %8340 = vmatprep.subr.bf16.mxu1 %v10231_v61  ;;  %2741 = vmatprep.mubr.bf16.mxu0 %v10234_v0  ;;  %v7359_v15 = vcombine.low %v513_v59, %v513_v59 }
  0xaf   :  { %2805 = vmatprep.mubr.bf16.mxu1 %v10237_v2  ;;  %v7360_v2 = vcombine.high %v513_v59, %v513_v59  ;;  %v10299_v59 = vld [vmem:[%s15290_s1 + $0xc8] ss:$100 sps:$4 sm:$0xff]  }
  0xb0   :  { %8301 = vmatpush3.bf16.msra.mxu0 %v10232_v62  ;;  %v10710_v62 = vld [vmem:[%s15288_s4 + $0x60] sm:$0xff]  }
  0xb1   :  { %8341 = vmatpush3.bf16.msra.mxu1 %v10233_v63  ;;  %8302 = vmatprep.subr.bf16.mxu0 %v10239_v3  ;;  %v10283_v63 = vld [vmem:[%s15288_s4 + $0x628] sm:$0xff]  }
  0xb2   :  { %8342 = vmatprep.subr.bf16.mxu1 %v10240_v4  ;;  %v10711_v4 = vld [vmem:[%s15288_s4 + $0x20] sm:$0xff]  }
  0xb3   :  { %2742 = vmatmul.mubr.bf16.gmra.mrb[72].mxu0 %v10236_v1 }
  0xb4   :  { %2806 = vmatmul.mubr.bf16.gmra.mrb[72].mxu1 %v10241_v5  ;;  %8303 = vmatpush3.bf16.msra.mxu0 %v10242_v6 }
  0xb5   :  { %8343 = vmatpush3.bf16.msra.mxu1 %v10243_v7  ;;  %8304 = vmatprep.subr.bf16.mxu0 %v10244_v8  ;;  %v10712_v7 = vld [vmem:[%s15288_s4 + $0x68] sm:$0xff]   ;;  %v10287_v8 = vld [vmem:[%s15288_s4 + $0x630] sm:$0xff]  }
  0xb6   :  { %8344 = vmatprep.subr.bf16.mxu1 %v10245_v9  ;;  %2749 = vmatprep.mubr.bf16.mxu0 %v7354_v13 }
  0xb7   :  { %2813 = vmatprep.mubr.bf16.mxu1 %v7356_v16  ;;  %v10290_v16 = vld [vmem:[%s15289_s0 + $0x60] ss:$100 sps:$4 sm:$0xff]  }
  0xb8   :  { %8305 = vmatpush3.bf16.msra.mxu0 %v10246_v10 }
  0xb9   :  { %8345 = vmatpush3.bf16.msra.mxu1 %v10247_v11  ;;  %8306 = vmatprep.subr.bf16.mxu0 %v10251_v17 }
  0xba   :  { %8346 = vmatprep.subr.bf16.mxu1 %v10252_v19 }
  0xbb   :  { %2750 = vmatmul.mubr.bf16.gmra.mrb[76].mxu0 %v7353_v14 }
  0xbc   :  { %2814 = vmatmul.mubr.bf16.gmra.mrb[76].mxu1 %v7355_v18  ;;  %8307 = vmatpush3.bf16.msra.mxu0 %v10254_v20 }
  0xbd   :  { %8347 = vmatpush3.bf16.msra.mxu1 %v10255_v21  ;;  %8308 = vmatprep.subr.bf16.mxu0 %v10256_v22  ;;  %v10713_v21 = vld [vmem:[%s15288_s4 + $0x28] sm:$0xff]  }
  0xbe   :  { %8348 = vmatprep.subr.bf16.mxu1 %v10257_v23  ;;  %2853 = vmatprep.mubr.bf16.mxu0 %v10262_v27 }
  0xbf   :  { %2917 = vmatprep.mubr.bf16.mxu1 %v10265_v29  ;;  %v10294_v29 = vld [vmem:[%s15290_s1 + $0x4] ss:$100 sps:$4 sm:$0xff]  }
  0xc0   :  { %8309 = vmatpush3.bf16.msra.mxu0 %v10258_v24  ;;  %v10714_v24 = vld [vmem:[%s15288_s4 + $0x70] sm:$0xff]  }
  0xc1   :  { %8349 = vmatpush3.bf16.msra.mxu1 %v10259_v25  ;;  %9862 = vmatprep.subr.bf16.mxu0 %v10266_v30  ;;  %v10289_v25 = vld [vmem:[%s15288_s4 + $0x638] sm:$0xff]  }
  0xc2   :  { %8386 = vmatprep.subr.bf16.mxu1 %v10702_v31  ;;  %v10715_v31 = vld [vmem:[%s15288_s4 + $0x30] sm:$0xff]  }
  0xc3   :  { %2854 = vmatmul.mubr.bf16.vlgmr.msra.gmra.mrb[80].mxu0 %v10260_v26 }
  0xc4   :  { %2918 = vmatmul.mubr.bf16.vlgmr.msra.gmra.mrb[80].mxu1 %v10263_v28  ;;  %9863 = vmatpush3.bf16.msra.mxu0 %v10266_v30 }
  0xc5   :  { %8387 = vmatpush3.bf16.msra.mxu1 %v10703_v34  ;;  %9864 = vmatprep.subr.bf16.mxu0 %v10267_v32  ;;  %v10292_v34 = vld [vmem:[%s15290_s1] ss:$100 sps:$4 sm:$0xff]  }
  0xc6   :  { %8388 = vmatprep.subr.bf16.mxu1 %v10704_v35  ;;  %2861 = vmatprep.mubr.bf16.mxu0 %v10268_v33  ;;  %v10291_v33 = vld [vmem:[%s15289_s0 + $0x128] ss:$100 sps:$4 sm:$0xff]  }
  0xc7   :  { %2925 = vmatprep.mubr.bf16.mxu1 %v10271_v36  ;;  %v10717_v36 = vld [vmem:[%s15288_s4 + $0x38] sm:$0xff]  }
  0xc8   :  { %9865 = vmatpush3.bf16.msra.mxu0 %v10267_v32  ;;  %v10716_v32 = vld [vmem:[%s15288_s4 + $0x78] sm:$0xff]  }
  0xc9   :  { %8389 = vmatpush3.bf16.msra.mxu1 %v10705_v40  ;;  %9866 = vmatprep.subr.bf16.mxu0 %v10273_v38  ;;  %v10719_v40 = vld [vmem:[%s15288_s4 + $0x140] sm:$0xff]  }
  0xca   :  { %8390 = vmatprep.subr.bf16.mxu1 %v10706_v43 }
  0xcb   :  { %2862 = vmatmul.mubr.bf16.gmra.mrb[84].mxu0 %v10270_v37 }
  0xcc   :  { %2926 = vmatmul.mubr.bf16.gmra.mrb[84].mxu1 %v10274_v39  ;;  %2869 = vmatprep.mubr.bf16.mxu0 %v10276_v42  ;;  %v10718_v39 = vld [vmem:[%s15288_s4 + $0xc0] sm:$0xff]  }
  0xcd   :  { %9867 = vmatpush3.bf16.msra.mxu0 %v10273_v38  ;;  %8391 = vmatpush3.bf16.msra.mxu1 %v10707_v46 }
  0xce   :  { %9868 = vmatprep.subr.bf16.mxu0 %v10275_v41  ;;  %8392 = vmatprep.subr.bf16.mxu1 %v10708_v51  ;;  %v10720_v51 = vld [vmem:[%s15288_s4 + $0x80] sm:$0xff]  }
  0xcf   :  { %2933 = vmatprep.mubr.bf16.mxu1 %v10279_v44  ;;  %v10295_v44 = vld [vmem:[%s15289_s0 + $0x1f0] ss:$100 sps:$4 sm:$0xff]  }
  0xd1   :  { %9869 = vmatpush3.bf16.msra.mxu0 %v10275_v41  ;;  %8393 = vmatpush3.bf16.msra.mxu1 %v10709_v60  ;;  %v10724_v60 = vld [vmem:[%s15288_s4 + $0x88] sm:$0xff]  }
  0xd2   :  { %9870 = vmatprep.subr.bf16.mxu0 %v10281_v52  ;;  %8394 = vmatprep.subr.bf16.mxu1 %v10710_v62  ;;  %v10725_v62 = vld [vmem:[%s15288_s4 + $0x108] sm:$0xff]  }
  0xd3   :  { %2870 = vmatmul.mubr.bf16.gmra.mrb[88].mxu0 %v10278_v47 }
  0xd4   :  { %2934 = vmatmul.mubr.bf16.gmra.mrb[88].mxu1 %v10282_v53  ;;  %2877 = vmatprep.mubr.bf16.mxu0 %v7358_v58  ;;  %v10296_v58 = vld [vmem:[%s15289_s0 + $0x2b8] ss:$0 sps:$4 sm:$0xff]  }
  0xd5   :  { %9871 = vmatpush3.bf16.msra.mxu0 %v10281_v52  ;;  %8395 = vmatpush3.bf16.msra.mxu1 %v10711_v4  ;;  %v10721_v52 = vld [vmem:[%s15288_s4 + $0x100] sm:$0xff]  }
  0xd6   :  { %9872 = vmatprep.subr.bf16.mxu0 %v10283_v63  ;;  %8396 = vmatprep.subr.bf16.mxu1 %v10712_v7  ;;  %v10728_v7 = vld [vmem:[%s15288_s4 + $0x90] sm:$0xff]  }
  0xd7   :  { %2941 = vmatprep.mubr.bf16.mxu1 %v7360_v2  ;;  %v10307_v2 = vld [vmem:[%s15290_s1 + $0xc] ss:$100 sps:$4 sm:$0xff]  }
  0xd9   :  { %9873 = vmatpush3.bf16.msra.mxu0 %v10283_v63  ;;  %8397 = vmatpush3.bf16.msra.mxu1 %v10713_v21  ;;  %v10726_v63 = vld [vmem:[%s15288_s4 + $0xd0] sm:$0xff]   ;;  %v10732_v21 = vld [vmem:[%s15288_s4 + $0x98] sm:$0xff]  }
  0xda   :  { %9874 = vmatprep.subr.bf16.mxu0 %v10287_v8  ;;  %8398 = vmatprep.subr.bf16.mxu1 %v10714_v24  ;;  %v10735_v24 = vld [vmem:[%s15288_s4 + $0x160] sm:$0xff]  }
  0xdb   :  { %2878 = vmatmul.mubr.bf16.gmra.mrb[92].mxu0 %v7357_v12 }
  0xdc   :  { %2942 = vmatmul.mubr.bf16.gmra.mrb[92].mxu1 %v7359_v15  ;;  %9878 = vmatprep.mubr.bf16.mxu0 %v10290_v16 }
  0xdd   :  { %9875 = vmatpush3.bf16.msra.mxu0 %v10287_v8  ;;  %8399 = vmatpush3.bf16.msra.mxu1 %v10715_v31  ;;  %v10729_v8 = vld [vmem:[%s15288_s4 + $0x110] sm:$0xff]  }
  0xde   :  { %9876 = vmatprep.subr.bf16.mxu0 %v10289_v25  ;;  %8400 = vmatprep.subr.bf16.mxu1 %v10716_v32 }
  0xdf   :  { %3602 = vmatprep.mubr.bf16.mxu1 %v10294_v29  ;;  %v10737_v29 = vld [vmem:[%s15288_s4 + $0x120] sm:$0xff]  }
  0xe1   :  { %9877 = vmatpush3.bf16.msra.mxu0 %v10289_v25  ;;  %8401 = vmatpush3.bf16.msra.mxu1 %v10717_v36 }
  0xe2   :  { %8426 = vmatprep.subr.bf16.mxu0 %v10718_v39  ;;  %8466 = vmatprep.subr.bf16.mxu1 %v10719_v40 }
  0xe4   :  { %9879 = vmatmul.mubr.bf16.vlgmr.msra.gmra.mrb[96].mxu0 %v10291_v33  ;;  %3603 = vmatmul.mubr.bf16.vlgmr.msra.gmra.mrb[96].mxu1 %v10292_v34  ;;  %v10738_v33 = vld [vmem:[%s15288_s4 + $0xe8] sm:$0xff]  }
  0xe5   :  { %8427 = vmatpush3.bf16.msra.mxu0 %v10720_v51  ;;  %8467 = vmatpush3.bf16.msra.mxu1 %v10721_v52  ;;  %v10739_v34 = vld [vmem:[%s15288_s4 + $0x168] sm:$0xff]   ;;  %v10310_v51 = vld [vmem:[%s15290_s1 + $0x14] ss:$100 sps:$4 sm:$0xff]  }
  0xe6   :  { %9882 = vmatprep.mubr.bf16.mxu0 %v10295_v44 }
  0xec   :  { %9883 = vmatmul.mubr.bf16.gmra.mrb[100].mxu0 %v10296_v58  ;;  %v10305_v58 = vld [vmem:[%s15290_s1 + $0x8] ss:$100 sps:$4 sm:$0xff]  }
  0xed   :  { %3666 = vmatprep.mubr.bf16.mxu0 %v10307_v2  ;;  %v10748_v2 = vld [vmem:[%s15288_s4 + $0xb8] sm:$0xff]  }
  0xf6   :  { %v7910_v45 = vpop.f32.mrb[0].mxu0 }
  0xf7   :  { %v7950_v49 = vpop.f32.mrb[0].mxu1  ;;  %v7911_v50 = vpop.f32.mrb[1].mxu0 }
  0xf8   :  { %v7951_v54 = vpop.f32.mrb[1].mxu1  ;;  %v7912_v55 = vadd.f32 %v7911_v50, %v7910_v45  ;;  %v7913_v57 = vpop.f32.mrb[2].mxu0  ;;  %v10297_v45 = vld [vmem:[%s15290_s1 + $0xcc] ss:$100 sps:$4 sm:$0xff]  }
  0xf9   :  { %v7952_v56 = vadd.f32 %v7951_v54, %v7950_v49  ;;  %v7953_v0 = vpop.f32.mrb[2].mxu1  ;;  %v7914_v1 = vpop.f32.mrb[3].mxu0  ;;  %3610 = vmatprep.mubr.bf16.mxu1 %v10297_v45  ;;  %v10740_v45 = vld [vmem:[%s15288_s4 + $0xa8] sm:$0xff]  }
  0xfa   :  { %v7915_v3 = vadd.f32 %v7914_v1, %v7913_v57  ;;  %v7954_v5 = vpop.f32.mrb[3].mxu1  ;;  %v10300_v1 = vld [vmem:[%s15290_s1 + $0x194] ss:$100 sps:$4 sm:$0xff]   ;;  %3611 = vmatmul.mubr.bf16.gmra.mrb[100].mxu1 %v10299_v59 }
  0xfb   :  { %v12208_v61 = vadd.f32 %v7952_v56, %v7912_v55  ;;  %v7955_v9 = vadd.f32 %v7954_v5, %v7953_v0  ;;  %v10722_v55 = vld [vmem:[%s15288_s4 + $0xc8] sm:$0xff]   ;;  %v10727_v0 = vld [vmem:[%s15288_s4 + $0x150] sm:$0xff]   ;;  %3618 = vmatprep.mubr.bf16.mxu1 %v10300_v1 }
  0xfc   :  { %8428 = vmatprep.subr.bf16.mxu0 %v10722_v55  ;;  %v10723_v56 = vld [vmem:[%s15288_s4 + $0x148] sm:$0xff]   ;;  %v10745_v55 = vld [vmem:[%s15288_s4 + $0x130] sm:$0xff]  }
  0xfd   :  { %v12230_v17 = vadd.f32 %v7955_v9, %v7915_v3  ;;  %8468 = vmatprep.subr.bf16.mxu1 %v10723_v56  ;;  %8429 = vmatpush3.bf16.msra.mxu0 %v10724_v60  ;;  %v10747_v56 = vld [vmem:[%s15288_s4 + $0x178] sm:$0xff]   ;;  %v10308_v59 = vld [vmem:[%s15290_s1 + $0x10] ss:$100 sps:$4 sm:$0xff]  }
  0xfe   :  { %v7916_v6 = vpop.f32.mrb[4].mxu0  ;;  %8469 = vmatpush3.bf16.msra.mxu1 %v10725_v62  ;;  %8430 = vmatprep.subr.bf16.mxu0 %v10726_v63 }
  0xff   :  { %v7956_v10 = vpop.f32.mrb[4].mxu1  ;;  %v7917_v11 = vpop.f32.mrb[5].mxu0  ;;  %8470 = vmatprep.subr.bf16.mxu1 %v10727_v0 }
 0x100   :  { %v7918_v13 = vadd.f32 %v7917_v11, %v7916_v6  ;;  %v7957_v14 = vpop.f32.mrb[5].mxu1  ;;  %v7919_v19 = vpop.f32.mrb[6].mxu0 }
 0x101   :  { %v7958_v18 = vadd.f32 %v7957_v14, %v7956_v10  ;;  %v7959_v20 = vpop.f32.mrb[6].mxu1  ;;  %v7920_v22 = vpop.f32.mrb[7].mxu0  ;;  %8431 = vmatpush3.bf16.msra.mxu0 %v10728_v7  ;;  %v10731_v14 = vld [vmem:[%s15288_s4 + $0x158] sm:$0xff]   ;;  %v10751_v7 = vld [vmem:[%s15288_s4 + $0x240] sm:$0xff]  }
 0x102   :  { %v7960_v23 = vpop.f32.mrb[7].mxu1  ;;  %v7921_v27 = vadd.f32 %v7920_v22, %v7919_v19  ;;  %8471 = vmatpush3.bf16.msra.mxu1 %v10729_v8  ;;  %v10302_v19 = vld [vmem:[%s15290_s1 + $0x190] ss:$100 sps:$4 sm:$0xff]   ;;  %v10733_v22 = vld [vmem:[%s15288_s4 + $0x118] sm:$0xff]  }
 0x103   :  { %v12241_v26 = vadd.f32 %v7958_v18, %v7918_v13  ;;  %v7961_v28 = vadd.f32 %v7960_v23, %v7959_v20  ;;  %v10730_v13 = vld [vmem:[%s15288_s4 + $0xd8] sm:$0xff]   ;;  %8472 = vmatprep.subr.bf16.mxu1 %v10731_v14  ;;  %v10734_v23 = vld [vmem:[%s15288_s4 + $0xe0] sm:$0xff]   ;;  %3619 = vmatmul.mubr.bf16.gmra.mrb[104].mxu1 %v10302_v19 }
 0x104   :  { %8432 = vmatprep.subr.bf16.mxu0 %v10730_v13  ;;  %v3091_v20 = vld [vmem:[%s15290_s1 + $0x258] sm:$0xff] }
 0x105   :  { %v12246_v30 = vadd.f32 %v7961_v28, %v7921_v27  ;;  %8433 = vmatpush3.bf16.msra.mxu0 %v10732_v21  ;;  %v7638_v25 = vcombine.high %v3091_v20, %v3091_v20  ;;  %v10736_v28 = vld [vmem:[%s15288_s4 + $0xa0] sm:$0xff]   ;;  %v10311_v8 = vld [vmem:[%s15290_s1 + $0xd4] ss:$100 sps:$4 sm:$0xff]   ;;  %v10754_v21 = vld [vmem:[%s15288_s4 + $0x1c8] sm:$0xff]  }
 0x106   :  { %v7922_v35 = vpop.f32.mrb[8].mxu0  ;;  %8473 = vmatpush3.bf16.msra.mxu1 %v10733_v22  ;;  %8434 = vmatprep.subr.bf16.mxu0 %v10734_v23  ;;  %v10314_v13 = vld [vmem:[%s15290_s1 + $0xdc] ss:$100 sps:$4 sm:$0xff]   ;;  %v10313_v23 = vld [vmem:[%s15290_s1 + $0xd0] ss:$100 sps:$4 sm:$0xff]  }
 0x107   :  { %v7962_v37 = vpop.f32.mrb[8].mxu1  ;;  %v7923_v38 = vpop.f32.mrb[9].mxu0  ;;  %8474 = vmatprep.subr.bf16.mxu1 %v10735_v24  ;;  %3626 = vmatprep.mubr.bf16.mxu1 %v7638_v25  ;;  %v10316_v24 = vld [vmem:[%s15290_s1 + $0xd8] ss:$100 sps:$4 sm:$0xff]  }
 0x108   :  { %v7924_v41 = vadd.f32 %v7923_v38, %v7922_v35  ;;  %v7963_v42 = vpop.f32.mrb[9].mxu1  ;;  %v7925_v43 = vpop.f32.mrb[10].mxu0 }
 0x109   :  { %v7964_v46 = vadd.f32 %v7963_v42, %v7962_v37  ;;  %v7965_v47 = vpop.f32.mrb[10].mxu1  ;;  %v7926_v48 = vpop.f32.mrb[11].mxu0  ;;  %8435 = vmatpush3.bf16.msra.mxu0 %v10736_v28  ;;  %v10757_v28 = vld [vmem:[%s15288_s4 + $0x208] sm:$0xff]  }
 0x10a   :  { %v7927_v49 = vadd.f32 %v7926_v48, %v7925_v43  ;;  %v7966_v50 = vpop.f32.mrb[11].mxu1  ;;  %8475 = vmatpush3.bf16.msra.mxu1 %v10737_v29  ;;  %8436 = vmatprep.subr.bf16.mxu0 %v10738_v33  ;;  %v10742_v48 = vld [vmem:[%s15288_s4 + $0xf0] sm:$0xff]  }
 0x10b   :  { %v12281_v53 = vadd.f32 %v7964_v46, %v7924_v41  ;;  %v7967_v54 = vadd.f32 %v7966_v50, %v7965_v47  ;;  %8476 = vmatprep.subr.bf16.mxu1 %v10739_v34  ;;  %v7637_v41 = vcombine.low %v3091_v20, %v3091_v20  ;;  %v10741_v46 = vld [vmem:[%s15288_s4 + $0x128] sm:$0xff]   ;;  %v10752_v20 = vld [vmem:[%s15288_s4 + $0x180] sm:$0xff]  }
 0x10d   :  { %v12289_v57 = vadd.f32 %v7967_v54, %v7927_v49  ;;  %8437 = vmatpush3.bf16.msra.mxu0 %v10740_v45  ;;  %3627 = vmatmul.mubr.bf16.gmra.mrb[108].mxu1 %v7637_v41  ;;  %v10744_v54 = vld [vmem:[%s15288_s4 + $0xb0] sm:$0xff]  }
 0x10e   :  { %v7928_v3 = vpop.f32.mrb[12].mxu0  ;;  %8477 = vmatpush3.bf16.msra.mxu1 %v10741_v46  ;;  %8438 = vmatprep.subr.bf16.mxu0 %v10742_v48  ;;  %v10762_v46 = vld [vmem:[%s15288_s4 + $0x1d8] sm:$0xff]  }
 0x10f   :  { %v7968_v4 = vpop.f32.mrb[12].mxu1  ;;  %v7929_v5 = vpop.f32.mrb[13].mxu0  ;;  %3730 = vmatprep.mubr.bf16.mxu1 %v10310_v51 }
 0x110   :  { %v7969_v6 = vpop.f32.mrb[13].mxu1  ;;  %v7930_v9 = vadd.f32 %v7929_v5, %v7928_v3  ;;  %v7931_v11 = vpop.f32.mrb[14].mxu0  ;;  %v10749_v3 = vld [vmem:[%s15288_s4 + $0x138] sm:$0xff]  }
 0x111   :  { %v7970_v10 = vadd.f32 %v7969_v6, %v7968_v4  ;;  %v7971_v12 = vpop.f32.mrb[14].mxu1  ;;  %v7932_v15 = vpop.f32.mrb[15].mxu0  ;;  %8439 = vmatpush3.bf16.msra.mxu0 %v10744_v54  ;;  %v10750_v6 = vld [vmem:[%s15288_s4 + $0x1c0] sm:$0xff]  }
 0x112   :  { %v7972_v16 = vpop.f32.mrb[15].mxu1  ;;  %v10322_v54 = vld [vmem:[%s15290_s1 + $0x1a0] ss:$100 sps:$4 sm:$0xff]  }
 0x113   :  { %v12327_v18 = vadd.f32 %v7970_v10, %v7930_v9 }
 0x116   :  { %v7990_v27 = vpop.f32.mrb[16].mxu0 }
 0x117   :  { %v7991_v31 = vpop.f32.mrb[17].mxu0  ;;  %v8030_v32 = vpop.f32.mrb[16].mxu1 }
 0x118   :  { %v7992_v35 = vadd.f32 %v7991_v31, %v7990_v27  ;;  %v7993_v36 = vpop.f32.mrb[18].mxu0  ;;  %v8031_v37 = vpop.f32.mrb[17].mxu1  ;;  %v10756_v27 = vld [vmem:[%s15288_s4 + $0x188] sm:$0xff]   ;;  %v10758_v31 = vld [vmem:[%s15288_s4 + $0x1d0] sm:$0xff]  }
 0x119   :  { %v7994_v38 = vpop.f32.mrb[19].mxu0  ;;  %v8032_v39 = vadd.f32 %v8031_v37, %v8030_v32  ;;  %v8033_v40 = vpop.f32.mrb[18].mxu1  ;;  %v10759_v32 = vld [vmem:[%s15288_s4 + $0x250] sm:$0xff]  }
 0x11a   :  { %v2344_v42 = vadd.f32 %v7992_v35, %v12208_v61  ;;  %v7995_v43 = vadd.f32 %v7994_v38, %v7993_v36  ;;  %v8034_v44 = vpop.f32.mrb[19].mxu1  ;;  %v10743_v61 = vld [vmem:[%s15288_s4 + $0x170] sm:$0xff]   ;;  %v10317_v35 = vld [vmem:[%s15290_s1 + $0x19c] ss:$100 sps:$4 sm:$0xff]   ;;  %v10320_v36 = vld [vmem:[%s15290_s1 + $0x1a4] ss:$100 sps:$4 sm:$0xff]  }
 0x11b   :  { %v8035_v47 = vadd.f32 %v8034_v44, %v8033_v40  ;;  %8478 = vmatprep.subr.bf16.mxu1 %v10743_v61  ;;  %v10319_v61 = vld [vmem:[%s15290_s1 + $0x198] ss:$100 sps:$4 sm:$0xff]  }
 0x11c   :  { %v2347_v49 = vadd.f32 %v7995_v43, %v12230_v17  ;;  %v12373_v50 = vadd.f32 %v8032_v39, %v2344_v42  ;;  %8479 = vmatpush3.bf16.msra.mxu1 %v10745_v55  ;;  %v10746_v17 = vld [vmem:[%s15288_s4 + $0xf8] sm:$0xff]   ;;  %v10760_v42 = vld [vmem:[%s15288_s4 + $0x190] sm:$0xff]   ;;  %v3092_v55 = vld [vmem:[%s15290_s1 + $0x260] sm:$0xff] }
 0x11d   :  { %8440 = vmatprep.subr.bf16.mxu0 %v10746_v17  ;;  %8480 = vmatprep.subr.bf16.mxu1 %v10747_v56  ;;  %v10761_v43 = vld [vmem:[%s15288_s4 + $0x210] sm:$0xff]   ;;  %v10764_v17 = vld [vmem:[%s15288_s4 + $0x198] sm:$0xff]  }
 0x11e   :  { %v12378_v52 = vadd.f32 %v8035_v47, %v2347_v49  ;;  %v7996_v60 = vpop.f32.mrb[20].mxu0  ;;  %8441 = vmatpush3.bf16.msra.mxu0 %v10748_v2  ;;  %v10765_v56 = vld [vmem:[%s15288_s4 + $0x218] sm:$0xff]   ;;  %v10768_v2 = vld [vmem:[%s15288_s4 + $0x1a0] sm:$0xff]  }
 0x11f   :  { %v7997_v62 = vpop.f32.mrb[21].mxu0  ;;  %v8036_v1 = vpop.f32.mrb[20].mxu1  ;;  %8506 = vmatprep.subr.bf16.mxu0 %v10750_v6 }
 0x120   :  { %v7998_v63 = vadd.f32 %v7997_v62, %v7996_v60  ;;  %v7999_v0 = vpop.f32.mrb[22].mxu0  ;;  %8481 = vmatpush3.bf16.msra.mxu1 %v10749_v3  ;;  %v8037_v5 = vpop.f32.mrb[21].mxu1  ;;  %v10767_v60 = vld [vmem:[%s15288_s4 + $0x260] sm:$0xff]   ;;  %v7640_v62 = vcombine.high %v3092_v55, %v3092_v55 }
 0x121   :  { %v8000_v4 = vpop.f32.mrb[23].mxu0  ;;  %8546 = vmatprep.subr.bf16.mxu1 %v10751_v7  ;;  %v8038_v11 = vadd.f32 %v8037_v5, %v8036_v1  ;;  %v8039_v12 = vpop.f32.mrb[22].mxu1  ;;  %3667 = vmatmul.mubr.bf16.vlgmr.msra.gmra.mrb[104].mxu0 %v10305_v58  ;;  %v10769_v3 = vld [vmem:[%s15288_s4 + $0x220] sm:$0xff]   ;;  %v10770_v7 = vld [vmem:[%s15288_s4 + $0x1e8] sm:$0xff]  }
 0x122   :  { %v2352_v9 = vadd.f32 %v7998_v63, %v12241_v26  ;;  %v8001_v10 = vadd.f32 %v8000_v4, %v7999_v0  ;;  %v8040_v14 = vpop.f32.mrb[23].mxu1  ;;  %8507 = vmatpush3.bf16.msra.mxu0 %v10752_v20  ;;  %v10753_v26 = vld [vmem:[%s15288_s4 + $0x200] sm:$0xff]   ;;  %3674 = vmatprep.mubr.bf16.mxu0 %v10311_v8  ;;  %v10771_v8 = vld [vmem:[%s15288_s4 + $0x268] sm:$0xff]  }
 0x123   :  { %3731 = vmatmul.mubr.bf16.vlgmr.msra.gmra.mrb[112].mxu1 %v10308_v59  ;;  %v8041_v19 = vadd.f32 %v8040_v14, %v8039_v12  ;;  %8508 = vmatprep.subr.bf16.mxu0 %v10754_v21  ;;  %v10766_v59 = vld [vmem:[%s15288_s4 + $0x1e0] sm:$0xff]   ;;  %v7639_v14 = vcombine.low %v3092_v55, %v3092_v55  ;;  %v10772_v20 = vld [vmem:[%s15288_s4 + $0x1a8] sm:$0xff]  }
 0x124   :  { %v2355_v15 = vadd.f32 %v8001_v10, %v12246_v30  ;;  %v12418_v16 = vadd.f32 %v8038_v11, %v2352_v9  ;;  %8547 = vmatpush3.bf16.msra.mxu1 %v10753_v26  ;;  %v10755_v30 = vld [vmem:[%s15288_s4 + $0x248] sm:$0xff]   ;;  %3738 = vmatprep.mubr.bf16.mxu1 %v10314_v13 }
 0x125   :  { %8548 = vmatprep.subr.bf16.mxu1 %v10755_v30  ;;  %v10773_v26 = vld [vmem:[%s15288_s4 + $0x228] sm:$0xff]   ;;  %v10775_v30 = vld [vmem:[%s15288_s4 + $0x270] sm:$0xff]  }
 0x126   :  { %v12432_v22 = vadd.f32 %v8041_v19, %v2355_v15  ;;  %v8002_v25 = vpop.f32.mrb[24].mxu0  ;;  %8509 = vmatpush3.bf16.msra.mxu0 %v10756_v27  ;;  %v10776_v27 = vld [vmem:[%s15288_s4 + $0x1b0] sm:$0xff]  }
 0x127   :  { %v8003_v29 = vpop.f32.mrb[25].mxu0  ;;  %8510 = vmatprep.subr.bf16.mxu0 %v10758_v31  ;;  %v8042_v37 = vpop.f32.mrb[24].mxu1 }
 0x128   :  { %8549 = vmatpush3.bf16.msra.mxu1 %v10757_v28  ;;  %v8004_v33 = vadd.f32 %v8003_v29, %v8002_v25  ;;  %v8005_v34 = vpop.f32.mrb[26].mxu0  ;;  %v8043_v41 = vpop.f32.mrb[25].mxu1  ;;  %v10777_v28 = vld [vmem:[%s15288_s4 + $0x230] sm:$0xff]  }
 0x129   :  { %8550 = vmatprep.subr.bf16.mxu1 %v10759_v32  ;;  %v8006_v38 = vpop.f32.mrb[27].mxu0  ;;  %3675 = vmatmul.mubr.bf16.gmra.mrb[108].mxu0 %v10313_v23  ;;  %v8044_v44 = vadd.f32 %v8043_v41, %v8042_v37  ;;  %v8045_v45 = vpop.f32.mrb[26].mxu1  ;;  %v10329_v23 = vld [vmem:[%s15290_s1 + $0x1c] ss:$100 sps:$4 sm:$0xff]  }
 0x12a   :  { %v2360_v39 = vadd.f32 %v8004_v33, %v12281_v53  ;;  %v8007_v40 = vadd.f32 %v8006_v38, %v8005_v34  ;;  %8511 = vmatpush3.bf16.msra.mxu0 %v10760_v42  ;;  %v10763_v53 = vld [vmem:[%s15288_s4 + $0x258] sm:$0xff]   ;;  %v8046_v48 = vpop.f32.mrb[27].mxu1  ;;  %3682 = vmatprep.mubr.bf16.mxu0 %v10317_v35  ;;  %v10330_v41 = vld [vmem:[%s15290_s1 + $0x20] ss:$100 sps:$4 sm:$0xff]  }
 0x12b   :  { %3739 = vmatmul.mubr.bf16.gmra.mrb[116].mxu1 %v10316_v24  ;;  %8512 = vmatprep.subr.bf16.mxu0 %v10762_v46  ;;  %v8047_v51 = vadd.f32 %v8046_v48, %v8045_v45  ;;  %v10332_v24 = vld [vmem:[%s15290_s1 + $0x24] ss:$100 sps:$4 sm:$0xff]   ;;  %v10778_v32 = vld [vmem:[%s15288_s4 + $0x1f8] sm:$0xff]  }
 0x12c   :  { %8551 = vmatpush3.bf16.msra.mxu1 %v10761_v43  ;;  %v2363_v47 = vadd.f32 %v8007_v40, %v12289_v57  ;;  %3746 = vmatprep.mubr.bf16.mxu1 %v10320_v36  ;;  %v12475_v49 = vadd.f32 %v8044_v44, %v2360_v39  ;;  %v3093_v57 = vld [vmem:[%s15290_s1 + $0x268] sm:$0xff]  ;;  %v10779_v33 = vld [vmem:[%s15288_s4 + $0x278] sm:$0xff]  }
 0x12d   :  { %8552 = vmatprep.subr.bf16.mxu1 %v10763_v53  ;;  %v7642_v63 = vcombine.high %v3093_v57, %v3093_v57  ;;  %v7641_v15 = vcombine.low %v3093_v57, %v3093_v57  ;;  %v10327_v40 = vld [vmem:[%s15290_s1 + $0x18] ss:$100 sps:$4 sm:$0xff]   ;;  %v10784_v57 = vld [vmem:[%s15288_s4 + $0x280] sm:$0xff]  }
 0x12e   :  { %8513 = vmatpush3.bf16.msra.mxu0 %v10764_v17  ;;  %v12492_v58 = vadd.f32 %v8047_v51, %v2363_v47  ;;  %v8008_v0 = vpop.f32.mrb[28].mxu0  ;;  %v10780_v45 = vld [vmem:[%s15288_s4 + $0x1b8] sm:$0xff]   ;;  %v10782_v47 = vld [vmem:[%s15288_s4 + $0x2c0] sm:$0xff]   ;;  %v10786_v17 = vld [vmem:[%s15288_s4 + $0x2c8] sm:$0xff]  }
 0x12f   :  { %8514 = vmatprep.subr.bf16.mxu0 %v10766_v59  ;;  %v8009_v1 = vpop.f32.mrb[29].mxu0  ;;  %v8048_v6 = vpop.f32.mrb[28].mxu1  ;;  %v10781_v46 = vld [vmem:[%s15288_s4 + $0x238] sm:$0xff]   ;;  %v10333_v51 = vld [vmem:[%s15290_s1 + $0xe4] ss:$100 sps:$4 sm:$0xff]  }
 0x130   :  { %8553 = vmatpush3.bf16.msra.mxu1 %v10765_v56  ;;  %v8010_v4 = vadd.f32 %v8009_v1, %v8008_v0  ;;  %v8011_v5 = vpop.f32.mrb[30].mxu0  ;;  %v8049_v10 = vpop.f32.mrb[29].mxu1  ;;  %v10787_v56 = vld [vmem:[%s15288_s4 + $0x348] sm:$0xff]  }
 0x131   :  { %8554 = vmatprep.subr.bf16.mxu1 %v10767_v60  ;;  %3683 = vmatmul.mubr.bf16.gmra.mrb[112].mxu0 %v10319_v61  ;;  %v8012_v9 = vpop.f32.mrb[31].mxu0  ;;  %v8050_v12 = vadd.f32 %v8049_v10, %v8048_v6  ;;  %v8051_v13 = vpop.f32.mrb[30].mxu1  ;;  %v10790_v6 = vld [vmem:[%s15288_s4 + $0x2d0] sm:$0xff]  }
 0x132   :  { %8515 = vmatpush3.bf16.msra.mxu0 %v10768_v2  ;;  %3690 = vmatprep.mubr.bf16.mxu0 %v7640_v62  ;;  %v2368_v11 = vadd.f32 %v8010_v4, %v12327_v18  ;;  %v8052_v19 = vpop.f32.mrb[31].mxu1  ;;  %v10774_v18 = vld [vmem:[%s15288_s4 + $0x1f0] sm:$0xff]   ;;  %v10335_v62 = vld [vmem:[%s15290_s1 + $0xe0] ss:$100 sps:$4 sm:$0xff]   ;;  %v10788_v2 = vld [vmem:[%s15288_s4 + $0x288] sm:$0xff]  }
 0x133   :  { %3747 = vmatmul.mubr.bf16.gmra.mrb[120].mxu1 %v10322_v54  ;;  %8516 = vmatprep.subr.bf16.mxu0 %v10770_v7  ;;  %v10336_v54 = vld [vmem:[%s15290_s1 + $0xec] ss:$100 sps:$4 sm:$0xff]  }
 0x134   :  { %8555 = vmatpush3.bf16.msra.mxu1 %v10769_v3  ;;  %3754 = vmatprep.mubr.bf16.mxu1 %v7642_v63  ;;  %v12519_v21 = vadd.f32 %v8050_v12, %v2368_v11  ;;  %v10338_v63 = vld [vmem:[%s15290_s1 + $0xe8] ss:$100 sps:$4 sm:$0xff]   ;;  %v10791_v7 = vld [vmem:[%s15288_s4 + $0x350] sm:$0xff]  }
 0x135   :  { %8556 = vmatprep.subr.bf16.mxu1 %v10771_v8  ;;  %v10789_v3 = vld [vmem:[%s15288_s4 + $0x308] sm:$0xff]   ;;  %v10342_v12 = vld [vmem:[%s15290_s1 + $0x1b4] ss:$100 sps:$4 sm:$0xff]  }
 0x136   :  { %8517 = vmatpush3.bf16.msra.mxu0 %v10772_v20  ;;  %v8070_v25 = vpop.f32.mrb[32].mxu0  ;;  %v10339_v11 = vld [vmem:[%s15290_s1 + $0x1ac] ss:$100 sps:$4 sm:$0xff]  }
 0x137   :  { %8518 = vmatprep.subr.bf16.mxu0 %v10774_v18  ;;  %v8071_v29 = vpop.f32.mrb[33].mxu0  ;;  %v8110_v31 = vpop.f32.mrb[32].mxu1  ;;  %v10793_v20 = vld [vmem:[%s15288_s4 + $0x310] sm:$0xff]  }
 0x138   :  { %8557 = vmatpush3.bf16.msra.mxu1 %v10773_v26  ;;  %v8072_v34 = vadd.f32 %v8071_v29, %v8070_v25  ;;  %v8073_v35 = vpop.f32.mrb[34].mxu0  ;;  %v8111_v36 = vpop.f32.mrb[33].mxu1  ;;  %v10344_v25 = vld [vmem:[%s15290_s1 + $0x1b0] ss:$100 sps:$4 sm:$0xff]   ;;  %v10796_v29 = vld [vmem:[%s15288_s4 + $0x298] sm:$0xff]  }
 0x139   :  { %8558 = vmatprep.subr.bf16.mxu1 %v10775_v30  ;;  %3691 = vmatmul.mubr.bf16.gmra.mrb[116].mxu0 %v7639_v14  ;;  %v8074_v37 = vpop.f32.mrb[35].mxu0  ;;  %v8112_v38 = vadd.f32 %v8111_v36, %v8110_v31  ;;  %v8113_v39 = vpop.f32.mrb[34].mxu1  ;;  %v10794_v30 = vld [vmem:[%s15288_s4 + $0x2d8] sm:$0xff]  }
 0x13a   :  { %8519 = vmatpush3.bf16.msra.mxu0 %v10776_v27  ;;  %3794 = vmatprep.mubr.bf16.mxu0 %v10329_v23  ;;  %v2472_v42 = vadd.f32 %v8072_v34, %v12373_v50  ;;  %v8075_v43 = vadd.f32 %v8074_v37, %v8073_v35  ;;  %v8114_v44 = vpop.f32.mrb[35].mxu1  ;;  %v10783_v50 = vld [vmem:[%s15288_s4 + $0x340] sm:$0xff]   ;;  %v10341_v23 = vld [vmem:[%s15290_s1 + $0x1a8] ss:$100 sps:$4 sm:$0xff]   ;;  %v3094_v27 = vld [vmem:[%s15290_s1 + $0x270] sm:$0xff] }
 0x13b   :  { %3755 = vmatmul.mubr.bf16.gmra.mrb[124].mxu1 %v7641_v15  ;;  %8520 = vmatprep.subr.bf16.mxu0 %v10778_v32  ;;  %v8115_v53 = vadd.f32 %v8114_v44, %v8113_v39  ;;  %v10797_v31 = vld [vmem:[%s15288_s4 + $0x318] sm:$0xff]   ;;  %v10799_v34 = vld [vmem:[%s15288_s4 + $0x360] sm:$0xff]   ;;  %v7644_v36 = vcombine.high %v3094_v27, %v3094_v27 }
 0x13c   :  { %8559 = vmatpush3.bf16.msra.mxu1 %v10777_v28  ;;  %3858 = vmatprep.mubr.bf16.mxu1 %v10332_v24  ;;  %v2475_v48 = vadd.f32 %v8075_v43, %v12378_v52  ;;  %v12565_v61 = vadd.f32 %v8112_v38, %v2472_v42  ;;  %v10785_v52 = vld [vmem:[%s15288_s4 + $0x300] sm:$0xff]   ;;  %v3095_v28 = vld [vmem:[%s15290_s1 + $0x278] sm:$0xff] }
 0x13d   :  { %8560 = vmatprep.subr.bf16.mxu1 %v10779_v33  ;;  %v10798_v33 = vld [vmem:[%s15288_s4 + $0x2e0] sm:$0xff]   ;;  %v7646_v37 = vcombine.high %v3095_v28, %v3095_v28 }
 0x13e   :  { %8521 = vmatpush3.bf16.msra.mxu0 %v10780_v45  ;;  %v12573_v55 = vadd.f32 %v8115_v53, %v2475_v48  ;;  %v8076_v59 = vpop.f32.mrb[36].mxu0  ;;  %v10800_v42 = vld [vmem:[%s15288_s4 + $0x2a0] sm:$0xff]   ;;  %v10802_v53 = vld [vmem:[%s15288_s4 + $0x2e8] sm:$0xff]  }
 0x13f   :  { %8586 = vmatprep.subr.bf16.mxu0 %v10782_v47  ;;  %v8077_v60 = vpop.f32.mrb[37].mxu0  ;;  %v8116_v4 = vpop.f32.mrb[36].mxu1  ;;  %v10801_v43 = vld [vmem:[%s15288_s4 + $0x320] sm:$0xff]   ;;  %v10803_v47 = vld [vmem:[%s15288_s4 + $0x368] sm:$0xff]  }
 0x140   :  { %8561 = vmatpush3.bf16.msra.mxu1 %v10781_v46  ;;  %v8078_v0 = vadd.f32 %v8077_v60, %v8076_v59  ;;  %v8079_v1 = vpop.f32.mrb[38].mxu0  ;;  %v8117_v10 = vpop.f32.mrb[37].mxu1  ;;  %v10805_v59 = vld [vmem:[%s15288_s4 + $0x328] sm:$0xff]   ;;  %v10807_v60 = vld [vmem:[%s15288_s4 + $0x370] sm:$0xff]  }
 0x141   :  { %8626 = vmatprep.subr.bf16.mxu1 %v10783_v50  ;;  %3795 = vmatmul.mubr.bf16.vlgmr.msra.gmra.mrb[120].mxu0 %v10327_v40  ;;  %v8080_v5 = vpop.f32.mrb[39].mxu0  ;;  %v8118_v13 = vadd.f32 %v8117_v10, %v8116_v4  ;;  %v8119_v14 = vpop.f32.mrb[38].mxu1 }
 0x142   :  { %8587 = vmatpush3.bf16.msra.mxu0 %v10784_v57  ;;  %3802 = vmatprep.mubr.bf16.mxu0 %v10333_v51  ;;  %v2480_v8 = vadd.f32 %v8078_v0, %v12418_v16  ;;  %v8081_v9 = vadd.f32 %v8080_v5, %v8079_v1  ;;  %v8120_v19 = vpop.f32.mrb[39].mxu1  ;;  %v10792_v16 = vld [vmem:[%s15288_s4 + $0x290] sm:$0xff]   ;;  %v7645_v57 = vcombine.low %v3095_v28, %v3095_v28  ;;  %v10817_v28 = vld [vmem:[%s15288_s4 + $0x400] sm:$0xff]  }
 0x143   :  { %3859 = vmatmul.mubr.bf16.vlgmr.msra.gmra.mrb[128].mxu1 %v10330_v41  ;;  %8588 = vmatprep.subr.bf16.mxu0 %v10786_v17  ;;  %v8121_v18 = vadd.f32 %v8120_v19, %v8119_v14  ;;  %v10354_v0 = vld [vmem:[%s15290_s1 + $0x34] ss:$100 sps:$4 sm:$0xff]   ;;  %v10349_v14 = vld [vmem:[%s15290_s1 + $0x28] ss:$100 sps:$4 sm:$0xff]  }
 0x144   :  { %8627 = vmatpush3.bf16.msra.mxu1 %v10785_v52  ;;  %3866 = vmatprep.mubr.bf16.mxu1 %v10336_v54  ;;  %v2483_v15 = vadd.f32 %v8081_v9, %v12432_v22  ;;  %v12619_v26 = vadd.f32 %v8118_v13, %v2480_v8  ;;  %v10795_v22 = vld [vmem:[%s15288_s4 + $0x358] sm:$0xff]  }
 0x145   :  { %8628 = vmatprep.subr.bf16.mxu1 %v10787_v56  ;;  %v10804_v56 = vld [vmem:[%s15288_s4 + $0x2a8] sm:$0xff]  }
 0x146   :  { %8589 = vmatpush3.bf16.msra.mxu0 %v10788_v2  ;;  %v12630_v24 = vadd.f32 %v8121_v18, %v2483_v15  ;;  %v8082_v32 = vpop.f32.mrb[40].mxu0  ;;  %v10808_v2 = vld [vmem:[%s15288_s4 + $0x2b0] sm:$0xff]   ;;  %v10813_v18 = vld [vmem:[%s15288_s4 + $0x338] sm:$0xff]  }
 0x147   :  { %8590 = vmatprep.subr.bf16.mxu0 %v10790_v6  ;;  %v8083_v35 = vpop.f32.mrb[41].mxu0  ;;  %v8122_v40 = vpop.f32.mrb[40].mxu1  ;;  %v10810_v6 = vld [vmem:[%s15288_s4 + $0x2f8] sm:$0xff]   ;;  %v10352_v15 = vld [vmem:[%s15290_s1 + $0x30] ss:$100 sps:$4 sm:$0xff]  }
 0x148   :  { %8629 = vmatpush3.bf16.msra.mxu1 %v10789_v3  ;;  %v8084_v38 = vadd.f32 %v8083_v35, %v8082_v32  ;;  %v8085_v39 = vpop.f32.mrb[42].mxu0  ;;  %v8123_v46 = vpop.f32.mrb[41].mxu1  ;;  %v10809_v3 = vld [vmem:[%s15288_s4 + $0x330] sm:$0xff]   ;;  %v10819_v32 = vld [vmem:[%s15288_s4 + $0x448] sm:$0xff]  }
 0x149   :  { %8630 = vmatprep.subr.bf16.mxu1 %v10791_v7  ;;  %3803 = vmatmul.mubr.bf16.gmra.mrb[124].mxu0 %v10335_v62  ;;  %v8086_v41 = vpop.f32.mrb[43].mxu0  ;;  %v8124_v50 = vadd.f32 %v8123_v46, %v8122_v40  ;;  %v8125_v48 = vpop.f32.mrb[42].mxu1  ;;  %v10811_v7 = vld [vmem:[%s15288_s4 + $0x378] sm:$0xff]  }
 0x14a   :  { %8591 = vmatpush3.bf16.msra.mxu0 %v10792_v16  ;;  %3810 = vmatprep.mubr.bf16.mxu0 %v10339_v11  ;;  %v2488_v44 = vadd.f32 %v8084_v38, %v12475_v49  ;;  %v8087_v45 = vadd.f32 %v8086_v41, %v8085_v39  ;;  %v8126_v54 = vpop.f32.mrb[43].mxu1  ;;  %v7643_v49 = vcombine.low %v3094_v27, %v3094_v27  ;;  %v10816_v27 = vld [vmem:[%s15288_s4 + $0x380] sm:$0xff]  }
 0x14b   :  { %3867 = vmatmul.mubr.bf16.gmra.mrb[132].mxu1 %v10338_v63  ;;  %8592 = vmatprep.subr.bf16.mxu0 %v10794_v30  ;;  %v8127_v17 = vadd.f32 %v8126_v54, %v8125_v48  ;;  %v10351_v63 = vld [vmem:[%s15290_s1 + $0x2c] ss:$100 sps:$4 sm:$0xff]   ;;  %v10814_v30 = vld [vmem:[%s15288_s4 + $0x3c0] sm:$0xff]  }
 0x14c   :  { %8631 = vmatpush3.bf16.msra.mxu1 %v10793_v20  ;;  %3874 = vmatprep.mubr.bf16.mxu1 %v10342_v12  ;;  %v2491_v51 = vadd.f32 %v8087_v45, %v12492_v58  ;;  %v12667_v52 = vadd.f32 %v8124_v50, %v2488_v44  ;;  %v10806_v58 = vld [vmem:[%s15288_s4 + $0x2f0] sm:$0xff]   ;;  %v10812_v20 = vld [vmem:[%s15288_s4 + $0x2b8] sm:$0xff]   ;;  %v10821_v44 = vld [vmem:[%s15288_s4 + $0x408] sm:$0xff]  }
 0x14d   :  { %8632 = vmatprep.subr.bf16.mxu1 %v10795_v22  ;;  %v10823_v50 = vld [vmem:[%s15288_s4 + $0x450] sm:$0xff]   ;;  %v10361_v48 = vld [vmem:[%s15290_s1 + $0x1bc] ss:$100 sps:$4 sm:$0xff]  }
 0x14e   :  { %8593 = vmatpush3.bf16.msra.mxu0 %v10796_v29  ;;  %v12681_v62 = vadd.f32 %v8127_v17, %v2491_v51  ;;  %v8088_v1 = vpop.f32.mrb[44].mxu0  ;;  %v10825_v17 = vld [vmem:[%s15288_s4 + $0x410] sm:$0xff]  }
 0x14f   :  { %8594 = vmatprep.subr.bf16.mxu0 %v10798_v33  ;;  %v8089_v4 = vpop.f32.mrb[45].mxu0  ;;  %v8128_v5 = vpop.f32.mrb[44].mxu1  ;;  %v10357_v33 = vld [vmem:[%s15290_s1 + $0xf0] ss:$100 sps:$4 sm:$0xff]  }
 0x150   :  { %8633 = vmatpush3.bf16.msra.mxu1 %v10797_v31  ;;  %v8090_v8 = vadd.f32 %v8089_v4, %v8088_v1  ;;  %v8091_v9 = vpop.f32.mrb[46].mxu0  ;;  %v8129_v10 = vpop.f32.mrb[45].mxu1  ;;  %v10818_v31 = vld [vmem:[%s15288_s4 + $0x3c8] sm:$0xff]   ;;  %v10829_v4 = vld [vmem:[%s15288_s4 + $0x418] sm:$0xff]  }
 0x151   :  { %8634 = vmatprep.subr.bf16.mxu1 %v10799_v34  ;;  %3811 = vmatmul.mubr.bf16.gmra.mrb[128].mxu0 %v10341_v23  ;;  %v8092_v11 = vpop.f32.mrb[47].mxu0  ;;  %v8130_v12 = vadd.f32 %v8129_v10, %v8128_v5  ;;  %v8131_v13 = vpop.f32.mrb[46].mxu1  ;;  %v10355_v23 = vld [vmem:[%s15290_s1 + $0xf4] ss:$100 sps:$4 sm:$0xff]  }
 0x152   :  { %8595 = vmatpush3.bf16.msra.mxu0 %v10800_v42  ;;  %3818 = vmatprep.mubr.bf16.mxu0 %v7644_v36  ;;  %v2496_v19 = vadd.f32 %v8090_v8, %v12519_v21  ;;  %v8132_v16 = vpop.f32.mrb[47].mxu1  ;;  %v10815_v21 = vld [vmem:[%s15288_s4 + $0x440] sm:$0xff]   ;;  %v10360_v34 = vld [vmem:[%s15290_s1 + $0xf8] ss:$100 sps:$4 sm:$0xff]  }
 0x153   :  { %3875 = vmatmul.mubr.bf16.gmra.mrb[136].mxu1 %v10344_v25  ;;  %8596 = vmatprep.subr.bf16.mxu0 %v10802_v53  ;;  %v10358_v25 = vld [vmem:[%s15290_s1 + $0xfc] ss:$100 sps:$4 sm:$0xff]  }
 0x154   :  { %8635 = vmatpush3.bf16.msra.mxu1 %v10801_v43  ;;  %3882 = vmatprep.mubr.bf16.mxu1 %v7646_v37  ;;  %v12720_v22 = vadd.f32 %v8130_v12, %v2496_v19  ;;  %v10820_v43 = vld [vmem:[%s15288_s4 + $0x388] sm:$0xff]   ;;  %v10831_v8 = vld [vmem:[%s15288_s4 + $0x460] sm:$0xff]  }
 0x155   :  { %8636 = vmatprep.subr.bf16.mxu1 %v10803_v47  ;;  %v10822_v47 = vld [vmem:[%s15288_s4 + $0x3d0] sm:$0xff]  }
 0x156   :  { %8597 = vmatpush3.bf16.msra.mxu0 %v10804_v56  ;;  %v8150_v29 = vpop.f32.mrb[48].mxu0 }
 0x157   :  { %8598 = vmatprep.subr.bf16.mxu0 %v10806_v58  ;;  %v8151_v35 = vpop.f32.mrb[49].mxu0  ;;  %v8190_v36 = vpop.f32.mrb[48].mxu1  ;;  %v10363_v58 = vld [vmem:[%s15290_s1 + $0x1b8] ss:$100 sps:$4 sm:$0xff]  }
 0x158   :  { %8637 = vmatpush3.bf16.msra.mxu1 %v10805_v59  ;;  %v8152_v37 = vadd.f32 %v8151_v35, %v8150_v29  ;;  %v8153_v38 = vpop.f32.mrb[50].mxu0  ;;  %v8191_v39 = vpop.f32.mrb[49].mxu1  ;;  %v10827_v59 = vld [vmem:[%s15288_s4 + $0x458] sm:$0xff]   ;;  %v10838_v35 = vld [vmem:[%s15288_s4 + $0x3f0] sm:$0xff]  }
 0x159   :  { %8638 = vmatprep.subr.bf16.mxu1 %v10807_v60  ;;  %3819 = vmatmul.mubr.bf16.gmra.mrb[132].mxu0 %v7643_v49  ;;  %v8154_v40 = vpop.f32.mrb[51].mxu0  ;;  %v8192_v41 = vadd.f32 %v8191_v39, %v8190_v36  ;;  %v8193_v42 = vpop.f32.mrb[50].mxu1  ;;  %v10366_v60 = vld [vmem:[%s15290_s1 + $0x1c0] ss:$100 sps:$4 sm:$0xff]   ;;  %v10839_v36 = vld [vmem:[%s15288_s4 + $0x470] sm:$0xff]  }
 0x15a   :  { %8599 = vmatpush3.bf16.msra.mxu0 %v10808_v2  ;;  %3922 = vmatprep.mubr.bf16.mxu0 %v10351_v63  ;;  %v2600_v45 = vadd.f32 %v8152_v37, %v12565_v61  ;;  %v8155_v46 = vadd.f32 %v8154_v40, %v8153_v38  ;;  %v8194_v53 = vpop.f32.mrb[51].mxu1  ;;  %v10364_v61 = vld [vmem:[%s15290_s1 + $0x1c4] ss:$100 sps:$4 sm:$0xff]  }
 0x15b   :  { %3883 = vmatmul.mubr.bf16.gmra.mrb[140].mxu1 %v7645_v57  ;;  %8600 = vmatprep.subr.bf16.mxu0 %v10810_v6  ;;  %v8195_v51 = vadd.f32 %v8194_v53, %v8193_v42  ;;  %v10824_v57 = vld [vmem:[%s15288_s4 + $0x390] sm:$0xff]   ;;  %v3096_v63 = vld [vmem:[%s15290_s1 + $0x280] sm:$0xff]  ;;  %v10843_v53 = vld [vmem:[%s15288_s4 + $0x478] sm:$0xff]  }
 0x15c   :  { %8639 = vmatpush3.bf16.msra.mxu1 %v10809_v3  ;;  %3986 = vmatprep.mubr.bf16.mxu1 %v10354_v0  ;;  %v2603_v54 = vadd.f32 %v8155_v46, %v12573_v55  ;;  %v12766_v49 = vadd.f32 %v8192_v41, %v2600_v45  ;;  %v10826_v55 = vld [vmem:[%s15288_s4 + $0x3d8] sm:$0xff]   ;;  %v3097_v0 = vld [vmem:[%s15290_s1 + $0x288] sm:$0xff]  ;;  %v7648_v11 = vcombine.high %v3096_v63, %v3096_v63  ;;  %v10840_v42 = vld [vmem:[%s15288_s4 + $0x3b0] sm:$0xff]  }
 0x15d   :  { %8640 = vmatprep.subr.bf16.mxu1 %v10811_v7  ;;  %v10828_v3 = vld [vmem:[%s15288_s4 + $0x398] sm:$0xff]   ;;  %v10830_v7 = vld [vmem:[%s15288_s4 + $0x3e0] sm:$0xff]   ;;  %v7650_v12 = vcombine.high %v3097_v0, %v3097_v0  ;;  %v7649_v29 = vcombine.low %v3097_v0, %v3097_v0 }
 0x15e   :  { %8601 = vmatpush3.bf16.msra.mxu0 %v10812_v20  ;;  %v12774_v56 = vadd.f32 %v8195_v51, %v2603_v54  ;;  %v8156_v1 = vpop.f32.mrb[52].mxu0  ;;  %v10832_v20 = vld [vmem:[%s15288_s4 + $0x3a0] sm:$0xff]   ;;  %v10842_v46 = vld [vmem:[%s15288_s4 + $0x3f8] sm:$0xff]  }
 0x15f   :  { %8666 = vmatprep.subr.bf16.mxu0 %v10814_v30  ;;  %v8157_v2 = vpop.f32.mrb[53].mxu0  ;;  %v8196_v9 = vpop.f32.mrb[52].mxu1  ;;  %v10377_v0 = vld [vmem:[%s15290_s1 + $0x104] ss:$100 sps:$4 sm:$0xff]  }
 0x160   :  { %8641 = vmatpush3.bf16.msra.mxu1 %v10813_v18  ;;  %v8158_v5 = vadd.f32 %v8157_v2, %v8156_v1  ;;  %v8159_v6 = vpop.f32.mrb[54].mxu0  ;;  %v10833_v18 = vld [vmem:[%s15288_s4 + $0x420] sm:$0xff]   ;;  %v10380_v1 = vld [vmem:[%s15290_s1 + $0x10c] ss:$100 sps:$4 sm:$0xff]  }
 0x161   :  { %8706 = vmatprep.subr.bf16.mxu1 %v10815_v21  ;;  %3923 = vmatmul.mubr.bf16.vlgmr.msra.gmra.mrb[136].mxu0 %v10349_v14  ;;  %v8160_v10 = vpop.f32.mrb[55].mxu0  ;;  %v10848_v2 = vld [vmem:[%s15288_s4 + $0x480] sm:$0xff]  }
 0x162   :  { %8667 = vmatpush3.bf16.msra.mxu0 %v10816_v27  ;;  %3930 = vmatprep.mubr.bf16.mxu0 %v10355_v23  ;;  %v2608_v13 = vadd.f32 %v8158_v5, %v12619_v26  ;;  %v8161_v14 = vadd.f32 %v8160_v10, %v8159_v6  ;;  %v10834_v26 = vld [vmem:[%s15288_s4 + $0x3e8] sm:$0xff]  }
 0x163   :  { %3987 = vmatmul.mubr.bf16.vlgmr.msra.gmra.mrb[144].mxu1 %v10352_v15  ;;  %8668 = vmatprep.subr.bf16.mxu0 %v10818_v31  ;;  %v8197_v15 = vpop.f32.mrb[53].mxu1  ;;  %v10835_v23 = vld [vmem:[%s15288_s4 + $0x468] sm:$0xff]  }
 0x164   :  { %8707 = vmatpush3.bf16.msra.mxu1 %v10817_v28  ;;  %3994 = vmatprep.mubr.bf16.mxu1 %v10358_v25  ;;  %v8198_v19 = vadd.f32 %v8197_v15, %v8196_v9  ;;  %v8199_v16 = vpop.f32.mrb[54].mxu1  ;;  %v2611_v30 = vadd.f32 %v8161_v14, %v12630_v24  ;;  %v7647_v28 = vcombine.low %v3096_v63, %v3096_v63  ;;  %v10836_v24 = vld [vmem:[%s15288_s4 + $0x3a8] sm:$0xff]  }
 0x165   :  { %8708 = vmatprep.subr.bf16.mxu1 %v10819_v32  ;;  %v8200_v21 = vpop.f32.mrb[55].mxu1  ;;  %v10837_v32 = vld [vmem:[%s15288_s4 + $0x428] sm:$0xff]  }
 0x166   :  { %8669 = vmatpush3.bf16.msra.mxu0 %v10820_v43  ;;  %v12820_v25 = vadd.f32 %v8198_v19, %v2608_v13  ;;  %v8201_v27 = vadd.f32 %v8200_v21, %v8199_v16  ;;  %v8162_v37 = vpop.f32.mrb[56].mxu0  ;;  %v10841_v43 = vld [vmem:[%s15288_s4 + $0x430] sm:$0xff]   ;;  %v10850_v5 = vld [vmem:[%s15288_s4 + $0x4c8] sm:$0xff]  }
 0x167   :  { %8670 = vmatprep.subr.bf16.mxu0 %v10822_v47  ;;  %v8163_v38 = vpop.f32.mrb[57].mxu0  ;;  %v8202_v41 = vpop.f32.mrb[56].mxu1  ;;  %v10371_v47 = vld [vmem:[%s15290_s1 + $0x38] ss:$100 sps:$4 sm:$0xff]   ;;  %v10851_v6 = vld [vmem:[%s15288_s4 + $0x548] sm:$0xff]   ;;  %v10854_v21 = vld [vmem:[%s15288_s4 + $0x4d0] sm:$0xff]  }
 0x168   :  { %8709 = vmatpush3.bf16.msra.mxu1 %v10821_v44  ;;  %v12822_v31 = vadd.f32 %v8201_v27, %v2611_v30  ;;  %v8164_v39 = vadd.f32 %v8163_v38, %v8162_v37  ;;  %v8165_v40 = vpop.f32.mrb[58].mxu0  ;;  %v8203_v45 = vpop.f32.mrb[57].mxu1  ;;  %v10382_v13 = vld [vmem:[%s15290_s1 + $0x108] ss:$100 sps:$4 sm:$0xff]   ;;  %v10388_v37 = vld [vmem:[%s15290_s1 + $0x1d0] ss:$100 sps:$4 sm:$0xff]  }
 0x169   :  { %8710 = vmatprep.subr.bf16.mxu1 %v10823_v50  ;;  %3931 = vmatmul.mubr.bf16.gmra.mrb[140].mxu0 %v10357_v33  ;;  %v10373_v33 = vld [vmem:[%s15290_s1 + $0x3c] ss:$100 sps:$4 sm:$0xff]   ;;  %v8166_v44 = vpop.f32.mrb[59].mxu0  ;;  %v8204_v51 = vadd.f32 %v8203_v45, %v8202_v41  ;;  %v8205_v54 = vpop.f32.mrb[58].mxu1  ;;  %v10852_v16 = vld [vmem:[%s15288_s4 + $0x488] sm:$0xff]   ;;  %v3098_v41 = vld [vmem:[%s15290_s1 + $0x290] sm:$0xff] }
 0x16a   :  { %8671 = vmatpush3.bf16.msra.mxu0 %v10824_v57  ;;  %3938 = vmatprep.mubr.bf16.mxu0 %v10361_v48  ;;  %v10374_v50 = vld [vmem:[%s15290_s1 + $0x40] ss:$100 sps:$4 sm:$0xff]   ;;  %v2616_v48 = vadd.f32 %v8164_v39, %v12667_v52  ;;  %v8206_v57 = vpop.f32.mrb[59].mxu1  ;;  %v10845_v52 = vld [vmem:[%s15288_s4 + $0x438] sm:$0xff]   ;;  %v10383_v27 = vld [vmem:[%s15290_s1 + $0x1cc] ss:$100 sps:$4 sm:$0xff]  }
 0x16b   :  { %3995 = vmatmul.mubr.bf16.gmra.mrb[148].mxu1 %v10360_v34  ;;  %8672 = vmatprep.subr.bf16.mxu0 %v10826_v55  ;;  %v10376_v34 = vld [vmem:[%s15290_s1 + $0x44] ss:$100 sps:$4 sm:$0xff]  }
 0x16c   :  { %8711 = vmatpush3.bf16.msra.mxu1 %v10825_v17  ;;  %4002 = vmatprep.mubr.bf16.mxu1 %v10364_v61  ;;  %v8167_v61 = vadd.f32 %v8166_v44, %v8165_v40  ;;  %v12862_v55 = vadd.f32 %v8204_v51, %v2616_v48  ;;  %v10861_v44 = vld [vmem:[%s15288_s4 + $0x518] sm:$0xff]  }
 0x16d   :  { %8712 = vmatprep.subr.bf16.mxu1 %v10827_v59  ;;  %v8207_v59 = vadd.f32 %v8206_v57, %v8205_v54  ;;  %v7652_v54 = vcombine.high %v3098_v41, %v3098_v41 }
 0x16e   :  { %8673 = vmatpush3.bf16.msra.mxu0 %v10828_v3  ;;  %v2619_v17 = vadd.f32 %v8167_v61, %v12681_v62  ;;  %v10847_v62 = vld [vmem:[%s15288_s4 + $0x540] sm:$0xff]  }
 0x16f   :  { %8674 = vmatprep.subr.bf16.mxu0 %v10830_v7  ;;  %v10849_v3 = vld [vmem:[%s15288_s4 + $0x500] sm:$0xff]  }
 0x170   :  { %8713 = vmatpush3.bf16.msra.mxu1 %v10829_v4  ;;  %v12876_v63 = vadd.f32 %v8207_v59, %v2619_v17  ;;  %v8168_v4 = vpop.f32.mrb[60].mxu0 }
 0x171   :  { %8714 = vmatprep.subr.bf16.mxu1 %v10831_v8  ;;  %3939 = vmatmul.mubr.bf16.gmra.mrb[144].mxu0 %v10363_v58  ;;  %v10844_v58 = vld [vmem:[%s15288_s4 + $0x3b8] sm:$0xff]   ;;  %v8169_v7 = vpop.f32.mrb[61].mxu0  ;;  %v8208_v8 = vpop.f32.mrb[60].mxu1 }
 0x172   :  { %8675 = vmatpush3.bf16.msra.mxu0 %v10832_v20  ;;  %3946 = vmatprep.mubr.bf16.mxu0 %v7648_v11  ;;  %v8170_v9 = vadd.f32 %v8169_v7, %v8168_v4  ;;  %v8171_v10 = vpop.f32.mrb[62].mxu0  ;;  %v8209_v11 = vpop.f32.mrb[61].mxu1  ;;  %v10853_v20 = vld [vmem:[%s15288_s4 + $0x508] sm:$0xff]   ;;  %v10871_v7 = vld [vmem:[%s15288_s4 + $0x570] sm:$0xff]  }
 0x173   :  { %4003 = vmatmul.mubr.bf16.gmra.mrb[152].mxu1 %v10366_v60  ;;  %8676 = vmatprep.subr.bf16.mxu0 %v10834_v26  ;;  %v10846_v60 = vld [vmem:[%s15288_s4 + $0x4c0] sm:$0xff]   ;;  %v8172_v14 = vpop.f32.mrb[63].mxu0  ;;  %v8210_v15 = vadd.f32 %v8209_v11, %v8208_v8  ;;  %v8211_v19 = vpop.f32.mrb[62].mxu1  ;;  %v10855_v26 = vld [vmem:[%s15288_s4 + $0x550] sm:$0xff]   ;;  %v10869_v4 = vld [vmem:[%s15288_s4 + $0x528] sm:$0xff]  }
 0x174   :  { %8715 = vmatpush3.bf16.msra.mxu1 %v10833_v18  ;;  %4010 = vmatprep.mubr.bf16.mxu1 %v7650_v12  ;;  %v10379_v12 = vld [vmem:[%s15290_s1 + $0x100] ss:$100 sps:$4 sm:$0xff]   ;;  %v2624_v18 = vadd.f32 %v8170_v9, %v12720_v22  ;;  %v8212_v30 = vpop.f32.mrb[63].mxu1  ;;  %v10386_v22 = vld [vmem:[%s15290_s1 + $0x1d4] ss:$100 sps:$4 sm:$0xff]  }
 0x175   :  { %8716 = vmatprep.subr.bf16.mxu1 %v10835_v23  ;;  %v10398_v14 = vld [vmem:[%s15290_s1 + $0x54] ss:$100 sps:$4 sm:$0xff]  }
 0x176   :  { %8677 = vmatpush3.bf16.msra.mxu0 %v10836_v24  ;;  %v12915_v23 = vadd.f32 %v8210_v15, %v2624_v18  ;;  %v10858_v24 = vld [vmem:[%s15288_s4 + $0x4d8] sm:$0xff]   ;;  %v10872_v18 = vld [vmem:[%s15288_s4 + $0x4b0] sm:$0xff]  }
 0x177   :  { %8678 = vmatprep.subr.bf16.mxu0 %v10838_v35  ;;  %v10873_v30 = vld [vmem:[%s15288_s4 + $0x530] sm:$0xff]  }
 0x178   :  { %8717 = vmatpush3.bf16.msra.mxu1 %v10837_v32  ;;  %v10859_v32 = vld [vmem:[%s15288_s4 + $0x558] sm:$0xff]  }
 0x179   :  { %8718 = vmatprep.subr.bf16.mxu1 %v10839_v36  ;;  %3947 = vmatmul.mubr.bf16.gmra.mrb[148].mxu0 %v7647_v28  ;;  %v10856_v28 = vld [vmem:[%s15288_s4 + $0x490] sm:$0xff]   ;;  %v8270_v36 = vpop.f32.mrb[64].mxu1 }
 0x17a   :  { %8679 = vmatpush3.bf16.msra.mxu0 %v10840_v42  ;;  %4050 = vmatprep.mubr.bf16.mxu0 %v10373_v33  ;;  %v8230_v33 = vpop.f32.mrb[64].mxu0  ;;  %v8271_v40 = vpop.f32.mrb[65].mxu1  ;;  %v3099_v42 = vld [vmem:[%s15290_s1 + $0x298] sm:$0xff] }
 0x17b   :  { %4011 = vmatmul.mubr.bf16.gmra.mrb[156].mxu1 %v7649_v29  ;;  %8680 = vmatprep.subr.bf16.mxu0 %v10842_v46  ;;  %v10857_v29 = vld [vmem:[%s15288_s4 + $0x510] sm:$0xff]   ;;  %v8231_v35 = vpop.f32.mrb[65].mxu0  ;;  %v8272_v46 = vadd.f32 %v8271_v40, %v8270_v36  ;;  %v7654_v17 = vcombine.high %v3099_v42, %v3099_v42 }
 0x17c   :  { %8719 = vmatpush3.bf16.msra.mxu1 %v10841_v43  ;;  %4114 = vmatprep.mubr.bf16.mxu1 %v10376_v34  ;;  %v10385_v34 = vld [vmem:[%s15290_s1 + $0x1c8] ss:$100 sps:$4 sm:$0xff]   ;;  %v8232_v38 = vadd.f32 %v8231_v35, %v8230_v33  ;;  %v8233_v39 = vpop.f32.mrb[66].mxu0  ;;  %v10860_v43 = vld [vmem:[%s15288_s4 + $0x498] sm:$0xff]   ;;  %v10879_v35 = vld [vmem:[%s15288_s4 + $0x600] sm:$0xff]  }
 0x17d   :  { %8720 = vmatprep.subr.bf16.mxu1 %v10843_v53  ;;  %v8234_v45 = vpop.f32.mrb[67].mxu0  ;;  %v8273_v53 = vpop.f32.mrb[66].mxu1  ;;  %v10876_v33 = vld [vmem:[%s15288_s4 + $0x4b8] sm:$0xff]  }
 0x17e   :  { %8681 = vmatpush3.bf16.msra.mxu0 %v10844_v58  ;;  %v2728_v48 = vadd.f32 %v8232_v38, %v12766_v49  ;;  %v8235_v61 = vadd.f32 %v8234_v45, %v8233_v39  ;;  %v8274_v51 = vpop.f32.mrb[67].mxu1  ;;  %v10865_v49 = vld [vmem:[%s15288_s4 + $0x520] sm:$0xff]   ;;  %v10399_v38 = vld [vmem:[%s15290_s1 + $0x114] ss:$100 sps:$4 sm:$0xff]  }
 0x17f   :  { %8746 = vmatprep.subr.bf16.mxu0 %v10846_v60  ;;  %v8275_v57 = vadd.f32 %v8274_v51, %v8273_v53  ;;  %v10866_v60 = vld [vmem:[%s15288_s4 + $0x4e8] sm:$0xff]   ;;  %v8276_v10 = vpop.f32.mrb[68].mxu1  ;;  %v10402_v39 = vld [vmem:[%s15290_s1 + $0x11c] ss:$100 sps:$4 sm:$0xff]  }
 0x180   :  { %8721 = vmatpush3.bf16.msra.mxu1 %v10845_v52  ;;  %v2731_v59 = vadd.f32 %v8235_v61, %v12774_v56  ;;  %v12961_v58 = vadd.f32 %v8272_v46, %v2728_v48  ;;  %v10864_v52 = vld [vmem:[%s15288_s4 + $0x4a0] sm:$0xff]   ;;  %v10867_v56 = vld [vmem:[%s15288_s4 + $0x568] sm:$0xff]  }
 0x181   :  { %8786 = vmatprep.subr.bf16.mxu1 %v10847_v62  ;;  %4051 = vmatmul.mubr.bf16.vlgmr.msra.gmra.mrb[152].mxu0 %v10371_v47  ;;  %v10862_v47 = vld [vmem:[%s15288_s4 + $0x4e0] sm:$0xff]   ;;  %v10881_v46 = vld [vmem:[%s15288_s4 + $0x5c8] sm:$0xff]  }
 0x182   :  { %8747 = vmatpush3.bf16.msra.mxu0 %v10848_v2  ;;  %4058 = vmatprep.mubr.bf16.mxu0 %v10377_v0  ;;  %v12975_v62 = vadd.f32 %v8275_v57, %v2731_v59  ;;  %v7651_v0 = vcombine.low %v3098_v41, %v3098_v41  ;;  %v8236_v2 = vpop.f32.mrb[68].mxu0  ;;  %v10882_v53 = vld [vmem:[%s15288_s4 + $0x608] sm:$0xff]   ;;  %v10404_v57 = vld [vmem:[%s15290_s1 + $0x118] ss:$100 sps:$4 sm:$0xff]  }
 0x183   :  { %4115 = vmatmul.mubr.bf16.vlgmr.msra.gmra.mrb[160].mxu1 %v10374_v50  ;;  %8748 = vmatprep.subr.bf16.mxu0 %v10850_v5  ;;  %v10863_v50 = vld [vmem:[%s15288_s4 + $0x560] sm:$0xff]   ;;  %v8237_v5 = vpop.f32.mrb[69].mxu0 }
 0x184   :  { %8787 = vmatpush3.bf16.msra.mxu1 %v10849_v3  ;;  %4122 = vmatprep.mubr.bf16.mxu1 %v10380_v1  ;;  %v7653_v1 = vcombine.low %v3099_v42, %v3099_v42  ;;  %v10868_v3 = vld [vmem:[%s15288_s4 + $0x4a8] sm:$0xff]   ;;  %v8238_v8 = vadd.f32 %v8237_v5, %v8236_v2  ;;  %v8239_v9 = vpop.f32.mrb[70].mxu0  ;;  %v10880_v42 = vld [vmem:[%s15288_s4 + $0x580] sm:$0xff]   ;;  %v10888_v5 = vld [vmem:[%s15288_s4 + $0x618] sm:$0xff]  }
 0x185   :  { %8788 = vmatprep.subr.bf16.mxu1 %v10851_v6  ;;  %v10870_v6 = vld [vmem:[%s15288_s4 + $0x4f0] sm:$0xff]   ;;  %v8240_v11 = vpop.f32.mrb[71].mxu0 }
 0x186   :  { %8749 = vmatpush3.bf16.msra.mxu0 %v10852_v16  ;;  %v2736_v15 = vadd.f32 %v8238_v8, %v12820_v25  ;;  %v8241_v19 = vadd.f32 %v8240_v11, %v8239_v9  ;;  %v10875_v25 = vld [vmem:[%s15288_s4 + $0x578] sm:$0xff]   ;;  %v8242_v36 = vpop.f32.mrb[72].mxu0 }
 0x187   :  { %8750 = vmatprep.subr.bf16.mxu0 %v10854_v21  ;;  %v10407_v9 = vld [vmem:[%s15290_s1 + $0x1d8] ss:$100 sps:$4 sm:$0xff]  }
 0x188   :  { %8789 = vmatpush3.bf16.msra.mxu1 %v10853_v20 }
 0x189   :  { %8790 = vmatprep.subr.bf16.mxu1 %v10855_v26  ;;  %4059 = vmatmul.mubr.bf16.gmra.mrb[156].mxu0 %v10379_v12  ;;  %v8277_v12 = vpop.f32.mrb[69].mxu1  ;;  %v10874_v26 = vld [vmem:[%s15288_s4 + $0x4f8] sm:$0xff]  }
 0x18a   :  { %8751 = vmatpush3.bf16.msra.mxu0 %v10856_v28  ;;  %4066 = vmatprep.mubr.bf16.mxu0 %v10383_v27  ;;  %v8278_v16 = vadd.f32 %v8277_v12, %v8276_v10  ;;  %v8279_v20 = vpop.f32.mrb[70].mxu1  ;;  %v2739_v27 = vadd.f32 %v8241_v19, %v12822_v31  ;;  %v10877_v31 = vld [vmem:[%s15288_s4 + $0x538] sm:$0xff]   ;;  %v10410_v12 = vld [vmem:[%s15290_s1 + $0x1e0] ss:$100 sps:$4 sm:$0xff]  }
 0x18b   :  { %4123 = vmatmul.mubr.bf16.gmra.mrb[164].mxu1 %v10382_v13  ;;  %8752 = vmatprep.subr.bf16.mxu0 %v10858_v24  ;;  %v10395_v13 = vld [vmem:[%s15290_s1 + $0x4c] ss:$100 sps:$4 sm:$0xff]   ;;  %v8280_v21 = vpop.f32.mrb[71].mxu1  ;;  %v10889_v19 = vld [vmem:[%s15288_s4 + $0x598] sm:$0xff]  }
 0x18c   :  { %8791 = vmatpush3.bf16.msra.mxu1 %v10857_v29  ;;  %4130 = vmatprep.mubr.bf16.mxu1 %v10386_v22  ;;  %v13009_v22 = vadd.f32 %v8278_v16, %v2736_v15  ;;  %v8281_v28 = vadd.f32 %v8280_v21, %v8279_v20  ;;  %v10393_v29 = vld [vmem:[%s15290_s1 + $0x48] ss:$100 sps:$4 sm:$0xff]  }
 0x18d   :  { %8792 = vmatprep.subr.bf16.mxu1 %v10859_v32  ;;  %v10396_v32 = vld [vmem:[%s15290_s1 + $0x50] ss:$100 sps:$4 sm:$0xff]  }
 0x18e   :  { %8753 = vmatpush3.bf16.msra.mxu0 %v10860_v43  ;;  %v13014_v24 = vadd.f32 %v8281_v28, %v2739_v27  ;;  %v8282_v43 = vpop.f32.mrb[72].mxu1  ;;  %v10892_v27 = vld [vmem:[%s15288_s4 + $0x5a0] sm:$0xff]  }
 0x18f   :  { %8754 = vmatprep.subr.bf16.mxu0 %v10862_v47 }
 0x190   :  { %8793 = vmatpush3.bf16.msra.mxu1 %v10861_v44 }
 0x191   :  { %8794 = vmatprep.subr.bf16.mxu1 %v10863_v50  ;;  %4067 = vmatmul.mubr.bf16.gmra.mrb[160].mxu0 %v10385_v34  ;;  %v10878_v34 = vld [vmem:[%s15288_s4 + $0x5c0] sm:$0xff]   ;;  %v8283_v50 = vpop.f32.mrb[73].mxu1 }
 0x192   :  { %8755 = vmatpush3.bf16.msra.mxu0 %v10864_v52  ;;  %4074 = vmatprep.mubr.bf16.mxu0 %v7652_v54  ;;  %v8284_v48 = vadd.f32 %v8283_v50, %v8282_v43  ;;  %v8285_v61 = vpop.f32.mrb[74].mxu1  ;;  %v10417_v50 = vld [vmem:[%s15290_s1 + $0x5c] ss:$100 sps:$4 sm:$0xff]  }
 0x193   :  { %4131 = vmatmul.mubr.bf16.gmra.mrb[168].mxu1 %v10388_v37  ;;  %8756 = vmatprep.subr.bf16.mxu0 %v10866_v60  ;;  %v8243_v37 = vpop.f32.mrb[73].mxu0  ;;  %v8286_v54 = vpop.f32.mrb[75].mxu1 }
 0x194   :  { %8795 = vmatpush3.bf16.msra.mxu1 %v10865_v49  ;;  %4138 = vmatprep.mubr.bf16.mxu1 %v7654_v17  ;;  %v8244_v40 = vadd.f32 %v8243_v37, %v8242_v36  ;;  %v8245_v41 = vpop.f32.mrb[74].mxu0  ;;  %v10883_v17 = vld [vmem:[%s15288_s4 + $0x588] sm:$0xff]   ;;  %v8287_v52 = vadd.f32 %v8286_v54, %v8285_v61  ;;  %v10885_v49 = vld [vmem:[%s15288_s4 + $0x610] sm:$0xff]   ;;  %v8288_v8 = vpop.f32.mrb[76].mxu1 }
 0x195   :  { %8796 = vmatprep.subr.bf16.mxu1 %v10867_v56  ;;  %v8246_v44 = vpop.f32.mrb[75].mxu0  ;;  %v10405_v56 = vld [vmem:[%s15290_s1 + $0x1dc] ss:$100 sps:$4 sm:$0xff]   ;;  %v8289_v11 = vpop.f32.mrb[77].mxu1 }
 0x196   :  { %8757 = vmatpush3.bf16.msra.mxu0 %v10868_v3  ;;  %v2744_v45 = vadd.f32 %v8244_v40, %v12862_v55  ;;  %v8247_v47 = vadd.f32 %v8246_v44, %v8245_v41  ;;  %v10401_v55 = vld [vmem:[%s15290_s1 + $0x110] ss:$100 sps:$4 sm:$0xff]   ;;  %v8248_v2 = vpop.f32.mrb[76].mxu0  ;;  %v8290_v16 = vadd.f32 %v8289_v11, %v8288_v8  ;;  %v8291_v20 = vpop.f32.mrb[78].mxu1 }
 0x197   :  { %8758 = vmatprep.subr.bf16.mxu0 %v10870_v6  ;;  %v8249_v3 = vpop.f32.mrb[77].mxu0  ;;  %v8292_v21 = vpop.f32.mrb[79].mxu1  ;;  %v10906_v20 = vld [vmem:[%s15288_s4 + $0x48] sm:$0xff]  }
 0x198   :  { %8797 = vmatpush3.bf16.msra.mxu1 %v10869_v4  ;;  %v2747_v51 = vadd.f32 %v8247_v47, %v12876_v63  ;;  %v13057_v59 = vadd.f32 %v8284_v48, %v2744_v45  ;;  %v10884_v63 = vld [vmem:[%s15288_s4 + $0x5d0] sm:$0xff]   ;;  %v10887_v4 = vld [vmem:[%s15288_s4 + $0x5d8] sm:$0xff]   ;;  %v8250_v6 = vadd.f32 %v8249_v3, %v8248_v2 }
 0x199   :  { %8798 = vmatprep.subr.bf16.mxu1 %v10871_v7  ;;  %4075 = vmatmul.mubr.bf16.gmra.mrb[164].mxu0 %v7651_v0  ;;  %v10408_v0 = vld [vmem:[%s15290_s1 + $0x1e4] ss:$100 sps:$4 sm:$0xff]   ;;  %v8251_v7 = vpop.f32.mrb[78].mxu0  ;;  %v10901_v2 = vld [vmem:[%s15288_s4 + $0x5b8] sm:$0xff]  }
 0x19a   :  { %8759 = vmatpush3.bf16.msra.mxu0 %v10872_v18  ;;  %4178 = vmatprep.mubr.bf16.mxu0 %v10395_v13  ;;  %v13065_v60 = vadd.f32 %v8287_v52, %v2747_v51  ;;  %v8252_v10 = vpop.f32.mrb[79].mxu0  ;;  %v3100_v13 = vld [vmem:[%s15290_s1 + $0x2a0] sm:$0xff]  ;;  %v2752_v15 = vadd.f32 %v8250_v6, %v12915_v23  ;;  %v10898_v51 = vld [vmem:[%s15288_s4 + $0x5b0] sm:$0xff]  }
 0x19b   :  { %4139 = vmatmul.mubr.bf16.gmra.mrb[172].mxu1 %v7653_v1  ;;  %8760 = vmatprep.subr.bf16.mxu0 %v10874_v26  ;;  %v10886_v1 = vld [vmem:[%s15288_s4 + $0x590] sm:$0xff]   ;;  %v10890_v18 = vld [vmem:[%s15288_s4 + $0x5e0] sm:$0xff]   ;;  %v7656_v26 = vcombine.high %v3100_v13, %v3100_v13  ;;  %v8310_v28 = vpop.f32.mrb[80].mxu0  ;;  %v7655_v37 = vcombine.low %v3100_v13, %v3100_v13 }
 0x19c   :  { %8799 = vmatpush3.bf16.msra.mxu1 %v10873_v30  ;;  %4242 = vmatprep.mubr.bf16.mxu1 %v10398_v14  ;;  %v3101_v14 = vld [vmem:[%s15290_s1 + $0x2a8] sm:$0xff]  ;;  %v10891_v30 = vld [vmem:[%s15288_s4 + $0x620] sm:$0xff]   ;;  %v13104_v23 = vadd.f32 %v8290_v16, %v2752_v15 }
 0x19d   :  { %8800 = vmatprep.subr.bf16.mxu1 %v10875_v25  ;;  %v7658_v25 = vcombine.high %v3101_v14, %v3101_v14  ;;  %v10903_v10 = vld [vmem:[%s15288_s4 + $0xc0] sm:$0xff]  }
 0x19e   :  { %8761 = vmatpush3.bf16.msra.mxu0 %v10876_v33  ;;  %v8311_v33 = vpop.f32.mrb[81].mxu0  ;;  %v10904_v15 = vld [vmem:[%s15288_s4] sm:$0xff]  }
 0x19f   :  { %8826 = vmatprep.subr.bf16.mxu0 %v10878_v34  ;;  %v8312_v34 = vadd.f32 %v8311_v33, %v8310_v28  ;;  %v10422_v28 = vld [vmem:[%s15290_s1 + $0x120] ss:$100 sps:$4 sm:$0xff]   ;;  %v10909_v33 = vld [vmem:[%s15288_s4 + $0x88] sm:$0xff]  }
 0x1a0   :  { %8801 = vmatpush3.bf16.msra.mxu1 %v10877_v31  ;;  %v8350_v31 = vpop.f32.mrb[80].mxu1 }
 0x1a1   :  { %9886 = vmatprep.subr.bf16.mxu1 %v10879_v35  ;;  %4179 = vmatmul.mubr.bf16.vlgmr.msra.gmra.mrb[168].mxu0 %v10393_v29  ;;  %v10893_v29 = vld [vmem:[%s15288_s4 + $0x5e8] sm:$0xff]   ;;  %v8351_v36 = vpop.f32.mrb[81].mxu1  ;;  %v2856_v43 = vadd.f32 %v8312_v34, %v12961_v58  ;;  %v10418_v58 = vld [vmem:[%s15290_s1 + $0x60] ss:$100 sps:$4 sm:$0xff]  }
 0x1a2   :  { %8827 = vmatpush3.bf16.msra.mxu0 %v10880_v42  ;;  %4186 = vmatprep.mubr.bf16.mxu0 %v10399_v38  ;;  %v7657_v38 = vcombine.low %v3101_v14, %v3101_v14  ;;  %v8352_v41 = vadd.f32 %v8351_v36, %v8350_v31  ;;  %v8353_v42 = vpop.f32.mrb[82].mxu1 }
 0x1a3   :  { %4243 = vmatmul.mubr.bf16.vlgmr.msra.gmra.mrb[176].mxu1 %v10396_v32  ;;  %8828 = vmatprep.subr.bf16.mxu0 %v10881_v46  ;;  %v10894_v32 = vld [vmem:[%s15288_s4 + $0x628] sm:$0xff]   ;;  %v8354_v45 = vpop.f32.mrb[83].mxu1  ;;  %v10896_v46 = vld [vmem:[%s15288_s4 + $0x5f0] sm:$0xff]  }
 0x1a4   :  { %9887 = vmatpush3.bf16.msra.mxu1 %v10879_v35  ;;  %4250 = vmatprep.mubr.bf16.mxu1 %v10402_v39  ;;  %v8313_v35 = vpop.f32.mrb[82].mxu0  ;;  %v10895_v39 = vld [vmem:[%s15288_s4 + $0x5a8] sm:$0xff]   ;;  %v8355_v47 = vadd.f32 %v8354_v45, %v8353_v42  ;;  %v13132_v61 = vadd.f32 %v8352_v41, %v2856_v43  ;;  %v8356_v52 = vpop.f32.mrb[84].mxu1  ;;  %v10912_v45 = vld [vmem:[%s15288_s4 + $0x10] sm:$0xff]  }
 0x1a5   :  { %9888 = vmatprep.subr.bf16.mxu1 %v10882_v53  ;;  %v8314_v40 = vpop.f32.mrb[83].mxu0  ;;  %v10423_v42 = vld [vmem:[%s15290_s1 + $0x1ec] ss:$100 sps:$4 sm:$0xff]  }
 0x1a6   :  { %8829 = vmatpush3.bf16.msra.mxu0 %v10883_v17  ;;  %v8315_v44 = vadd.f32 %v8314_v40, %v8313_v35  ;;  %v8316_v54 = vpop.f32.mrb[84].mxu0  ;;  %v10911_v40 = vld [vmem:[%s15288_s4 + $0xd0] sm:$0xff]  }
 0x1a7   :  { %8830 = vmatprep.subr.bf16.mxu0 %v10884_v63  ;;  %v8317_v17 = vpop.f32.mrb[85].mxu0 }
 0x1a8   :  { %9889 = vmatpush3.bf16.msra.mxu1 %v10882_v53  ;;  %v10897_v53 = vld [vmem:[%s15288_s4 + $0x630] sm:$0xff]   ;;  %v2859_v48 = vadd.f32 %v8315_v44, %v12975_v62  ;;  %v10900_v62 = vld [vmem:[%s15288_s4 + $0x638] sm:$0xff]   ;;  %v8318_v63 = vadd.f32 %v8317_v17, %v8316_v54 }
 0x1a9   :  { %9890 = vmatprep.subr.bf16.mxu1 %v10885_v49  ;;  %4187 = vmatmul.mubr.bf16.gmra.mrb[172].mxu0 %v10401_v55  ;;  %v10899_v55 = vld [vmem:[%s15288_s4 + $0x5f8] sm:$0xff]   ;;  %v3102_v17 = vld [vmem:[%s15290_s1 + $0x2b0] sm:$0xff] }
 0x1aa   :  { %8831 = vmatpush3.bf16.msra.mxu0 %v10886_v1  ;;  %4194 = vmatprep.mubr.bf16.mxu0 %v10405_v56  ;;  %v8357_v56 = vpop.f32.mrb[85].mxu1  ;;  %v10419_v1 = vld [vmem:[%s15290_s1 + $0x128] ss:$100 sps:$4 sm:$0xff]   ;;  %v2864_v6 = vadd.f32 %v8318_v63, %v13009_v22  ;;  %v10426_v22 = vld [vmem:[%s15290_s1 + $0x1f0] ss:$100 sps:$4 sm:$0xff]   ;;  %v10917_v63 = vld [vmem:[%s15288_s4 + $0x98] sm:$0xff]  }
 0x1ab   :  { %4251 = vmatmul.mubr.bf16.gmra.mrb[180].mxu1 %v10404_v57  ;;  %8832 = vmatprep.subr.bf16.mxu0 %v10887_v4  ;;  %v13143_v57 = vadd.f32 %v8355_v47, %v2859_v48  ;;  %v8358_v4 = vadd.f32 %v8357_v56, %v8356_v52  ;;  %v10914_v47 = vld [vmem:[%s15288_s4 + $0x58] sm:$0xff]  }
 0x1ac   :  { %9891 = vmatpush3.bf16.msra.mxu1 %v10885_v49  ;;  %4258 = vmatprep.mubr.bf16.mxu1 %v10408_v0  ;;  %v8319_v49 = vpop.f32.mrb[86].mxu0  ;;  %v10415_v0 = vld [vmem:[%s15290_s1 + $0x58] ss:$100 sps:$4 sm:$0xff]  }
 0x1ad   :  { %9892 = vmatprep.subr.bf16.mxu1 %v10888_v5  ;;  %v8320_v3 = vpop.f32.mrb[87].mxu0  ;;  %v13168_v14 = vadd.f32 %v8358_v4, %v2864_v6  ;;  %v10916_v52 = vld [vmem:[%s15288_s4 + $0x18] sm:$0xff]  }
 0x1ae   :  { %8833 = vmatpush3.bf16.msra.mxu0 %v10889_v19  ;;  %v8321_v7 = vadd.f32 %v8320_v3, %v8319_v49  ;;  %v10905_v19 = vld [vmem:[%s15288_s4 + $0x80] sm:$0xff]   ;;  %v8322_v16 = vpop.f32.mrb[88].mxu0 }
 0x1af   :  { %8834 = vmatprep.subr.bf16.mxu0 %v10890_v18  ;;  %v10919_v3 = vld [vmem:[%s15288_s4 + $0xe0] sm:$0xff]  }
 0x1b0   :  { %9893 = vmatpush3.bf16.msra.mxu1 %v10888_v5  ;;  %v8359_v5 = vpop.f32.mrb[86].mxu1  ;;  %v2867_v13 = vadd.f32 %v8321_v7, %v13014_v24  ;;  %v10907_v24 = vld [vmem:[%s15288_s4 + $0xc8] sm:$0xff]   ;;  %v10920_v7 = vld [vmem:[%s15288_s4 + $0x20] sm:$0xff]  }
 0x1b1   :  { %9894 = vmatprep.subr.bf16.mxu1 %v10891_v30  ;;  %4195 = vmatmul.mubr.bf16.gmra.mrb[176].mxu0 %v10407_v9  ;;  %v8360_v8 = vpop.f32.mrb[87].mxu1  ;;  %v10902_v9 = vld [vmem:[%s15288_s4 + $0x40] sm:$0xff]  }
 0x1b2   :  { %8835 = vmatpush3.bf16.msra.mxu0 %v10892_v27  ;;  %4202 = vmatprep.mubr.bf16.mxu0 %v7656_v26  ;;  %v8361_v11 = vadd.f32 %v8360_v8, %v8359_v5  ;;  %v8362_v21 = vpop.f32.mrb[88].mxu1  ;;  %v7660_v5 = vcombine.high %v3102_v17, %v3102_v17  ;;  %v10922_v8 = vld [vmem:[%s15288_s4 + $0x68] sm:$0xff]  }
 0x1b3   :  { %4259 = vmatmul.mubr.bf16.gmra.mrb[184].mxu1 %v10410_v12  ;;  %8836 = vmatprep.subr.bf16.mxu0 %v10893_v29  ;;  %v10420_v12 = vld [vmem:[%s15290_s1 + $0x124] ss:$100 sps:$4 sm:$0xff]   ;;  %v8363_v27 = vpop.f32.mrb[89].mxu1  ;;  %v10427_v29 = vld [vmem:[%s15290_s1 + $0x2b8] ss:$0 sps:$4 sm:$0xff]  }
 0x1b4   :  { %9895 = vmatpush3.bf16.msra.mxu1 %v10891_v30  ;;  %4266 = vmatprep.mubr.bf16.mxu1 %v7658_v25  ;;  %v13182_v18 = vadd.f32 %v8361_v11, %v2867_v13  ;;  %v8323_v30 = vpop.f32.mrb[89].mxu0  ;;  %v8364_v34 = vadd.f32 %v8363_v27, %v8362_v21  ;;  %v8365_v35 = vpop.f32.mrb[90].mxu1  ;;  %v7659_v13 = vcombine.low %v3102_v17, %v3102_v17  ;;  %v10939_v17 = vld [vmem:[%s15288_s4 + $0x1c8] sm:$0xff]  }
 0x1b5   :  { %9896 = vmatprep.subr.bf16.mxu1 %v10894_v32  ;;  %v8324_v26 = vadd.f32 %v8323_v30, %v8322_v16  ;;  %v8325_v25 = vpop.f32.mrb[90].mxu0 }
 0x1b6   :  { %8837 = vmatpush3.bf16.msra.mxu0 %v10895_v39  ;;  %v8326_v31 = vpop.f32.mrb[91].mxu0  ;;  %v10910_v39 = vld [vmem:[%s15288_s4 + $0x50] sm:$0xff]  }
 0x1b7   :  { %8838 = vmatprep.subr.bf16.mxu0 %v10896_v46  ;;  %v2872_v36 = vadd.f32 %v8324_v26, %v13057_v59  ;;  %v10435_v59 = vld [vmem:[%s15291_s2 + $0xc] ss:$100 sps:$4 sm:$0xff]  }
 0x1b8   :  { %9897 = vmatpush3.bf16.msra.mxu1 %v10894_v32  ;;  %v10908_v32 = vld [vmem:[%s15288_s4 + $0x8] sm:$0xff]   ;;  %v10913_v46 = vld [vmem:[%s15288_s4 + $0x90] sm:$0xff]  }
 0x1b9   :  { %9898 = vmatprep.subr.bf16.mxu1 %v10897_v53  ;;  %4203 = vmatmul.mubr.bf16.gmra.mrb[180].mxu0 %v7655_v37  ;;  %v8327_v37 = vadd.f32 %v8326_v31, %v8325_v25  ;;  %v13210_v44 = vadd.f32 %v8364_v34, %v2872_v36  ;;  %v10927_v25 = vld [vmem:[%s15288_s4 + $0xf0] sm:$0xff]   ;;  %v10931_v31 = vld [vmem:[%s15288_s4 + $0xf8] sm:$0xff]  }
 0x1ba   :  { %8839 = vmatpush3.bf16.msra.mxu0 %v10898_v51  ;;  %4306 = vmatprep.mubr.bf16.mxu0 %v10417_v50 }
 0x1bb   :  { %4267 = vmatmul.mubr.bf16.gmra.mrb[188].mxu1 %v7657_v38  ;;  %8840 = vmatprep.subr.bf16.mxu0 %v10899_v55  ;;  %v8366_v38 = vpop.f32.mrb[91].mxu1  ;;  %v2875_v43 = vadd.f32 %v8327_v37, %v13065_v60  ;;  %v10915_v60 = vld [vmem:[%s15288_s4 + $0xd8] sm:$0xff]  }
 0x1bc   :  { %9899 = vmatpush3.bf16.msra.mxu1 %v10897_v53  ;;  %9902 = vmatprep.mubr.bf16.mxu1 %v10418_v58  ;;  %v8367_v41 = vadd.f32 %v8366_v38, %v8365_v35  ;;  %v8328_v53 = vpop.f32.mrb[92].mxu0  ;;  %v8368_v48 = vpop.f32.mrb[92].mxu1  ;;  %v10430_v38 = vld [vmem:[%s15291_s2] ss:$100 sps:$4 sm:$0xff]  }
 0x1bd   :  { %9900 = vmatprep.subr.bf16.mxu1 %v10900_v62  ;;  %v8329_v58 = vpop.f32.mrb[93].mxu0  ;;  %v8369_v55 = vpop.f32.mrb[93].mxu1 }
 0x1be   :  { %8841 = vmatpush3.bf16.msra.mxu0 %v10901_v2  ;;  %v13224_v50 = vadd.f32 %v8367_v41, %v2875_v43  ;;  %v8330_v51 = vadd.f32 %v8329_v58, %v8328_v53  ;;  %v8331_v54 = vpop.f32.mrb[94].mxu0  ;;  %v8370_v56 = vadd.f32 %v8369_v55, %v8368_v48  ;;  %v10918_v2 = vld [vmem:[%s15288_s4 + $0x60] sm:$0xff]   ;;  %v10933_v43 = vld [vmem:[%s15288_s4 + $0xb8] sm:$0xff]   ;;  %v10436_v48 = vld [vmem:[%s15291_s2 + $0xcc] ss:$100 sps:$4 sm:$0xff]  }
 0x1bf   :  { %8878 = vmatprep.subr.bf16.mxu0 %v10902_v9  ;;  %v8332_v49 = vpop.f32.mrb[95].mxu0  ;;  %v10923_v9 = vld [vmem:[%s15288_s4 + $0xe8] sm:$0xff]   ;;  %v10936_v55 = vld [vmem:[%s15288_s4 + $0x100] sm:$0xff]  }
 0x1c0   :  { %9901 = vmatpush3.bf16.msra.mxu1 %v10900_v62  ;;  %v10425_v62 = vld [vmem:[%s15290_s1 + $0x1e8] ss:$100 sps:$4 sm:$0xff]   ;;  %v10441_v49 = vld [vmem:[%s15291_s2 + $0xd0] ss:$100 sps:$4 sm:$0xff]  }
 0x1c1   :  { %8918 = vmatprep.subr.bf16.mxu1 %v10903_v10  ;;  %4307 = vmatmul.mubr.bf16.vlgmr.msra.gmra.mrb[184].mxu0 %v10415_v0  ;;  %v8371_v0 = vpop.f32.mrb[94].mxu1  ;;  %v9880_v10 = vpop.f32.mrb[96].mxu0 }
 0x1c2   :  { %8879 = vmatpush3.bf16.msra.mxu0 %v10904_v15  ;;  %4314 = vmatprep.mubr.bf16.mxu0 %v10420_v12  ;;  %v8372_v4 = vpop.f32.mrb[95].mxu1  ;;  %v13258_v12 = vadd.f32 %v9880_v10, %v13168_v14  ;;  %v10940_v0 = vld [vmem:[%s15288_s4 + $0x108] sm:$0xff]   ;;  %v10945_v10 = vld [vmem:[%s15288_s4 + $0x190] sm:$0xff]  }
 0x1c3   :  { %9903 = vmatmul.mubr.bf16.vlgmr.msra.gmra.mrb[192].mxu1 %v10419_v1  ;;  %8880 = vmatprep.subr.bf16.mxu0 %v10906_v20  ;;  %v2880_v1 = vadd.f32 %v8330_v51, %v13104_v23  ;;  %v10921_v23 = vld [vmem:[%s15288_s4 + $0xa0] sm:$0xff]   ;;  %v8402_v11 = vpop.f32.mrb[96].mxu1  ;;  %v10924_v20 = vld [vmem:[%s15288_s4 + $0x28] sm:$0xff]   ;;  %v10438_v51 = vld [vmem:[%s15291_s2 + $0xd4] ss:$100 sps:$4 sm:$0xff]  }
 0x1c4   :  { %8919 = vmatpush3.bf16.msra.mxu1 %v10905_v19  ;;  %9906 = vmatprep.mubr.bf16.mxu1 %v10426_v22  ;;  %v2983_v22 = vpop.f32.mrb[97].mxu0  ;;  %v8403_v15 = vpop.f32.mrb[97].mxu1  ;;  %v10942_v4 = vld [vmem:[%s15288_s4 + $0x150] sm:$0xff]  }
 0x1c5   :  { %8920 = vmatprep.subr.bf16.mxu1 %v10907_v24  ;;  %v2944_v6 = vadd.f32 %v8370_v56, %v2880_v1  ;;  %v13261_v19 = vadd.f32 %v2983_v22, %v13132_v61  ;;  %v9881_v16 = vpop.f32.mrb[98].mxu0  ;;  %v10925_v24 = vld [vmem:[%s15288_s4 + $0xa8] sm:$0xff]   ;;  %v13269_v30 = vadd.f32 %v8403_v15, %v8402_v11  ;;  %v8405_v14 = vpop.f32.mrb[98].mxu1  ;;  %v10926_v61 = vld [vmem:[%s15288_s4 + $0x70] sm:$0xff]   ;;  %v10946_v11 = vld [vmem:[%s15288_s4 + $0x158] sm:$0xff]  }
 0x1c6   :  { %8881 = vmatpush3.bf16.msra.mxu0 %v10908_v32  ;;  %v13272_v21 = vadd.f32 %v9881_v16, %v13182_v18  ;;  %v2986_v26 = vpop.f32.mrb[99].mxu0  ;;  %v8406_v27 = vpop.f32.mrb[99].mxu1  ;;  %v10432_v18 = vld [vmem:[%s15291_s2 + $0x4] ss:$100 sps:$4 sm:$0xff]   ;;  %v10928_v32 = vld [vmem:[%s15288_s4 + $0x30] sm:$0xff]   ;;  %v10947_v22 = vld [vmem:[%s15288_s4 + $0x1d8] sm:$0xff]  }
 0x1c7   :  { %8882 = vmatprep.subr.bf16.mxu0 %v10910_v39  ;;  %v9884_v34 = vpop.f32.mrb[100].mxu0  ;;  %v10433_v39 = vld [vmem:[%s15291_s2 + $0x8] ss:$100 sps:$4 sm:$0xff]   ;;  %v10447_v16 = vld [vmem:[%s15291_s2 + $0x198] ss:$100 sps:$4 sm:$0xff]  }
 0x1c8   :  { %8921 = vmatpush3.bf16.msra.mxu1 %v10909_v33  ;;  %v10929_v33 = vld [vmem:[%s15288_s4 + $0xb0] sm:$0xff]   ;;  %v13300_v36 = vadd.f32 %v9884_v34, %v2944_v6  ;;  %v2999_v37 = vpop.f32.mrb[101].mxu0  ;;  %v10941_v1 = vld [vmem:[%s15288_s4 + $0x188] sm:$0xff]   ;;  %v10952_v34 = vld [vmem:[%s15288_s4 + $0x120] sm:$0xff]  }
 0x1c9   :  { %8922 = vmatprep.subr.bf16.mxu1 %v10911_v40  ;;  %4315 = vmatmul.mubr.bf16.gmra.mrb[188].mxu0 %v10422_v28  ;;  %v13281_v28 = vadd.f32 %v2986_v26, %v13143_v57  ;;  %v10930_v57 = vld [vmem:[%s15288_s4 + $0x78] sm:$0xff]   ;;  %v13309_v41 = vadd.f32 %v2999_v37, %v13210_v44  ;;  %v10934_v44 = vld [vmem:[%s15288_s4 + $0x140] sm:$0xff]   ;;  %v10954_v37 = vld [vmem:[%s15288_s4 + $0x168] sm:$0xff]  }
 0x1ca   :  { %8883 = vmatpush3.bf16.msra.mxu0 %v10912_v45  ;;  %4322 = vmatprep.mubr.bf16.mxu0 %v10423_v42  ;;  %v9885_v42 = vpop.f32.mrb[102].mxu0  ;;  %v10948_v26 = vld [vmem:[%s15288_s4 + $0x118] sm:$0xff]  }
 0x1cb   :  { %9907 = vmatmul.mubr.bf16.gmra.mrb[196].mxu1 %v10427_v29  ;;  %8884 = vmatprep.subr.bf16.mxu0 %v10914_v47  ;;  %v13286_v29 = vadd.f32 %v8406_v27, %v8405_v14  ;;  %v3002_v53 = vpop.f32.mrb[103].mxu0  ;;  %v10935_v47 = vld [vmem:[%s15288_s4 + $0x1c0] sm:$0xff]  }
 0x1cc   :  { %8923 = vmatpush3.bf16.msra.mxu1 %v10913_v46  ;;  %5055 = vmatprep.mubr.bf16.mxu1 %v10435_v59  ;;  %v10932_v59 = vld [vmem:[%s15288_s4 + $0x38] sm:$0xff]   ;;  %v13326_v58 = vadd.f32 %v3002_v53, %v13224_v50  ;;  %v10937_v50 = vld [vmem:[%s15288_s4 + $0x180] sm:$0xff]  }
 0x1cd   :  { %8924 = vmatprep.subr.bf16.mxu1 %v10915_v60  ;;  %v8408_v35 = vpop.f32.mrb[100].mxu1  ;;  %v4481_v14 = vld [vmem:[%s15291_s2 + $0x260] sm:$0xff] }
 0x1ce   :  { %8885 = vmatpush3.bf16.msra.mxu0 %v10916_v52  ;;  %v8409_v40 = vpop.f32.mrb[101].mxu1 }
 0x1cf   :  { %8886 = vmatprep.subr.bf16.mxu0 %v10918_v2  ;;  %v13317_v45 = vadd.f32 %v8409_v40, %v8408_v35  ;;  %v8411_v46 = vpop.f32.mrb[102].mxu1  ;;  %v10953_v35 = vld [vmem:[%s15288_s4 + $0x1a0] sm:$0xff]  }
 0x1d0   :  { %8925 = vmatpush3.bf16.msra.mxu1 %v10917_v63  ;;  %v8412_v60 = vpop.f32.mrb[103].mxu1  ;;  %v10440_v63 = vld [vmem:[%s15291_s2 + $0xc8] ss:$100 sps:$4 sm:$0xff]  }
 0x1d1   :  { %8926 = vmatprep.subr.bf16.mxu1 %v10919_v3  ;;  %4323 = vmatmul.mubr.bf16.gmra.mrb[192].mxu0 %v10425_v62  ;;  %v13334_v54 = vadd.f32 %v8412_v60, %v8411_v46  ;;  %v10938_v62 = vld [vmem:[%s15288_s4 + $0x148] sm:$0xff]   ;;  %v7739_v46 = vcombine.low %v4481_v14, %v4481_v14 }
 0x1d2   :  { %8887 = vmatpush3.bf16.msra.mxu0 %v10920_v7  ;;  %4330 = vmatprep.mubr.bf16.mxu0 %v7660_v5  ;;  %v10943_v5 = vld [vmem:[%s15288_s4 + $0x1d0] sm:$0xff]  }
 0x1d3   :  { %8888 = vmatprep.subr.bf16.mxu0 %v10922_v8  ;;  %v10442_v7 = vld [vmem:[%s15291_s2 + $0x194] ss:$100 sps:$4 sm:$0xff]  }
 0x1d4   :  { %8927 = vmatpush3.bf16.msra.mxu1 %v10921_v23  ;;  %v10444_v23 = vld [vmem:[%s15291_s2 + $0x19c] ss:$100 sps:$4 sm:$0xff]  }
 0x1d5   :  { %8928 = vmatprep.subr.bf16.mxu1 %v10923_v9  ;;  %v10944_v9 = vld [vmem:[%s15288_s4 + $0x110] sm:$0xff]  }
 0x1d6   :  { %8889 = vmatpush3.bf16.msra.mxu0 %v10924_v20  ;;  %v8414_v52 = vpop.f32.mrb[104].mxu1 }
 0x1d7   :  { %8890 = vmatprep.subr.bf16.mxu0 %v10926_v61  ;;  %v8415_v56 = vpop.f32.mrb[105].mxu1  ;;  %v10949_v61 = vld [vmem:[%s15288_s4 + $0x198] sm:$0xff]  }
 0x1d8   :  { %8929 = vmatpush3.bf16.msra.mxu1 %v10925_v24  ;;  %v13360_v2 = vadd.f32 %v8415_v56, %v8414_v52  ;;  %v8417_v3 = vpop.f32.mrb[106].mxu1  ;;  %v4480_v24 = vld [vmem:[%s15291_s2 + $0x258] sm:$0xff] }
 0x1d9   :  { %8930 = vmatprep.subr.bf16.mxu1 %v10927_v25  ;;  %4331 = vmatmul.mubr.bf16.gmra.mrb[196].mxu0 %v7659_v13  ;;  %v8418_v6 = vpop.f32.mrb[107].mxu1  ;;  %v10446_v13 = vld [vmem:[%s15291_s2 + $0x190] ss:$100 sps:$4 sm:$0xff]  }
 0x1da   :  { %8891 = vmatpush3.bf16.msra.mxu0 %v10928_v32  ;;  %4991 = vmatprep.mubr.bf16.mxu0 %v10432_v18  ;;  %v13374_v8 = vadd.f32 %v8418_v6, %v8417_v3  ;;  %v10950_v18 = vld [vmem:[%s15288_s4 + $0x160] sm:$0xff]   ;;  %v10454_v56 = vld [vmem:[%s15291_s2 + $0x14] ss:$100 sps:$4 sm:$0xff]  }
 0x1db   :  { %8892 = vmatprep.subr.bf16.mxu0 %v10930_v57  ;;  %v10951_v32 = vld [vmem:[%s15288_s4 + $0x1e0] sm:$0xff]   ;;  %v7738_v57 = vcombine.high %v4480_v24, %v4480_v24 }
 0x1dc   :  { %8931 = vmatpush3.bf16.msra.mxu1 %v10929_v33 }
 0x1dd   :  { %8932 = vmatprep.subr.bf16.mxu1 %v10931_v31  ;;  %v7740_v31 = vcombine.high %v4481_v14, %v4481_v14  ;;  %v10965_v14 = vld [vmem:[%s15288_s4 + $0x1b8] sm:$0xff]  }
 0x1de   :  { %8893 = vmatpush3.bf16.msra.mxu0 %v10932_v59 }
 0x1df   :  { %8958 = vmatprep.subr.bf16.mxu0 %v10934_v44 }
 0x1e0   :  { %8933 = vmatpush3.bf16.msra.mxu1 %v10933_v43  ;;  %v8420_v15 = vpop.f32.mrb[108].mxu1  ;;  %v7737_v43 = vcombine.low %v4480_v24, %v4480_v24 }
 0x1e1   :  { %8998 = vmatprep.subr.bf16.mxu1 %v10935_v47  ;;  %4992 = vmatmul.mubr.bf16.vlgmr.msra.gmra.mrb[200].mxu0 %v10430_v38  ;;  %v8421_v20 = vpop.f32.mrb[109].mxu1  ;;  %v10955_v38 = vld [vmem:[%s15288_s4 + $0x1e8] sm:$0xff]  }
 0x1e2   :  { %8959 = vmatpush3.bf16.msra.mxu0 %v10936_v55  ;;  %4999 = vmatprep.mubr.bf16.mxu0 %v10436_v48  ;;  %v13406_v25 = vadd.f32 %v8421_v20, %v8420_v15  ;;  %v8423_v27 = vpop.f32.mrb[110].mxu1  ;;  %v10956_v47 = vld [vmem:[%s15288_s4 + $0x128] sm:$0xff]  }
 0x1e3   :  { %5056 = vmatmul.mubr.bf16.vlgmr.msra.gmra.mrb[200].mxu1 %v10433_v39  ;;  %8960 = vmatprep.subr.bf16.mxu0 %v10938_v62  ;;  %v8424_v33 = vpop.f32.mrb[111].mxu1  ;;  %v10958_v62 = vld [vmem:[%s15288_s4 + $0x170] sm:$0xff]   ;;  %v10966_v27 = vld [vmem:[%s15288_s4 + $0x240] sm:$0xff]  }
 0x1e4   :  { %8999 = vmatpush3.bf16.msra.mxu1 %v10937_v50  ;;  %5063 = vmatprep.mubr.bf16.mxu1 %v10438_v51  ;;  %v10957_v51 = vld [vmem:[%s15288_s4 + $0x1a8] sm:$0xff]  }
 0x1e5   :  { %9000 = vmatprep.subr.bf16.mxu1 %v10939_v17  ;;  %v10959_v17 = vld [vmem:[%s15288_s4 + $0x1f0] sm:$0xff]  }
 0x1e6   :  { %8961 = vmatpush3.bf16.msra.mxu0 %v10940_v0  ;;  %v10457_v0 = vld [vmem:[%s15291_s2 + $0x1c] ss:$100 sps:$4 sm:$0xff]  }
 0x1e7   :  { %8962 = vmatprep.subr.bf16.mxu0 %v10942_v4  ;;  %v10961_v4 = vld [vmem:[%s15288_s4 + $0x1b0] sm:$0xff]  }
 0x1e8   :  { %9001 = vmatpush3.bf16.msra.mxu1 %v10941_v1 }
 0x1e9   :  { %9002 = vmatprep.subr.bf16.mxu1 %v10943_v5  ;;  %5000 = vmatmul.mubr.bf16.gmra.mrb[204].mxu0 %v10440_v63  ;;  %v10962_v5 = vld [vmem:[%s15288_s4 + $0x178] sm:$0xff]  }
 0x1ea   :  { %8963 = vmatpush3.bf16.msra.mxu0 %v10944_v9  ;;  %5007 = vmatprep.mubr.bf16.mxu0 %v10442_v7 }
 0x1eb   :  { %5064 = vmatmul.mubr.bf16.gmra.mrb[204].mxu1 %v10441_v49  ;;  %8964 = vmatprep.subr.bf16.mxu0 %v10946_v11  ;;  %v10452_v11 = vld [vmem:[%s15291_s2 + $0x10] ss:$100 sps:$4 sm:$0xff]  }
 0x1ec   :  { %9003 = vmatpush3.bf16.msra.mxu1 %v10945_v10  ;;  %5071 = vmatprep.mubr.bf16.mxu1 %v10444_v23 }
 0x1ed   :  { %9004 = vmatprep.subr.bf16.mxu1 %v10947_v22  ;;  %v10455_v22 = vld [vmem:[%s15291_s2 + $0x18] ss:$100 sps:$4 sm:$0xff]  }
 0x1ee   :  { %8965 = vmatpush3.bf16.msra.mxu0 %v10948_v26 }
 0x1ef   :  { %8966 = vmatprep.subr.bf16.mxu0 %v10950_v18  ;;  %v10967_v18 = vld [vmem:[%s15288_s4 + $0x2c0] sm:$0xff]  }
 0x1f0   :  { %9005 = vmatpush3.bf16.msra.mxu1 %v10949_v61 }
 0x1f1   :  { %9006 = vmatprep.subr.bf16.mxu1 %v10951_v32  ;;  %5008 = vmatmul.mubr.bf16.gmra.mrb[208].mxu0 %v10446_v13 }
 0x1f2   :  { %8967 = vmatpush3.bf16.msra.mxu0 %v10952_v34  ;;  %5015 = vmatprep.mubr.bf16.mxu0 %v7738_v57  ;;  %v10461_v34 = vld [vmem:[%s15291_s2 + $0xe4] ss:$100 sps:$4 sm:$0xff]  }
 0x1f3   :  { %5072 = vmatmul.mubr.bf16.gmra.mrb[208].mxu1 %v10447_v16  ;;  %8968 = vmatprep.subr.bf16.mxu0 %v10954_v37  ;;  %v10964_v16 = vld [vmem:[%s15288_s4 + $0x138] sm:$0xff]  }
 0x1f4   :  { %9007 = vmatpush3.bf16.msra.mxu1 %v10953_v35  ;;  %v8442_v39 = vpop.f32.mrb[104].mxu0  ;;  %5079 = vmatprep.mubr.bf16.mxu1 %v7740_v31  ;;  %v10458_v31 = vld [vmem:[%s15291_s2 + $0xdc] ss:$100 sps:$4 sm:$0xff]  }
 0x1f5   :  { %9008 = vmatprep.subr.bf16.mxu1 %v10955_v38  ;;  %v8443_v42 = vpop.f32.mrb[105].mxu0  ;;  %v10969_v38 = vld [vmem:[%s15288_s4 + $0x280] sm:$0xff]  }
 0x1f6   :  { %v8482_v40 = vpop.f32.mrb[112].mxu1  ;;  %v8444_v53 = vadd.f32 %v8443_v42, %v8442_v39  ;;  %v8445_v44 = vpop.f32.mrb[106].mxu0  ;;  %8969 = vmatpush3.bf16.msra.mxu0 %v10956_v47  ;;  %v10970_v39 = vld [vmem:[%s15288_s4 + $0x248] sm:$0xff]  }
 0x1f7   :  { %v8483_v59 = vpop.f32.mrb[113].mxu1  ;;  %v8446_v55 = vpop.f32.mrb[107].mxu0  ;;  %8970 = vmatprep.subr.bf16.mxu0 %v10958_v62 }
 0x1f8   :  { %v8484_v60 = vadd.f32 %v8483_v59, %v8482_v40  ;;  %v8485_v48 = vpop.f32.mrb[114].mxu1  ;;  %9009 = vmatpush3.bf16.msra.mxu1 %v10957_v51  ;;  %v3669_v52 = vadd.f32 %v8444_v53, %v13269_v30  ;;  %v8447_v63 = vadd.f32 %v8446_v55, %v8445_v44  ;;  %v10960_v30 = vld [vmem:[%s15288_s4 + $0x130] sm:$0xff]   ;;  %v10460_v53 = vld [vmem:[%s15291_s2 + $0xd8] ss:$100 sps:$4 sm:$0xff]   ;;  %v10463_v44 = vld [vmem:[%s15291_s2 + $0xe0] ss:$100 sps:$4 sm:$0xff]  }
 0x1f9   :  { %v8486_v50 = vpop.f32.mrb[115].mxu1  ;;  %9010 = vmatprep.subr.bf16.mxu1 %v10959_v17  ;;  %5016 = vmatmul.mubr.bf16.gmra.mrb[212].mxu0 %v7737_v43 }
 0x1fa   :  { %v8487_v49 = vadd.f32 %v8486_v50, %v8485_v48  ;;  %v3672_v1 = vadd.f32 %v8447_v63, %v13286_v29  ;;  %v13446_v3 = vadd.f32 %v8484_v60, %v3669_v52  ;;  %8971 = vmatpush3.bf16.msra.mxu0 %v10960_v30  ;;  %v10963_v29 = vld [vmem:[%s15288_s4 + $0x1f8] sm:$0xff]   ;;  %5119 = vmatprep.mubr.bf16.mxu0 %v10454_v56  ;;  %v10972_v48 = vld [vmem:[%s15288_s4 + $0x208] sm:$0xff]   ;;  %v10974_v52 = vld [vmem:[%s15288_s4 + $0x250] sm:$0xff]  }
 0x1fb   :  { %5080 = vmatmul.mubr.bf16.gmra.mrb[212].mxu1 %v7739_v46  ;;  %8972 = vmatprep.subr.bf16.mxu0 %v10962_v5  ;;  %v10973_v50 = vld [vmem:[%s15288_s4 + $0x288] sm:$0xff]   ;;  %v10975_v63 = vld [vmem:[%s15288_s4 + $0x2d0] sm:$0xff]  }
 0x1fc   :  { %9011 = vmatpush3.bf16.msra.mxu1 %v10961_v4  ;;  %v13460_v6 = vadd.f32 %v8487_v49, %v3672_v1  ;;  %v8448_v7 = vpop.f32.mrb[108].mxu0  ;;  %5183 = vmatprep.mubr.bf16.mxu1 %v10457_v0  ;;  %v10464_v1 = vld [vmem:[%s15291_s2 + $0x1a4] ss:$100 sps:$4 sm:$0xff]   ;;  %v10467_v30 = vld [vmem:[%s15291_s2 + $0x1ac] ss:$100 sps:$4 sm:$0xff]  }
 0x1fd   :  { %9012 = vmatprep.subr.bf16.mxu1 %v10963_v29  ;;  %v8449_v9 = vpop.f32.mrb[109].mxu0  ;;  %v10977_v29 = vld [vmem:[%s15288_s4 + $0x290] sm:$0xff]  }
 0x1fe   :  { %v8488_v23 = vpop.f32.mrb[116].mxu1  ;;  %v8450_v13 = vadd.f32 %v8449_v9, %v8448_v7  ;;  %v8451_v15 = vpop.f32.mrb[110].mxu0  ;;  %8973 = vmatpush3.bf16.msra.mxu0 %v10964_v16  ;;  %v10978_v7 = vld [vmem:[%s15288_s4 + $0x258] sm:$0xff]   ;;  %v4482_v16 = vld [vmem:[%s15291_s2 + $0x268] sm:$0xff] }
 0x1ff   :  { %v8489_v10 = vpop.f32.mrb[117].mxu1  ;;  %v8452_v26 = vpop.f32.mrb[111].mxu0  ;;  %9038 = vmatprep.subr.bf16.mxu0 %v10966_v27  ;;  %v10981_v27 = vld [vmem:[%s15288_s4 + $0x298] sm:$0xff]  }
 0x200   :  { %v8490_v20 = vadd.f32 %v8489_v10, %v8488_v23  ;;  %v8491_v24 = vpop.f32.mrb[118].mxu1  ;;  %9013 = vmatpush3.bf16.msra.mxu1 %v10965_v14  ;;  %v3677_v32 = vadd.f32 %v8450_v13, %v13317_v45  ;;  %v8453_v33 = vadd.f32 %v8452_v26, %v8451_v15  ;;  %v10968_v45 = vld [vmem:[%s15288_s4 + $0x200] sm:$0xff]   ;;  %v10469_v15 = vld [vmem:[%s15291_s2 + $0x1a8] ss:$100 sps:$4 sm:$0xff]   ;;  %v10980_v26 = vld [vmem:[%s15288_s4 + $0x218] sm:$0xff]  }
 0x201   :  { %v8492_v61 = vpop.f32.mrb[119].mxu1  ;;  %9078 = vmatprep.subr.bf16.mxu1 %v10967_v18  ;;  %5120 = vmatmul.mubr.bf16.vlgmr.msra.gmra.mrb[216].mxu0 %v10452_v11  ;;  %v10466_v11 = vld [vmem:[%s15291_s2 + $0x1a0] ss:$100 sps:$4 sm:$0xff]  }
 0x202   :  { %v8493_v57 = vadd.f32 %v8492_v61, %v8491_v24  ;;  %v3680_v35 = vadd.f32 %v8453_v33, %v13334_v54  ;;  %v13488_v37 = vadd.f32 %v8490_v20, %v3677_v32  ;;  %9039 = vmatpush3.bf16.msra.mxu0 %v10968_v45  ;;  %v10971_v54 = vld [vmem:[%s15288_s4 + $0x2c8] sm:$0xff]   ;;  %5127 = vmatprep.mubr.bf16.mxu0 %v10458_v31  ;;  %v4483_v20 = vld [vmem:[%s15291_s2 + $0x270] sm:$0xff]  ;;  %v10982_v33 = vld [vmem:[%s15288_s4 + $0x260] sm:$0xff]  }
 0x203   :  { %5184 = vmatmul.mubr.bf16.vlgmr.msra.gmra.mrb[216].mxu1 %v10455_v22  ;;  %9040 = vmatprep.subr.bf16.mxu0 %v10970_v39  ;;  %v7744_v45 = vcombine.high %v4483_v20, %v4483_v20  ;;  %v10984_v39 = vld [vmem:[%s15288_s4 + $0x220] sm:$0xff]  }
 0x204   :  { %9079 = vmatpush3.bf16.msra.mxu1 %v10969_v38  ;;  %v13502_v40 = vadd.f32 %v8493_v57, %v3680_v35  ;;  %v8454_v42 = vpop.f32.mrb[112].mxu0  ;;  %5191 = vmatprep.mubr.bf16.mxu1 %v10461_v34  ;;  %v10983_v57 = vld [vmem:[%s15288_s4 + $0x2e0] sm:$0xff]   ;;  %v7742_v35 = vcombine.high %v4482_v16, %v4482_v16 }
 0x205   :  { %9080 = vmatprep.subr.bf16.mxu1 %v10971_v54  ;;  %v8455_v43 = vpop.f32.mrb[113].mxu0  ;;  %v10985_v54 = vld [vmem:[%s15288_s4 + $0x2a0] sm:$0xff]  }
 0x206   :  { %v8494_v59 = vpop.f32.mrb[120].mxu1  ;;  %v8456_v47 = vadd.f32 %v8455_v43, %v8454_v42  ;;  %v8457_v60 = vpop.f32.mrb[114].mxu0  ;;  %9041 = vmatpush3.bf16.msra.mxu0 %v10972_v48  ;;  %v10987_v42 = vld [vmem:[%s15288_s4 + $0x2e8] sm:$0xff]  }
 0x207   :  { %v8495_v46 = vpop.f32.mrb[121].mxu1  ;;  %v8458_v62 = vpop.f32.mrb[115].mxu0  ;;  %9042 = vmatprep.subr.bf16.mxu0 %v10974_v52 }
 0x208   :  { %v8496_v51 = vadd.f32 %v8495_v46, %v8494_v59  ;;  %v8497_v55 = vpop.f32.mrb[122].mxu1  ;;  %9081 = vmatpush3.bf16.msra.mxu1 %v10973_v50  ;;  %v3685_v49 = vadd.f32 %v8456_v47, %v13360_v2  ;;  %v8459_v56 = vadd.f32 %v8458_v62, %v8457_v60  ;;  %v10976_v2 = vld [vmem:[%s15288_s4 + $0x210] sm:$0xff]   ;;  %v7743_v47 = vcombine.low %v4483_v20, %v4483_v20  ;;  %v10989_v62 = vld [vmem:[%s15288_s4 + $0x2a8] sm:$0xff]  }
 0x209   :  { %v8498_v17 = vpop.f32.mrb[123].mxu1  ;;  %9082 = vmatprep.subr.bf16.mxu1 %v10975_v63  ;;  %5128 = vmatmul.mubr.bf16.gmra.mrb[220].mxu0 %v10460_v53  ;;  %v10990_v63 = vld [vmem:[%s15288_s4 + $0x270] sm:$0xff]  }
 0x20a   :  { %v8499_v0 = vadd.f32 %v8498_v17, %v8497_v55  ;;  %v3688_v4 = vadd.f32 %v8459_v56, %v13374_v8  ;;  %v13530_v5 = vadd.f32 %v8496_v51, %v3685_v49  ;;  %9043 = vmatpush3.bf16.msra.mxu0 %v10976_v2  ;;  %v10979_v8 = vld [vmem:[%s15288_s4 + $0x2d8] sm:$0xff]   ;;  %5135 = vmatprep.mubr.bf16.mxu0 %v10464_v1  ;;  %v10988_v51 = vld [vmem:[%s15288_s4 + $0x228] sm:$0xff]   ;;  %v10991_v49 = vld [vmem:[%s15288_s4 + $0x2f0] sm:$0xff]  }
 0x20b   :  { %5192 = vmatmul.mubr.bf16.gmra.mrb[220].mxu1 %v10463_v44  ;;  %9044 = vmatprep.subr.bf16.mxu0 %v10978_v7  ;;  %v7741_v44 = vcombine.low %v4482_v16, %v4482_v16  ;;  %v10993_v7 = vld [vmem:[%s15288_s4 + $0x2b0] sm:$0xff]   ;;  %v10477_v16 = vld [vmem:[%s15291_s2 + $0x28] ss:$100 sps:$4 sm:$0xff]  }
 0x20c   :  { %9083 = vmatpush3.bf16.msra.mxu1 %v10977_v29  ;;  %v13544_v23 = vadd.f32 %v8499_v0, %v3688_v4  ;;  %v8460_v9 = vpop.f32.mrb[116].mxu0  ;;  %5199 = vmatprep.mubr.bf16.mxu1 %v10467_v30  ;;  %v10476_v30 = vld [vmem:[%s15291_s2 + $0x24] ss:$100 sps:$4 sm:$0xff]   ;;  %v10479_v4 = vld [vmem:[%s15291_s2 + $0x2c] ss:$100 sps:$4 sm:$0xff]  }
 0x20d   :  { %9084 = vmatprep.subr.bf16.mxu1 %v10979_v8  ;;  %v8461_v22 = vpop.f32.mrb[117].mxu0  ;;  %v10994_v8 = vld [vmem:[%s15288_s4 + $0x278] sm:$0xff]  }
 0x20e   :  { %v8500_v10 = vpop.f32.mrb[124].mxu1  ;;  %v8462_v24 = vadd.f32 %v8461_v22, %v8460_v9  ;;  %v8463_v14 = vpop.f32.mrb[118].mxu0  ;;  %9045 = vmatpush3.bf16.msra.mxu0 %v10980_v26 }
 0x20f   :  { %v8501_v13 = vpop.f32.mrb[125].mxu1  ;;  %v8464_v32 = vpop.f32.mrb[119].mxu0  ;;  %9046 = vmatprep.subr.bf16.mxu0 %v10982_v33  ;;  %v10996_v14 = vld [vmem:[%s15288_s4 + $0x238] sm:$0xff]   ;;  %v10998_v33 = vld [vmem:[%s15288_s4 + $0x340] sm:$0xff]  }
 0x210   :  { %v8502_v61 = vadd.f32 %v8501_v13, %v8500_v10  ;;  %9085 = vmatpush3.bf16.msra.mxu1 %v10981_v27  ;;  %v8503_v18 = vpop.f32.mrb[126].mxu1  ;;  %v3693_v34 = vadd.f32 %v8462_v24, %v13406_v25  ;;  %v10986_v25 = vld [vmem:[%s15288_s4 + $0x268] sm:$0xff]   ;;  %v10997_v27 = vld [vmem:[%s15288_s4 + $0x2b8] sm:$0xff]  }
 0x211   :  { %9086 = vmatprep.subr.bf16.mxu1 %v10983_v57  ;;  %v8504_v31 = vpop.f32.mrb[127].mxu1  ;;  %5136 = vmatmul.mubr.bf16.gmra.mrb[224].mxu0 %v10466_v11  ;;  %v10999_v57 = vld [vmem:[%s15288_s4 + $0x3c0] sm:$0xff]  }
 0x212   :  { %v13571_v38 = vadd.f32 %v8502_v61, %v3693_v34  ;;  %9047 = vmatpush3.bf16.msra.mxu0 %v10984_v39  ;;  %5143 = vmatprep.mubr.bf16.mxu0 %v7742_v35  ;;  %v10480_v31 = vld [vmem:[%s15291_s2 + $0xec] ss:$100 sps:$4 sm:$0xff]   ;;  %v10483_v39 = vld [vmem:[%s15291_s2 + $0xf4] ss:$100 sps:$4 sm:$0xff]  }
 0x213   :  { %5200 = vmatmul.mubr.bf16.gmra.mrb[224].mxu1 %v10469_v15  ;;  %9048 = vmatprep.subr.bf16.mxu0 %v10986_v25  ;;  %v10474_v15 = vld [vmem:[%s15291_s2 + $0x20] ss:$100 sps:$4 sm:$0xff]  }
 0x214   :  { %9087 = vmatpush3.bf16.msra.mxu1 %v10985_v54  ;;  %v8522_v59 = vpop.f32.mrb[120].mxu0  ;;  %5207 = vmatprep.mubr.bf16.mxu1 %v7744_v45 }
 0x215   :  { %9088 = vmatprep.subr.bf16.mxu1 %v10987_v42  ;;  %v8523_v46 = vpop.f32.mrb[121].mxu0  ;;  %v11000_v42 = vld [vmem:[%s15288_s4 + $0x300] sm:$0xff]  }
 0x216   :  { %v8562_v43 = vpop.f32.mrb[128].mxu1  ;;  %v8524_v60 = vadd.f32 %v8523_v46, %v8522_v59  ;;  %v8525_v48 = vpop.f32.mrb[122].mxu0  ;;  %9049 = vmatpush3.bf16.msra.mxu0 %v10988_v51  ;;  %v11002_v59 = vld [vmem:[%s15288_s4 + $0x348] sm:$0xff]   ;;  %v10485_v46 = vld [vmem:[%s15291_s2 + $0xf0] ss:$100 sps:$4 sm:$0xff]  }
 0x217   :  { %v8563_v53 = vpop.f32.mrb[129].mxu1  ;;  %v8526_v17 = vpop.f32.mrb[123].mxu0  ;;  %9050 = vmatprep.subr.bf16.mxu0 %v10990_v63 }
 0x218   :  { %v8564_v55 = vadd.f32 %v8563_v53, %v8562_v43  ;;  %v8565_v50 = vpop.f32.mrb[130].mxu1  ;;  %9089 = vmatpush3.bf16.msra.mxu1 %v10989_v62  ;;  %v3797_v56 = vadd.f32 %v8524_v60, %v13446_v3  ;;  %v8527_v0 = vadd.f32 %v8526_v17, %v8525_v48  ;;  %v10992_v3 = vld [vmem:[%s15288_s4 + $0x230] sm:$0xff]   ;;  %v10482_v43 = vld [vmem:[%s15291_s2 + $0xe8] ss:$100 sps:$4 sm:$0xff]  }
 0x219   :  { %v8566_v52 = vpop.f32.mrb[131].mxu1  ;;  %9090 = vmatprep.subr.bf16.mxu1 %v10991_v49  ;;  %5144 = vmatmul.mubr.bf16.gmra.mrb[228].mxu0 %v7741_v44 }
 0x21a   :  { %v8567_v1 = vadd.f32 %v8566_v52, %v8565_v50  ;;  %v3800_v2 = vadd.f32 %v8527_v0, %v13460_v6  ;;  %v13605_v29 = vadd.f32 %v8564_v55, %v3797_v56  ;;  %9051 = vmatpush3.bf16.msra.mxu0 %v10992_v3  ;;  %v10995_v6 = vld [vmem:[%s15288_s4 + $0x2f8] sm:$0xff]   ;;  %5247 = vmatprep.mubr.bf16.mxu0 %v10476_v30  ;;  %v11004_v50 = vld [vmem:[%s15288_s4 + $0x308] sm:$0xff]   ;;  %v11006_v56 = vld [vmem:[%s15288_s4 + $0x350] sm:$0xff]  }
 0x21b   :  { %5208 = vmatmul.mubr.bf16.gmra.mrb[228].mxu1 %v7743_v47  ;;  %9052 = vmatprep.subr.bf16.mxu0 %v10994_v8  ;;  %v11005_v52 = vld [vmem:[%s15288_s4 + $0x388] sm:$0xff]   ;;  %v11007_v0 = vld [vmem:[%s15288_s4 + $0x3d0] sm:$0xff]   ;;  %v10489_v3 = vld [vmem:[%s15291_s2 + $0x1bc] ss:$100 sps:$4 sm:$0xff]  }
 0x21c   :  { %9091 = vmatpush3.bf16.msra.mxu1 %v10993_v7  ;;  %v13619_v9 = vadd.f32 %v8567_v1, %v3800_v2  ;;  %v8528_v10 = vpop.f32.mrb[124].mxu0  ;;  %5311 = vmatprep.mubr.bf16.mxu1 %v10479_v4  ;;  %v10486_v1 = vld [vmem:[%s15291_s2 + $0x1b4] ss:$100 sps:$4 sm:$0xff]  }
 0x21d   :  { %9092 = vmatprep.subr.bf16.mxu1 %v10995_v6  ;;  %v8529_v22 = vpop.f32.mrb[125].mxu0  ;;  %v11008_v8 = vld [vmem:[%s15288_s4 + $0x310] sm:$0xff]  }
 0x21e   :  { %v8568_v11 = vpop.f32.mrb[132].mxu1  ;;  %v8530_v20 = vadd.f32 %v8529_v22, %v8528_v10  ;;  %v8531_v24 = vpop.f32.mrb[126].mxu0  ;;  %9053 = vmatpush3.bf16.msra.mxu0 %v10996_v14  ;;  %v11009_v6 = vld [vmem:[%s15288_s4 + $0x390] sm:$0xff]   ;;  %v11010_v10 = vld [vmem:[%s15288_s4 + $0x358] sm:$0xff]  }
 0x21f   :  { %v8569_v13 = vpop.f32.mrb[133].mxu1  ;;  %v8532_v18 = vpop.f32.mrb[127].mxu0  ;;  %9118 = vmatprep.subr.bf16.mxu0 %v10998_v33  ;;  %v10491_v22 = vld [vmem:[%s15291_s2 + $0x1b8] ss:$100 sps:$4 sm:$0xff]  }
 0x220   :  { %v8570_v26 = vadd.f32 %v8569_v13, %v8568_v11  ;;  %v8571_v61 = vpop.f32.mrb[134].mxu1  ;;  %9093 = vmatpush3.bf16.msra.mxu1 %v10997_v27  ;;  %v3805_v34 = vadd.f32 %v8530_v20, %v13488_v37  ;;  %v8533_v35 = vadd.f32 %v8532_v18, %v8531_v24  ;;  %v11001_v37 = vld [vmem:[%s15288_s4 + $0x380] sm:$0xff]   ;;  %v10488_v11 = vld [vmem:[%s15291_s2 + $0x1b0] ss:$100 sps:$4 sm:$0xff]   ;;  %v13712_v13 = vld [vmem:[%s15291_s2 + $0x278] sm:$0xff] }
 0x221   :  { %v8572_v32 = vpop.f32.mrb[135].mxu1  ;;  %9158 = vmatprep.subr.bf16.mxu1 %v10999_v57  ;;  %5248 = vmatmul.mubr.bf16.vlgmr.msra.gmra.mrb[232].mxu0 %v10474_v15  ;;  %v13717_v15 = vld [vmem:[%s15291_s2 + $0x280] sm:$0xff]  ;;  %v11012_v18 = vld [vmem:[%s15288_s4 + $0x318] sm:$0xff]  }
 0x222   :  { %v8573_v45 = vadd.f32 %v8572_v32, %v8571_v61  ;;  %v3808_v54 = vadd.f32 %v8533_v35, %v13502_v40  ;;  %v13647_v25 = vadd.f32 %v8570_v26, %v3805_v34  ;;  %9119 = vmatpush3.bf16.msra.mxu0 %v11000_v42  ;;  %v11003_v40 = vld [vmem:[%s15288_s4 + $0x3c8] sm:$0xff]   ;;  %5255 = vmatprep.mubr.bf16.mxu0 %v10480_v31  ;;  %v11013_v33 = vld [vmem:[%s15288_s4 + $0x398] sm:$0xff]   ;;  %v11014_v34 = vld [vmem:[%s15288_s4 + $0x360] sm:$0xff]  }
 0x223   :  { %5312 = vmatmul.mubr.bf16.vlgmr.msra.gmra.mrb[232].mxu1 %v10477_v16  ;;  %9120 = vmatprep.subr.bf16.mxu0 %v11002_v59  ;;  %v11015_v35 = vld [vmem:[%s15288_s4 + $0x3e0] sm:$0xff]   ;;  %v7748_v42 = vcombine.high %v13717_v15, %v13717_v15 }
 0x224   :  { %9159 = vmatpush3.bf16.msra.mxu1 %v11001_v37  ;;  %v13667_v53 = vadd.f32 %v8573_v45, %v3808_v54  ;;  %v8534_v44 = vpop.f32.mrb[128].mxu0  ;;  %5319 = vmatprep.mubr.bf16.mxu1 %v10483_v39  ;;  %v7746_v54 = vcombine.high %v13712_v13, %v13712_v13  ;;  %v11016_v37 = vld [vmem:[%s15288_s4 + $0x320] sm:$0xff]  }
 0x225   :  { %9160 = vmatprep.subr.bf16.mxu1 %v11003_v40  ;;  %v8535_v60 = vpop.f32.mrb[129].mxu0  ;;  %v11017_v59 = vld [vmem:[%s15288_s4 + $0x3a0] sm:$0xff]  }
 0x226   :  { %v8574_v47 = vpop.f32.mrb[136].mxu1  ;;  %v8536_v51 = vadd.f32 %v8535_v60, %v8534_v44  ;;  %v8537_v55 = vpop.f32.mrb[130].mxu0  ;;  %9121 = vmatpush3.bf16.msra.mxu0 %v11004_v50 }
 0x227   :  { %v8575_v48 = vpop.f32.mrb[137].mxu1  ;;  %v8538_v63 = vpop.f32.mrb[131].mxu0  ;;  %9122 = vmatprep.subr.bf16.mxu0 %v11006_v56 }
 0x228   :  { %v8576_v62 = vadd.f32 %v8575_v48, %v8574_v47  ;;  %v8577_v17 = vpop.f32.mrb[138].mxu1  ;;  %9161 = vmatpush3.bf16.msra.mxu1 %v11005_v52  ;;  %v3813_v30 = vadd.f32 %v8536_v51, %v13530_v5  ;;  %v8539_v4 = vadd.f32 %v8538_v63, %v8537_v55  ;;  %v7745_v48 = vcombine.low %v13712_v13, %v13712_v13  ;;  %v11021_v63 = vld [vmem:[%s15288_s4 + $0x3a8] sm:$0xff]  }
 0x229   :  { %v8578_v49 = vpop.f32.mrb[139].mxu1  ;;  %9162 = vmatprep.subr.bf16.mxu1 %v11007_v0  ;;  %5256 = vmatmul.mubr.bf16.gmra.mrb[236].mxu0 %v10482_v43  ;;  %v11019_v43 = vld [vmem:[%s15288_s4 + $0x3e8] sm:$0xff]   ;;  %v7747_v51 = vcombine.low %v13717_v15, %v13717_v15 }
 0x22a   :  { %v8579_v2 = vadd.f32 %v8578_v49, %v8577_v17  ;;  %v3816_v7 = vadd.f32 %v8539_v4, %v13544_v23  ;;  %9123 = vmatpush3.bf16.msra.mxu0 %v11008_v8  ;;  %v13695_v5 = vadd.f32 %v8576_v62, %v3813_v30  ;;  %v11011_v23 = vld [vmem:[%s15288_s4 + $0x3d8] sm:$0xff]   ;;  %5263 = vmatprep.mubr.bf16.mxu0 %v10486_v1  ;;  %v11020_v62 = vld [vmem:[%s15288_s4 + $0x328] sm:$0xff]   ;;  %v11022_v1 = vld [vmem:[%s15288_s4 + $0x370] sm:$0xff]  }
 0x22b   :  { %5320 = vmatmul.mubr.bf16.gmra.mrb[236].mxu1 %v10485_v46  ;;  %9124 = vmatprep.subr.bf16.mxu0 %v11010_v10  ;;  %v10498_v49 = vld [vmem:[%s15291_s2 + $0x34] ss:$100 sps:$4 sm:$0xff]   ;;  %v10501_v4 = vld [vmem:[%s15291_s2 + $0x3c] ss:$100 sps:$4 sm:$0xff]  }
 0x22c   :  { %9163 = vmatpush3.bf16.msra.mxu1 %v11009_v6  ;;  %v8540_v16 = vpop.f32.mrb[132].mxu0  ;;  %5327 = vmatprep.mubr.bf16.mxu1 %v10489_v3  ;;  %v13719_v24 = vadd.f32 %v8579_v2, %v3816_v7  ;;  %v11023_v30 = vld [vmem:[%s15288_s4 + $0x3f0] sm:$0xff]  }
 0x22d   :  { %9164 = vmatprep.subr.bf16.mxu1 %v11011_v23  ;;  %v8541_v14 = vpop.f32.mrb[133].mxu0  ;;  %v11024_v10 = vld [vmem:[%s15288_s4 + $0x330] sm:$0xff]  }
 0x22e   :  { %v8580_v20 = vpop.f32.mrb[140].mxu1  ;;  %v8542_v61 = vadd.f32 %v8541_v14, %v8540_v16  ;;  %v8543_v27 = vpop.f32.mrb[134].mxu0  ;;  %9125 = vmatpush3.bf16.msra.mxu0 %v11012_v18  ;;  %v11025_v23 = vld [vmem:[%s15288_s4 + $0x3b0] sm:$0xff]  }
 0x22f   :  { %v8581_v26 = vpop.f32.mrb[141].mxu1  ;;  %v8544_v31 = vpop.f32.mrb[135].mxu0  ;;  %9126 = vmatprep.subr.bf16.mxu0 %v11014_v34  ;;  %v11028_v27 = vld [vmem:[%s15288_s4 + $0x338] sm:$0xff]   ;;  %v11030_v34 = vld [vmem:[%s15288_s4 + $0x440] sm:$0xff]  }
 0x230   :  { %v8582_v32 = vadd.f32 %v8581_v26, %v8580_v20  ;;  %9165 = vmatpush3.bf16.msra.mxu1 %v11013_v33  ;;  %v8583_v57 = vpop.f32.mrb[142].mxu1  ;;  %v3821_v39 = vadd.f32 %v8542_v61, %v13571_v38  ;;  %v11018_v38 = vld [vmem:[%s15288_s4 + $0x368] sm:$0xff]   ;;  %v11029_v33 = vld [vmem:[%s15288_s4 + $0x3b8] sm:$0xff]  }
 0x231   :  { %9166 = vmatprep.subr.bf16.mxu1 %v11015_v35  ;;  %v8584_v45 = vpop.f32.mrb[143].mxu1  ;;  %5264 = vmatmul.mubr.bf16.gmra.mrb[240].mxu0 %v10488_v11  ;;  %v11027_v11 = vld [vmem:[%s15288_s4 + $0x3f8] sm:$0xff]   ;;  %v11031_v35 = vld [vmem:[%s15288_s4 + $0x4c0] sm:$0xff]  }
 0x232   :  { %9127 = vmatpush3.bf16.msra.mxu0 %v11016_v37  ;;  %v13744_v40 = vadd.f32 %v8582_v32, %v3821_v39  ;;  %5271 = vmatprep.mubr.bf16.mxu0 %v7746_v54  ;;  %v10505_v37 = vld [vmem:[%s15291_s2 + $0x104] ss:$100 sps:$4 sm:$0xff]  }
 0x233   :  { %5328 = vmatmul.mubr.bf16.gmra.mrb[240].mxu1 %v10491_v22  ;;  %9128 = vmatprep.subr.bf16.mxu0 %v11018_v38  ;;  %v10499_v22 = vld [vmem:[%s15291_s2 + $0x38] ss:$100 sps:$4 sm:$0xff]  }
 0x234   :  { %9167 = vmatpush3.bf16.msra.mxu1 %v11017_v59  ;;  %v8602_v46 = vpop.f32.mrb[136].mxu0  ;;  %5335 = vmatprep.mubr.bf16.mxu1 %v7748_v42  ;;  %v10502_v42 = vld [vmem:[%s15291_s2 + $0xfc] ss:$100 sps:$4 sm:$0xff]  }
 0x235   :  { %9168 = vmatprep.subr.bf16.mxu1 %v11019_v43  ;;  %v8603_v47 = vpop.f32.mrb[137].mxu0  ;;  %v11032_v43 = vld [vmem:[%s15288_s4 + $0x400] sm:$0xff]  }
 0x236   :  { %v8642_v44 = vpop.f32.mrb[144].mxu1  ;;  %v8604_v55 = vadd.f32 %v8603_v47, %v8602_v46  ;;  %v8605_v50 = vpop.f32.mrb[138].mxu0  ;;  %9129 = vmatpush3.bf16.msra.mxu0 %v11020_v62  ;;  %v11034_v46 = vld [vmem:[%s15288_s4 + $0x448] sm:$0xff]  }
 0x237   :  { %v8643_v60 = vpop.f32.mrb[145].mxu1  ;;  %v8606_v56 = vpop.f32.mrb[139].mxu0  ;;  %9130 = vmatprep.subr.bf16.mxu0 %v11022_v1 }
 0x238   :  { %v8644_v17 = vadd.f32 %v8643_v60, %v8642_v44  ;;  %v8645_v52 = vpop.f32.mrb[146].mxu1  ;;  %9169 = vmatpush3.bf16.msra.mxu1 %v11021_v63  ;;  %v8607_v2 = vadd.f32 %v8606_v56, %v8605_v50  ;;  %v3925_v3 = vadd.f32 %v8604_v55, %v13605_v29  ;;  %v11026_v29 = vld [vmem:[%s15288_s4 + $0x378] sm:$0xff]   ;;  %v11035_v44 = vld [vmem:[%s15288_s4 + $0x4c8] sm:$0xff]   ;;  %v10507_v50 = vld [vmem:[%s15291_s2 + $0x100] ss:$100 sps:$4 sm:$0xff]  }
 0x239   :  { %v8646_v0 = vpop.f32.mrb[147].mxu1  ;;  %9170 = vmatprep.subr.bf16.mxu1 %v11023_v30  ;;  %5272 = vmatmul.mubr.bf16.gmra.mrb[244].mxu0 %v7745_v48  ;;  %v10504_v55 = vld [vmem:[%s15291_s2 + $0xf8] ss:$100 sps:$4 sm:$0xff]   ;;  %v11037_v56 = vld [vmem:[%s15288_s4 + $0x488] sm:$0xff]   ;;  %v11038_v30 = vld [vmem:[%s15288_s4 + $0x450] sm:$0xff]  }
 0x23a   :  { %v8647_v7 = vadd.f32 %v8646_v0, %v8645_v52  ;;  %v13775_v8 = vadd.f32 %v8644_v17, %v3925_v3  ;;  %v3928_v6 = vadd.f32 %v8607_v2, %v13619_v9  ;;  %9131 = vmatpush3.bf16.msra.mxu0 %v11024_v10  ;;  %v10496_v9 = vld [vmem:[%s15291_s2 + $0x30] ss:$100 sps:$4 sm:$0xff]   ;;  %5375 = vmatprep.mubr.bf16.mxu0 %v10498_v49  ;;  %v11036_v52 = vld [vmem:[%s15288_s4 + $0x408] sm:$0xff]  }
 0x23b   :  { %5336 = vmatmul.mubr.bf16.gmra.mrb[244].mxu1 %v7747_v51  ;;  %9132 = vmatprep.subr.bf16.mxu0 %v11026_v29  ;;  %v10513_v10 = vld [vmem:[%s15291_s2 + $0x1cc] ss:$100 sps:$4 sm:$0xff]  }
 0x23c   :  { %9171 = vmatpush3.bf16.msra.mxu1 %v11025_v23  ;;  %v13796_v13 = vadd.f32 %v8647_v7, %v3928_v6  ;;  %v8608_v15 = vpop.f32.mrb[140].mxu0  ;;  %5439 = vmatprep.mubr.bf16.mxu1 %v10501_v4  ;;  %v11039_v4 = vld [vmem:[%s15288_s4 + $0x4d0] sm:$0xff]   ;;  %v10510_v6 = vld [vmem:[%s15291_s2 + $0x1c4] ss:$100 sps:$4 sm:$0xff]  }
 0x23d   :  { %9172 = vmatprep.subr.bf16.mxu1 %v11027_v11  ;;  %v8609_v20 = vpop.f32.mrb[141].mxu0  ;;  %v11041_v11 = vld [vmem:[%s15288_s4 + $0x490] sm:$0xff]  }
 0x23e   :  { %v8648_v16 = vpop.f32.mrb[148].mxu1  ;;  %v8610_v26 = vadd.f32 %v8609_v20, %v8608_v15  ;;  %v8611_v61 = vpop.f32.mrb[142].mxu0  ;;  %9133 = vmatpush3.bf16.msra.mxu0 %v11028_v27  ;;  %v10508_v20 = vld [vmem:[%s15291_s2 + $0x1c0] ss:$100 sps:$4 sm:$0xff]   ;;  %v4486_v27 = vld [vmem:[%s15291_s2 + $0x288] sm:$0xff] }
 0x23f   :  { %v8649_v14 = vpop.f32.mrb[149].mxu1  ;;  %v8612_v57 = vpop.f32.mrb[143].mxu0  ;;  %9198 = vmatprep.subr.bf16.mxu0 %v11030_v34  ;;  %v11045_v34 = vld [vmem:[%s15288_s4 + $0x498] sm:$0xff]  }
 0x240   :  { %v8650_v18 = vadd.f32 %v8649_v14, %v8648_v16  ;;  %v8651_v32 = vpop.f32.mrb[150].mxu1  ;;  %9173 = vmatpush3.bf16.msra.mxu1 %v11029_v33  ;;  %v8613_v45 = vadd.f32 %v8612_v57, %v8611_v61  ;;  %v3933_v39 = vadd.f32 %v8610_v26, %v13647_v25  ;;  %v11033_v25 = vld [vmem:[%s15288_s4 + $0x480] sm:$0xff]   ;;  %v10511_v61 = vld [vmem:[%s15291_s2 + $0x1c8] ss:$100 sps:$4 sm:$0xff]   ;;  %v11044_v57 = vld [vmem:[%s15288_s4 + $0x418] sm:$0xff]  }
 0x241   :  { %v8652_v31 = vpop.f32.mrb[151].mxu1  ;;  %9238 = vmatprep.subr.bf16.mxu1 %v11031_v35  ;;  %5376 = vmatmul.mubr.bf16.vlgmr.msra.gmra.mrb[248].mxu0 %v10496_v9  ;;  %v11042_v9 = vld [vmem:[%s15288_s4 + $0x458] sm:$0xff]  }
 0x242   :  { %v8653_v54 = vadd.f32 %v8652_v31, %v8651_v32  ;;  %v13817_v59 = vadd.f32 %v8650_v18, %v3933_v39  ;;  %v3936_v38 = vadd.f32 %v8613_v45, %v13667_v53  ;;  %9199 = vmatpush3.bf16.msra.mxu0 %v11032_v43  ;;  %5383 = vmatprep.mubr.bf16.mxu0 %v10502_v42  ;;  %v4487_v18 = vld [vmem:[%s15291_s2 + $0x290] sm:$0xff]  ;;  %v11046_v39 = vld [vmem:[%s15288_s4 + $0x460] sm:$0xff]  }
 0x243   :  { %5440 = vmatmul.mubr.bf16.vlgmr.msra.gmra.mrb[248].mxu1 %v10499_v22  ;;  %9200 = vmatprep.subr.bf16.mxu0 %v11034_v46  ;;  %v7752_v43 = vcombine.high %v4487_v18, %v4487_v18  ;;  %v11048_v46 = vld [vmem:[%s15288_s4 + $0x420] sm:$0xff]  }
 0x244   :  { %9239 = vmatpush3.bf16.msra.mxu1 %v11033_v25  ;;  %v13832_v53 = vadd.f32 %v8653_v54, %v3936_v38  ;;  %v8614_v47 = vpop.f32.mrb[144].mxu0  ;;  %5447 = vmatprep.mubr.bf16.mxu1 %v10505_v37  ;;  %v11047_v54 = vld [vmem:[%s15288_s4 + $0x4e0] sm:$0xff]   ;;  %v7750_v38 = vcombine.high %v4486_v27, %v4486_v27 }
 0x245   :  { %9240 = vmatprep.subr.bf16.mxu1 %v11035_v44  ;;  %v8615_v48 = vpop.f32.mrb[145].mxu0  ;;  %v11049_v44 = vld [vmem:[%s15288_s4 + $0x4a0] sm:$0xff]  }
 0x246   :  { %v8654_v60 = vpop.f32.mrb[152].mxu1  ;;  %v8616_v62 = vadd.f32 %v8615_v48, %v8614_v47  ;;  %v8617_v17 = vpop.f32.mrb[146].mxu0  ;;  %9201 = vmatpush3.bf16.msra.mxu0 %v11036_v52  ;;  %v11051_v47 = vld [vmem:[%s15288_s4 + $0x4e8] sm:$0xff]  }
 0x247   :  { %v8655_v51 = vpop.f32.mrb[153].mxu1  ;;  %v8618_v0 = vpop.f32.mrb[147].mxu0  ;;  %9202 = vmatprep.subr.bf16.mxu0 %v11038_v30 }
 0x248   :  { %v8656_v63 = vadd.f32 %v8655_v51, %v8654_v60  ;;  %v8657_v49 = vpop.f32.mrb[154].mxu1  ;;  %9241 = vmatpush3.bf16.msra.mxu1 %v11037_v56  ;;  %v3941_v2 = vadd.f32 %v8616_v62, %v13695_v5  ;;  %v8619_v3 = vadd.f32 %v8618_v0, %v8617_v17  ;;  %v11040_v5 = vld [vmem:[%s15288_s4 + $0x410] sm:$0xff]   ;;  %v7751_v62 = vcombine.low %v4487_v18, %v4487_v18  ;;  %v11053_v0 = vld [vmem:[%s15288_s4 + $0x4a8] sm:$0xff]  }
 0x249   :  { %v8658_v1 = vpop.f32.mrb[155].mxu1  ;;  %9242 = vmatprep.subr.bf16.mxu1 %v11039_v4  ;;  %5384 = vmatmul.mubr.bf16.gmra.mrb[252].mxu0 %v10504_v55  ;;  %v11054_v4 = vld [vmem:[%s15288_s4 + $0x470] sm:$0xff]  }
 0x24a   :  { %v8659_v7 = vadd.f32 %v8658_v1, %v8657_v49  ;;  %v3944_v23 = vadd.f32 %v8619_v3, %v13719_v24  ;;  %v13860_v29 = vadd.f32 %v8656_v63, %v3941_v2  ;;  %9203 = vmatpush3.bf16.msra.mxu0 %v11040_v5  ;;  %v11043_v24 = vld [vmem:[%s15288_s4 + $0x4d8] sm:$0xff]   ;;  %5391 = vmatprep.mubr.bf16.mxu0 %v10510_v6  ;;  %v11052_v63 = vld [vmem:[%s15288_s4 + $0x428] sm:$0xff]   ;;  %v11055_v2 = vld [vmem:[%s15288_s4 + $0x4f0] sm:$0xff]  }
 0x24b   :  { %5448 = vmatmul.mubr.bf16.gmra.mrb[252].mxu1 %v10507_v50  ;;  %9204 = vmatprep.subr.bf16.mxu0 %v11042_v9  ;;  %v7749_v50 = vcombine.low %v4486_v27, %v4486_v27  ;;  %v11057_v9 = vld [vmem:[%s15288_s4 + $0x4b0] sm:$0xff]   ;;  %v10521_v27 = vld [vmem:[%s15291_s2 + $0x48] ss:$100 sps:$4 sm:$0xff]  }
 0x24c   :  { %9243 = vmatpush3.bf16.msra.mxu1 %v11041_v11  ;;  %v13874_v22 = vadd.f32 %v8659_v7, %v3944_v23  ;;  %v8620_v15 = vpop.f32.mrb[148].mxu0  ;;  %5455 = vmatprep.mubr.bf16.mxu1 %v10513_v10  ;;  %v10520_v10 = vld [vmem:[%s15291_s2 + $0x44] ss:$100 sps:$4 sm:$0xff]   ;;  %v10523_v23 = vld [vmem:[%s15291_s2 + $0x4c] ss:$100 sps:$4 sm:$0xff]  }
 0x24d   :  { %9244 = vmatprep.subr.bf16.mxu1 %v11043_v24  ;;  %v8621_v14 = vpop.f32.mrb[149].mxu0  ;;  %v11058_v24 = vld [vmem:[%s15288_s4 + $0x478] sm:$0xff]  }
 0x24e   :  { %v8660_v16 = vpop.f32.mrb[156].mxu1  ;;  %v8622_v32 = vadd.f32 %v8621_v14, %v8620_v15  ;;  %v8623_v33 = vpop.f32.mrb[150].mxu0  ;;  %9205 = vmatpush3.bf16.msra.mxu0 %v11044_v57 }
 0x24f   :  { %v8661_v26 = vpop.f32.mrb[157].mxu1  ;;  %v8624_v45 = vpop.f32.mrb[151].mxu0  ;;  %9206 = vmatprep.subr.bf16.mxu0 %v11046_v39  ;;  %v11060_v33 = vld [vmem:[%s15288_s4 + $0x438] sm:$0xff]   ;;  %v11062_v39 = vld [vmem:[%s15288_s4 + $0x540] sm:$0xff]  }
 0x250   :  { %v8662_v31 = vadd.f32 %v8661_v26, %v8660_v16  ;;  %9245 = vmatpush3.bf16.msra.mxu1 %v11045_v34  ;;  %v8663_v35 = vpop.f32.mrb[158].mxu1  ;;  %v3949_v37 = vadd.f32 %v8622_v32, %v13744_v40  ;;  %v11050_v40 = vld [vmem:[%s15288_s4 + $0x468] sm:$0xff]   ;;  %v11061_v34 = vld [vmem:[%s15288_s4 + $0x4b8] sm:$0xff]  }
 0x251   :  { %9246 = vmatprep.subr.bf16.mxu1 %v11047_v54  ;;  %v8664_v42 = vpop.f32.mrb[159].mxu1  ;;  %5392 = vmatmul.mubr.bf16.gmra.mrb[0].mxu0 %v10508_v20  ;;  %v11063_v54 = vld [vmem:[%s15288_s4 + $0x5c0] sm:$0xff]  }
 0x252   :  { %v13901_v25 = vadd.f32 %v8662_v31, %v3949_v37  ;;  %9207 = vmatpush3.bf16.msra.mxu0 %v11048_v46  ;;  %5399 = vmatprep.mubr.bf16.mxu0 %v7750_v38  ;;  %v10529_v46 = vld [vmem:[%s15291_s2 + $0x114] ss:$100 sps:$4 sm:$0xff]  }
 0x253   :  { %5456 = vmatmul.mubr.bf16.gmra.mrb[0].mxu1 %v10511_v61  ;;  %9208 = vmatprep.subr.bf16.mxu0 %v11050_v40  ;;  %v10518_v61 = vld [vmem:[%s15291_s2 + $0x40] ss:$100 sps:$4 sm:$0xff]  }
 0x254   :  { %9247 = vmatpush3.bf16.msra.mxu1 %v11049_v44  ;;  %v8682_v60 = vpop.f32.mrb[152].mxu0  ;;  %5463 = vmatprep.mubr.bf16.mxu1 %v7752_v43  ;;  %v10526_v43 = vld [vmem:[%s15291_s2 + $0x10c] ss:$100 sps:$4 sm:$0xff]  }
 0x255   :  { %9248 = vmatprep.subr.bf16.mxu1 %v11051_v47  ;;  %v8683_v51 = vpop.f32.mrb[153].mxu0  ;;  %v11065_v47 = vld [vmem:[%s15288_s4 + $0x580] sm:$0xff]  }
 0x256   :  { %v8722_v48 = vpop.f32.mrb[160].mxu1  ;;  %v8684_v17 = vadd.f32 %v8683_v51, %v8682_v60  ;;  %v8685_v52 = vpop.f32.mrb[154].mxu0  ;;  %9209 = vmatpush3.bf16.msra.mxu0 %v11052_v63  ;;  %v11066_v60 = vld [vmem:[%s15288_s4 + $0x548] sm:$0xff]  }
 0x257   :  { %v8723_v55 = vpop.f32.mrb[161].mxu1  ;;  %v8686_v1 = vpop.f32.mrb[155].mxu0  ;;  %9210 = vmatprep.subr.bf16.mxu0 %v11054_v4 }
 0x258   :  { %v8724_v49 = vadd.f32 %v8723_v55, %v8722_v48  ;;  %v8725_v56 = vpop.f32.mrb[162].mxu1  ;;  %9249 = vmatpush3.bf16.msra.mxu1 %v11053_v0  ;;  %v4053_v3 = vadd.f32 %v8684_v17, %v13775_v8  ;;  %v8687_v7 = vadd.f32 %v8686_v1, %v8685_v52  ;;  %v11056_v8 = vld [vmem:[%s15288_s4 + $0x430] sm:$0xff]   ;;  %v10524_v17 = vld [vmem:[%s15291_s2 + $0x108] ss:$100 sps:$4 sm:$0xff]  }
 0x259   :  { %v8726_v30 = vpop.f32.mrb[163].mxu1  ;;  %9250 = vmatprep.subr.bf16.mxu1 %v11055_v2  ;;  %5400 = vmatmul.mubr.bf16.gmra.mrb[4].mxu0 %v7749_v50  ;;  %v10527_v52 = vld [vmem:[%s15291_s2 + $0x110] ss:$100 sps:$4 sm:$0xff]  }
 0x25a   :  { %v8727_v6 = vadd.f32 %v8726_v30, %v8725_v56  ;;  %v4056_v5 = vadd.f32 %v8687_v7, %v13796_v13  ;;  %v13935_v11 = vadd.f32 %v8724_v49, %v4053_v3  ;;  %9211 = vmatpush3.bf16.msra.mxu0 %v11056_v8  ;;  %v11059_v13 = vld [vmem:[%s15288_s4 + $0x4f8] sm:$0xff]   ;;  %5503 = vmatprep.mubr.bf16.mxu0 %v10520_v10  ;;  %v11068_v56 = vld [vmem:[%s15288_s4 + $0x508] sm:$0xff]   ;;  %v11070_v3 = vld [vmem:[%s15288_s4 + $0x550] sm:$0xff]  }
 0x25b   :  { %5464 = vmatmul.mubr.bf16.gmra.mrb[4].mxu1 %v7751_v62  ;;  %9212 = vmatprep.subr.bf16.mxu0 %v11058_v24  ;;  %v11069_v30 = vld [vmem:[%s15288_s4 + $0x588] sm:$0xff]   ;;  %v11071_v7 = vld [vmem:[%s15288_s4 + $0x5d0] sm:$0xff]   ;;  %v10535_v8 = vld [vmem:[%s15291_s2 + $0x1dc] ss:$100 sps:$4 sm:$0xff]  }
 0x25c   :  { %9251 = vmatpush3.bf16.msra.mxu1 %v11057_v9  ;;  %v13949_v15 = vadd.f32 %v8727_v6, %v4056_v5  ;;  %v8688_v16 = vpop.f32.mrb[156].mxu0  ;;  %5567 = vmatprep.mubr.bf16.mxu1 %v10523_v23  ;;  %v10532_v5 = vld [vmem:[%s15291_s2 + $0x1d4] ss:$100 sps:$4 sm:$0xff]  }
 0x25d   :  { %9252 = vmatprep.subr.bf16.mxu1 %v11059_v13  ;;  %v8689_v14 = vpop.f32.mrb[157].mxu0  ;;  %v11073_v13 = vld [vmem:[%s15288_s4 + $0x590] sm:$0xff]  }
 0x25e   :  { %v8728_v20 = vpop.f32.mrb[164].mxu1  ;;  %v8690_v18 = vadd.f32 %v8689_v14, %v8688_v16  ;;  %v8691_v32 = vpop.f32.mrb[158].mxu0  ;;  %9213 = vmatpush3.bf16.msra.mxu0 %v11060_v33  ;;  %v11074_v16 = vld [vmem:[%s15288_s4 + $0x558] sm:$0xff]  }
 0x25f   :  { %v8729_v26 = vpop.f32.mrb[165].mxu1  ;;  %v8692_v35 = vpop.f32.mrb[159].mxu0  ;;  %9278 = vmatprep.subr.bf16.mxu0 %v11062_v39  ;;  %v4488_v33 = vld [vmem:[%s15291_s2 + $0x298] sm:$0xff] }
 0x260   :  { %v8730_v57 = vadd.f32 %v8729_v26, %v8728_v20  ;;  %v8731_v31 = vpop.f32.mrb[166].mxu1  ;;  %9253 = vmatpush3.bf16.msra.mxu1 %v11061_v34  ;;  %v4061_v42 = vadd.f32 %v8690_v18, %v13817_v59  ;;  %v8693_v37 = vadd.f32 %v8692_v35, %v8691_v32  ;;  %v11064_v59 = vld [vmem:[%s15288_s4 + $0x500] sm:$0xff]   ;;  %v10533_v32 = vld [vmem:[%s15291_s2 + $0x1d8] ss:$100 sps:$4 sm:$0xff]  }
 0x261   :  { %v8732_v45 = vpop.f32.mrb[167].mxu1  ;;  %9318 = vmatprep.subr.bf16.mxu1 %v11063_v54  ;;  %5504 = vmatmul.mubr.bf16.vlgmr.msra.gmra.mrb[8].mxu0 %v10518_v61  ;;  %v10530_v61 = vld [vmem:[%s15291_s2 + $0x1d0] ss:$100 sps:$4 sm:$0xff]   ;;  %v11076_v35 = vld [vmem:[%s15288_s4 + $0x518] sm:$0xff]  }
 0x262   :  { %v8733_v38 = vadd.f32 %v8732_v45, %v8731_v31  ;;  %v4064_v44 = vadd.f32 %v8693_v37, %v13832_v53  ;;  %v13977_v40 = vadd.f32 %v8730_v57, %v4061_v42  ;;  %9279 = vmatpush3.bf16.msra.mxu0 %v11064_v59  ;;  %v11067_v53 = vld [vmem:[%s15288_s4 + $0x5c8] sm:$0xff]   ;;  %5511 = vmatprep.mubr.bf16.mxu0 %v10526_v43  ;;  %v4489_v57 = vld [vmem:[%s15291_s2 + $0x2a0] sm:$0xff]  ;;  %v11077_v39 = vld [vmem:[%s15288_s4 + $0x598] sm:$0xff]  }
 0x263   :  { %5568 = vmatmul.mubr.bf16.vlgmr.msra.gmra.mrb[8].mxu1 %v10521_v27  ;;  %9280 = vmatprep.subr.bf16.mxu0 %v11066_v60  ;;  %v11078_v37 = vld [vmem:[%s15288_s4 + $0x560] sm:$0xff]   ;;  %v7756_v59 = vcombine.high %v4489_v57, %v4489_v57 }
 0x264   :  { %9319 = vmatpush3.bf16.msra.mxu1 %v11065_v47  ;;  %v13991_v48 = vadd.f32 %v8733_v38, %v4064_v44  ;;  %v8694_v51 = vpop.f32.mrb[160].mxu0  ;;  %5575 = vmatprep.mubr.bf16.mxu1 %v10529_v46  ;;  %v11079_v38 = vld [vmem:[%s15288_s4 + $0x5e0] sm:$0xff]   ;;  %v7754_v44 = vcombine.high %v4488_v33, %v4488_v33 }
 0x265   :  { %9320 = vmatprep.subr.bf16.mxu1 %v11067_v53  ;;  %v8695_v50 = vpop.f32.mrb[161].mxu0  ;;  %v11080_v60 = vld [vmem:[%s15288_s4 + $0x520] sm:$0xff]  }
 0x266   :  { %v8734_v55 = vpop.f32.mrb[168].mxu1  ;;  %v8696_v63 = vadd.f32 %v8695_v50, %v8694_v51  ;;  %v8697_v49 = vpop.f32.mrb[162].mxu0  ;;  %9281 = vmatpush3.bf16.msra.mxu0 %v11068_v56  ;;  %v11081_v53 = vld [vmem:[%s15288_s4 + $0x5a0] sm:$0xff]   ;;  %v11083_v51 = vld [vmem:[%s15288_s4 + $0x5e8] sm:$0xff]  }
 0x267   :  { %v8735_v62 = vpop.f32.mrb[169].mxu1  ;;  %v8698_v4 = vpop.f32.mrb[163].mxu0  ;;  %9282 = vmatprep.subr.bf16.mxu0 %v11070_v3 }
 0x268   :  { %v8736_v0 = vadd.f32 %v8735_v62, %v8734_v55  ;;  %v8737_v1 = vpop.f32.mrb[170].mxu1  ;;  %9321 = vmatpush3.bf16.msra.mxu1 %v11069_v30  ;;  %v4069_v6 = vadd.f32 %v8696_v63, %v13860_v29  ;;  %v8699_v10 = vadd.f32 %v8698_v4, %v8697_v49  ;;  %v11072_v29 = vld [vmem:[%s15288_s4 + $0x510] sm:$0xff]   ;;  %v7755_v63 = vcombine.low %v4489_v57, %v4489_v57  ;;  %v11085_v4 = vld [vmem:[%s15288_s4 + $0x5a8] sm:$0xff]  }
 0x269   :  { %v8738_v2 = vpop.f32.mrb[171].mxu1  ;;  %9322 = vmatprep.subr.bf16.mxu1 %v11071_v7  ;;  %5512 = vmatmul.mubr.bf16.gmra.mrb[12].mxu0 %v10524_v17  ;;  %v11086_v7 = vld [vmem:[%s15288_s4 + $0x570] sm:$0xff]  }
 0x26a   :  { %v8739_v23 = vadd.f32 %v8738_v2, %v8737_v1  ;;  %v4072_v9 = vadd.f32 %v8699_v10, %v13874_v22  ;;  %v14019_v24 = vadd.f32 %v8736_v0, %v4069_v6  ;;  %9283 = vmatpush3.bf16.msra.mxu0 %v11072_v29  ;;  %v11075_v22 = vld [vmem:[%s15288_s4 + $0x5d8] sm:$0xff]   ;;  %5519 = vmatprep.mubr.bf16.mxu0 %v10532_v5  ;;  %v11084_v0 = vld [vmem:[%s15288_s4 + $0x528] sm:$0xff]   ;;  %v11087_v6 = vld [vmem:[%s15288_s4 + $0x5f0] sm:$0xff]  }
 0x26b   :  { %5576 = vmatmul.mubr.bf16.gmra.mrb[12].mxu1 %v10527_v52  ;;  %9284 = vmatprep.subr.bf16.mxu0 %v11074_v16  ;;  %v7753_v52 = vcombine.low %v4488_v33, %v4488_v33  ;;  %v11089_v16 = vld [vmem:[%s15288_s4 + $0x5b0] sm:$0xff]   ;;  %v10543_v33 = vld [vmem:[%s15291_s2 + $0x58] ss:$100 sps:$4 sm:$0xff]  }
 0x26c   :  { %9323 = vmatpush3.bf16.msra.mxu1 %v11073_v13  ;;  %v14033_v20 = vadd.f32 %v8739_v23, %v4072_v9  ;;  %v8700_v14 = vpop.f32.mrb[164].mxu0  ;;  %5583 = vmatprep.mubr.bf16.mxu1 %v10535_v8  ;;  %v10542_v8 = vld [vmem:[%s15291_s2 + $0x54] ss:$100 sps:$4 sm:$0xff]   ;;  %v10545_v9 = vld [vmem:[%s15291_s2 + $0x5c] ss:$100 sps:$4 sm:$0xff]  }
 0x26d   :  { %9324 = vmatprep.subr.bf16.mxu1 %v11075_v22  ;;  %v8701_v27 = vpop.f32.mrb[165].mxu0  ;;  %v11090_v22 = vld [vmem:[%s15288_s4 + $0x578] sm:$0xff]  }
 0x26e   :  { %v8740_v26 = vpop.f32.mrb[172].mxu1  ;;  %v8702_v31 = vadd.f32 %v8701_v27, %v8700_v14  ;;  %v8703_v34 = vpop.f32.mrb[166].mxu0  ;;  %9285 = vmatpush3.bf16.msra.mxu0 %v11076_v35 }
 0x26f   :  { %v8741_v18 = vpop.f32.mrb[173].mxu1  ;;  %v8704_v42 = vpop.f32.mrb[167].mxu0  ;;  %9286 = vmatprep.subr.bf16.mxu0 %v11078_v37  ;;  %v11092_v34 = vld [vmem:[%s15288_s4 + $0x538] sm:$0xff]   ;;  %v11094_v37 = vld [vmem:[%s15288_s4 + $0x600] sm:$0xff]  }
 0x270   :  { %v8742_v45 = vadd.f32 %v8741_v18, %v8740_v26  ;;  %9325 = vmatpush3.bf16.msra.mxu1 %v11077_v39  ;;  %v8743_v54 = vpop.f32.mrb[174].mxu1  ;;  %v4077_v46 = vadd.f32 %v8702_v31, %v13901_v25  ;;  %v11082_v25 = vld [vmem:[%s15288_s4 + $0x568] sm:$0xff]   ;;  %v11093_v39 = vld [vmem:[%s15288_s4 + $0x5b8] sm:$0xff]  }
 0x271   :  { %9326 = vmatprep.subr.bf16.mxu1 %v11079_v38  ;;  %v8744_v43 = vpop.f32.mrb[175].mxu1  ;;  %5520 = vmatmul.mubr.bf16.gmra.mrb[16].mxu0 %v10530_v61  ;;  %v11095_v38 = vld [vmem:[%s15288_s4 + $0x40] sm:$0xff]  }
 0x272   :  { %v14060_v47 = vadd.f32 %v8742_v45, %v4077_v46  ;;  %9287 = vmatpush3.bf16.msra.mxu0 %v11080_v60  ;;  %5527 = vmatprep.mubr.bf16.mxu0 %v7754_v44  ;;  %v10551_v60 = vld [vmem:[%s15291_s2 + $0x124] ss:$100 sps:$4 sm:$0xff]  }
 0x273   :  { %5584 = vmatmul.mubr.bf16.gmra.mrb[16].mxu1 %v10533_v32  ;;  %9288 = vmatprep.subr.bf16.mxu0 %v11082_v25  ;;  %v10540_v32 = vld [vmem:[%s15291_s2 + $0x50] ss:$100 sps:$4 sm:$0xff]  }
 0x274   :  { %9327 = vmatpush3.bf16.msra.mxu1 %v11081_v53  ;;  %v8762_v55 = vpop.f32.mrb[168].mxu0  ;;  %5591 = vmatprep.mubr.bf16.mxu1 %v7756_v59  ;;  %v10548_v59 = vld [vmem:[%s15291_s2 + $0x11c] ss:$100 sps:$4 sm:$0xff]  }
 0x275   :  { %9328 = vmatprep.subr.bf16.mxu1 %v11083_v51  ;;  %v8763_v62 = vpop.f32.mrb[169].mxu0  ;;  %v11097_v51 = vld [vmem:[%s15288_s4 + $0x608] sm:$0xff]  }
 0x276   :  { %v8802_v50 = vpop.f32.mrb[176].mxu1  ;;  %v8764_v49 = vadd.f32 %v8763_v62, %v8762_v55  ;;  %v8765_v56 = vpop.f32.mrb[170].mxu0  ;;  %9289 = vmatpush3.bf16.msra.mxu0 %v11084_v0  ;;  %v11098_v55 = vld [vmem:[%s15288_s4 + $0x48] sm:$0xff]  }
 0x277   :  { %v8803_v17 = vpop.f32.mrb[177].mxu1  ;;  %v8766_v2 = vpop.f32.mrb[171].mxu0  ;;  %9290 = vmatprep.subr.bf16.mxu0 %v11086_v7  ;;  %v11100_v7 = vld [vmem:[%s15288_s4 + $0x610] sm:$0xff]  }
 0x278   :  { %v8804_v1 = vadd.f32 %v8803_v17, %v8802_v50  ;;  %v8805_v30 = vpop.f32.mrb[178].mxu1  ;;  %9329 = vmatpush3.bf16.msra.mxu1 %v11085_v4  ;;  %v4181_v10 = vadd.f32 %v8764_v49, %v13935_v11  ;;  %v8767_v23 = vadd.f32 %v8766_v2, %v8765_v56  ;;  %v11088_v11 = vld [vmem:[%s15288_s4 + $0x530] sm:$0xff]   ;;  %v10549_v49 = vld [vmem:[%s15291_s2 + $0x120] ss:$100 sps:$4 sm:$0xff]   ;;  %v11099_v4 = vld [vmem:[%s15288_s4 + $0x8] sm:$0xff]  }
 0x279   :  { %v8806_v3 = vpop.f32.mrb[179].mxu1  ;;  %9330 = vmatprep.subr.bf16.mxu1 %v11087_v6  ;;  %5528 = vmatmul.mubr.bf16.gmra.mrb[20].mxu0 %v7753_v52  ;;  %v11101_v6 = vld [vmem:[%s15288_s4 + $0x50] sm:$0xff]  }
 0x27a   :  { %v8807_v5 = vadd.f32 %v8806_v3, %v8805_v30  ;;  %v4184_v29 = vadd.f32 %v8767_v23, %v13949_v15  ;;  %v14094_v13 = vadd.f32 %v8804_v1, %v4181_v10  ;;  %9291 = vmatpush3.bf16.msra.mxu0 %v11088_v11  ;;  %v11091_v15 = vld [vmem:[%s15288_s4 + $0x5f8] sm:$0xff]   ;;  %5631 = vmatprep.mubr.bf16.mxu0 %v10542_v8  ;;  %v10554_v8 = vld [vmem:[%s15291_s2 + $0x1e4] ss:$100 sps:$4 sm:$0xff]  }
 0x27b   :  { %5592 = vmatmul.mubr.bf16.gmra.mrb[20].mxu1 %v7755_v63  ;;  %9292 = vmatprep.subr.bf16.mxu0 %v11090_v22  ;;  %v10546_v63 = vld [vmem:[%s15291_s2 + $0x118] ss:$100 sps:$4 sm:$0xff]  }
 0x27c   :  { %9331 = vmatpush3.bf16.msra.mxu1 %v11089_v16  ;;  %v14108_v14 = vadd.f32 %v8807_v5, %v4184_v29  ;;  %v8768_v26 = vpop.f32.mrb[172].mxu0  ;;  %5695 = vmatprep.mubr.bf16.mxu1 %v10545_v9  ;;  %v10557_v9 = vld [vmem:[%s15291_s2 + $0x1ec] ss:$100 sps:$4 sm:$0xff]   ;;  %v11103_v16 = vld [vmem:[%s15288_s4 + $0x618] sm:$0xff]  }
 0x27d   :  { %9332 = vmatprep.subr.bf16.mxu1 %v11091_v15  ;;  %v8769_v27 = vpop.f32.mrb[173].mxu0  ;;  %v11104_v22 = vld [vmem:[%s15288_s4 + $0x58] sm:$0xff]  }
 0x27e   :  { %v8808_v61 = vpop.f32.mrb[180].mxu1  ;;  %v8770_v57 = vadd.f32 %v8769_v27, %v8768_v26  ;;  %v8771_v31 = vpop.f32.mrb[174].mxu0  ;;  %9293 = vmatpush3.bf16.msra.mxu0 %v11092_v34 }
 0x27f   :  { %v8809_v18 = vpop.f32.mrb[181].mxu1  ;;  %v8772_v54 = vpop.f32.mrb[175].mxu0  ;;  %9910 = vmatprep.subr.bf16.mxu0 %v11094_v37 }
 0x280   :  { %v8810_v35 = vadd.f32 %v8809_v18, %v8808_v61  ;;  %v8811_v45 = vpop.f32.mrb[182].mxu1  ;;  %9333 = vmatpush3.bf16.msra.mxu1 %v11093_v39  ;;  %v4189_v43 = vadd.f32 %v8770_v57, %v13977_v40  ;;  %v8773_v46 = vadd.f32 %v8772_v54, %v8771_v31  ;;  %v11096_v40 = vld [vmem:[%s15288_s4] sm:$0xff]   ;;  %v4491_v57 = vld [vmem:[%s15291_s2 + $0x2b0] sm:$0xff] }
 0x281   :  { %v8812_v42 = vpop.f32.mrb[183].mxu1  ;;  %9370 = vmatprep.subr.bf16.mxu1 %v11095_v38  ;;  %5632 = vmatmul.mubr.bf16.vlgmr.msra.gmra.mrb[24].mxu0 %v10540_v32  ;;  %v10552_v61 = vld [vmem:[%s15291_s2 + $0x1e0] ss:$100 sps:$4 sm:$0xff]   ;;  %v10555_v32 = vld [vmem:[%s15291_s2 + $0x1e8] ss:$100 sps:$4 sm:$0xff]  }
 0x282   :  { %v8813_v44 = vadd.f32 %v8812_v42, %v8811_v45  ;;  %v4192_v53 = vadd.f32 %v8773_v46, %v13991_v48  ;;  %v14136_v25 = vadd.f32 %v8810_v35, %v4189_v43  ;;  %9911 = vmatpush3.bf16.msra.mxu0 %v11094_v37  ;;  %5639 = vmatprep.mubr.bf16.mxu0 %v10548_v59  ;;  %v11105_v45 = vld [vmem:[%s15288_s4 + $0x18] sm:$0xff]   ;;  %v11106_v42 = vld [vmem:[%s15288_s4 + $0x620] sm:$0xff]  }
 0x283   :  { %5696 = vmatmul.mubr.bf16.vlgmr.msra.gmra.mrb[24].mxu1 %v10543_v33  ;;  %9912 = vmatprep.subr.bf16.mxu0 %v11097_v51  ;;  %v4490_v33 = vld [vmem:[%s15291_s2 + $0x2a8] sm:$0xff]  ;;  %v11107_v37 = vld [vmem:[%s15288_s4 + $0x60] sm:$0xff]  }
 0x284   :  { %9371 = vmatpush3.bf16.msra.mxu1 %v11096_v40  ;;  %v14147_v50 = vadd.f32 %v8813_v44, %v4192_v53  ;;  %v8774_v48 = vpop.f32.mrb[176].mxu0  ;;  %5703 = vmatprep.mubr.bf16.mxu1 %v10551_v60  ;;  %v7758_v46 = vcombine.high %v4490_v33, %v4490_v33  ;;  %v7760_v44 = vcombine.high %v4491_v57, %v4491_v57  ;;  %v11108_v60 = vld [vmem:[%s15288_s4 + $0x20] sm:$0xff]   ;;  %v11109_v53 = vld [vmem:[%s15288_s4 + $0x628] sm:$0xff]  }
 0x285   :  { %9372 = vmatprep.subr.bf16.mxu1 %v11098_v55  ;;  %v8775_v17 = vpop.f32.mrb[177].mxu0 }
 0x286   :  { %v8814_v62 = vpop.f32.mrb[184].mxu1  ;;  %v8776_v56 = vadd.f32 %v8775_v17, %v8774_v48  ;;  %v8777_v0 = vpop.f32.mrb[178].mxu0  ;;  %9913 = vmatpush3.bf16.msra.mxu0 %v11097_v51  ;;  %v7757_v48 = vcombine.low %v4490_v33, %v4490_v33  ;;  %v7759_v17 = vcombine.low %v4491_v57, %v4491_v57 }
 0x287   :  { %v8815_v52 = vpop.f32.mrb[185].mxu1  ;;  %v8778_v2 = vpop.f32.mrb[179].mxu0  ;;  %9914 = vmatprep.subr.bf16.mxu0 %v11100_v7 }
 0x288   :  { %v8816_v1 = vadd.f32 %v8815_v52, %v8814_v62  ;;  %v8817_v30 = vpop.f32.mrb[186].mxu1  ;;  %9373 = vmatpush3.bf16.msra.mxu1 %v11099_v4  ;;  %v4197_v10 = vadd.f32 %v8776_v56, %v14019_v24  ;;  %v8779_v23 = vadd.f32 %v8778_v2, %v8777_v0  ;;  %v11102_v24 = vld [vmem:[%s15288_s4 + $0x10] sm:$0xff]  }
 0x289   :  { %v8818_v3 = vpop.f32.mrb[187].mxu1  ;;  %9374 = vmatprep.subr.bf16.mxu1 %v11101_v6  ;;  %5640 = vmatmul.mubr.bf16.gmra.mrb[28].mxu0 %v10546_v63  ;;  %v11113_v4 = vld [vmem:[%s15288_s4 + $0x70] sm:$0xff]   ;;  %v10566_v6 = vld [vmem:[%s15292_s3 + $0x4] ss:$100 sps:$4 sm:$0xff]  }
 0x28a   :  { %v8819_v5 = vadd.f32 %v8818_v3, %v8817_v30  ;;  %v4200_v29 = vadd.f32 %v8779_v23, %v14033_v20  ;;  %v14172_v11 = vadd.f32 %v8816_v1, %v4197_v10  ;;  %9915 = vmatpush3.bf16.msra.mxu0 %v11100_v7  ;;  %5647 = vmatprep.mubr.bf16.mxu0 %v10554_v8  ;;  %v11112_v1 = vld [vmem:[%s15288_s4 + $0x630] sm:$0xff]   ;;  %v10562_v7 = vld [vmem:[%s15291_s2 + $0x60] ss:$100 sps:$4 sm:$0xff]   ;;  %v11116_v8 = vld [vmem:[%s15288_s4 + $0x78] sm:$0xff]  }
 0x28b   :  { %5704 = vmatmul.mubr.bf16.gmra.mrb[28].mxu1 %v10549_v49  ;;  %9916 = vmatprep.subr.bf16.mxu0 %v11103_v16  ;;  %v11111_v49 = vld [vmem:[%s15288_s4 + $0x28] sm:$0xff]  }
 0x28c   :  { %9375 = vmatpush3.bf16.msra.mxu1 %v11102_v24  ;;  %v14183_v15 = vadd.f32 %v8819_v5, %v4200_v29  ;;  %v8780_v20 = vpop.f32.mrb[180].mxu0  ;;  %5711 = vmatprep.mubr.bf16.mxu1 %v10557_v9  ;;  %v11114_v5 = vld [vmem:[%s15288_s4 + $0x30] sm:$0xff]  }
 0x28d   :  { %9376 = vmatprep.subr.bf16.mxu1 %v11104_v22  ;;  %v8781_v27 = vpop.f32.mrb[181].mxu0  ;;  %v10563_v22 = vld [vmem:[%s15291_s2 + $0x128] ss:$100 sps:$4 sm:$0xff]  }
 0x28e   :  { %v8820_v26 = vpop.f32.mrb[188].mxu1  ;;  %v8782_v31 = vadd.f32 %v8781_v27, %v8780_v20  ;;  %v8783_v34 = vpop.f32.mrb[182].mxu0  ;;  %9917 = vmatpush3.bf16.msra.mxu0 %v11103_v16  ;;  %v10564_v20 = vld [vmem:[%s15292_s3] ss:$100 sps:$4 sm:$0xff]  }
 0x28f   :  { %v8821_v18 = vpop.f32.mrb[189].mxu1  ;;  %v8784_v54 = vpop.f32.mrb[183].mxu0  ;;  %9918 = vmatprep.subr.bf16.mxu0 %v11106_v42  ;;  %v11119_v34 = vld [vmem:[%s15288_s4 + $0x140] sm:$0xff]  }
 0x290   :  { %v8822_v35 = vadd.f32 %v8821_v18, %v8820_v26  ;;  %9377 = vmatpush3.bf16.msra.mxu1 %v11105_v45  ;;  %v8823_v39 = vpop.f32.mrb[190].mxu1  ;;  %v4205_v43 = vadd.f32 %v8782_v31, %v14060_v47  ;;  %v11110_v47 = vld [vmem:[%s15288_s4 + $0x68] sm:$0xff]   ;;  %v11118_v31 = vld [vmem:[%s15288_s4 + $0xc0] sm:$0xff]   ;;  %v10567_v54 = vld [vmem:[%s15291_s2 + $0x1f0] ss:$100 sps:$4 sm:$0xff]  }
 0x291   :  { %9378 = vmatprep.subr.bf16.mxu1 %v11107_v37  ;;  %v8824_v38 = vpop.f32.mrb[191].mxu1  ;;  %5648 = vmatmul.mubr.bf16.gmra.mrb[32].mxu0 %v10552_v61 }
 0x292   :  { %v14207_v59 = vadd.f32 %v8822_v35, %v4205_v43  ;;  %9919 = vmatpush3.bf16.msra.mxu0 %v11106_v42  ;;  %5655 = vmatprep.mubr.bf16.mxu0 %v7758_v46  ;;  %v10571_v42 = vld [vmem:[%s15292_s3 + $0xcc] ss:$100 sps:$4 sm:$0xff]   ;;  %v11121_v43 = vld [vmem:[%s15288_s4 + $0x100] sm:$0xff]  }
 0x293   :  { %5712 = vmatmul.mubr.bf16.gmra.mrb[32].mxu1 %v10555_v32  ;;  %9920 = vmatprep.subr.bf16.mxu0 %v11109_v53  ;;  %v11117_v32 = vld [vmem:[%s15288_s4 + $0x38] sm:$0xff]   ;;  %v11122_v46 = vld [vmem:[%s15288_s4 + $0xc8] sm:$0xff]  }
 0x294   :  { %9379 = vmatpush3.bf16.msra.mxu1 %v11108_v60  ;;  %v8842_v40 = vpop.f32.mrb[184].mxu0  ;;  %5719 = vmatprep.mubr.bf16.mxu1 %v7760_v44  ;;  %v11123_v44 = vld [vmem:[%s15288_s4 + $0x148] sm:$0xff]  }
 0x295   :  { %9380 = vmatprep.subr.bf16.mxu1 %v11110_v47  ;;  %v8843_v55 = vpop.f32.mrb[185].mxu0 }
 0x296   :  { %v14218_v51 = vpop.f32.mrb[192].mxu1  ;;  %v8844_v52 = vadd.f32 %v8843_v55, %v8842_v40  ;;  %v8845_v63 = vpop.f32.mrb[186].mxu0  ;;  %9921 = vmatpush3.bf16.msra.mxu0 %v11109_v53  ;;  %v10568_v40 = vld [vmem:[%s15291_s2 + $0x2b8] ss:$0 sps:$4 sm:$0xff]  }
 0x297   :  { %v4372_v62 = vpop.f32.mrb[193].mxu1  ;;  %v8846_v0 = vpop.f32.mrb[187].mxu0  ;;  %9922 = vmatprep.subr.bf16.mxu0 %v11112_v1 }
 0x298   :  { %9381 = vmatpush3.bf16.msra.mxu1 %v11111_v49  ;;  %v9905_v56 = vpop.f32.mrb[194].mxu1  ;;  %v8847_v2 = vadd.f32 %v8846_v0, %v8845_v63  ;;  %v4309_v3 = vadd.f32 %v8844_v52, %v14094_v13  ;;  %v11115_v13 = vld [vmem:[%s15288_s4 + $0x638] sm:$0xff]   ;;  %v11125_v52 = vld [vmem:[%s15288_s4 + $0x108] sm:$0xff]   ;;  %v11126_v49 = vld [vmem:[%s15288_s4 + $0xd0] sm:$0xff]  }
 0x299   :  { %v4375_v30 = vpop.f32.mrb[195].mxu1  ;;  %9382 = vmatprep.subr.bf16.mxu1 %v11113_v4  ;;  %5656 = vmatmul.mubr.bf16.gmra.mrb[36].mxu0 %v7757_v48  ;;  %v10579_v4 = vld [vmem:[%s15292_s3 + $0xc] ss:$100 sps:$4 sm:$0xff]  }
 0x29a   :  { %v14236_v10 = vadd.f32 %v4372_v62, %v4309_v3  ;;  %9923 = vmatpush3.bf16.msra.mxu0 %v11112_v1  ;;  %v4312_v23 = vadd.f32 %v8847_v2, %v14108_v14  ;;  %9926 = vmatprep.mubr.bf16.mxu0 %v10562_v7  ;;  %v11128_v3 = vld [vmem:[%s15288_s4 + $0x90] sm:$0xff]  }
 0x29b   :  { %5720 = vmatmul.mubr.bf16.gmra.mrb[36].mxu1 %v7759_v17  ;;  %9924 = vmatprep.subr.bf16.mxu0 %v11115_v13  ;;  %v11124_v17 = vld [vmem:[%s15288_s4 + $0x88] sm:$0xff]  }
 0x29c   :  { %9383 = vmatpush3.bf16.msra.mxu1 %v11114_v5  ;;  %v7180_v9 = vmax.f32 %v13261_v19, %v14236_v10  ;;  %v14250_v29 = vadd.f32 %v4375_v30, %v4312_v23  ;;  %v8848_v14 = vpop.f32.mrb[188].mxu0  ;;  %6380 = vmatprep.mubr.bf16.mxu1 %v10566_v6  ;;  %v10574_v30 = vld [vmem:[%s15292_s3 + $0x194] ss:$100 sps:$4 sm:$0xff]  }
 0x29d   :  { %9384 = vmatprep.subr.bf16.mxu1 %v11116_v8  ;;  %v8849_v16 = vpop.f32.mrb[189].mxu0  ;;  %v11130_v6 = vld [vmem:[%s15288_s4 + $0xd8] sm:$0xff]  }
 0x29e   :  { %v14252_v24 = vpop.f32.mrb[196].mxu1  ;;  %v7181_v61 = vmax.f32 %v13281_v28, %v14250_v29  ;;  %v8850_v27 = vadd.f32 %v8849_v16, %v8848_v14  ;;  %v8851_v18 = vpop.f32.mrb[190].mxu0  ;;  %9925 = vmatpush3.bf16.msra.mxu0 %v11115_v13  ;;  %v11131_v23 = vld [vmem:[%s15288_s4 + $0x158] sm:$0xff]   ;;  %v10572_v14 = vld [vmem:[%s15292_s3 + $0x190] ss:$100 sps:$4 sm:$0xff]  }
 0x29f   :  { %v4388_v26 = vpop.f32.mrb[197].mxu1  ;;  %v8852_v57 = vpop.f32.mrb[191].mxu0  ;;  %9410 = vmatprep.subr.bf16.mxu0 %v11118_v31  ;;  %v5869_v16 = vld [vmem:[%s15292_s3 + $0x258] sm:$0xff] }
 0x2a0   :  { %9385 = vmatpush3.bf16.msra.mxu1 %v11117_v32  ;;  %v9909_v33 = vpop.f32.mrb[198].mxu1  ;;  %v4317_v45 = vadd.f32 %v8850_v27, %v14136_v25  ;;  %v8853_v39 = vadd.f32 %v8852_v57, %v8851_v18  ;;  %v11120_v25 = vld [vmem:[%s15288_s4 + $0x80] sm:$0xff]   ;;  %v11132_v27 = vld [vmem:[%s15288_s4 + $0x98] sm:$0xff]  }
 0x2a1   :  { %9450 = vmatprep.subr.bf16.mxu1 %v11119_v34  ;;  %v4391_v35 = vpop.f32.mrb[199].mxu1  ;;  %9927 = vmatmul.mubr.bf16.vlgmr.msra.gmra.mrb[40].mxu0 %v10563_v22  ;;  %v11133_v18 = vld [vmem:[%s15288_s4 + $0x118] sm:$0xff]   ;;  %v11134_v33 = vld [vmem:[%s15288_s4 + $0xe0] sm:$0xff]   ;;  %v7838_v34 = vcombine.high %v5869_v16, %v5869_v16 }
 0x2a2   :  { %v14279_v37 = vadd.f32 %v14218_v51, %v4317_v45  ;;  %v4320_v38 = vadd.f32 %v8853_v39, %v14147_v50  ;;  %9411 = vmatpush3.bf16.msra.mxu0 %v11120_v25  ;;  %9930 = vmatprep.mubr.bf16.mxu0 %v10567_v54  ;;  %v10569_v51 = vld [vmem:[%s15292_s3 + $0xc8] ss:$100 sps:$4 sm:$0xff]   ;;  %v11135_v57 = vld [vmem:[%s15288_s4 + $0x160] sm:$0xff]  }
 0x2a3   :  { %6381 = vmatmul.mubr.bf16.vlgmr.msra.gmra.mrb[40].mxu1 %v10564_v20  ;;  %9412 = vmatprep.subr.bf16.mxu0 %v11122_v46  ;;  %v11136_v45 = vld [vmem:[%s15288_s4 + $0xa0] sm:$0xff]   ;;  %v11138_v54 = vld [vmem:[%s15288_s4 + $0xe8] sm:$0xff]   ;;  %v7837_v46 = vcombine.low %v5869_v16, %v5869_v16  ;;  %v10580_v16 = vld [vmem:[%s15292_s3 + $0x10] ss:$100 sps:$4 sm:$0xff]  }
 0x2a4   :  { %9451 = vmatpush3.bf16.msra.mxu1 %v11121_v43  ;;  %v7182_v50 = vmax.f32 %v13258_v12, %v14279_v37  ;;  %v14296_v60 = vadd.f32 %v9905_v56, %v4320_v38  ;;  %v8854_v53 = vpop.f32.mrb[192].mxu0  ;;  %6388 = vmatprep.mubr.bf16.mxu1 %v10571_v42  ;;  %v11127_v56 = vld [vmem:[%s15288_s4 + $0x150] sm:$0xff]   ;;  %v11137_v39 = vld [vmem:[%s15288_s4 + $0x120] sm:$0xff]  }
 0x2a5   :  { %9452 = vmatprep.subr.bf16.mxu1 %v11123_v44  ;;  %v8855_v47 = vpop.f32.mrb[193].mxu0 }
 0x2a6   :  { %v7183_v55 = vmax.f32 %v13272_v21, %v14296_v60  ;;  %v8856_v48 = vadd.f32 %v8855_v47, %v8854_v53  ;;  %v8857_v62 = vpop.f32.mrb[194].mxu0  ;;  %9413 = vmatpush3.bf16.msra.mxu0 %v11124_v17 }
 0x2a7   :  { %v8858_v63 = vpop.f32.mrb[195].mxu0  ;;  %9414 = vmatprep.subr.bf16.mxu0 %v11126_v49 }
 0x2a8   :  { %9453 = vmatpush3.bf16.msra.mxu1 %v11125_v52  ;;  %v8859_v0 = vadd.f32 %v8858_v63, %v8857_v62  ;;  %v4325_v1 = vadd.f32 %v8856_v48, %v14172_v11  ;;  %v11129_v11 = vld [vmem:[%s15288_s4 + $0x110] sm:$0xff]   ;;  %v11141_v48 = vld [vmem:[%s15288_s4 + $0x128] sm:$0xff]  }
 0x2a9   :  { %9454 = vmatprep.subr.bf16.mxu1 %v11127_v56  ;;  %9931 = vmatmul.mubr.bf16.gmra.mrb[44].mxu0 %v10568_v40  ;;  %v11142_v52 = vld [vmem:[%s15288_s4 + $0xf0] sm:$0xff]  }
 0x2aa   :  { %v14325_v2 = vadd.f32 %v4388_v26, %v4325_v1  ;;  %9415 = vmatpush3.bf16.msra.mxu0 %v11128_v3  ;;  %v4328_v7 = vadd.f32 %v8859_v0, %v14183_v15  ;;  %6444 = vmatprep.mubr.bf16.mxu0 %v10579_v4  ;;  %v11143_v63 = vld [vmem:[%s15288_s4 + $0x170] sm:$0xff]  }
 0x2ab   :  { %6389 = vmatmul.mubr.bf16.gmra.mrb[44].mxu1 %v10569_v51  ;;  %9416 = vmatprep.subr.bf16.mxu0 %v11130_v6  ;;  %v11140_v51 = vld [vmem:[%s15288_s4 + $0xa8] sm:$0xff]   ;;  %v10582_v1 = vld [vmem:[%s15292_s3 + $0x14] ss:$100 sps:$4 sm:$0xff]  }
 0x2ac   :  { %9455 = vmatpush3.bf16.msra.mxu1 %v11129_v11  ;;  %v7184_v5 = vmax.f32 %v13309_v41, %v14325_v2  ;;  %v14342_v13 = vadd.f32 %v4391_v35, %v4328_v7  ;;  %v8860_v15 = vpop.f32.mrb[196].mxu0  ;;  %6396 = vmatprep.mubr.bf16.mxu1 %v10574_v30  ;;  %v11144_v4 = vld [vmem:[%s15288_s4 + $0xb0] sm:$0xff]   ;;  %v11146_v7 = vld [vmem:[%s15288_s4 + $0xf8] sm:$0xff]  }
 0x2ad   :  { %9456 = vmatprep.subr.bf16.mxu1 %v11131_v23  ;;  %v8861_v8 = vpop.f32.mrb[197].mxu0  ;;  %v11145_v3 = vld [vmem:[%s15288_s4 + $0x130] sm:$0xff]   ;;  %v11147_v11 = vld [vmem:[%s15288_s4 + $0x178] sm:$0xff]  }
 0x2ae   :  { %v7185_v22 = vmax.f32 %v13326_v58, %v14342_v13  ;;  %v8862_v20 = vadd.f32 %v8861_v8, %v8860_v15  ;;  %v8863_v26 = vpop.f32.mrb[198].mxu0  ;;  %9417 = vmatpush3.bf16.msra.mxu0 %v11132_v27 }
 0x2af   :  { %v8864_v32 = vpop.f32.mrb[199].mxu0  ;;  %9418 = vmatprep.subr.bf16.mxu0 %v11134_v33  ;;  %v11149_v33 = vld [vmem:[%s15288_s4 + $0x138] sm:$0xff]  }
 0x2b0   :  { %9457 = vmatpush3.bf16.msra.mxu1 %v11133_v18  ;;  %v4333_v31 = vadd.f32 %v8862_v20, %v14207_v59  ;;  %v11139_v59 = vld [vmem:[%s15288_s4 + $0x168] sm:$0xff]   ;;  %v11148_v32 = vld [vmem:[%s15288_s4 + $0xb8] sm:$0xff]  }
 0x2b1   :  { %9458 = vmatprep.subr.bf16.mxu1 %v11135_v57 }
 0x2b2   :  { %v14366_v35 = vadd.f32 %v14252_v24, %v4333_v31  ;;  %9419 = vmatpush3.bf16.msra.mxu0 %v11136_v45  ;;  %v11151_v45 = vld [vmem:[%s15288_s4 + $0x240] sm:$0xff]  }
 0x2b3   :  { %6397 = vmatmul.mubr.bf16.gmra.mrb[48].mxu1 %v10572_v14  ;;  %9420 = vmatprep.subr.bf16.mxu0 %v11138_v54  ;;  %v10577_v14 = vld [vmem:[%s15292_s3 + $0x8] ss:$100 sps:$4 sm:$0xff]  }
 0x2b4   :  { %9459 = vmatpush3.bf16.msra.mxu1 %v11137_v39  ;;  %v7186_v24 = vmax.f32 %v13300_v36, %v14366_v35  ;;  %v8894_v42 = vpop.f32.mrb[200].mxu0  ;;  %6404 = vmatprep.mubr.bf16.mxu1 %v7838_v34  ;;  %v11150_v34 = vld [vmem:[%s15288_s4 + $0x1c0] sm:$0xff]  }
 0x2b5   :  { %9460 = vmatprep.subr.bf16.mxu1 %v11139_v59  ;;  %v8895_v25 = vpop.f32.mrb[201].mxu0 }
 0x2b6   :  { %v8934_v38 = vpop.f32.mrb[200].mxu1  ;;  %v8896_v44 = vadd.f32 %v8895_v25, %v8894_v42  ;;  %v8897_v47 = vpop.f32.mrb[202].mxu0  ;;  %9421 = vmatpush3.bf16.msra.mxu0 %v11140_v51  ;;  %v10585_v42 = vld [vmem:[%s15292_s3 + $0xd4] ss:$100 sps:$4 sm:$0xff]  }
 0x2b7   :  { %v8935_v43 = vpop.f32.mrb[201].mxu1  ;;  %v8898_v62 = vpop.f32.mrb[203].mxu0  ;;  %9422 = vmatprep.subr.bf16.mxu0 %v11142_v52 }
 0x2b8   :  { %v8936_v53 = vadd.f32 %v8935_v43, %v8934_v38  ;;  %v8937_v40 = vpop.f32.mrb[202].mxu1  ;;  %9461 = vmatpush3.bf16.msra.mxu1 %v11141_v48  ;;  %v8899_v56 = vadd.f32 %v8898_v62, %v8897_v47  ;;  %v10588_v38 = vld [vmem:[%s15292_s3 + $0xdc] ss:$100 sps:$4 sm:$0xff]   ;;  %v10583_v62 = vld [vmem:[%s15292_s3 + $0xd0] ss:$100 sps:$4 sm:$0xff]  }
 0x2b9   :  { %v8938_v17 = vpop.f32.mrb[203].mxu1  ;;  %9462 = vmatprep.subr.bf16.mxu1 %v11143_v63  ;;  %v11152_v43 = vld [vmem:[%s15288_s4 + $0x180] sm:$0xff]  }
 0x2ba   :  { %v14394_v49 = vadd.f32 %v8936_v53, %v8896_v44  ;;  %v8939_v0 = vadd.f32 %v8938_v17, %v8937_v40  ;;  %9423 = vmatpush3.bf16.msra.mxu0 %v11144_v4  ;;  %v11154_v44 = vld [vmem:[%s15288_s4 + $0x1c8] sm:$0xff]   ;;  %v10586_v17 = vld [vmem:[%s15292_s3 + $0xd8] ss:$100 sps:$4 sm:$0xff]  }
 0x2bb   :  { %6405 = vmatmul.mubr.bf16.gmra.mrb[52].mxu1 %v7837_v46  ;;  %9424 = vmatprep.subr.bf16.mxu0 %v11146_v7  ;;  %v11153_v46 = vld [vmem:[%s15288_s4 + $0x200] sm:$0xff]   ;;  %v11155_v53 = vld [vmem:[%s15288_s4 + $0x248] sm:$0xff]  }
 0x2bc   :  { %v14399_v30 = vadd.f32 %v8939_v0, %v8899_v56  ;;  %9463 = vmatpush3.bf16.msra.mxu1 %v11145_v3  ;;  %v8900_v6 = vpop.f32.mrb[204].mxu0  ;;  %6508 = vmatprep.mubr.bf16.mxu1 %v10582_v1  ;;  %v11156_v1 = vld [vmem:[%s15288_s4 + $0x188] sm:$0xff]  }
 0x2bd   :  { %9464 = vmatprep.subr.bf16.mxu1 %v11147_v11  ;;  %v8901_v15 = vpop.f32.mrb[205].mxu0  ;;  %v11157_v4 = vld [vmem:[%s15288_s4 + $0x208] sm:$0xff]   ;;  %v11158_v11 = vld [vmem:[%s15288_s4 + $0x1d0] sm:$0xff]  }
 0x2be   :  { %v8940_v23 = vpop.f32.mrb[204].mxu1  ;;  %v8902_v20 = vadd.f32 %v8901_v15, %v8900_v6  ;;  %v8903_v27 = vpop.f32.mrb[206].mxu0  ;;  %9425 = vmatpush3.bf16.msra.mxu0 %v11148_v32  ;;  %v11159_v6 = vld [vmem:[%s15288_s4 + $0x250] sm:$0xff]   ;;  %v11163_v32 = vld [vmem:[%s15288_s4 + $0x258] sm:$0xff]  }
 0x2bf   :  { %v8941_v8 = vpop.f32.mrb[205].mxu1  ;;  %v8904_v57 = vpop.f32.mrb[207].mxu0  ;;  %9490 = vmatprep.subr.bf16.mxu0 %v11150_v34 }
 0x2c0   :  { %v8942_v26 = vadd.f32 %v8941_v8, %v8940_v23  ;;  %v8943_v18 = vpop.f32.mrb[206].mxu1  ;;  %9465 = vmatpush3.bf16.msra.mxu1 %v11149_v33  ;;  %v8905_v54 = vadd.f32 %v8904_v57, %v8903_v27  ;;  %v11161_v27 = vld [vmem:[%s15288_s4 + $0x210] sm:$0xff]  }
 0x2c1   :  { %v8944_v31 = vpop.f32.mrb[207].mxu1  ;;  %9530 = vmatprep.subr.bf16.mxu1 %v11151_v45  ;;  %6445 = vmatmul.mubr.bf16.vlgmr.msra.gmra.mrb[48].mxu0 %v10577_v14  ;;  %v10591_v14 = vld [vmem:[%s15292_s3 + $0x19c] ss:$100 sps:$4 sm:$0xff]  }
 0x2c2   :  { %v14431_v39 = vadd.f32 %v8942_v26, %v8902_v20  ;;  %v8945_v59 = vadd.f32 %v8944_v31, %v8943_v18  ;;  %9491 = vmatpush3.bf16.msra.mxu0 %v11152_v43  ;;  %6452 = vmatprep.mubr.bf16.mxu0 %v10585_v42  ;;  %v11160_v26 = vld [vmem:[%s15288_s4 + $0x190] sm:$0xff]   ;;  %v11162_v18 = vld [vmem:[%s15288_s4 + $0x1d8] sm:$0xff]   ;;  %v5871_v42 = vld [vmem:[%s15292_s3 + $0x268] sm:$0xff] }
 0x2c3   :  { %6509 = vmatmul.mubr.bf16.vlgmr.msra.gmra.mrb[56].mxu1 %v10580_v16  ;;  %9492 = vmatprep.subr.bf16.mxu0 %v11154_v44  ;;  %v10594_v16 = vld [vmem:[%s15292_s3 + $0x1a4] ss:$100 sps:$4 sm:$0xff]   ;;  %v10589_v31 = vld [vmem:[%s15292_s3 + $0x198] ss:$100 sps:$4 sm:$0xff]  }
 0x2c4   :  { %v14439_v25 = vadd.f32 %v8945_v59, %v8905_v54  ;;  %9531 = vmatpush3.bf16.msra.mxu1 %v11153_v46  ;;  %v8906_v47 = vpop.f32.mrb[208].mxu0  ;;  %6516 = vmatprep.mubr.bf16.mxu1 %v10588_v38  ;;  %v10592_v54 = vld [vmem:[%s15292_s3 + $0x1a0] ss:$100 sps:$4 sm:$0xff]   ;;  %v11164_v44 = vld [vmem:[%s15288_s4 + $0x198] sm:$0xff]  }
 0x2c5   :  { %9532 = vmatprep.subr.bf16.mxu1 %v11155_v53  ;;  %v8907_v51 = vpop.f32.mrb[209].mxu0  ;;  %v5870_v59 = vld [vmem:[%s15292_s3 + $0x260] sm:$0xff]  ;;  %v11165_v53 = vld [vmem:[%s15288_s4 + $0x218] sm:$0xff]  }
 0x2c6   :  { %v8946_v40 = vpop.f32.mrb[208].mxu1  ;;  %v8908_v52 = vadd.f32 %v8907_v51, %v8906_v47  ;;  %v8909_v56 = vpop.f32.mrb[210].mxu0  ;;  %9493 = vmatpush3.bf16.msra.mxu0 %v11156_v1  ;;  %v11166_v51 = vld [vmem:[%s15288_s4 + $0x1e0] sm:$0xff]   ;;  %v11170_v1 = vld [vmem:[%s15288_s4 + $0x1e8] sm:$0xff]  }
 0x2c7   :  { %v8947_v48 = vpop.f32.mrb[209].mxu1  ;;  %v8910_v3 = vpop.f32.mrb[211].mxu0  ;;  %9494 = vmatprep.subr.bf16.mxu0 %v11158_v11 }
 0x2c8   :  { %v8948_v63 = vadd.f32 %v8947_v48, %v8946_v40  ;;  %v8949_v0 = vpop.f32.mrb[210].mxu1  ;;  %9533 = vmatpush3.bf16.msra.mxu1 %v11157_v4  ;;  %v8911_v15 = vadd.f32 %v8910_v3, %v8909_v56  ;;  %v11167_v48 = vld [vmem:[%s15288_s4 + $0x260] sm:$0xff]   ;;  %v11171_v4 = vld [vmem:[%s15288_s4 + $0x268] sm:$0xff]  }
 0x2c9   :  { %v8950_v7 = vpop.f32.mrb[211].mxu1  ;;  %9534 = vmatprep.subr.bf16.mxu1 %v11159_v6  ;;  %6453 = vmatmul.mubr.bf16.gmra.mrb[52].mxu0 %v10583_v62  ;;  %v11168_v56 = vld [vmem:[%s15288_s4 + $0x1a0] sm:$0xff]  }
 0x2ca   :  { %v14471_v23 = vadd.f32 %v8948_v63, %v8908_v52  ;;  %v8951_v8 = vadd.f32 %v8950_v7, %v8949_v0  ;;  %9495 = vmatpush3.bf16.msra.mxu0 %v11160_v26  ;;  %6460 = vmatprep.mubr.bf16.mxu0 %v10591_v14  ;;  %v7840_v52 = vcombine.high %v5870_v59, %v5870_v59  ;;  %v11169_v0 = vld [vmem:[%s15288_s4 + $0x220] sm:$0xff]   ;;  %v11172_v26 = vld [vmem:[%s15288_s4 + $0x1a8] sm:$0xff]  }
 0x2cb   :  { %6517 = vmatmul.mubr.bf16.gmra.mrb[60].mxu1 %v10586_v17  ;;  %9496 = vmatprep.subr.bf16.mxu0 %v11162_v18  ;;  %v7842_v63 = vcombine.high %v5871_v42, %v5871_v42 }
 0x2cc   :  { %v14479_v20 = vadd.f32 %v8951_v8, %v8911_v15  ;;  %9535 = vmatpush3.bf16.msra.mxu1 %v11161_v27  ;;  %v8912_v33 = vpop.f32.mrb[212].mxu0  ;;  %6524 = vmatprep.mubr.bf16.mxu1 %v10594_v16  ;;  %v7839_v15 = vcombine.low %v5870_v59, %v5870_v59  ;;  %v7841_v8 = vcombine.low %v5871_v42, %v5871_v42  ;;  %v10601_v42 = vld [vmem:[%s15292_s3 + $0x1c] ss:$100 sps:$4 sm:$0xff]  }
 0x2cd   :  { %9536 = vmatprep.subr.bf16.mxu1 %v11163_v32  ;;  %v8913_v34 = vpop.f32.mrb[213].mxu0  ;;  %v11173_v32 = vld [vmem:[%s15288_s4 + $0x228] sm:$0xff]  }
 0x2ce   :  { %v8952_v57 = vpop.f32.mrb[212].mxu1  ;;  %v8914_v38 = vadd.f32 %v8913_v34, %v8912_v33  ;;  %v8915_v46 = vpop.f32.mrb[214].mxu0  ;;  %9497 = vmatpush3.bf16.msra.mxu0 %v11164_v44  ;;  %v11175_v34 = vld [vmem:[%s15288_s4 + $0x270] sm:$0xff]  }
 0x2cf   :  { %v8953_v45 = vpop.f32.mrb[213].mxu1  ;;  %v8916_v40 = vpop.f32.mrb[215].mxu0  ;;  %9498 = vmatprep.subr.bf16.mxu0 %v11166_v51  ;;  %v11177_v44 = vld [vmem:[%s15288_s4 + $0x230] sm:$0xff]  }
 0x2d0   :  { %v8954_v43 = vadd.f32 %v8953_v45, %v8952_v57  ;;  %9537 = vmatpush3.bf16.msra.mxu1 %v11165_v53  ;;  %v8955_v47 = vpop.f32.mrb[214].mxu1  ;;  %v11178_v53 = vld [vmem:[%s15288_s4 + $0x1f8] sm:$0xff]  }
 0x2d1   :  { %9538 = vmatprep.subr.bf16.mxu1 %v11167_v48  ;;  %v8956_v62 = vpop.f32.mrb[215].mxu1  ;;  %6461 = vmatmul.mubr.bf16.gmra.mrb[56].mxu0 %v10589_v31  ;;  %v11174_v31 = vld [vmem:[%s15288_s4 + $0x1f0] sm:$0xff]  }
 0x2d2   :  { %v14517_v17 = vadd.f32 %v8954_v43, %v8914_v38  ;;  %9499 = vmatpush3.bf16.msra.mxu0 %v11168_v56  ;;  %6468 = vmatprep.mubr.bf16.mxu0 %v7840_v52  ;;  %v10604_v38 = vld [vmem:[%s15292_s3 + $0x24] ss:$100 sps:$4 sm:$0xff]   ;;  %v10599_v52 = vld [vmem:[%s15292_s3 + $0x18] ss:$100 sps:$4 sm:$0xff]  }
 0x2d3   :  { %6525 = vmatmul.mubr.bf16.gmra.mrb[64].mxu1 %v10592_v54  ;;  %9500 = vmatprep.subr.bf16.mxu0 %v11170_v1  ;;  %v11180_v1 = vld [vmem:[%s15288_s4 + $0x1b8] sm:$0xff]  }
 0x2d4   :  { %9539 = vmatpush3.bf16.msra.mxu1 %v11169_v0  ;;  %v8974_v3 = vpop.f32.mrb[216].mxu0  ;;  %6532 = vmatprep.mubr.bf16.mxu1 %v7842_v63  ;;  %v10602_v63 = vld [vmem:[%s15292_s3 + $0x20] ss:$100 sps:$4 sm:$0xff]  }
 0x2d5   :  { %9540 = vmatprep.subr.bf16.mxu1 %v11171_v4  ;;  %v8975_v11 = vpop.f32.mrb[217].mxu0 }
 0x2d6   :  { %v9014_v7 = vpop.f32.mrb[216].mxu1  ;;  %v8976_v14 = vadd.f32 %v8975_v11, %v8974_v3  ;;  %v8977_v16 = vpop.f32.mrb[218].mxu0  ;;  %9501 = vmatpush3.bf16.msra.mxu0 %v11172_v26 }
 0x2d7   :  { %v9015_v6 = vpop.f32.mrb[217].mxu1  ;;  %v8978_v33 = vpop.f32.mrb[219].mxu0  ;;  %9502 = vmatprep.subr.bf16.mxu0 %v11174_v31  ;;  %v11186_v31 = vld [vmem:[%s15288_s4 + $0x2c8] sm:$0xff]  }
 0x2d8   :  { %v9016_v27 = vadd.f32 %v9015_v6, %v9014_v7  ;;  %v9017_v18 = vpop.f32.mrb[218].mxu1  ;;  %9541 = vmatpush3.bf16.msra.mxu1 %v11173_v32  ;;  %v5122_v45 = vadd.f32 %v8976_v14, %v14394_v49  ;;  %v8979_v54 = vadd.f32 %v8978_v33, %v8977_v16  ;;  %v11176_v49 = vld [vmem:[%s15288_s4 + $0x1b0] sm:$0xff]   ;;  %v11181_v7 = vld [vmem:[%s15288_s4 + $0x238] sm:$0xff]  }
 0x2d9   :  { %v9018_v57 = vpop.f32.mrb[219].mxu1  ;;  %9542 = vmatprep.subr.bf16.mxu1 %v11175_v34  ;;  %6469 = vmatmul.mubr.bf16.gmra.mrb[60].mxu0 %v7839_v15  ;;  %v11182_v15 = vld [vmem:[%s15288_s4 + $0x2c0] sm:$0xff]  }
 0x2da   :  { %v9019_v59 = vadd.f32 %v9018_v57, %v9017_v18  ;;  %v5125_v43 = vadd.f32 %v8979_v54, %v14399_v30  ;;  %v14551_v46 = vadd.f32 %v9016_v27, %v5122_v45  ;;  %9503 = vmatpush3.bf16.msra.mxu0 %v11176_v49  ;;  %v11179_v30 = vld [vmem:[%s15288_s4 + $0x278] sm:$0xff]   ;;  %6572 = vmatprep.mubr.bf16.mxu0 %v10601_v42  ;;  %v10607_v27 = vld [vmem:[%s15292_s3 + $0xe4] ss:$100 sps:$4 sm:$0xff]   ;;  %v10610_v18 = vld [vmem:[%s15292_s3 + $0xec] ss:$100 sps:$4 sm:$0xff]  }
 0x2db   :  { %6533 = vmatmul.mubr.bf16.gmra.mrb[68].mxu1 %v7841_v8  ;;  %9504 = vmatprep.subr.bf16.mxu0 %v11178_v53  ;;  %v11183_v8 = vld [vmem:[%s15288_s4 + $0x340] sm:$0xff]   ;;  %v11188_v53 = vld [vmem:[%s15288_s4 + $0x288] sm:$0xff]  }
 0x2dc   :  { %9543 = vmatpush3.bf16.msra.mxu1 %v11177_v44  ;;  %v14565_v47 = vadd.f32 %v9019_v59, %v5125_v43  ;;  %v8980_v40 = vpop.f32.mrb[220].mxu0  ;;  %6636 = vmatprep.mubr.bf16.mxu1 %v10604_v38  ;;  %v11185_v57 = vld [vmem:[%s15288_s4 + $0x300] sm:$0xff]   ;;  %v10608_v43 = vld [vmem:[%s15292_s3 + $0xe8] ss:$100 sps:$4 sm:$0xff]  }
 0x2dd   :  { %9544 = vmatprep.subr.bf16.mxu1 %v11179_v30  ;;  %v8981_v48 = vpop.f32.mrb[221].mxu0  ;;  %v10605_v38 = vld [vmem:[%s15292_s3 + $0xe0] ss:$100 sps:$4 sm:$0xff]  }
 0x2de   :  { %v9020_v51 = vpop.f32.mrb[220].mxu1  ;;  %v8982_v56 = vadd.f32 %v8981_v48, %v8980_v40  ;;  %v8983_v0 = vpop.f32.mrb[222].mxu0  ;;  %9505 = vmatpush3.bf16.msra.mxu0 %v11180_v1 }
 0x2df   :  { %v9021_v62 = vpop.f32.mrb[221].mxu1  ;;  %v8984_v11 = vpop.f32.mrb[223].mxu0  ;;  %9570 = vmatprep.subr.bf16.mxu0 %v11182_v15  ;;  %v11194_v15 = vld [vmem:[%s15288_s4 + $0x2d8] sm:$0xff]  }
 0x2e0   :  { %v9022_v4 = vadd.f32 %v9021_v62, %v9020_v51  ;;  %v9023_v3 = vpop.f32.mrb[222].mxu1  ;;  %9545 = vmatpush3.bf16.msra.mxu1 %v11181_v7  ;;  %v5130_v14 = vadd.f32 %v8982_v56, %v14431_v39  ;;  %v8985_v16 = vadd.f32 %v8984_v11, %v8983_v0  ;;  %v11184_v39 = vld [vmem:[%s15288_s4 + $0x280] sm:$0xff]   ;;  %v11189_v51 = vld [vmem:[%s15288_s4 + $0x308] sm:$0xff]  }
 0x2e1   :  { %v9024_v6 = vpop.f32.mrb[223].mxu1  ;;  %9610 = vmatprep.subr.bf16.mxu1 %v11183_v8  ;;  %6573 = vmatmul.mubr.bf16.vlgmr.msra.gmra.mrb[64].mxu0 %v10599_v52  ;;  %v11190_v52 = vld [vmem:[%s15288_s4 + $0x2d0] sm:$0xff]  }
 0x2e2   :  { %v9025_v26 = vadd.f32 %v9024_v6, %v9023_v3  ;;  %v5133_v32 = vadd.f32 %v8985_v16, %v14439_v25  ;;  %v14593_v33 = vadd.f32 %v9022_v4, %v5130_v14  ;;  %9571 = vmatpush3.bf16.msra.mxu0 %v11184_v39  ;;  %v11187_v25 = vld [vmem:[%s15288_s4 + $0x348] sm:$0xff]   ;;  %6580 = vmatprep.mubr.bf16.mxu0 %v10607_v27  ;;  %v10616_v3 = vld [vmem:[%s15292_s3 + $0x1b4] ss:$100 sps:$4 sm:$0xff]  }
 0x2e3   :  { %6637 = vmatmul.mubr.bf16.vlgmr.msra.gmra.mrb[72].mxu1 %v10602_v63  ;;  %9572 = vmatprep.subr.bf16.mxu0 %v11186_v31  ;;  %v11191_v63 = vld [vmem:[%s15288_s4 + $0x350] sm:$0xff]  }
 0x2e4   :  { %9611 = vmatpush3.bf16.msra.mxu1 %v11185_v57  ;;  %v14607_v34 = vadd.f32 %v9025_v26, %v5133_v32  ;;  %v8986_v45 = vpop.f32.mrb[224].mxu0  ;;  %6644 = vmatprep.mubr.bf16.mxu1 %v10610_v18  ;;  %v10613_v4 = vld [vmem:[%s15292_s3 + $0x1ac] ss:$100 sps:$4 sm:$0xff]   ;;  %v5873_v57 = vld [vmem:[%s15292_s3 + $0x278] sm:$0xff] }
 0x2e5   :  { %9612 = vmatprep.subr.bf16.mxu1 %v11187_v25  ;;  %v8987_v59 = vpop.f32.mrb[225].mxu0  ;;  %v11193_v6 = vld [vmem:[%s15288_s4 + $0x310] sm:$0xff]   ;;  %v10611_v26 = vld [vmem:[%s15292_s3 + $0x1a8] ss:$100 sps:$4 sm:$0xff]  }
 0x2e6   :  { %v9026_v54 = vpop.f32.mrb[224].mxu1  ;;  %v8988_v49 = vadd.f32 %v8987_v59, %v8986_v45  ;;  %v8989_v44 = vpop.f32.mrb[226].mxu0  ;;  %9573 = vmatpush3.bf16.msra.mxu0 %v11188_v53  ;;  %v10614_v32 = vld [vmem:[%s15292_s3 + $0x1b0] ss:$100 sps:$4 sm:$0xff]   ;;  %v11196_v45 = vld [vmem:[%s15288_s4 + $0x298] sm:$0xff]  }
 0x2e7   :  { %v9027_v42 = vpop.f32.mrb[225].mxu1  ;;  %v8990_v48 = vpop.f32.mrb[227].mxu0  ;;  %9574 = vmatprep.subr.bf16.mxu0 %v11190_v52  ;;  %v5872_v39 = vld [vmem:[%s15292_s3 + $0x270] sm:$0xff]  ;;  %v11197_v59 = vld [vmem:[%s15288_s4 + $0x318] sm:$0xff]   ;;  %v11203_v52 = vld [vmem:[%s15288_s4 + $0x368] sm:$0xff]  }
 0x2e8   :  { %v9028_v30 = vadd.f32 %v9027_v42, %v9026_v54  ;;  %v9029_v40 = vpop.f32.mrb[226].mxu1  ;;  %9613 = vmatpush3.bf16.msra.mxu1 %v11189_v51  ;;  %v5138_v56 = vadd.f32 %v8988_v49, %v14471_v23  ;;  %v8991_v0 = vadd.f32 %v8990_v48, %v8989_v44  ;;  %v11192_v23 = vld [vmem:[%s15288_s4 + $0x290] sm:$0xff]   ;;  %v11199_v49 = vld [vmem:[%s15288_s4 + $0x360] sm:$0xff]  }
 0x2e9   :  { %v9030_v62 = vpop.f32.mrb[227].mxu1  ;;  %9614 = vmatprep.subr.bf16.mxu1 %v11191_v63  ;;  %6581 = vmatmul.mubr.bf16.gmra.mrb[68].mxu0 %v10605_v38  ;;  %v11200_v48 = vld [vmem:[%s15288_s4 + $0x2a0] sm:$0xff]  }
 0x2ea   :  { %v9031_v1 = vadd.f32 %v9030_v62, %v9029_v40  ;;  %v5141_v7 = vadd.f32 %v8991_v0, %v14479_v20  ;;  %v14635_v11 = vadd.f32 %v9028_v30, %v5138_v56  ;;  %9575 = vmatpush3.bf16.msra.mxu0 %v11192_v23  ;;  %v11195_v20 = vld [vmem:[%s15288_s4 + $0x358] sm:$0xff]   ;;  %6588 = vmatprep.mubr.bf16.mxu0 %v10613_v4  ;;  %v11201_v62 = vld [vmem:[%s15288_s4 + $0x320] sm:$0xff]  }
 0x2eb   :  { %6645 = vmatmul.mubr.bf16.gmra.mrb[76].mxu1 %v10608_v43  ;;  %9576 = vmatprep.subr.bf16.mxu0 %v11194_v15  ;;  %v11198_v43 = vld [vmem:[%s15288_s4 + $0x2e0] sm:$0xff]   ;;  %v7844_v30 = vcombine.high %v5872_v39, %v5872_v39  ;;  %v7846_v40 = vcombine.high %v5873_v57, %v5873_v57  ;;  %v7843_v4 = vcombine.low %v5872_v39, %v5872_v39 }
 0x2ec   :  { %9615 = vmatpush3.bf16.msra.mxu1 %v11193_v6  ;;  %v14649_v8 = vadd.f32 %v9031_v1, %v5141_v7  ;;  %v8992_v14 = vpop.f32.mrb[228].mxu0  ;;  %6652 = vmatprep.mubr.bf16.mxu1 %v10616_v3  ;;  %v7845_v3 = vcombine.low %v5873_v57, %v5873_v57  ;;  %v11204_v6 = vld [vmem:[%s15288_s4 + $0x2a8] sm:$0xff]  }
 0x2ed   :  { %9616 = vmatprep.subr.bf16.mxu1 %v11195_v20  ;;  %v8993_v27 = vpop.f32.mrb[229].mxu0 }
 0x2ee   :  { %v9032_v16 = vpop.f32.mrb[228].mxu1  ;;  %v8994_v31 = vadd.f32 %v8993_v27, %v8992_v14  ;;  %v8995_v25 = vpop.f32.mrb[230].mxu0  ;;  %9577 = vmatpush3.bf16.msra.mxu0 %v11196_v45  ;;  %v11205_v14 = vld [vmem:[%s15288_s4 + $0x328] sm:$0xff]   ;;  %v11206_v27 = vld [vmem:[%s15288_s4 + $0x2f0] sm:$0xff]  }
 0x2ef   :  { %v9033_v18 = vpop.f32.mrb[229].mxu1  ;;  %v8996_v38 = vpop.f32.mrb[231].mxu0  ;;  %9578 = vmatprep.subr.bf16.mxu0 %v11198_v43  ;;  %v10626_v25 = vld [vmem:[%s15292_s3 + $0x34] ss:$100 sps:$4 sm:$0xff]  }
 0x2f0   :  { %v9034_v54 = vadd.f32 %v9033_v18, %v9032_v16  ;;  %9617 = vmatpush3.bf16.msra.mxu1 %v11197_v59  ;;  %v9035_v42 = vpop.f32.mrb[230].mxu1  ;;  %v5146_v53 = vadd.f32 %v8994_v31, %v14517_v17  ;;  %v11202_v17 = vld [vmem:[%s15288_s4 + $0x2e8] sm:$0xff]   ;;  %v11207_v18 = vld [vmem:[%s15288_s4 + $0x370] sm:$0xff]  }
 0x2f1   :  { %9618 = vmatprep.subr.bf16.mxu1 %v11199_v49  ;;  %v9036_v44 = vpop.f32.mrb[231].mxu1  ;;  %6589 = vmatmul.mubr.bf16.gmra.mrb[72].mxu0 %v10611_v26  ;;  %v10623_v31 = vld [vmem:[%s15292_s3 + $0x2c] ss:$100 sps:$4 sm:$0xff]   ;;  %v11210_v42 = vld [vmem:[%s15288_s4 + $0x2f8] sm:$0xff]  }
 0x2f2   :  { %v14676_v51 = vadd.f32 %v9034_v54, %v5146_v53  ;;  %9579 = vmatpush3.bf16.msra.mxu0 %v11200_v48  ;;  %6596 = vmatprep.mubr.bf16.mxu0 %v7844_v30  ;;  %v11209_v59 = vld [vmem:[%s15288_s4 + $0x330] sm:$0xff]   ;;  %v10621_v30 = vld [vmem:[%s15292_s3 + $0x28] ss:$100 sps:$4 sm:$0xff]  }
 0x2f3   :  { %6653 = vmatmul.mubr.bf16.gmra.mrb[80].mxu1 %v10614_v32  ;;  %9580 = vmatprep.subr.bf16.mxu0 %v11202_v17  ;;  %v11212_v17 = vld [vmem:[%s15288_s4 + $0x2b8] sm:$0xff]  }
 0x2f4   :  { %9619 = vmatpush3.bf16.msra.mxu1 %v11201_v62  ;;  %v9054_v63 = vpop.f32.mrb[232].mxu0  ;;  %6660 = vmatprep.mubr.bf16.mxu1 %v7846_v40  ;;  %v10624_v40 = vld [vmem:[%s15292_s3 + $0x30] ss:$100 sps:$4 sm:$0xff]  }
 0x2f5   :  { %9620 = vmatprep.subr.bf16.mxu1 %v11203_v52  ;;  %v9055_v0 = vpop.f32.mrb[233].mxu0 }
 0x2f6   :  { %v9094_v56 = vpop.f32.mrb[232].mxu1  ;;  %v9056_v7 = vadd.f32 %v9055_v0, %v9054_v63  ;;  %v9057_v23 = vpop.f32.mrb[234].mxu0  ;;  %9581 = vmatpush3.bf16.msra.mxu0 %v11204_v6 }
 0x2f7   :  { %v9095_v1 = vpop.f32.mrb[233].mxu1  ;;  %v9058_v16 = vpop.f32.mrb[235].mxu0  ;;  %9582 = vmatprep.subr.bf16.mxu0 %v11206_v27  ;;  %v11218_v27 = vld [vmem:[%s15288_s4 + $0x3c8] sm:$0xff]  }
 0x2f8   :  { %v9096_v15 = vadd.f32 %v9095_v1, %v9094_v56  ;;  %v9097_v20 = vpop.f32.mrb[234].mxu1  ;;  %9621 = vmatpush3.bf16.msra.mxu1 %v11205_v14  ;;  %v5250_v32 = vadd.f32 %v9056_v7, %v14551_v46  ;;  %v9059_v39 = vadd.f32 %v9058_v16, %v9057_v23  ;;  %v11208_v46 = vld [vmem:[%s15288_s4 + $0x2b0] sm:$0xff]   ;;  %v11213_v56 = vld [vmem:[%s15288_s4 + $0x338] sm:$0xff]  }
 0x2f9   :  { %v9098_v26 = vpop.f32.mrb[235].mxu1  ;;  %9622 = vmatprep.subr.bf16.mxu1 %v11207_v18  ;;  %6597 = vmatmul.mubr.bf16.gmra.mrb[76].mxu0 %v7843_v4  ;;  %v11214_v4 = vld [vmem:[%s15288_s4 + $0x3c0] sm:$0xff]  }
 0x2fa   :  { %v9099_v57 = vadd.f32 %v9098_v26, %v9097_v20  ;;  %v5253_v45 = vadd.f32 %v9059_v39, %v14565_v47  ;;  %v14710_v54 = vadd.f32 %v9096_v15, %v5250_v32  ;;  %9583 = vmatpush3.bf16.msra.mxu0 %v11208_v46  ;;  %v11211_v47 = vld [vmem:[%s15288_s4 + $0x378] sm:$0xff]   ;;  %6700 = vmatprep.mubr.bf16.mxu0 %v10623_v31  ;;  %v11217_v26 = vld [vmem:[%s15288_s4 + $0x400] sm:$0xff]  }
 0x2fb   :  { %6661 = vmatmul.mubr.bf16.gmra.mrb[84].mxu1 %v7845_v3  ;;  %9584 = vmatprep.subr.bf16.mxu0 %v11210_v42  ;;  %v11215_v3 = vld [vmem:[%s15288_s4 + $0x440] sm:$0xff]   ;;  %v10629_v15 = vld [vmem:[%s15292_s3 + $0xf4] ss:$100 sps:$4 sm:$0xff]   ;;  %v11220_v42 = vld [vmem:[%s15288_s4 + $0x388] sm:$0xff]  }
 0x2fc   :  { %9623 = vmatpush3.bf16.msra.mxu1 %v11209_v59  ;;  %v14724_v38 = vadd.f32 %v9099_v57, %v5253_v45  ;;  %v9060_v43 = vpop.f32.mrb[236].mxu0  ;;  %6764 = vmatprep.mubr.bf16.mxu1 %v10626_v25  ;;  %v10632_v20 = vld [vmem:[%s15292_s3 + $0xfc] ss:$100 sps:$4 sm:$0xff]   ;;  %v10627_v25 = vld [vmem:[%s15292_s3 + $0xf0] ss:$100 sps:$4 sm:$0xff]  }
 0x2fd   :  { %9624 = vmatprep.subr.bf16.mxu1 %v11211_v47  ;;  %v9061_v44 = vpop.f32.mrb[237].mxu0  ;;  %v10630_v45 = vld [vmem:[%s15292_s3 + $0xf8] ss:$100 sps:$4 sm:$0xff]  }
 0x2fe   :  { %v9100_v49 = vpop.f32.mrb[236].mxu1  ;;  %v9062_v48 = vadd.f32 %v9061_v44, %v9060_v43  ;;  %v9063_v62 = vpop.f32.mrb[238].mxu0  ;;  %9585 = vmatpush3.bf16.msra.mxu0 %v11212_v17 }
 0x2ff   :  { %v9101_v53 = vpop.f32.mrb[237].mxu1  ;;  %v9064_v0 = vpop.f32.mrb[239].mxu0  ;;  %9650 = vmatprep.subr.bf16.mxu0 %v11214_v4  ;;  %v11226_v4 = vld [vmem:[%s15288_s4 + $0x3d8] sm:$0xff]  }
 0x300   :  { %v9102_v52 = vadd.f32 %v9101_v53, %v9100_v49  ;;  %v9103_v63 = vpop.f32.mrb[238].mxu1  ;;  %9625 = vmatpush3.bf16.msra.mxu1 %v11213_v56  ;;  %v5258_v7 = vadd.f32 %v9062_v48, %v14593_v33  ;;  %v9065_v23 = vadd.f32 %v9064_v0, %v9063_v62  ;;  %v11216_v33 = vld [vmem:[%s15288_s4 + $0x380] sm:$0xff]   ;;  %v11221_v49 = vld [vmem:[%s15288_s4 + $0x408] sm:$0xff]  }
 0x301   :  { %v9104_v1 = vpop.f32.mrb[239].mxu1  ;;  %9690 = vmatprep.subr.bf16.mxu1 %v11215_v3  ;;  %6701 = vmatmul.mubr.bf16.vlgmr.msra.gmra.mrb[80].mxu0 %v10621_v30  ;;  %v11222_v30 = vld [vmem:[%s15288_s4 + $0x3d0] sm:$0xff]  }
 0x302   :  { %v9105_v6 = vadd.f32 %v9104_v1, %v9103_v63  ;;  %v5261_v14 = vadd.f32 %v9065_v23, %v14607_v34  ;;  %v14752_v16 = vadd.f32 %v9102_v52, %v5258_v7  ;;  %9651 = vmatpush3.bf16.msra.mxu0 %v11216_v33  ;;  %v11219_v34 = vld [vmem:[%s15288_s4 + $0x448] sm:$0xff]   ;;  %6708 = vmatprep.mubr.bf16.mxu0 %v10629_v15  ;;  %v10635_v52 = vld [vmem:[%s15292_s3 + $0x1bc] ss:$100 sps:$4 sm:$0xff]   ;;  %v11225_v1 = vld [vmem:[%s15288_s4 + $0x410] sm:$0xff]  }
 0x303   :  { %6765 = vmatmul.mubr.bf16.vlgmr.msra.gmra.mrb[88].mxu1 %v10624_v40  ;;  %9652 = vmatprep.subr.bf16.mxu0 %v11218_v27  ;;  %v11223_v40 = vld [vmem:[%s15288_s4 + $0x450] sm:$0xff]   ;;  %v10638_v63 = vld [vmem:[%s15292_s3 + $0x1c4] ss:$100 sps:$4 sm:$0xff]  }
 0x304   :  { %9691 = vmatpush3.bf16.msra.mxu1 %v11217_v26  ;;  %v14766_v18 = vadd.f32 %v9105_v6, %v5261_v14  ;;  %v9066_v32 = vpop.f32.mrb[240].mxu0  ;;  %6772 = vmatprep.mubr.bf16.mxu1 %v10632_v20  ;;  %v10633_v6 = vld [vmem:[%s15292_s3 + $0x1b8] ss:$100 sps:$4 sm:$0xff]   ;;  %v10636_v14 = vld [vmem:[%s15292_s3 + $0x1c0] ss:$100 sps:$4 sm:$0xff]   ;;  %v5875_v26 = vld [vmem:[%s15292_s3 + $0x288] sm:$0xff] }
 0x305   :  { %9692 = vmatprep.subr.bf16.mxu1 %v11219_v34  ;;  %v9067_v57 = vpop.f32.mrb[241].mxu0  ;;  %v5874_v33 = vld [vmem:[%s15292_s3 + $0x280] sm:$0xff] }
 0x306   :  { %v9106_v39 = vpop.f32.mrb[240].mxu1  ;;  %v9068_v46 = vadd.f32 %v9067_v57, %v9066_v32  ;;  %v9069_v59 = vpop.f32.mrb[242].mxu0  ;;  %9653 = vmatpush3.bf16.msra.mxu0 %v11220_v42  ;;  %v11228_v32 = vld [vmem:[%s15288_s4 + $0x398] sm:$0xff]  }
 0x307   :  { %v9107_v31 = vpop.f32.mrb[241].mxu1  ;;  %v9070_v44 = vpop.f32.mrb[243].mxu0  ;;  %9654 = vmatprep.subr.bf16.mxu0 %v11222_v30  ;;  %v11229_v57 = vld [vmem:[%s15288_s4 + $0x418] sm:$0xff]   ;;  %v11235_v30 = vld [vmem:[%s15288_s4 + $0x468] sm:$0xff]  }
 0x308   :  { %v9108_v47 = vadd.f32 %v9107_v31, %v9106_v39  ;;  %v9109_v43 = vpop.f32.mrb[242].mxu1  ;;  %9693 = vmatpush3.bf16.msra.mxu1 %v11221_v49  ;;  %v5266_v48 = vadd.f32 %v9068_v46, %v14635_v11  ;;  %v9071_v62 = vadd.f32 %v9070_v44, %v9069_v59  ;;  %v11224_v11 = vld [vmem:[%s15288_s4 + $0x390] sm:$0xff]   ;;  %v11231_v46 = vld [vmem:[%s15288_s4 + $0x460] sm:$0xff]  }
 0x309   :  { %v9110_v53 = vpop.f32.mrb[243].mxu1  ;;  %9694 = vmatprep.subr.bf16.mxu1 %v11223_v40  ;;  %6709 = vmatmul.mubr.bf16.gmra.mrb[84].mxu0 %v10627_v25  ;;  %v11232_v44 = vld [vmem:[%s15288_s4 + $0x3a0] sm:$0xff]  }
 0x30a   :  { %v9111_v17 = vadd.f32 %v9110_v53, %v9109_v43  ;;  %v5269_v56 = vadd.f32 %v9071_v62, %v14649_v8  ;;  %v14794_v0 = vadd.f32 %v9108_v47, %v5266_v48  ;;  %9655 = vmatpush3.bf16.msra.mxu0 %v11224_v11  ;;  %v11227_v8 = vld [vmem:[%s15288_s4 + $0x458] sm:$0xff]   ;;  %6716 = vmatprep.mubr.bf16.mxu0 %v10635_v52  ;;  %v11233_v53 = vld [vmem:[%s15288_s4 + $0x420] sm:$0xff]  }
 0x30b   :  { %6773 = vmatmul.mubr.bf16.gmra.mrb[92].mxu1 %v10630_v45  ;;  %9656 = vmatprep.subr.bf16.mxu0 %v11226_v4  ;;  %v11230_v45 = vld [vmem:[%s15288_s4 + $0x3e0] sm:$0xff]   ;;  %v7848_v47 = vcombine.high %v5874_v33, %v5874_v33  ;;  %v7850_v43 = vcombine.high %v5875_v26, %v5875_v26  ;;  %v7847_v52 = vcombine.low %v5874_v33, %v5874_v33 }
 0x30c   :  { %9695 = vmatpush3.bf16.msra.mxu1 %v11225_v1  ;;  %v14808_v3 = vadd.f32 %v9111_v17, %v5269_v56  ;;  %v9072_v7 = vpop.f32.mrb[244].mxu0  ;;  %6780 = vmatprep.mubr.bf16.mxu1 %v10638_v63  ;;  %v7849_v63 = vcombine.low %v5875_v26, %v5875_v26  ;;  %v11236_v1 = vld [vmem:[%s15288_s4 + $0x3a8] sm:$0xff]  }
 0x30d   :  { %9696 = vmatprep.subr.bf16.mxu1 %v11227_v8  ;;  %v9073_v15 = vpop.f32.mrb[245].mxu0 }
 0x30e   :  { %v9112_v23 = vpop.f32.mrb[244].mxu1  ;;  %v9074_v27 = vadd.f32 %v9073_v15, %v9072_v7  ;;  %v9075_v34 = vpop.f32.mrb[246].mxu0  ;;  %9657 = vmatpush3.bf16.msra.mxu0 %v11228_v32  ;;  %v11237_v7 = vld [vmem:[%s15288_s4 + $0x428] sm:$0xff]   ;;  %v11238_v15 = vld [vmem:[%s15288_s4 + $0x3f0] sm:$0xff]  }
 0x30f   :  { %v9113_v20 = vpop.f32.mrb[245].mxu1  ;;  %v9076_v25 = vpop.f32.mrb[247].mxu0  ;;  %9658 = vmatprep.subr.bf16.mxu0 %v11230_v45  ;;  %v10648_v34 = vld [vmem:[%s15292_s3 + $0x44] ss:$100 sps:$4 sm:$0xff]  }
 0x310   :  { %v9114_v39 = vadd.f32 %v9113_v20, %v9112_v23  ;;  %9697 = vmatpush3.bf16.msra.mxu1 %v11229_v57  ;;  %v9115_v31 = vpop.f32.mrb[246].mxu1  ;;  %v5274_v42 = vadd.f32 %v9074_v27, %v14676_v51  ;;  %v11234_v51 = vld [vmem:[%s15288_s4 + $0x3e8] sm:$0xff]   ;;  %v11239_v20 = vld [vmem:[%s15288_s4 + $0x470] sm:$0xff]   ;;  %v10645_v27 = vld [vmem:[%s15292_s3 + $0x3c] ss:$100 sps:$4 sm:$0xff]  }
 0x311   :  { %9698 = vmatprep.subr.bf16.mxu1 %v11231_v46  ;;  %v9116_v59 = vpop.f32.mrb[247].mxu1  ;;  %6717 = vmatmul.mubr.bf16.gmra.mrb[88].mxu0 %v10633_v6  ;;  %v11241_v57 = vld [vmem:[%s15288_s4 + $0x430] sm:$0xff]   ;;  %v11242_v31 = vld [vmem:[%s15288_s4 + $0x3f8] sm:$0xff]  }
 0x312   :  { %v14835_v49 = vadd.f32 %v9114_v39, %v5274_v42  ;;  %9659 = vmatpush3.bf16.msra.mxu0 %v11232_v44  ;;  %6724 = vmatprep.mubr.bf16.mxu0 %v7848_v47  ;;  %v10643_v47 = vld [vmem:[%s15292_s3 + $0x38] ss:$100 sps:$4 sm:$0xff]  }
 0x313   :  { %6781 = vmatmul.mubr.bf16.gmra.mrb[96].mxu1 %v10636_v14  ;;  %9660 = vmatprep.subr.bf16.mxu0 %v11234_v51  ;;  %v11244_v51 = vld [vmem:[%s15288_s4 + $0x3b8] sm:$0xff]  }
 0x314   :  { %9699 = vmatpush3.bf16.msra.mxu1 %v11233_v53  ;;  %v9134_v40 = vpop.f32.mrb[248].mxu0  ;;  %6788 = vmatprep.mubr.bf16.mxu1 %v7850_v43  ;;  %v10646_v43 = vld [vmem:[%s15292_s3 + $0x40] ss:$100 sps:$4 sm:$0xff]  }
 0x315   :  { %9700 = vmatprep.subr.bf16.mxu1 %v11235_v30  ;;  %v9135_v62 = vpop.f32.mrb[249].mxu0 }
 0x316   :  { %v9174_v48 = vpop.f32.mrb[248].mxu1  ;;  %v9136_v56 = vadd.f32 %v9135_v62, %v9134_v40  ;;  %v9137_v11 = vpop.f32.mrb[250].mxu0  ;;  %9661 = vmatpush3.bf16.msra.mxu0 %v11236_v1 }
 0x317   :  { %v9175_v17 = vpop.f32.mrb[249].mxu1  ;;  %v9138_v23 = vpop.f32.mrb[251].mxu0  ;;  %9662 = vmatprep.subr.bf16.mxu0 %v11238_v15  ;;  %v11250_v15 = vld [vmem:[%s15288_s4 + $0x4c8] sm:$0xff]  }
 0x318   :  { %v9176_v4 = vadd.f32 %v9175_v17, %v9174_v48  ;;  %v9177_v8 = vpop.f32.mrb[250].mxu1  ;;  %9701 = vmatpush3.bf16.msra.mxu1 %v11237_v7  ;;  %v5378_v14 = vadd.f32 %v9136_v56, %v14710_v54  ;;  %v9139_v33 = vadd.f32 %v9138_v23, %v9137_v11  ;;  %v11240_v54 = vld [vmem:[%s15288_s4 + $0x3b0] sm:$0xff]   ;;  %v11245_v48 = vld [vmem:[%s15288_s4 + $0x438] sm:$0xff]  }
 0x319   :  { %v9178_v6 = vpop.f32.mrb[251].mxu1  ;;  %9702 = vmatprep.subr.bf16.mxu1 %v11239_v20  ;;  %6725 = vmatmul.mubr.bf16.gmra.mrb[92].mxu0 %v7847_v52  ;;  %v11246_v52 = vld [vmem:[%s15288_s4 + $0x4c0] sm:$0xff]  }
 0x31a   :  { %v9179_v26 = vadd.f32 %v9178_v6, %v9177_v8  ;;  %v5381_v32 = vadd.f32 %v9139_v33, %v14724_v38  ;;  %v14869_v39 = vadd.f32 %v9176_v4, %v5378_v14  ;;  %9663 = vmatpush3.bf16.msra.mxu0 %v11240_v54  ;;  %v11243_v38 = vld [vmem:[%s15288_s4 + $0x478] sm:$0xff]   ;;  %6828 = vmatprep.mubr.bf16.mxu0 %v10645_v27  ;;  %v10651_v4 = vld [vmem:[%s15292_s3 + $0x104] ss:$100 sps:$4 sm:$0xff]   ;;  %v10654_v8 = vld [vmem:[%s15292_s3 + $0x10c] ss:$100 sps:$4 sm:$0xff]  }
 0x31b   :  { %6789 = vmatmul.mubr.bf16.gmra.mrb[100].mxu1 %v7849_v63  ;;  %9664 = vmatprep.subr.bf16.mxu0 %v11242_v31  ;;  %v11247_v63 = vld [vmem:[%s15288_s4 + $0x540] sm:$0xff]   ;;  %v11252_v31 = vld [vmem:[%s15288_s4 + $0x488] sm:$0xff]  }
 0x31c   :  { %9703 = vmatpush3.bf16.msra.mxu1 %v11241_v57  ;;  %v14883_v25 = vadd.f32 %v9179_v26, %v5381_v32  ;;  %v9140_v45 = vpop.f32.mrb[252].mxu0  ;;  %6892 = vmatprep.mubr.bf16.mxu1 %v10648_v34  ;;  %v11249_v6 = vld [vmem:[%s15288_s4 + $0x500] sm:$0xff]   ;;  %v10652_v32 = vld [vmem:[%s15292_s3 + $0x108] ss:$100 sps:$4 sm:$0xff]  }
 0x31d   :  { %9704 = vmatprep.subr.bf16.mxu1 %v11243_v38  ;;  %v9141_v59 = vpop.f32.mrb[253].mxu0  ;;  %v10649_v34 = vld [vmem:[%s15292_s3 + $0x100] ss:$100 sps:$4 sm:$0xff]  }
 0x31e   :  { %v9180_v46 = vpop.f32.mrb[252].mxu1  ;;  %v9142_v44 = vadd.f32 %v9141_v59, %v9140_v45  ;;  %v9143_v53 = vpop.f32.mrb[254].mxu0  ;;  %9665 = vmatpush3.bf16.msra.mxu0 %v11244_v51 }
 0x31f   :  { %v9181_v42 = vpop.f32.mrb[253].mxu1  ;;  %v9144_v62 = vpop.f32.mrb[255].mxu0  ;;  %9730 = vmatprep.subr.bf16.mxu0 %v11246_v52  ;;  %v11258_v52 = vld [vmem:[%s15288_s4 + $0x4d8] sm:$0xff]  }
 0x320   :  { %v9182_v30 = vadd.f32 %v9181_v42, %v9180_v46  ;;  %v9183_v40 = vpop.f32.mrb[254].mxu1  ;;  %9705 = vmatpush3.bf16.msra.mxu1 %v11245_v48  ;;  %v5386_v56 = vadd.f32 %v9142_v44, %v14752_v16  ;;  %v9145_v11 = vadd.f32 %v9144_v62, %v9143_v53  ;;  %v11248_v16 = vld [vmem:[%s15288_s4 + $0x480] sm:$0xff]   ;;  %v11253_v46 = vld [vmem:[%s15288_s4 + $0x508] sm:$0xff]  }
 0x321   :  { %v9184_v17 = vpop.f32.mrb[255].mxu1  ;;  %9770 = vmatprep.subr.bf16.mxu1 %v11247_v63  ;;  %6829 = vmatmul.mubr.bf16.vlgmr.msra.gmra.mrb[96].mxu0 %v10643_v47  ;;  %v11254_v47 = vld [vmem:[%s15288_s4 + $0x4d0] sm:$0xff]  }
 0x322   :  { %v9185_v1 = vadd.f32 %v9184_v17, %v9183_v40  ;;  %v5389_v7 = vadd.f32 %v9145_v11, %v14766_v18  ;;  %v14911_v23 = vadd.f32 %v9182_v30, %v5386_v56  ;;  %9731 = vmatpush3.bf16.msra.mxu0 %v11248_v16  ;;  %v11251_v18 = vld [vmem:[%s15288_s4 + $0x548] sm:$0xff]   ;;  %6836 = vmatprep.mubr.bf16.mxu0 %v10651_v4  ;;  %v10660_v40 = vld [vmem:[%s15292_s3 + $0x1d4] ss:$100 sps:$4 sm:$0xff]  }
 0x323   :  { %6893 = vmatmul.mubr.bf16.vlgmr.msra.gmra.mrb[104].mxu1 %v10646_v43  ;;  %9732 = vmatprep.subr.bf16.mxu0 %v11250_v15  ;;  %v11255_v43 = vld [vmem:[%s15288_s4 + $0x550] sm:$0xff]  }
 0x324   :  { %9771 = vmatpush3.bf16.msra.mxu1 %v11249_v6  ;;  %v14925_v20 = vadd.f32 %v9185_v1, %v5389_v7  ;;  %v9146_v14 = vpop.f32.mrb[0].mxu0  ;;  %6900 = vmatprep.mubr.bf16.mxu1 %v10654_v8  ;;  %v10657_v30 = vld [vmem:[%s15292_s3 + $0x1cc] ss:$100 sps:$4 sm:$0xff]   ;;  %v5877_v6 = vld [vmem:[%s15292_s3 + $0x298] sm:$0xff] }
 0x325   :  { %9772 = vmatprep.subr.bf16.mxu1 %v11251_v18  ;;  %v9147_v26 = vpop.f32.mrb[1].mxu0  ;;  %v11257_v17 = vld [vmem:[%s15288_s4 + $0x510] sm:$0xff]   ;;  %v10655_v1 = vld [vmem:[%s15292_s3 + $0x1c8] ss:$100 sps:$4 sm:$0xff]  }
 0x326   :  { %v9186_v33 = vpop.f32.mrb[0].mxu1  ;;  %v9148_v54 = vadd.f32 %v9147_v26, %v9146_v14  ;;  %v9149_v57 = vpop.f32.mrb[2].mxu0  ;;  %9733 = vmatpush3.bf16.msra.mxu0 %v11252_v31  ;;  %v10658_v7 = vld [vmem:[%s15292_s3 + $0x1d0] ss:$100 sps:$4 sm:$0xff]   ;;  %v11260_v14 = vld [vmem:[%s15288_s4 + $0x498] sm:$0xff]  }
 0x327   :  { %v9187_v27 = vpop.f32.mrb[1].mxu1  ;;  %v9150_v59 = vpop.f32.mrb[3].mxu0  ;;  %9734 = vmatprep.subr.bf16.mxu0 %v11254_v47  ;;  %v5876_v16 = vld [vmem:[%s15292_s3 + $0x290] sm:$0xff]  ;;  %v11261_v26 = vld [vmem:[%s15288_s4 + $0x518] sm:$0xff]   ;;  %v11267_v47 = vld [vmem:[%s15288_s4 + $0x568] sm:$0xff]  }
 0x328   :  { %v9188_v38 = vadd.f32 %v9187_v27, %v9186_v33  ;;  %v9189_v45 = vpop.f32.mrb[2].mxu1  ;;  %9773 = vmatpush3.bf16.msra.mxu1 %v11253_v46  ;;  %v5394_v44 = vadd.f32 %v9148_v54, %v14794_v0  ;;  %v9151_v53 = vadd.f32 %v9150_v59, %v9149_v57  ;;  %v11256_v0 = vld [vmem:[%s15288_s4 + $0x490] sm:$0xff]   ;;  %v11263_v54 = vld [vmem:[%s15288_s4 + $0x560] sm:$0xff]  }
 0x329   :  { %v9190_v42 = vpop.f32.mrb[3].mxu1  ;;  %9774 = vmatprep.subr.bf16.mxu1 %v11255_v43  ;;  %6837 = vmatmul.mubr.bf16.gmra.mrb[100].mxu0 %v10649_v34  ;;  %v11264_v59 = vld [vmem:[%s15288_s4 + $0x4a0] sm:$0xff]  }
 0x32a   :  { %v9191_v51 = vadd.f32 %v9190_v42, %v9189_v45  ;;  %v5397_v48 = vadd.f32 %v9151_v53, %v14808_v3  ;;  %v14953_v62 = vadd.f32 %v9188_v38, %v5394_v44  ;;  %9735 = vmatpush3.bf16.msra.mxu0 %v11256_v0  ;;  %v11259_v3 = vld [vmem:[%s15288_s4 + $0x558] sm:$0xff]   ;;  %6844 = vmatprep.mubr.bf16.mxu0 %v10657_v30  ;;  %v11265_v42 = vld [vmem:[%s15288_s4 + $0x520] sm:$0xff]  }
 0x32b   :  { %6901 = vmatmul.mubr.bf16.gmra.mrb[108].mxu1 %v10652_v32  ;;  %9736 = vmatprep.subr.bf16.mxu0 %v11258_v52  ;;  %v11262_v32 = vld [vmem:[%s15288_s4 + $0x4e0] sm:$0xff]   ;;  %v7852_v38 = vcombine.high %v5876_v16, %v5876_v16  ;;  %v7854_v45 = vcombine.high %v5877_v6, %v5877_v6  ;;  %v7851_v30 = vcombine.low %v5876_v16, %v5876_v16 }
 0x32c   :  { %9775 = vmatpush3.bf16.msra.mxu1 %v11257_v17  ;;  %v14967_v63 = vadd.f32 %v9191_v51, %v5397_v48  ;;  %v9152_v56 = vpop.f32.mrb[4].mxu0  ;;  %6908 = vmatprep.mubr.bf16.mxu1 %v10660_v40  ;;  %v7853_v40 = vcombine.low %v5877_v6, %v5877_v6  ;;  %v11268_v17 = vld [vmem:[%s15288_s4 + $0x4a8] sm:$0xff]  }
 0x32d   :  { %9776 = vmatprep.subr.bf16.mxu1 %v11259_v3  ;;  %v9153_v4 = vpop.f32.mrb[5].mxu0 }
 0x32e   :  { %v9192_v11 = vpop.f32.mrb[4].mxu1  ;;  %v9154_v15 = vadd.f32 %v9153_v4, %v9152_v56  ;;  %v9155_v18 = vpop.f32.mrb[6].mxu0  ;;  %9737 = vmatpush3.bf16.msra.mxu0 %v11260_v14  ;;  %v11269_v56 = vld [vmem:[%s15288_s4 + $0x528] sm:$0xff]   ;;  %v11270_v4 = vld [vmem:[%s15288_s4 + $0x4f0] sm:$0xff]  }
 0x32f   :  { %v9193_v8 = vpop.f32.mrb[5].mxu1  ;;  %v9156_v34 = vpop.f32.mrb[7].mxu0  ;;  %9738 = vmatprep.subr.bf16.mxu0 %v11262_v32  ;;  %v10670_v18 = vld [vmem:[%s15292_s3 + $0x54] ss:$100 sps:$4 sm:$0xff]  }
 0x330   :  { %v9194_v33 = vadd.f32 %v9193_v8, %v9192_v11  ;;  %9777 = vmatpush3.bf16.msra.mxu1 %v11261_v26  ;;  %v9195_v27 = vpop.f32.mrb[6].mxu1  ;;  %v5402_v31 = vadd.f32 %v9154_v15, %v14835_v49  ;;  %v11266_v49 = vld [vmem:[%s15288_s4 + $0x4e8] sm:$0xff]   ;;  %v11271_v8 = vld [vmem:[%s15288_s4 + $0x570] sm:$0xff]  }
 0x331   :  { %9778 = vmatprep.subr.bf16.mxu1 %v11263_v54  ;;  %v9196_v57 = vpop.f32.mrb[7].mxu1  ;;  %6845 = vmatmul.mubr.bf16.gmra.mrb[104].mxu0 %v10655_v1  ;;  %v10667_v15 = vld [vmem:[%s15292_s3 + $0x4c] ss:$100 sps:$4 sm:$0xff]   ;;  %v11274_v27 = vld [vmem:[%s15288_s4 + $0x4f8] sm:$0xff]  }
 0x332   :  { %v14994_v46 = vadd.f32 %v9194_v33, %v5402_v31  ;;  %9739 = vmatpush3.bf16.msra.mxu0 %v11264_v59  ;;  %6852 = vmatprep.mubr.bf16.mxu0 %v7852_v38  ;;  %v11273_v26 = vld [vmem:[%s15288_s4 + $0x530] sm:$0xff]   ;;  %v10665_v38 = vld [vmem:[%s15292_s3 + $0x48] ss:$100 sps:$4 sm:$0xff]  }
 0x333   :  { %6909 = vmatmul.mubr.bf16.gmra.mrb[112].mxu1 %v10658_v7  ;;  %9740 = vmatprep.subr.bf16.mxu0 %v11266_v49  ;;  %v11276_v49 = vld [vmem:[%s15288_s4 + $0x4b8] sm:$0xff]  }
 0x334   :  { %9779 = vmatpush3.bf16.msra.mxu1 %v11265_v42  ;;  %v9214_v43 = vpop.f32.mrb[8].mxu0  ;;  %6916 = vmatprep.mubr.bf16.mxu1 %v7854_v45  ;;  %v10668_v45 = vld [vmem:[%s15292_s3 + $0x50] ss:$100 sps:$4 sm:$0xff]  }
 0x335   :  { %9780 = vmatprep.subr.bf16.mxu1 %v11267_v47  ;;  %v9215_v53 = vpop.f32.mrb[9].mxu0 }
 0x336   :  { %v9254_v44 = vpop.f32.mrb[8].mxu1  ;;  %v9216_v48 = vadd.f32 %v9215_v53, %v9214_v43  ;;  %v9217_v0 = vpop.f32.mrb[10].mxu0  ;;  %9741 = vmatpush3.bf16.msra.mxu0 %v11268_v17 }
 0x337   :  { %v9255_v51 = vpop.f32.mrb[9].mxu1  ;;  %v9218_v11 = vpop.f32.mrb[11].mxu0  ;;  %9742 = vmatprep.subr.bf16.mxu0 %v11270_v4 }
 0x338   :  { %v9256_v52 = vadd.f32 %v9255_v51, %v9254_v44  ;;  %v9257_v3 = vpop.f32.mrb[10].mxu1  ;;  %9781 = vmatpush3.bf16.msra.mxu1 %v11269_v56  ;;  %v5506_v7 = vadd.f32 %v9216_v48, %v14869_v39  ;;  %v9219_v16 = vadd.f32 %v9218_v11, %v9217_v0  ;;  %v11272_v39 = vld [vmem:[%s15288_s4 + $0x4b0] sm:$0xff]   ;;  %v11277_v44 = vld [vmem:[%s15288_s4 + $0x538] sm:$0xff]  }
 0x339   :  { %v9258_v1 = vpop.f32.mrb[11].mxu1  ;;  %9782 = vmatprep.subr.bf16.mxu1 %v11271_v8  ;;  %6853 = vmatmul.mubr.bf16.gmra.mrb[108].mxu0 %v7851_v30  ;;  %v11278_v30 = vld [vmem:[%s15288_s4 + $0x5c0] sm:$0xff]   ;;  %v10673_v48 = vld [vmem:[%s15292_s3 + $0x114] ss:$100 sps:$4 sm:$0xff]  }
 0x33a   :  { %v9259_v6 = vadd.f32 %v9258_v1, %v9257_v3  ;;  %v5509_v14 = vadd.f32 %v9219_v16, %v14883_v25  ;;  %v15028_v33 = vadd.f32 %v9256_v52, %v5506_v7  ;;  %9743 = vmatpush3.bf16.msra.mxu0 %v11272_v39  ;;  %v11275_v25 = vld [vmem:[%s15288_s4 + $0x578] sm:$0xff]   ;;  %6956 = vmatprep.mubr.bf16.mxu0 %v10667_v15  ;;  %v11280_v1 = vld [vmem:[%s15288_s4 + $0x580] sm:$0xff]   ;;  %v10671_v15 = vld [vmem:[%s15292_s3 + $0x110] ss:$100 sps:$4 sm:$0xff]  }
 0x33b   :  { %6917 = vmatmul.mubr.bf16.gmra.mrb[116].mxu1 %v7853_v40  ;;  %9744 = vmatprep.subr.bf16.mxu0 %v11274_v27  ;;  %v11279_v40 = vld [vmem:[%s15288_s4 + $0x600] sm:$0xff]  }
 0x33c   :  { %9783 = vmatpush3.bf16.msra.mxu1 %v11273_v26  ;;  %v15042_v34 = vadd.f32 %v9259_v6, %v5509_v14  ;;  %v9220_v32 = vpop.f32.mrb[12].mxu0  ;;  %7020 = vmatprep.mubr.bf16.mxu1 %v10670_v18  ;;  %v10676_v3 = vld [vmem:[%s15292_s3 + $0x11c] ss:$100 sps:$4 sm:$0xff]   ;;  %v11283_v26 = vld [vmem:[%s15288_s4 + $0x588] sm:$0xff]  }
 0x33d   :  { %9784 = vmatprep.subr.bf16.mxu1 %v11275_v25  ;;  %v9221_v57 = vpop.f32.mrb[13].mxu0  ;;  %v10674_v18 = vld [vmem:[%s15292_s3 + $0x118] ss:$100 sps:$4 sm:$0xff]  }
 0x33e   :  { %v9260_v54 = vpop.f32.mrb[12].mxu1  ;;  %v9222_v59 = vadd.f32 %v9221_v57, %v9220_v32  ;;  %v9223_v42 = vpop.f32.mrb[14].mxu0  ;;  %9745 = vmatpush3.bf16.msra.mxu0 %v11276_v49  ;;  %v11284_v57 = vld [vmem:[%s15288_s4 + $0x5d0] sm:$0xff]   ;;  %v10682_v49 = vld [vmem:[%s15292_s3 + $0x1e4] ss:$100 sps:$4 sm:$0xff]  }
 0x33f   :  { %v9261_v31 = vpop.f32.mrb[13].mxu1  ;;  %v9224_v53 = vpop.f32.mrb[15].mxu0  ;;  %9810 = vmatprep.subr.bf16.mxu0 %v11278_v30 }
 0x340   :  { %v9262_v47 = vadd.f32 %v9261_v31, %v9260_v54  ;;  %v9263_v43 = vpop.f32.mrb[14].mxu1  ;;  %9785 = vmatpush3.bf16.msra.mxu1 %v11277_v44  ;;  %v5514_v0 = vadd.f32 %v9222_v59, %v14911_v23  ;;  %v9225_v17 = vadd.f32 %v9224_v53, %v9223_v42  ;;  %v11281_v23 = vld [vmem:[%s15288_s4 + $0x5c8] sm:$0xff]   ;;  %v11285_v31 = vld [vmem:[%s15288_s4 + $0x610] sm:$0xff]  }
 0x341   :  { %v9264_v51 = vpop.f32.mrb[15].mxu1  ;;  %9934 = vmatprep.subr.bf16.mxu1 %v11279_v40  ;;  %6957 = vmatmul.mubr.bf16.vlgmr.msra.gmra.mrb[112].mxu0 %v10665_v38  ;;  %v10679_v38 = vld [vmem:[%s15292_s3 + $0x1dc] ss:$100 sps:$4 sm:$0xff]   ;;  %v11286_v44 = vld [vmem:[%s15288_s4 + $0x590] sm:$0xff]  }
 0x342   :  { %v9265_v52 = vadd.f32 %v9264_v51, %v9263_v43  ;;  %v5517_v56 = vadd.f32 %v9225_v17, %v14925_v20  ;;  %v15070_v11 = vadd.f32 %v9262_v47, %v5514_v0  ;;  %9811 = vmatpush3.bf16.msra.mxu0 %v11280_v1  ;;  %6964 = vmatprep.mubr.bf16.mxu0 %v10673_v48  ;;  %v11282_v20 = vld [vmem:[%s15288_s4 + $0x608] sm:$0xff]   ;;  %v5878_v48 = vld [vmem:[%s15292_s3 + $0x2a0] sm:$0xff] }
 0x343   :  { %7021 = vmatmul.mubr.bf16.vlgmr.msra.gmra.mrb[120].mxu1 %v10668_v45  ;;  %9812 = vmatprep.subr.bf16.mxu0 %v11281_v23  ;;  %v11289_v23 = vld [vmem:[%s15288_s4 + $0x598] sm:$0xff]  }
 0x344   :  { %9935 = vmatpush3.bf16.msra.mxu1 %v11279_v40  ;;  %v15078_v4 = vadd.f32 %v9265_v52, %v5517_v56  ;;  %v9226_v8 = vpop.f32.mrb[16].mxu0  ;;  %7028 = vmatprep.mubr.bf16.mxu1 %v10676_v3  ;;  %v11288_v40 = vld [vmem:[%s15288_s4 + $0x618] sm:$0xff]   ;;  %v10680_v52 = vld [vmem:[%s15292_s3 + $0x1e0] ss:$100 sps:$4 sm:$0xff]   ;;  %v5879_v3 = vld [vmem:[%s15292_s3 + $0x2a8] sm:$0xff] }
 0x345   :  { %9936 = vmatprep.subr.bf16.mxu1 %v11282_v20  ;;  %v9227_v16 = vpop.f32.mrb[17].mxu0 }
 0x346   :  { %v9266_v7 = vpop.f32.mrb[16].mxu1  ;;  %v9228_v14 = vadd.f32 %v9227_v16, %v9226_v8  ;;  %v9229_v39 = vpop.f32.mrb[18].mxu0  ;;  %9813 = vmatpush3.bf16.msra.mxu0 %v11283_v26  ;;  %v11290_v16 = vld [vmem:[%s15288_s4 + $0x5e0] sm:$0xff]  }
 0x347   :  { %v9267_v6 = vpop.f32.mrb[17].mxu1  ;;  %v9230_v32 = vpop.f32.mrb[19].mxu0  ;;  %9814 = vmatprep.subr.bf16.mxu0 %v11284_v57 }
 0x348   :  { %v9268_v27 = vadd.f32 %v9267_v6, %v9266_v7  ;;  %v9269_v25 = vpop.f32.mrb[18].mxu1  ;;  %9937 = vmatpush3.bf16.msra.mxu1 %v11282_v20  ;;  %v5522_v45 = vadd.f32 %v9228_v14, %v14953_v62  ;;  %v9231_v59 = vadd.f32 %v9230_v32, %v9229_v39  ;;  %v11287_v62 = vld [vmem:[%s15288_s4 + $0x5d8] sm:$0xff]   ;;  %v7858_v39 = vcombine.high %v5879_v3, %v5879_v3 }
 0x349   :  { %v9270_v54 = vpop.f32.mrb[19].mxu1  ;;  %9938 = vmatprep.subr.bf16.mxu1 %v11285_v31  ;;  %6965 = vmatmul.mubr.bf16.gmra.mrb[116].mxu0 %v10671_v15  ;;  %v11291_v15 = vld [vmem:[%s15288_s4 + $0x620] sm:$0xff]  }
 0x34a   :  { %v9271_v42 = vadd.f32 %v9270_v54, %v9269_v25  ;;  %v5525_v47 = vadd.f32 %v9231_v59, %v14967_v63  ;;  %v15106_v43 = vadd.f32 %v9268_v27, %v5522_v45  ;;  %9815 = vmatpush3.bf16.msra.mxu0 %v11286_v44  ;;  %6972 = vmatprep.mubr.bf16.mxu0 %v10679_v38  ;;  %v10677_v63 = vld [vmem:[%s15292_s3 + $0x1d8] ss:$100 sps:$4 sm:$0xff]   ;;  %v11292_v27 = vld [vmem:[%s15288_s4 + $0x5a0] sm:$0xff]   ;;  %v11293_v25 = vld [vmem:[%s15288_s4 + $0x5e8] sm:$0xff]  }
 0x34b   :  { %7029 = vmatmul.mubr.bf16.gmra.mrb[124].mxu1 %v10674_v18  ;;  %9816 = vmatprep.subr.bf16.mxu0 %v11287_v62  ;;  %v7856_v18 = vcombine.high %v5878_v48, %v5878_v48  ;;  %v7855_v38 = vcombine.low %v5878_v48, %v5878_v48  ;;  %v7857_v45 = vcombine.low %v5879_v3, %v5879_v3 }
 0x34c   :  { %9939 = vmatpush3.bf16.msra.mxu1 %v11285_v31  ;;  %v15114_v53 = vadd.f32 %v9271_v42, %v5525_v47  ;;  %v9232_v51 = vpop.f32.mrb[20].mxu0  ;;  %7036 = vmatprep.mubr.bf16.mxu1 %v10682_v49  ;;  %v11295_v49 = vld [vmem:[%s15288_s4 + $0x5a8] sm:$0xff]  }
 0x34d   :  { %9940 = vmatprep.subr.bf16.mxu1 %v11288_v40  ;;  %v9233_v0 = vpop.f32.mrb[21].mxu0 }
 0x34e   :  { %v9272_v30 = vpop.f32.mrb[20].mxu1  ;;  %v9234_v56 = vadd.f32 %v9233_v0, %v9232_v51  ;;  %v9235_v1 = vpop.f32.mrb[22].mxu0  ;;  %9817 = vmatpush3.bf16.msra.mxu0 %v11289_v23 }
 0x34f   :  { %v9273_v17 = vpop.f32.mrb[21].mxu1  ;;  %v9236_v20 = vpop.f32.mrb[23].mxu0  ;;  %9818 = vmatprep.subr.bf16.mxu0 %v11290_v16 }
 0x350   :  { %v9274_v8 = vadd.f32 %v9273_v17, %v9272_v30  ;;  %9941 = vmatpush3.bf16.msra.mxu1 %v11288_v40  ;;  %v9275_v7 = vpop.f32.mrb[22].mxu1  ;;  %v5530_v14 = vadd.f32 %v9234_v56, %v14994_v46  ;;  %v11294_v46 = vld [vmem:[%s15288_s4 + $0x628] sm:$0xff]   ;;  %v11296_v30 = vld [vmem:[%s15288_s4 + $0x5f0] sm:$0xff]   ;;  %v10689_v40 = vld [vmem:[%s15292_s3 + $0x5c] ss:$100 sps:$4 sm:$0xff]  }
 0x351   :  { %v9276_v6 = vpop.f32.mrb[23].mxu1  ;;  %9942 = vmatprep.subr.bf16.mxu1 %v11291_v15  ;;  %6973 = vmatmul.mubr.bf16.gmra.mrb[120].mxu0 %v10677_v63  ;;  %v11297_v63 = vld [vmem:[%s15288_s4 + $0x630] sm:$0xff]  }
 0x352   :  { %v15141_v26 = vadd.f32 %v9274_v8, %v5530_v14  ;;  %9819 = vmatpush3.bf16.msra.mxu0 %v11292_v27  ;;  %6980 = vmatprep.mubr.bf16.mxu0 %v7856_v18  ;;  %v11298_v56 = vld [vmem:[%s15288_s4 + $0x5b0] sm:$0xff]   ;;  %v10687_v6 = vld [vmem:[%s15292_s3 + $0x58] ss:$100 sps:$4 sm:$0xff]  }
 0x353   :  { %7037 = vmatmul.mubr.bf16.gmra.mrb[128].mxu1 %v10680_v52  ;;  %9820 = vmatprep.subr.bf16.mxu0 %v11293_v25  ;;  %v10690_v52 = vld [vmem:[%s15292_s3 + $0x60] ss:$100 sps:$4 sm:$0xff]  }
 0x354   :  { %9943 = vmatpush3.bf16.msra.mxu1 %v11291_v15  ;;  %v9294_v32 = vpop.f32.mrb[24].mxu0  ;;  %7044 = vmatprep.mubr.bf16.mxu1 %v7858_v39  ;;  %v10691_v15 = vld [vmem:[%s15292_s3 + $0x128] ss:$100 sps:$4 sm:$0xff]   ;;  %v11301_v39 = vld [vmem:[%s15288_s4 + $0x5b8] sm:$0xff]  }
 0x355   :  { %9944 = vmatprep.subr.bf16.mxu1 %v11294_v46  ;;  %v9295_v57 = vpop.f32.mrb[25].mxu0 }
 0x356   :  { %v9334_v54 = vpop.f32.mrb[24].mxu1  ;;  %v9296_v59 = vadd.f32 %v9295_v57, %v9294_v32  ;;  %v9297_v42 = vpop.f32.mrb[26].mxu0  ;;  %9821 = vmatpush3.bf16.msra.mxu0 %v11295_v49  ;;  %v10694_v32 = vld [vmem:[%s15292_s3 + $0x124] ss:$100 sps:$4 sm:$0xff]  }
 0x357   :  { %v9335_v31 = vpop.f32.mrb[25].mxu1  ;;  %v9298_v62 = vpop.f32.mrb[27].mxu0  ;;  %9822 = vmatprep.subr.bf16.mxu0 %v11296_v30  ;;  %v10692_v30 = vld [vmem:[%s15292_s3 + $0x120] ss:$100 sps:$4 sm:$0xff]  }
 0x358   :  { %v9336_v47 = vadd.f32 %v9335_v31, %v9334_v54  ;;  %v9337_v44 = vpop.f32.mrb[26].mxu1  ;;  %9945 = vmatpush3.bf16.msra.mxu1 %v11294_v46  ;;  %v5634_v48 = vadd.f32 %v9296_v59, %v15028_v33  ;;  %v9299_v0 = vadd.f32 %v9298_v62, %v9297_v42  ;;  %v11299_v33 = vld [vmem:[%s15288_s4 + $0x5f8] sm:$0xff]   ;;  %v10698_v54 = vld [vmem:[%s15292_s3 + $0x1f0] ss:$100 sps:$4 sm:$0xff]  }
 0x359   :  { %v9338_v51 = vpop.f32.mrb[27].mxu1  ;;  %9946 = vmatprep.subr.bf16.mxu1 %v11297_v63  ;;  %6981 = vmatmul.mubr.bf16.gmra.mrb[124].mxu0 %v7855_v38 }
 0x35a   :  { %v9339_v17 = vadd.f32 %v9338_v51, %v9337_v44  ;;  %v5637_v3 = vadd.f32 %v9299_v0, %v15042_v34  ;;  %9823 = vmatpush3.bf16.msra.mxu0 %v11298_v56  ;;  %v15172_v1 = vadd.f32 %v9336_v47, %v5634_v48  ;;  %7084 = vmatprep.mubr.bf16.mxu0 %v10689_v40  ;;  %v11300_v34 = vld [vmem:[%s15288_s4 + $0x638] sm:$0xff]   ;;  %v10697_v0 = vld [vmem:[%s15292_s3 + $0x1ec] ss:$100 sps:$4 sm:$0xff]  }
 0x35b   :  { %7045 = vmatmul.mubr.bf16.gmra.mrb[132].mxu1 %v7857_v45  ;;  %9824 = vmatprep.subr.bf16.mxu0 %v11299_v33 }
 0x35c   :  { %9947 = vmatpush3.bf16.msra.mxu1 %v11297_v63  ;;  %v9300_v23 = vpop.f32.mrb[28].mxu0  ;;  %9950 = vmatprep.mubr.bf16.mxu1 %v10690_v52  ;;  %v15180_v7 = vadd.f32 %v9339_v17, %v5637_v3 }
 0x35d   :  { %9948 = vmatprep.subr.bf16.mxu1 %v11300_v34  ;;  %v9301_v20 = vpop.f32.mrb[29].mxu0 }
 0x35e   :  { %v9340_v8 = vpop.f32.mrb[28].mxu1  ;;  %v9302_v18 = vadd.f32 %v9301_v20, %v9300_v23  ;;  %v9303_v14 = vpop.f32.mrb[30].mxu0  ;;  %9825 = vmatpush3.bf16.msra.mxu0 %v11301_v39 }
 0x35f   :  { %v9341_v16 = vpop.f32.mrb[29].mxu1  ;;  %v9304_v46 = vpop.f32.mrb[31].mxu0 }
 0x360   :  { %v9342_v27 = vadd.f32 %v9341_v16, %v9340_v8  ;;  %v9343_v25 = vpop.f32.mrb[30].mxu1  ;;  %9949 = vmatpush3.bf16.msra.mxu1 %v11300_v34  ;;  %v5642_v31 = vadd.f32 %v9302_v18, %v15070_v11  ;;  %v9305_v38 = vadd.f32 %v9304_v46, %v9303_v14  ;;  %v10699_v11 = vld [vmem:[%s15292_s3 + $0x2b8] ss:$0 sps:$4 sm:$0xff]   ;;  %v5880_v34 = vld [vmem:[%s15292_s3 + $0x2b0] sm:$0xff] }
 0x361   :  { %v9344_v57 = vpop.f32.mrb[31].mxu1  ;;  %7085 = vmatmul.mubr.bf16.vlgmr.msra.gmra.mrb[128].mxu0 %v10687_v6 }
 0x362   :  { %v9345_v45 = vadd.f32 %v9344_v57, %v9343_v25  ;;  %v5645_v59 = vadd.f32 %v9305_v38, %v15078_v4  ;;  %7092 = vmatprep.mubr.bf16.mxu0 %v10694_v32  ;;  %v5706_v42 = vadd.f32 %v9342_v27, %v5642_v31  ;;  %v7860_v25 = vcombine.high %v5880_v34, %v5880_v34 }
 0x363   :  { %9951 = vmatmul.mubr.bf16.vlgmr.msra.gmra.mrb[136].mxu1 %v10691_v15 }
 0x364   :  { %9954 = vmatprep.mubr.bf16.mxu1 %v10698_v54  ;;  %v9306_v49 = vpop.f32.mrb[32].mxu0  ;;  %v5709_v44 = vadd.f32 %v9345_v45, %v5645_v59 }
 0x365   :  { %v9307_v62 = vpop.f32.mrb[33].mxu0 }
 0x366   :  { %v9346_v47 = vpop.f32.mrb[32].mxu1  ;;  %v9308_v63 = vadd.f32 %v9307_v62, %v9306_v49  ;;  %v9309_v40 = vpop.f32.mrb[34].mxu0  ;;  %v7859_v49 = vcombine.low %v5880_v34, %v5880_v34 }
 0x367   :  { %v9347_v51 = vpop.f32.mrb[33].mxu1  ;;  %v9310_v17 = vpop.f32.mrb[35].mxu0 }
 0x368   :  { %v9348_v48 = vadd.f32 %v9347_v51, %v9346_v47  ;;  %v9349_v4 = vpop.f32.mrb[34].mxu1  ;;  %v5650_v3 = vadd.f32 %v9308_v63, %v15106_v43  ;;  %v9311_v56 = vadd.f32 %v9310_v17, %v9309_v40  ;;  %v10695_v43 = vld [vmem:[%s15292_s3 + $0x1e8] ss:$100 sps:$4 sm:$0xff]  }
 0x369   :  { %v9350_v52 = vpop.f32.mrb[35].mxu1  ;;  %7093 = vmatmul.mubr.bf16.gmra.mrb[132].mxu0 %v10692_v30 }
 0x36a   :  { %v9351_v33 = vadd.f32 %v9350_v52, %v9349_v4  ;;  %v5653_v23 = vadd.f32 %v9311_v56, %v15114_v53  ;;  %7100 = vmatprep.mubr.bf16.mxu0 %v10697_v0  ;;  %v5714_v8 = vadd.f32 %v9348_v48, %v5650_v3 }
 0x36b   :  { %9955 = vmatmul.mubr.bf16.gmra.mrb[140].mxu1 %v10699_v11 }
 0x36c   :  { %v9312_v20 = vpop.f32.mrb[36].mxu0  ;;  %v5717_v6 = vadd.f32 %v9351_v33, %v5653_v23 }
 0x36d   :  { %v9313_v15 = vpop.f32.mrb[37].mxu0 }
 0x36e   :  { %v9352_v16 = vpop.f32.mrb[36].mxu1  ;;  %v9314_v14 = vadd.f32 %v9313_v15, %v9312_v20  ;;  %v9315_v39 = vpop.f32.mrb[38].mxu0 }
 0x36f   :  { %v9353_v18 = vpop.f32.mrb[37].mxu1  ;;  %v9316_v32 = vpop.f32.mrb[39].mxu0 }
 0x370   :  { %v9354_v27 = vadd.f32 %v9353_v18, %v9352_v16  ;;  %v9355_v53 = vpop.f32.mrb[38].mxu1  ;;  %v5658_v46 = vadd.f32 %v9314_v14, %v15141_v26 }
 0x371   :  { %v9356_v54 = vpop.f32.mrb[39].mxu1  ;;  %7101 = vmatmul.mubr.bf16.gmra.mrb[136].mxu0 %v10695_v43 }
 0x372   :  { %7108 = vmatprep.mubr.bf16.mxu0 %v7860_v25  ;;  %v5722_v57 = vadd.f32 %v9354_v27, %v5658_v46 }
 0x374   :  { %v9928_v31 = vpop.f32.mrb[40].mxu0 }
 0x375   :  { %v15217_v45 = vadd.f32 %v9928_v31, %v5706_v42  ;;  %v5761_v59 = vpop.f32.mrb[41].mxu0 }
 0x376   :  { %v9386_v38 = vpop.f32.mrb[40].mxu1  ;;  %v15220_v62 = vadd.f32 %v5761_v59, %v15172_v1  ;;  %v9929_v51 = vpop.f32.mrb[42].mxu0 }
 0x377   :  { %v9387_v47 = vpop.f32.mrb[41].mxu1  ;;  %v15222_v63 = vadd.f32 %v9929_v51, %v5709_v44  ;;  %v5764_v40 = vpop.f32.mrb[43].mxu0 }
 0x378   :  { %v9388_v30 = vadd.f32 %v9387_v47, %v9386_v38  ;;  %v9389_v11 = vpop.f32.mrb[42].mxu1  ;;  %v15225_v48 = vadd.f32 %v5764_v40, %v15180_v7 }
 0x379   :  { %v9390_v26 = vpop.f32.mrb[43].mxu1  ;;  %7109 = vmatmul.mubr.bf16.gmra.mrb[140].mxu0 %v7859_v49 }
 0x37a   :  { %v9391_v4 = vadd.f32 %v9390_v26, %v9389_v11 }
 0x37c   :  { %v9932_v42 = vpop.f32.mrb[44].mxu0 }
 0x37d   :  { %v15227_v17 = vadd.f32 %v9932_v42, %v5722_v57  ;;  %v5777_v52 = vpop.f32.mrb[45].mxu0 }
 0x37e   :  { %v9392_v0 = vpop.f32.mrb[44].mxu1  ;;  %v15229_v1 = vadd.f32 %v5777_v52, %v5714_v8  ;;  %v9933_v56 = vpop.f32.mrb[46].mxu0 }
 0x37f   :  { %v9393_v3 = vpop.f32.mrb[45].mxu1  ;;  %v5780_v44 = vpop.f32.mrb[47].mxu0 }
 0x380   :  { %v9394_v33 = vadd.f32 %v9393_v3, %v9392_v0  ;;  %v9395_v23 = vpop.f32.mrb[46].mxu1  ;;  %v15231_v20 = vadd.f32 %v5780_v44, %v5717_v6 }
 0x381   :  { %v9396_v34 = vpop.f32.mrb[47].mxu1 }
 0x382   :  { %v9397_v16 = vadd.f32 %v9396_v34, %v9395_v23 }
 0x386   :  { %v9398_v7 = vpop.f32.mrb[48].mxu1 }
 0x387   :  { %v9399_v15 = vpop.f32.mrb[49].mxu1 }
 0x388   :  { %v9400_v18 = vadd.f32 %v9399_v15, %v9398_v7  ;;  %v9401_v43 = vpop.f32.mrb[50].mxu1 }
 0x389   :  { %v9402_v14 = vpop.f32.mrb[51].mxu1 }
 0x38a   :  { %v9403_v39 = vadd.f32 %v9402_v14, %v9401_v43 }
 0x38e   :  { %v9404_v27 = vpop.f32.mrb[52].mxu1 }
 0x38f   :  { %v9405_v25 = vpop.f32.mrb[53].mxu1 }
 0x390   :  { %v9406_v53 = vadd.f32 %v9405_v25, %v9404_v27  ;;  %v9407_v32 = vpop.f32.mrb[54].mxu1 }
 0x391   :  { %v9408_v8 = vpop.f32.mrb[55].mxu1 }
 0x394   :  { %v9426_v54 = vpop.f32.mrb[48].mxu0 }
 0x395   :  { %v9427_v57 = vpop.f32.mrb[49].mxu0 }
 0x396   :  { %v9466_v46 = vpop.f32.mrb[56].mxu1  ;;  %v9428_v38 = vadd.f32 %v9427_v57, %v9426_v54  ;;  %v9429_v59 = vpop.f32.mrb[50].mxu0 }
 0x397   :  { %v9467_v31 = vpop.f32.mrb[57].mxu1  ;;  %v9430_v47 = vpop.f32.mrb[51].mxu0 }
 0x398   :  { %v9468_v6 = vadd.f32 %v9467_v31, %v9466_v46  ;;  %v9469_v49 = vpop.f32.mrb[58].mxu1  ;;  %v6447_v11 = vadd.f32 %v9428_v38, %v9388_v30  ;;  %v9431_v40 = vadd.f32 %v9430_v47, %v9429_v59 }
 0x399   :  { %v9470_v51 = vpop.f32.mrb[59].mxu1 }
 0x39a   :  { %v9471_v26 = vadd.f32 %v9470_v51, %v9469_v49  ;;  %v6450_v42 = vadd.f32 %v9431_v40, %v9391_v4  ;;  %v6511_v0 = vadd.f32 %v9468_v6, %v6447_v11 }
 0x39c   :  { %v6514_v52 = vadd.f32 %v9471_v26, %v6450_v42  ;;  %v9432_v3 = vpop.f32.mrb[52].mxu0 }
 0x39d   :  { %v9433_v23 = vpop.f32.mrb[53].mxu0 }
 0x39e   :  { %v9472_v56 = vpop.f32.mrb[60].mxu1  ;;  %v9434_v34 = vadd.f32 %v9433_v23, %v9432_v3  ;;  %v9435_v7 = vpop.f32.mrb[54].mxu0 }
 0x39f   :  { %v9473_v44 = vpop.f32.mrb[61].mxu1  ;;  %v9436_v14 = vpop.f32.mrb[55].mxu0 }
 0x3a0   :  { %v9474_v15 = vadd.f32 %v9473_v44, %v9472_v56  ;;  %v9475_v43 = vpop.f32.mrb[62].mxu1  ;;  %v6455_v25 = vadd.f32 %v9434_v34, %v9394_v33  ;;  %v9437_v32 = vadd.f32 %v9436_v14, %v9435_v7 }
 0x3a1   :  { %v9476_v27 = vpop.f32.mrb[63].mxu1 }
 0x3a2   :  { %v9477_v8 = vadd.f32 %v9476_v27, %v9475_v43  ;;  %v6458_v54 = vadd.f32 %v9437_v32, %v9397_v16  ;;  %v6519_v30 = vadd.f32 %v9474_v15, %v6455_v25 }
 0x3a4   :  { %v6522_v46 = vadd.f32 %v9477_v8, %v6458_v54  ;;  %v9438_v57 = vpop.f32.mrb[56].mxu0 }
 0x3a5   :  { %v9439_v31 = vpop.f32.mrb[57].mxu0 }
 0x3a6   :  { %v9478_v4 = vpop.f32.mrb[64].mxu1  ;;  %v9440_v59 = vadd.f32 %v9439_v31, %v9438_v57  ;;  %v9441_v6 = vpop.f32.mrb[58].mxu0 }
 0x3a7   :  { %v9479_v38 = vpop.f32.mrb[65].mxu1  ;;  %v9442_v51 = vpop.f32.mrb[59].mxu0 }
 0x3a8   :  { %v9480_v49 = vadd.f32 %v9479_v38, %v9478_v4  ;;  %v9481_v47 = vpop.f32.mrb[66].mxu1  ;;  %v6463_v40 = vadd.f32 %v9440_v59, %v9400_v18  ;;  %v9443_v26 = vadd.f32 %v9442_v51, %v9441_v6 }
 0x3a9   :  { %v9482_v11 = vpop.f32.mrb[67].mxu1 }
 0x3aa   :  { %v9483_v42 = vadd.f32 %v9482_v11, %v9481_v47  ;;  %v6466_v3 = vadd.f32 %v9443_v26, %v9403_v39  ;;  %v6527_v33 = vadd.f32 %v9480_v49, %v6463_v40 }
 0x3ac   :  { %v6530_v56 = vadd.f32 %v9483_v42, %v6466_v3  ;;  %v9444_v23 = vpop.f32.mrb[60].mxu0 }
 0x3ad   :  { %v9445_v44 = vpop.f32.mrb[61].mxu0 }
 0x3ae   :  { %v9484_v16 = vpop.f32.mrb[68].mxu1  ;;  %v9446_v7 = vadd.f32 %v9445_v44, %v9444_v23  ;;  %v9447_v15 = vpop.f32.mrb[62].mxu0 }
 0x3af   :  { %v9485_v34 = vpop.f32.mrb[69].mxu1  ;;  %v9448_v27 = vpop.f32.mrb[63].mxu0 }
 0x3b0   :  { %v9486_v43 = vadd.f32 %v9485_v34, %v9484_v16  ;;  %v9487_v14 = vpop.f32.mrb[70].mxu1  ;;  %v6471_v32 = vadd.f32 %v9446_v7, %v9406_v53 }
 0x3b1   :  { %v9488_v25 = vpop.f32.mrb[71].mxu1 }
 0x3b2   :  { %v6535_v8 = vadd.f32 %v9486_v43, %v6471_v32 }
 0x3b4   :  { %v9506_v54 = vpop.f32.mrb[64].mxu0 }
 0x3b5   :  { %v9507_v18 = vpop.f32.mrb[65].mxu0 }
 0x3b6   :  { %v9546_v57 = vpop.f32.mrb[72].mxu1  ;;  %v9508_v31 = vadd.f32 %v9507_v18, %v9506_v54  ;;  %v9509_v39 = vpop.f32.mrb[66].mxu0 }
 0x3b7   :  { %v9547_v4 = vpop.f32.mrb[73].mxu1  ;;  %v9510_v6 = vpop.f32.mrb[67].mxu0 }
 0x3b8   :  { %v9548_v38 = vadd.f32 %v9547_v4, %v9546_v57  ;;  %v9549_v59 = vpop.f32.mrb[74].mxu1  ;;  %v6575_v47 = vadd.f32 %v9508_v31, %v6511_v0  ;;  %v9511_v51 = vadd.f32 %v9510_v6, %v9509_v39 }
 0x3b9   :  { %v9550_v49 = vpop.f32.mrb[75].mxu1 }
 0x3ba   :  { %v9551_v11 = vadd.f32 %v9550_v49, %v9549_v59  ;;  %v6578_v40 = vadd.f32 %v9511_v51, %v6514_v52  ;;  %v6639_v26 = vadd.f32 %v9548_v38, %v6575_v47 }
 0x3bc   :  { %v6642_v42 = vadd.f32 %v9551_v11, %v6578_v40  ;;  %v9512_v3 = vpop.f32.mrb[68].mxu0 }
 0x3bd   :  { %v9513_v53 = vpop.f32.mrb[69].mxu0 }
 0x3be   :  { %v9552_v23 = vpop.f32.mrb[76].mxu1  ;;  %v9514_v44 = vadd.f32 %v9513_v53, %v9512_v3  ;;  %v9515_v34 = vpop.f32.mrb[70].mxu0 }
 0x3bf   :  { %v9553_v16 = vpop.f32.mrb[77].mxu1  ;;  %v9516_v43 = vpop.f32.mrb[71].mxu0 }
 0x3c0   :  { %v9554_v7 = vadd.f32 %v9553_v16, %v9552_v23  ;;  %v9555_v15 = vpop.f32.mrb[78].mxu1  ;;  %v6583_v27 = vadd.f32 %v9514_v44, %v6519_v30  ;;  %v9517_v25 = vadd.f32 %v9516_v43, %v9515_v34 }
 0x3c1   :  { %v9556_v14 = vpop.f32.mrb[79].mxu1 }
 0x3c2   :  { %v9557_v32 = vadd.f32 %v9556_v14, %v9555_v15  ;;  %v6586_v54 = vadd.f32 %v9517_v25, %v6522_v46  ;;  %v6647_v0 = vadd.f32 %v9554_v7, %v6583_v27 }
 0x3c4   :  { %v6650_v57 = vadd.f32 %v9557_v32, %v6586_v54  ;;  %v9518_v18 = vpop.f32.mrb[72].mxu0 }
 0x3c5   :  { %v9519_v4 = vpop.f32.mrb[73].mxu0 }
 0x3c6   :  { %v9558_v52 = vpop.f32.mrb[80].mxu1  ;;  %v9520_v39 = vadd.f32 %v9519_v4, %v9518_v18  ;;  %v9521_v38 = vpop.f32.mrb[74].mxu0 }
 0x3c7   :  { %v9559_v31 = vpop.f32.mrb[81].mxu1  ;;  %v9522_v49 = vpop.f32.mrb[75].mxu0 }
 0x3c8   :  { %v9560_v59 = vadd.f32 %v9559_v31, %v9558_v52  ;;  %v9561_v6 = vpop.f32.mrb[82].mxu1  ;;  %v6591_v51 = vadd.f32 %v9520_v39, %v6527_v33  ;;  %v9523_v11 = vadd.f32 %v9522_v49, %v9521_v38 }
 0x3c9   :  { %v9562_v47 = vpop.f32.mrb[83].mxu1 }
 0x3ca   :  { %v9563_v40 = vadd.f32 %v9562_v47, %v9561_v6  ;;  %v6594_v3 = vadd.f32 %v9523_v11, %v6530_v56  ;;  %v6655_v30 = vadd.f32 %v9560_v59, %v6591_v51 }
 0x3cc   :  { %v6658_v23 = vadd.f32 %v9563_v40, %v6594_v3  ;;  %v9524_v53 = vpop.f32.mrb[76].mxu0 }
 0x3cd   :  { %v9525_v16 = vpop.f32.mrb[77].mxu0 }
 0x3ce   :  { %v9564_v46 = vpop.f32.mrb[84].mxu1  ;;  %v9526_v34 = vadd.f32 %v9525_v16, %v9524_v53  ;;  %v9527_v7 = vpop.f32.mrb[78].mxu0 }
 0x3cf   :  { %v9565_v44 = vpop.f32.mrb[85].mxu1  ;;  %v9528_v14 = vpop.f32.mrb[79].mxu0 }
 0x3d0   :  { %v9566_v15 = vadd.f32 %v9565_v44, %v9564_v46  ;;  %v9567_v43 = vpop.f32.mrb[86].mxu1  ;;  %v6599_v25 = vadd.f32 %v9526_v34, %v6535_v8 }
 0x3d1   :  { %v9568_v27 = vpop.f32.mrb[87].mxu1 }
 0x3d2   :  { %v6663_v32 = vadd.f32 %v9566_v15, %v6599_v25 }
 0x3d4   :  { %v9586_v54 = vpop.f32.mrb[80].mxu0 }
 0x3d5   :  { %v9587_v33 = vpop.f32.mrb[81].mxu0 }
 0x3d6   :  { %v9626_v18 = vpop.f32.mrb[88].mxu1  ;;  %v9588_v4 = vadd.f32 %v9587_v33, %v9586_v54  ;;  %v9589_v56 = vpop.f32.mrb[82].mxu0 }
 0x3d7   :  { %v9627_v52 = vpop.f32.mrb[89].mxu1  ;;  %v9590_v38 = vpop.f32.mrb[83].mxu0 }
 0x3d8   :  { %v9628_v31 = vadd.f32 %v9627_v52, %v9626_v18  ;;  %v9629_v39 = vpop.f32.mrb[90].mxu1  ;;  %v6703_v6 = vadd.f32 %v9588_v4, %v6639_v26  ;;  %v9591_v49 = vadd.f32 %v9590_v38, %v9589_v56 }
 0x3d9   :  { %v9630_v59 = vpop.f32.mrb[91].mxu1 }
 0x3da   :  { %v9631_v47 = vadd.f32 %v9630_v59, %v9629_v39  ;;  %v6706_v51 = vadd.f32 %v9591_v49, %v6642_v42  ;;  %v6767_v11 = vadd.f32 %v9628_v31, %v6703_v6 }
 0x3dc   :  { %v6770_v40 = vadd.f32 %v9631_v47, %v6706_v51  ;;  %v9592_v3 = vpop.f32.mrb[84].mxu0 }
 0x3dd   :  { %v9593_v8 = vpop.f32.mrb[85].mxu0 }
 0x3de   :  { %v9632_v53 = vpop.f32.mrb[92].mxu1  ;;  %v9594_v16 = vadd.f32 %v9593_v8, %v9592_v3  ;;  %v9595_v44 = vpop.f32.mrb[86].mxu0 }
 0x3df   :  { %v9633_v46 = vpop.f32.mrb[93].mxu1  ;;  %v9596_v15 = vpop.f32.mrb[87].mxu0 }
 0x3e0   :  { %v9634_v34 = vadd.f32 %v9633_v46, %v9632_v53  ;;  %v9635_v7 = vpop.f32.mrb[94].mxu1  ;;  %v6711_v14 = vadd.f32 %v9594_v16, %v6647_v0  ;;  %v9597_v27 = vadd.f32 %v9596_v15, %v9595_v44 }
 0x3e1   :  { %v9636_v43 = vpop.f32.mrb[95].mxu1 }
 0x3e2   :  { %v9637_v25 = vadd.f32 %v9636_v43, %v9635_v7  ;;  %v6714_v54 = vadd.f32 %v9597_v27, %v6650_v57  ;;  %v6775_v26 = vadd.f32 %v9634_v34, %v6711_v14 }
 0x3e4   :  { %v6778_v18 = vadd.f32 %v9637_v25, %v6714_v54  ;;  %v9598_v33 = vpop.f32.mrb[88].mxu0 }
 0x3e5   :  { %v9599_v52 = vpop.f32.mrb[89].mxu0 }
 0x3e6   :  { %v9638_v42 = vpop.f32.mrb[96].mxu1  ;;  %v9600_v56 = vadd.f32 %v9599_v52, %v9598_v33  ;;  %v9601_v31 = vpop.f32.mrb[90].mxu0 }
 0x3e7   :  { %v9639_v4 = vpop.f32.mrb[97].mxu1  ;;  %v9602_v59 = vpop.f32.mrb[91].mxu0 }
 0x3e8   :  { %v9640_v39 = vadd.f32 %v9639_v4, %v9638_v42  ;;  %v9641_v38 = vpop.f32.mrb[98].mxu1  ;;  %v6719_v49 = vadd.f32 %v9600_v56, %v6655_v30  ;;  %v9603_v47 = vadd.f32 %v9602_v59, %v9601_v31 }
 0x3e9   :  { %v9642_v6 = vpop.f32.mrb[99].mxu1 }
 0x3ea   :  { %v9643_v51 = vadd.f32 %v9642_v6, %v9641_v38  ;;  %v6722_v3 = vadd.f32 %v9603_v47, %v6658_v23  ;;  %v6783_v0 = vadd.f32 %v9640_v39, %v6719_v49 }
 0x3ec   :  { %v6786_v53 = vadd.f32 %v9643_v51, %v6722_v3  ;;  %v9604_v8 = vpop.f32.mrb[92].mxu0 }
 0x3ed   :  { %v9605_v46 = vpop.f32.mrb[93].mxu0 }
 0x3ee   :  { %v9644_v57 = vpop.f32.mrb[100].mxu1  ;;  %v9606_v44 = vadd.f32 %v9605_v46, %v9604_v8  ;;  %v9607_v34 = vpop.f32.mrb[94].mxu0 }
 0x3ef   :  { %v9645_v16 = vpop.f32.mrb[101].mxu1  ;;  %v9608_v43 = vpop.f32.mrb[95].mxu0 }
 0x3f0   :  { %v9646_v7 = vadd.f32 %v9645_v16, %v9644_v57  ;;  %v9647_v15 = vpop.f32.mrb[102].mxu1  ;;  %v6727_v27 = vadd.f32 %v9606_v44, %v6663_v32 }
 0x3f1   :  { %v9648_v14 = vpop.f32.mrb[103].mxu1 }
 0x3f2   :  { %v6791_v25 = vadd.f32 %v9646_v7, %v6727_v27 }
 0x3f4   :  { %v9666_v54 = vpop.f32.mrb[96].mxu0 }
 0x3f5   :  { %v9667_v30 = vpop.f32.mrb[97].mxu0 }
 0x3f6   :  { %v9706_v33 = vpop.f32.mrb[104].mxu1  ;;  %v9668_v52 = vadd.f32 %v9667_v30, %v9666_v54  ;;  %v9669_v23 = vpop.f32.mrb[98].mxu0 }
 0x3f7   :  { %v9707_v42 = vpop.f32.mrb[105].mxu1  ;;  %v9670_v31 = vpop.f32.mrb[99].mxu0 }
 0x3f8   :  { %v9708_v4 = vadd.f32 %v9707_v42, %v9706_v33  ;;  %v9709_v56 = vpop.f32.mrb[106].mxu1  ;;  %v6831_v38 = vadd.f32 %v9668_v52, %v6767_v11  ;;  %v9671_v59 = vadd.f32 %v9670_v31, %v9669_v23 }
 0x3f9   :  { %v9710_v39 = vpop.f32.mrb[107].mxu1 }
 0x3fa   :  { %v9711_v6 = vadd.f32 %v9710_v39, %v9709_v56  ;;  %v6834_v49 = vadd.f32 %v9671_v59, %v6770_v40  ;;  %v6895_v47 = vadd.f32 %v9708_v4, %v6831_v38 }
 0x3fc   :  { %v6898_v51 = vadd.f32 %v9711_v6, %v6834_v49  ;;  %v9672_v3 = vpop.f32.mrb[100].mxu0 }
 0x3fd   :  { %v9673_v32 = vpop.f32.mrb[101].mxu0 }
 0x3fe   :  { %v9712_v8 = vpop.f32.mrb[108].mxu1  ;;  %v9674_v46 = vadd.f32 %v9673_v32, %v9672_v3  ;;  %v9675_v16 = vpop.f32.mrb[102].mxu0 }
 0x3ff   :  { %v9713_v57 = vpop.f32.mrb[109].mxu1  ;;  %v9676_v7 = vpop.f32.mrb[103].mxu0 }
 0x400   :  { %v9714_v44 = vadd.f32 %v9713_v57, %v9712_v8  ;;  %v9715_v34 = vpop.f32.mrb[110].mxu1  ;;  %v6839_v43 = vadd.f32 %v9674_v46, %v6775_v26  ;;  %v9677_v14 = vadd.f32 %v9676_v7, %v9675_v16 }
 0x401   :  { %v9716_v15 = vpop.f32.mrb[111].mxu1 }
 0x402   :  { %v9717_v27 = vadd.f32 %v9716_v15, %v9715_v34  ;;  %v6842_v54 = vadd.f32 %v9677_v14, %v6778_v18  ;;  %v6903_v11 = vadd.f32 %v9714_v44, %v6839_v43 }
 0x404   :  { %v6906_v33 = vadd.f32 %v9717_v27, %v6842_v54  ;;  %v9678_v30 = vpop.f32.mrb[104].mxu0 }
 0x405   :  { %v9679_v42 = vpop.f32.mrb[105].mxu0 }
 0x406   :  { %v9718_v40 = vpop.f32.mrb[112].mxu1  ;;  %v9680_v23 = vadd.f32 %v9679_v42, %v9678_v30  ;;  %v9681_v4 = vpop.f32.mrb[106].mxu0 }
 0x407   :  { %v9719_v52 = vpop.f32.mrb[113].mxu1  ;;  %v9682_v39 = vpop.f32.mrb[107].mxu0 }
 0x408   :  { %v9720_v56 = vadd.f32 %v9719_v52, %v9718_v40  ;;  %v9721_v31 = vpop.f32.mrb[114].mxu1  ;;  %v6847_v59 = vadd.f32 %v9680_v23, %v6783_v0  ;;  %v9683_v6 = vadd.f32 %v9682_v39, %v9681_v4 }
 0x409   :  { %v9722_v38 = vpop.f32.mrb[115].mxu1 }
 0x40a   :  { %v9723_v49 = vadd.f32 %v9722_v38, %v9721_v31  ;;  %v6850_v3 = vadd.f32 %v9683_v6, %v6786_v53  ;;  %v6911_v26 = vadd.f32 %v9720_v56, %v6847_v59 }
 0x40c   :  { %v6914_v8 = vadd.f32 %v9723_v49, %v6850_v3  ;;  %v9684_v32 = vpop.f32.mrb[108].mxu0 }
 0x40d   :  { %v9685_v57 = vpop.f32.mrb[109].mxu0 }
 0x40e   :  { %v9724_v18 = vpop.f32.mrb[116].mxu1  ;;  %v9686_v16 = vadd.f32 %v9685_v57, %v9684_v32  ;;  %v9687_v44 = vpop.f32.mrb[110].mxu0 }
 0x40f   :  { %v9725_v46 = vpop.f32.mrb[117].mxu1  ;;  %v9688_v15 = vpop.f32.mrb[111].mxu0 }
 0x410   :  { %v9726_v34 = vadd.f32 %v9725_v46, %v9724_v18  ;;  %v9727_v7 = vpop.f32.mrb[118].mxu1  ;;  %v6855_v14 = vadd.f32 %v9686_v16, %v6791_v25 }
 0x411   :  { %v9728_v43 = vpop.f32.mrb[119].mxu1 }
 0x412   :  { %v6919_v27 = vadd.f32 %v9726_v34, %v6855_v14 }
 0x414   :  { %v9746_v54 = vpop.f32.mrb[112].mxu0 }
 0x415   :  { %v9747_v0 = vpop.f32.mrb[113].mxu0 }
 0x416   :  { %v9786_v30 = vpop.f32.mrb[120].mxu1  ;;  %v9748_v42 = vadd.f32 %v9747_v0, %v9746_v54  ;;  %v9749_v53 = vpop.f32.mrb[114].mxu0 }
 0x417   :  { %v9787_v40 = vpop.f32.mrb[121].mxu1  ;;  %v9750_v4 = vpop.f32.mrb[115].mxu0 }
 0x418   :  { %v9788_v52 = vadd.f32 %v9787_v40, %v9786_v30  ;;  %v9789_v23 = vpop.f32.mrb[122].mxu1  ;;  %v6959_v31 = vadd.f32 %v9748_v42, %v6895_v47  ;;  %v9751_v39 = vadd.f32 %v9750_v4, %v9749_v53 }
 0x419   :  { %v9790_v56 = vpop.f32.mrb[123].mxu1 }
 0x41a   :  { %v9791_v38 = vadd.f32 %v9790_v56, %v9789_v23  ;;  %v6962_v59 = vadd.f32 %v9751_v39, %v6898_v51  ;;  %v7023_v6 = vadd.f32 %v9788_v52, %v6959_v31 }
 0x41c   :  { %v7026_v49 = vadd.f32 %v9791_v38, %v6962_v59  ;;  %v9752_v3 = vpop.f32.mrb[116].mxu0 }
 0x41d   :  { %v9753_v25 = vpop.f32.mrb[117].mxu0 }
 0x41e   :  { %v9792_v32 = vpop.f32.mrb[124].mxu1  ;;  %v9754_v57 = vadd.f32 %v9753_v25, %v9752_v3  ;;  %v9755_v46 = vpop.f32.mrb[118].mxu0 }
 0x41f   :  { %v9793_v18 = vpop.f32.mrb[125].mxu1  ;;  %v9756_v34 = vpop.f32.mrb[119].mxu0 }
 0x420   :  { %v9794_v16 = vadd.f32 %v9793_v18, %v9792_v32  ;;  %v9795_v44 = vpop.f32.mrb[126].mxu1  ;;  %v6967_v15 = vadd.f32 %v9754_v57, %v6903_v11  ;;  %v9757_v43 = vadd.f32 %v9756_v34, %v9755_v46 }
 0x421   :  { %v9796_v7 = vpop.f32.mrb[127].mxu1 }
 0x422   :  { %v9797_v14 = vadd.f32 %v9796_v7, %v9795_v44  ;;  %v6970_v54 = vadd.f32 %v9757_v43, %v6906_v33  ;;  %v7031_v47 = vadd.f32 %v9794_v16, %v6967_v15 }
 0x424   :  { %v15233_v30 = vadd.f32 %v9797_v14, %v6970_v54  ;;  %v9758_v51 = vpop.f32.mrb[120].mxu0 }
 0x425   :  { %v9759_v40 = vpop.f32.mrb[121].mxu0 }
 0x426   :  { %v9798_v0 = vpop.f32.mrb[128].mxu1  ;;  %v9760_v53 = vadd.f32 %v9759_v40, %v9758_v51  ;;  %v9761_v52 = vpop.f32.mrb[122].mxu0 }
 0x427   :  { %v9799_v42 = vpop.f32.mrb[129].mxu1  ;;  %v9762_v56 = vpop.f32.mrb[123].mxu0 }
 0x428   :  { %v9800_v23 = vadd.f32 %v9799_v42, %v9798_v0  ;;  %v9801_v4 = vpop.f32.mrb[130].mxu1  ;;  %v6975_v39 = vadd.f32 %v9760_v53, %v6911_v26  ;;  %v9763_v38 = vadd.f32 %v9762_v56, %v9761_v52 }
 0x429   :  { %v9802_v31 = vpop.f32.mrb[131].mxu1 }
 0x42a   :  { %v9803_v59 = vadd.f32 %v9802_v31, %v9801_v4  ;;  %v6978_v11 = vadd.f32 %v9763_v38, %v6914_v8  ;;  %v15235_v3 = vadd.f32 %v9800_v23, %v6975_v39 }
 0x42c   :  { %v15237_v33 = vadd.f32 %v9803_v59, %v6978_v11  ;;  %v9764_v32 = vpop.f32.mrb[124].mxu0  ;;  %v7862_v11 = vld [vmem:[%s15293_s5] ss:$0 sm:$0xff] }
 0x42d   :  { %v9765_v18 = vpop.f32.mrb[125].mxu0 }
 0x42e   :  { %v9804_v25 = vpop.f32.mrb[132].mxu1  ;;  %v9766_v46 = vadd.f32 %v9765_v18, %v9764_v32  ;;  %v9767_v16 = vpop.f32.mrb[126].mxu0 }
 0x42f   :  { %v9805_v57 = vpop.f32.mrb[133].mxu1  ;;  %v9768_v7 = vpop.f32.mrb[127].mxu0 }
 0x430   :  { %v9806_v44 = vadd.f32 %v9805_v57, %v9804_v25  ;;  %v9807_v34 = vpop.f32.mrb[134].mxu1  ;;  %v6983_v43 = vadd.f32 %v9766_v46, %v6919_v27 }
 0x431   :  { %v9808_v15 = vpop.f32.mrb[135].mxu1 }
 0x432   :  { %v15239_v14 = vadd.f32 %v9806_v44, %v6983_v43 }
 0x434   :  { %v9826_v26 = vpop.f32.mrb[128].mxu0 }
 0x435   :  { %v9827_v8 = vpop.f32.mrb[129].mxu0 }
 0x436   :  { %v9952_v54 = vpop.f32.mrb[136].mxu1  ;;  %v9828_v0 = vadd.f32 %v9827_v8, %v9826_v26  ;;  %v9829_v40 = vpop.f32.mrb[130].mxu0 }
 0x437   :  { %v7150_v51 = vpop.f32.mrb[137].mxu1  ;;  %v9830_v53 = vpop.f32.mrb[131].mxu0 }
 0x438   :  { %v9953_v42 = vpop.f32.mrb[138].mxu1  ;;  %v9831_v23 = vadd.f32 %v9830_v53, %v9829_v40  ;;  %v7087_v4 = vadd.f32 %v9828_v0, %v7023_v6 }
 0x439   :  { %v7153_v52 = vpop.f32.mrb[139].mxu1 }
 0x43a   :  { %v7151_v56 = vadd.f32 %v7150_v51, %v7087_v4  ;;  %v7090_v31 = vadd.f32 %v9831_v23, %v7026_v49 }
 0x43c   :  { %v7187_v39 = vmax.f32 %v15220_v62, %v7151_v56  ;;  %v7154_v38 = vadd.f32 %v7153_v52, %v7090_v31  ;;  %v9832_v59 = vpop.f32.mrb[132].mxu0 }
 0x43d   :  { %v9833_v32 = vpop.f32.mrb[133].mxu0 }
 0x43e   :  { %v9956_v27 = vpop.f32.mrb[140].mxu1  ;;  %v7194_v18 = vmax.f32 %v7180_v9, %v7187_v39  ;;  %v7188_v57 = vmax.f32 %v15225_v48, %v7154_v38  ;;  %v9834_v6 = vadd.f32 %v9833_v32, %v9832_v59  ;;  %v9835_v46 = vpop.f32.mrb[134].mxu0 }
 0x43f   :  { %v7166_v25 = vpop.f32.mrb[141].mxu1  ;;  %v9836_v16 = vpop.f32.mrb[135].mxu0 }
 0x440   :  { %v9957_v49 = vpop.f32.mrb[142].mxu1  ;;  %v7208_v44 = vadd.f32 %v7862_v11, %v7194_v18  ;;  %v7195_v34 = vmax.f32 %v7181_v61, %v7188_v57  ;;  %v7095_v7 = vadd.f32 %v9834_v6, %v7031_v47  ;;  %v9837_v15 = vadd.f32 %v9836_v16, %v9835_v46 }
 0x441   :  { %v7169_v62 = vpop.f32.mrb[143].mxu1 }
 0x442   :  { %v7209_v43 = vadd.f32 %v7862_v11, %v7195_v34  ;;  %v7159_v26 = vadd.f32 %v9952_v54, %v7095_v7  ;;  %v7098_v8 = vadd.f32 %v9837_v15, %v15233_v30  ;;  %v7215_v19 = vmax.f32 %v7208_v44, 0.0 }
 0x444   :  { %v7216_v10 = vmax.f32 %v7209_v43, 0.0  ;;  %v7189_v9 = vmax.f32 %v15217_v45, %v7159_v26  ;;  %v7162_v48 = vadd.f32 %v9953_v42, %v7098_v8  ;;  %v9838_v51 = vpop.f32.mrb[136].mxu0 }
 0x445   :  { %v9839_v0 = vpop.f32.mrb[137].mxu0 }
 0x446   :  { %v7880_v40 = vpack.c.bf16 %v7216_v10, %v7215_v19  ;;  %v7196_v53 = vmax.f32 %v7182_v50, %v7189_v9  ;;  %v7190_v28 = vmax.f32 %v15222_v63, %v7162_v48  ;;  %v9840_v29 = vadd.f32 %v9839_v0, %v9838_v51  ;;  %v9841_v61 = vpop.f32.mrb[138].mxu0 }
 0x447   :  { %v9842_v47 = vpop.f32.mrb[139].mxu0 }
 0x448   :  { %7881 = vst [vmem:[%s15294_s6] sm:$0xff] %v7880_v40   ;;  %v7210_v30 = vadd.f32 %v7862_v11, %v7196_v53  ;;  %v7197_v45 = vmax.f32 %v7183_v55, %v7190_v28  ;;  %v9843_v54 = vadd.f32 %v9842_v47, %v9841_v61  ;;  %v7103_v42 = vadd.f32 %v9840_v29, %v15235_v3 }
 0x44a   :  { %v7211_v52 = vadd.f32 %v7862_v11, %v7197_v45  ;;  %v7167_v12 = vadd.f32 %v7166_v25, %v7103_v42  ;;  %v7106_v37 = vadd.f32 %v9843_v54, %v15237_v33  ;;  %v7217_v50 = vmax.f32 %v7210_v30, 0.0 }
 0x44c   :  { %v7218_v63 = vmax.f32 %v7211_v52, 0.0  ;;  %v7191_v23 = vmax.f32 %v15229_v1, %v7167_v12  ;;  %v7170_v4 = vadd.f32 %v7169_v62, %v7106_v37  ;;  %v9844_v56 = vpop.f32.mrb[140].mxu0 }
 0x44d   :  { %v9845_v31 = vpop.f32.mrb[141].mxu0 }
 0x44e   :  { %v7885_v39 = vpack.c.bf16 %v7218_v63, %v7217_v50  ;;  %v7198_v21 = vmax.f32 %v7184_v5, %v7191_v23  ;;  %v7192_v60 = vmax.f32 %v15231_v20, %v7170_v4  ;;  %v9846_v55 = vadd.f32 %v9845_v31, %v9844_v56  ;;  %v9847_v3 = vpop.f32.mrb[142].mxu0 }
 0x44f   :  { %v9848_v38 = vpop.f32.mrb[143].mxu0 }
 0x450   :  { %7892 = vst [vmem:[%s15294_s6 + $0x8] sm:$0xff] %v7885_v39   ;;  %v7212_v33 = vadd.f32 %v7862_v11, %v7198_v21  ;;  %v7199_v1 = vmax.f32 %v7185_v22, %v7192_v60  ;;  %v7111_v59 = vadd.f32 %v9846_v55, %v15239_v14 }
 0x452   :  { %v7213_v32 = vadd.f32 %v7862_v11, %v7199_v1  ;;  %v7175_v25 = vadd.f32 %v9956_v27, %v7111_v59  ;;  %v7219_v41 = vmax.f32 %v7212_v33, 0.0 }
 0x454   :  { %v7220_v2 = vmax.f32 %v7213_v32, 0.0  ;;  %v7193_v5 = vmax.f32 %v15227_v17, %v7175_v25 }
 0x456   :  { %v7890_v20 = vpack.c.bf16 %v7220_v2, %v7219_v41  ;;  %v7200_v18 = vmax.f32 %v7186_v24, %v7193_v5 }
 0x458   :  { %7893 = vst [vmem:[%s15294_s6 + $0x10] sm:$0xff] %v7890_v20   ;;  %v7214_v57 = vadd.f32 %v7862_v11, %v7200_v18 }
 0x45a   :  { %v7221_v58 = vmax.f32 %v7214_v57, 0.0 }
 0x45c   :  { %v7876_v13 = vpack.c.bf16 %v7221_v58, %v7221_v58 }
 0x45e   :  { %7257 = vst [vmem:[%s15294_s6 + $0x18] sm:$0xf] %v7876_v13 }

</bundles_post_ra>
